<compile_context>
chip_gen: v6e
topology: v6e:2x2x1
jax: 0.10.0
libtpu: 0.0.40
codegen_flags: <defaults>
</compile_context>

<pallas_src>
import functools

import jax
import jax.numpy as jnp
from jax import lax
from jax.experimental import pallas as pl
from jax.experimental.pallas import tpu as pltpu

# scaled-down but structurally identical hyper-parameters
DIM = 128            # channel dim (original module: 256)
FTS = 16             # feature spatial size (original: 32)
N_TOK = FTS * FTS    # tokens per image


# ================================ Pallas kernel ================================

def _fused_cross_attn_kernel(xt_ref, yt_ref, sm_ref, qm_ref,
                             wqkv_ref, bqkv_ref, w1_ref, b1_ref, w2_ref, b2_ref,
                             lnw_ref, lnb_ref, ox_ref, oy_ref, *, dim, c8, n_tok):
    f32 = jnp.float32
    bf16 = jnp.bfloat16

    def layernorm(t):
        # LayerNorm over the whole (C, H*W) slab.  Lane-dense row reductions first,
        # then a small (C,1) reduce.  ln_w/ln_b are re-read at point of use
        # (32 vregs each -> never hold them live across attention/MLP).
        n = t.shape[0] * t.shape[1]
        rs = jnp.sum(t, axis=1, keepdims=True)
        rss = jnp.sum(t * t, axis=1, keepdims=True)
        mean = jnp.sum(rs) / n
        var = jnp.sum(rss) / n - mean * mean
        w = lnw_ref[...].astype(f32)
        b = lnb_ref[...].astype(f32)
        return (t - mean) * lax.rsqrt(var + 1e-5) * w + b

    # ---- packed QKV projection for BOTH branches in one MXU pass --------------
    # channel-major activations: rows = channels, columns = tokens (lane-dense).
    cat16 = jnp.concatenate([xt_ref[...], yt_ref[...]], axis=1).astype(bf16)      # (C, 2N)
    proj = jnp.dot(wqkv_ref[...], cat16,
                   preferred_element_type=f32) + bqkv_ref[...]                    # (2c8+C, 2N)
    qt = proj[0:c8].T.astype(bf16)                 # (2N, c8) token-major q (small XLU transpose)
    k = proj[c8:2 * c8].astype(bf16)               # (c8, 2N)
    v = proj[2 * c8:2 * c8 + dim].astype(bf16)     # (C,  2N)

    def attention(q_tm, k_cm, v_cm, m_row):
        # q_tm (N, c8), k_cm (c8, N), v_cm (C, N), m_row (1, N)
        logits = jnp.dot(q_tm, k_cm, preferred_element_type=f32)                  # (Nq, Nk)
        mx = jnp.max(logits, axis=1, keepdims=True)
        e = jnp.exp(logits - mx)
        attn = (e * pl.reciprocal(jnp.sum(e, axis=1, keepdims=True),
                                  approx=True)).astype(bf16)                      # bf16 right away
        out = lax.dot_general(v_cm, attn, (((1,), (1,)), ((), ())),
                              preferred_element_type=f32)                         # (C, Nq)
        return out * m_row

    # branch 0: q from x, k/v from y (s_mask);  branch 1: q from y, k/v from x (q_mask)
    o0 = attention(qt[:n_tok], k[:, n_tok:], v[:, n_tok:], sm_ref[...])
    o1 = attention(qt[n_tok:], k[:, :n_tok], v[:, :n_tok], qm_ref[...])

    n0 = layernorm(xt_ref[...] + o0)
    n1 = layernorm(yt_ref[...] + o1)

    # ---- MLP: both branches stacked along tokens -> one weight pass per layer --
    ncat = jnp.concatenate([n0, n1], axis=1).astype(bf16)                         # (C, 2N)
    h = jnp.maximum(jnp.dot(w1_ref[...], ncat, preferred_element_type=f32)
                    + b1_ref[...], 0.0)
    mlp = jnp.dot(w2_ref[...], h.astype(bf16), preferred_element_type=f32) + b2_ref[...]

    ox_ref[...] = layernorm(n0 + mlp[:, :n_tok])
    oy_ref[...] = layernorm(n1 + mlp[:, n_tok:])


# ============================== glue: mask resize ==============================

def _interp_matrix(n_in, n_out, align_corners):
    i = jnp.arange(n_out, dtype=jnp.float32)
    if align_corners:
        src = jnp.zeros((n_out,), jnp.float32) if n_out == 1 else i * (n_in - 1) / (n_out - 1)
    else:
        src = jnp.clip((i + 0.5) * n_in / n_out - 0.5, 0.0, n_in - 1)
    lo = jnp.clip(jnp.floor(src).astype(jnp.int32), 0, n_in - 1)
    hi = jnp.clip(lo + 1, 0, n_in - 1)
    w_hi = src - lo.astype(jnp.float32)
    w_lo = 1.0 - w_hi
    m = jnp.zeros((n_out, n_in), jnp.float32)
    m = m.at[jnp.arange(n_out), lo].add(w_lo)
    m = m.at[jnp.arange(n_out), hi].add(w_hi)
    return m


def bilinear_resize(x_nchw, size, align_corners):
    Ho, Wo = size
    Hi, Wi = x_nchw.shape[-2:]
    Mh = _interp_matrix(Hi, Ho, align_corners)
    Mw = _interp_matrix(Wi, Wo, align_corners)
    return jnp.einsum('oh,nchw,pw->ncop', Mh, x_nchw, Mw)


def _mask_row(m, H, W):
    # torch: mask.unsqueeze(0) -> F.interpolate(align_corners=True) -> broadcast mul
    # (broadcasts over batch AND channels, so one (1, H*W) row is enough).
    if m is None:
        return jnp.ones((1, H * W), jnp.float32)
    assert m.shape[0] == 1, "torch-style mask broadcast requires leading dim 1"
    m4 = bilinear_resize(m[None].astype(jnp.float32), (H, W), align_corners=True)  # (1,1,H,W)
    return m4.reshape(1, H * W)


# =============================== kernel wrapper ================================

def pack_params(p):
    """One-time packing (call outside the jitted forward)."""
    c8 = p['wq'].shape[0]
    C = p['wv'].shape[0]
    scale = float(c8) ** (-0.5)
    return dict(
        # q scale folded into weight AND bias, matching torch: (conv(x)) * scale
        wqkv=jnp.concatenate([p['wq'] * scale, p['wk'], p['wv']], axis=0).astype(jnp.bfloat16),
        bqkv=jnp.concatenate([p['bq'] * scale, p['bk'], p['bv']])[:, None].astype(jnp.float32),
        w1=p['w1'].astype(jnp.bfloat16), b1=p['b1'][:, None].astype(jnp.float32),
        w2=p['w2'].astype(jnp.bfloat16), b2=p['b2'][:, None].astype(jnp.float32),
        ln_w=p['ln_w'].reshape(C, -1).astype(jnp.bfloat16),
        ln_b=p['ln_b'].reshape(C, -1).astype(jnp.bfloat16),
    )


def cross_attention_pallas(x, y, packed, s_mask=None, q_mask=None):
    B, C, H, W = x.shape
    n_tok = H * W
    c8 = C // 8
    # channel-major token views: pure reshapes of contiguous NCHW -> no copies.
    xt = x.reshape(B, C, n_tok)
    yt = y.reshape(B, C, n_tok)
    sm = _mask_row(s_mask, H, W)
    qm = _mask_row(q_mask, H, W)

    per_b = lambda b: (b, 0, 0)
    const2 = lambda b: (0, 0)
    kern = functools.partial(_fused_cross_attn_kernel, dim=C, c8=c8, n_tok=n_tok)

    o0, o1 = pl.pallas_call(
        kern,
        out_shape=(jax.ShapeDtypeStruct((B, C, n_tok), jnp.float32),
                   jax.ShapeDtypeStruct((B, C, n_tok), jnp.float32)),
        grid=(B,),
        in_specs=[
            pl.BlockSpec((None, C, n_tok), per_b),      # x tokens (C, N)
            pl.BlockSpec((None, C, n_tok), per_b),      # y tokens (C, N)
            pl.BlockSpec((1, n_tok), const2),           # s_mask row
            pl.BlockSpec((1, n_tok), const2),           # q_mask row
            pl.BlockSpec((2 * c8 + C, C), const2),      # packed [Wq*s; Wk; Wv] bf16
            pl.BlockSpec((2 * c8 + C, 1), const2),      # packed biases f32
            pl.BlockSpec((C, C), const2),               # W1 bf16
            pl.BlockSpec((C, 1), const2),               # b1
            pl.BlockSpec((C, C), const2),               # W2 bf16
            pl.BlockSpec((C, 1), const2),               # b2
            pl.BlockSpec((C, n_tok), const2),           # ln_w bf16
            pl.BlockSpec((C, n_tok), const2),           # ln_b bf16
        ],
        out_specs=(pl.BlockSpec((None, C, n_tok), per_b),
                   pl.BlockSpec((None, C, n_tok), per_b)),
        compiler_params=pltpu.CompilerParams(dimension_semantics=("parallel",)),
    )(xt, yt, sm, qm,
      packed['wqkv'], packed['bqkv'], packed['w1'], packed['b1'],
      packed['w2'], packed['b2'], packed['ln_w'], packed['ln_b'])

    # free reshapes back to NCHW -- no slicing, no transposes
    return o0.reshape(B, C, H, W), o1.reshape(B, C, H, W)


# ============================ pure-JAX f32 reference ===========================

def cross_attention_ref(x, y, p, s_mask=None, q_mask=None):
    B, C, H, W = x.shape
    n = H * W
    scale = float(C // 8) ** (-0.5)

    def conv1x1(t_bcn, w, b):                      # w (out,in), b (out,)
        return jnp.einsum('oc,bcn->bon', w, t_bcn) + b[None, :, None]

    def ln(t):
        mean = jnp.mean(t, axis=(1, 2, 3), keepdims=True)
        var = jnp.mean((t - mean) ** 2, axis=(1, 2, 3), keepdims=True)
        return (t - mean) * lax.rsqrt(var + 1e-5) * p['ln_w'][None] + p['ln_b'][None]

    def branch(src, other, m):
        s = src.reshape(B, C, n)
        o = other.reshape(B, C, n)
        q = conv1x1(s, p['wq'], p['bq']) * scale                         # (B, c8, n)
        k = conv1x1(o, p['wk'], p['bk'])                                  # (B, c8, n)
        v = conv1x1(o, p['wv'], p['bv'])                                  # (B, C, n)
        attn = jax.nn.softmax(jnp.einsum('bci,bcj->bij', q, k), axis=-1)
        out = jnp.einsum('bcj,bij->bci', v, attn).reshape(B, C, H, W)
        if m is not None:
            m4 = bilinear_resize(m[None].astype(jnp.float32), (H, W), True)
            out = out * m4
        out = ln(src + out)
        h = jnp.maximum(jnp.einsum('oc,bchw->bohw', p['w1'], out)
                        + p['b1'][None, :, None, None], 0.0)
        out2 = jnp.einsum('oc,bchw->bohw', p['w2'], h) + p['b2'][None, :, None, None]
        return ln(out + out2)

    return branch(x, y, s_mask), branch(y, x, q_mask)


# ================================ parameter init ===============================

def init_params(key, dim, H, W):
    c8 = dim // 8
    ks = jax.random.split(key, 10)

    def nrm(k, shape, s=0.05):
        return jax.random.normal(k, shape, jnp.float32) * s

    return dict(                                   # torch layouts: conv/linear (out,in)
        wq=nrm(ks[0], (c8, dim), 0.1), bq=nrm(ks[1], (c8,), 0.01),
        wk=nrm(ks[2], (c8, dim), 0.1), bk=nrm(ks[3], (c8,), 0.01),
        wv=nrm(ks[4], (dim, dim)), bv=jnp.zeros((dim,), jnp.float32),
        w1=nrm(ks[5], (dim, dim)), b1=nrm(ks[6], (dim,), 0.01),
        w2=nrm(ks[7], (dim, dim)), b2=jnp.zeros((dim,), jnp.float32),
        ln_w=1.0 + nrm(ks[8], (dim, H, W), 0.1),   # nn.LayerNorm([C,H,W]) affine params
        ln_b=nrm(ks[9], (dim, H, W), 0.01),
    )


# ==================================== main =====================================

if __name__ == "__main__":
    key = jax.random.PRNGKey(0)
    kp, kx, ky, ksm, kqm = jax.random.split(key, 5)

    B = 2
    params = init_params(kp, DIM, FTS, FTS)
    x = jax.random.normal(kx, (B, DIM, FTS, FTS), jnp.float32)
    y = jax.random.normal(ky, (B, DIM, FTS, FTS), jnp.float32)
    s_mask = (jax.random.uniform(ksm, (1, 32, 32)) > 0.5).astype(jnp.float32)
    q_mask = (jax.random.uniform(kqm, (1, 32, 32)) > 0.5).astype(jnp.float32)

    packed = pack_params(params)                   # one-time pack, outside the jit

    fwd = jax.jit(cross_attention_pallas)
    outx, outy = fwd(x, y, packed, s_mask, q_mask)
    outx = jax.block_until_ready(outx)
    outy = jax.block_until_ready(outy)

    assert outx.shape == (B, DIM, FTS, FTS), outx.shape
    assert outy.shape == (B, DIM, FTS, FTS), outy.shape
    assert bool(jnp.all(jnp.isfinite(outx))) and bool(jnp.all(jnp.isfinite(outy)))

    rx, ry = cross_attention_ref(x, y, params, s_mask, q_mask)
    err = max(float(jnp.max(jnp.abs(outx - rx))), float(jnp.max(jnp.abs(outy - ry))))
    assert err < 0.15, f"max abs err vs f32 reference: {err}"

    print("KERNEL_OK")
</pallas_src>

<mosaic_0001>
module attributes {stable_mosaic.version = 11 : i64} {
  func.func private @main(%arg0: i32) attributes {dimension_semantics = [#tpu.dimension_semantics<core_parallel>], iteration_bounds = array<i64: 2>, tpu.core_type = #tpu.core_type<sc_scalar_subcore>, window_params = []} {
    return
  }
}

module attributes {stable_mosaic.version = 11 : i64} {
  func.func private @main(%arg0: i32) attributes {dimension_semantics = [#tpu.dimension_semantics<core_parallel>], iteration_bounds = array<i64: 2>, tpu.core_type = #tpu.core_type<sc_scalar_subcore>, window_params = []} {
    return
  }
}

module attributes {stable_mosaic.version = 11 : i64} {
  func.func @_fused_cross_attn_kernel(%arg0: i32, %arg1: memref<1x128x256xf32, #tpu.memory_space<vmem>>, %arg2: memref<1x128x256xf32, #tpu.memory_space<vmem>>, %arg3: memref<1x256xf32, #tpu.memory_space<vmem>>, %arg4: memref<1x256xf32, #tpu.memory_space<vmem>>, %arg5: memref<160x128xbf16, #tpu.memory_space<vmem>>, %arg6: memref<160x1xf32, #tpu.memory_space<vmem>>, %arg7: memref<128x128xbf16, #tpu.memory_space<vmem>>, %arg8: memref<128x1xf32, #tpu.memory_space<vmem>>, %arg9: memref<128x128xbf16, #tpu.memory_space<vmem>>, %arg10: memref<128x1xf32, #tpu.memory_space<vmem>>, %arg11: memref<128x256xbf16, #tpu.memory_space<vmem>>, %arg12: memref<128x256xbf16, #tpu.memory_space<vmem>>, %arg13: memref<1x128x256xf32, #tpu.memory_space<vmem>>, %arg14: memref<1x128x256xf32, #tpu.memory_space<vmem>>) attributes {dimension_semantics = [#tpu.dimension_semantics<parallel>], iteration_bounds = array<i64: 2>, scalar_prefetch = 0 : i64, scratch_operands = 0 : i64, tpu.core_type = #tpu.core_type<tc>, window_params = [{transform_indices = @transform_0, window_bounds = array<i64: 1, 128, 256>}, {transform_indices = @transform_1, window_bounds = array<i64: 1, 128, 256>}, {pipeline_mode = #tpu.pipeline_mode<synchronous>, transform_indices = @transform_2, window_bounds = array<i64: 1, 256>}, {pipeline_mode = #tpu.pipeline_mode<synchronous>, transform_indices = @transform_3, window_bounds = array<i64: 1, 256>}, {pipeline_mode = #tpu.pipeline_mode<synchronous>, transform_indices = @transform_4, window_bounds = array<i64: 160, 128>}, {pipeline_mode = #tpu.pipeline_mode<synchronous>, transform_indices = @transform_5, window_bounds = array<i64: 160, 1>}, {pipeline_mode = #tpu.pipeline_mode<synchronous>, transform_indices = @transform_6, window_bounds = array<i64: 128, 128>}, {pipeline_mode = #tpu.pipeline_mode<synchronous>, transform_indices = @transform_7, window_bounds = array<i64: 128, 1>}, {pipeline_mode = #tpu.pipeline_mode<synchronous>, transform_indices = @transform_8, window_bounds = array<i64: 128, 128>}, {pipeline_mode = #tpu.pipeline_mode<synchronous>, transform_indices = @transform_9, window_bounds = array<i64: 128, 1>}, {pipeline_mode = #tpu.pipeline_mode<synchronous>, transform_indices = @transform_10, window_bounds = array<i64: 128, 256>}, {pipeline_mode = #tpu.pipeline_mode<synchronous>, transform_indices = @transform_11, window_bounds = array<i64: 128, 256>}, {transform_indices = @transform_12, window_bounds = array<i64: 1, 128, 256>}, {transform_indices = @transform_13, window_bounds = array<i64: 1, 128, 256>}]} {
    %c0 = arith.constant 0 : index
    %c0_0 = arith.constant 0 : index
    %c0_1 = arith.constant 0 : index
    %0 = vector.load %arg1[%c0, %c0_0, %c0_1] : memref<1x128x256xf32, #tpu.memory_space<vmem>>, vector<1x128x256xf32>
    %1 = vector.shape_cast %0 : vector<1x128x256xf32> to vector<128x256xf32>
    %c0_2 = arith.constant 0 : index
    %c0_3 = arith.constant 0 : index
    %c0_4 = arith.constant 0 : index
    %2 = vector.load %arg2[%c0_2, %c0_3, %c0_4] : memref<1x128x256xf32, #tpu.memory_space<vmem>>, vector<1x128x256xf32>
    %3 = vector.shape_cast %2 : vector<1x128x256xf32> to vector<128x256xf32>
    %4 = tpu.concatenate %1, %3 in 1 : vector<128x256xf32>, vector<128x256xf32> -> vector<128x512xf32>
    %5 = arith.truncf %4 : vector<128x512xf32> to vector<128x512xbf16>
    %c0_5 = arith.constant 0 : index
    %c0_6 = arith.constant 0 : index
    %6 = vector.load %arg5[%c0_5, %c0_6] : memref<160x128xbf16, #tpu.memory_space<vmem>>, vector<160x128xbf16>
    %cst = arith.constant dense<0.000000e+00> : vector<160x512xf32>
    %7 = tpu.matmul %6, %5, %cst {dimension_numbers = #tpu.dot_dimension_numbers<[1], [0], [0], [1], [0, 0, 1, 1], [], []>} : vector<160x128xbf16>, vector<128x512xbf16>, vector<160x512xf32> -> vector<160x512xf32>
    %c0_7 = arith.constant 0 : index
    %c0_8 = arith.constant 0 : index
    %8 = vector.load %arg6[%c0_7, %c0_8] : memref<160x1xf32, #tpu.memory_space<vmem>>, vector<160x1xf32>
    %9 = vector.broadcast %8 : vector<160x1xf32> to vector<160x512xf32>
    %10 = arith.addf %7, %9 : vector<160x512xf32>
    %11 = vector.extract_strided_slice %10 {offsets = [0, 0], sizes = [16, 512], strides = [1, 1]} : vector<160x512xf32> to vector<16x512xf32>
    %12 = tpu.transpose %11, [1, 0] : vector<16x512xf32> -> vector<512x16xf32>
    %13 = arith.truncf %12 : vector<512x16xf32> to vector<512x16xbf16>
    %14 = vector.extract_strided_slice %10 {offsets = [16, 0], sizes = [16, 512], strides = [1, 1]} : vector<160x512xf32> to vector<16x512xf32>
    %15 = arith.truncf %14 : vector<16x512xf32> to vector<16x512xbf16>
    %16 = vector.extract_strided_slice %10 {offsets = [32, 0], sizes = [128, 512], strides = [1, 1]} : vector<160x512xf32> to vector<128x512xf32>
    %17 = arith.truncf %16 : vector<128x512xf32> to vector<128x512xbf16>
    %18 = vector.extract_strided_slice %13 {offsets = [0, 0], sizes = [256, 16], strides = [1, 1]} : vector<512x16xbf16> to vector<256x16xbf16>
    %19 = vector.extract_strided_slice %15 {offsets = [0, 256], sizes = [16, 256], strides = [1, 1]} : vector<16x512xbf16> to vector<16x256xbf16>
    %20 = vector.extract_strided_slice %17 {offsets = [0, 256], sizes = [128, 256], strides = [1, 1]} : vector<128x512xbf16> to vector<128x256xbf16>
    %c0_9 = arith.constant 0 : index
    %c0_10 = arith.constant 0 : index
    %21 = vector.load %arg3[%c0_9, %c0_10] : memref<1x256xf32, #tpu.memory_space<vmem>>, vector<1x256xf32>
    %cst_11 = arith.constant dense<0.000000e+00> : vector<256x256xf32>
    %22 = tpu.matmul %18, %19, %cst_11 {dimension_numbers = #tpu.dot_dimension_numbers<[1], [0], [0], [1], [0, 0, 1, 1], [], []>} : vector<256x16xbf16>, vector<16x256xbf16>, vector<256x256xf32> -> vector<256x256xf32>
    %cst_12 = arith.constant dense<0xFF800000> : vector<256xf32>
    %23 = vector.multi_reduction <maximumf>, %22, %cst_12 [1] : vector<256x256xf32> to vector<256xf32>
    %24 = vector.shape_cast %23 : vector<256xf32> to vector<256x1xf32>
    %25 = vector.broadcast %24 : vector<256x1xf32> to vector<256x256xf32>
    %26 = arith.subf %22, %25 : vector<256x256xf32>
    %27 = math.exp %26 : vector<256x256xf32>
    %cst_13 = arith.constant dense<0.000000e+00> : vector<256xf32>
    %28 = vector.multi_reduction <add>, %27, %cst_13 [1] : vector<256x256xf32> to vector<256xf32>
    %29 = vector.shape_cast %28 : vector<256xf32> to vector<256x1xf32>
    %30 = tpu.reciprocal %29 {approx = true} : vector<256x1xf32> -> vector<256x1xf32>
    %31 = vector.broadcast %30 : vector<256x1xf32> to vector<256x256xf32>
    %32 = arith.mulf %27, %31 : vector<256x256xf32>
    %33 = arith.truncf %32 : vector<256x256xf32> to vector<256x256xbf16>
    %cst_14 = arith.constant dense<0.000000e+00> : vector<128x256xf32>
    %34 = tpu.matmul %20, %33, %cst_14 {dimension_numbers = #tpu.dot_dimension_numbers<[1], [1], [0], [0], [0, 0, 1, 0], [], []>} : vector<128x256xbf16>, vector<256x256xbf16>, vector<128x256xf32> -> vector<128x256xf32>
    %35 = vector.broadcast %21 : vector<1x256xf32> to vector<128x256xf32>
    %36 = arith.mulf %34, %35 : vector<128x256xf32>
    %37 = vector.extract_strided_slice %13 {offsets = [256, 0], sizes = [256, 16], strides = [1, 1]} : vector<512x16xbf16> to vector<256x16xbf16>
    %38 = vector.extract_strided_slice %15 {offsets = [0, 0], sizes = [16, 256], strides = [1, 1]} : vector<16x512xbf16> to vector<16x256xbf16>
    %39 = vector.extract_strided_slice %17 {offsets = [0, 0], sizes = [128, 256], strides = [1, 1]} : vector<128x512xbf16> to vector<128x256xbf16>
    %c0_15 = arith.constant 0 : index
    %c0_16 = arith.constant 0 : index
    %40 = vector.load %arg4[%c0_15, %c0_16] : memref<1x256xf32, #tpu.memory_space<vmem>>, vector<1x256xf32>
    %cst_17 = arith.constant dense<0.000000e+00> : vector<256x256xf32>
    %41 = tpu.matmul %37, %38, %cst_17 {dimension_numbers = #tpu.dot_dimension_numbers<[1], [0], [0], [1], [0, 0, 1, 1], [], []>} : vector<256x16xbf16>, vector<16x256xbf16>, vector<256x256xf32> -> vector<256x256xf32>
    %cst_18 = arith.constant dense<0xFF800000> : vector<256xf32>
    %42 = vector.multi_reduction <maximumf>, %41, %cst_18 [1] : vector<256x256xf32> to vector<256xf32>
    %43 = vector.shape_cast %42 : vector<256xf32> to vector<256x1xf32>
    %44 = vector.broadcast %43 : vector<256x1xf32> to vector<256x256xf32>
    %45 = arith.subf %41, %44 : vector<256x256xf32>
    %46 = math.exp %45 : vector<256x256xf32>
    %cst_19 = arith.constant dense<0.000000e+00> : vector<256xf32>
    %47 = vector.multi_reduction <add>, %46, %cst_19 [1] : vector<256x256xf32> to vector<256xf32>
    %48 = vector.shape_cast %47 : vector<256xf32> to vector<256x1xf32>
    %49 = tpu.reciprocal %48 {approx = true} : vector<256x1xf32> -> vector<256x1xf32>
    %50 = vector.broadcast %49 : vector<256x1xf32> to vector<256x256xf32>
    %51 = arith.mulf %46, %50 : vector<256x256xf32>
    %52 = arith.truncf %51 : vector<256x256xf32> to vector<256x256xbf16>
    %cst_20 = arith.constant dense<0.000000e+00> : vector<128x256xf32>
    %53 = tpu.matmul %39, %52, %cst_20 {dimension_numbers = #tpu.dot_dimension_numbers<[1], [1], [0], [0], [0, 0, 1, 0], [], []>} : vector<128x256xbf16>, vector<256x256xbf16>, vector<128x256xf32> -> vector<128x256xf32>
    %54 = vector.broadcast %40 : vector<1x256xf32> to vector<128x256xf32>
    %55 = arith.mulf %53, %54 : vector<128x256xf32>
    %c0_21 = arith.constant 0 : index
    %c0_22 = arith.constant 0 : index
    %c0_23 = arith.constant 0 : index
    %56 = vector.load %arg1[%c0_21, %c0_22, %c0_23] : memref<1x128x256xf32, #tpu.memory_space<vmem>>, vector<1x128x256xf32>
    %57 = vector.shape_cast %56 : vector<1x128x256xf32> to vector<128x256xf32>
    %58 = arith.addf %57, %36 : vector<128x256xf32>
    %cst_24 = arith.constant dense<0.000000e+00> : vector<128xf32>
    %59 = vector.multi_reduction <add>, %58, %cst_24 [1] : vector<128x256xf32> to vector<128xf32>
    %60 = vector.shape_cast %59 : vector<128xf32> to vector<128x1xf32>
    %61 = arith.mulf %58, %58 : vector<128x256xf32>
    %cst_25 = arith.constant dense<0.000000e+00> : vector<128xf32>
    %62 = vector.multi_reduction <add>, %61, %cst_25 [1] : vector<128x256xf32> to vector<128xf32>
    %63 = vector.shape_cast %62 : vector<128xf32> to vector<128x1xf32>
    %64 = vector.shape_cast %60 : vector<128x1xf32> to vector<1x128x1xf32>
    %cst_26 = arith.constant dense<0.000000e+00> : vector<1xf32>
    %65 = vector.multi_reduction <add>, %64, %cst_26 [1, 2] : vector<1x128x1xf32> to vector<1xf32>
    %66 = vector.shape_cast %65 : vector<1xf32> to vector<1x1x1xf32>
    %67 = vector.extract %66[0, 0, 0] : f32 from vector<1x1x1xf32>
    %cst_27 = arith.constant 3.276800e+04 : f32
    %68 = arith.divf %67, %cst_27 : f32
    %69 = vector.shape_cast %63 : vector<128x1xf32> to vector<1x128x1xf32>
    %cst_28 = arith.constant dense<0.000000e+00> : vector<1xf32>
    %70 = vector.multi_reduction <add>, %69, %cst_28 [1, 2] : vector<1x128x1xf32> to vector<1xf32>
    %71 = vector.shape_cast %70 : vector<1xf32> to vector<1x1x1xf32>
    %72 = vector.extract %71[0, 0, 0] : f32 from vector<1x1x1xf32>
    %cst_29 = arith.constant 3.276800e+04 : f32
    %73 = arith.divf %72, %cst_29 : f32
    %74 = arith.mulf %68, %68 : f32
    %75 = arith.subf %73, %74 : f32
    %c0_30 = arith.constant 0 : index
    %c0_31 = arith.constant 0 : index
    %76 = vector.load %arg11[%c0_30, %c0_31] : memref<128x256xbf16, #tpu.memory_space<vmem>>, vector<128x256xbf16>
    %77 = arith.extf %76 : vector<128x256xbf16> to vector<128x256xf32>
    %c0_32 = arith.constant 0 : index
    %c0_33 = arith.constant 0 : index
    %78 = vector.load %arg12[%c0_32, %c0_33] : memref<128x256xbf16, #tpu.memory_space<vmem>>, vector<128x256xbf16>
    %79 = arith.extf %78 : vector<128x256xbf16> to vector<128x256xf32>
    %80 = vector.broadcast %68 : f32 to vector<128x256xf32>
    %81 = arith.subf %58, %80 : vector<128x256xf32>
    %cst_34 = arith.constant 9.99999974E-6 : f32
    %82 = arith.addf %75, %cst_34 : f32
    %83 = math.rsqrt %82 : f32
    %84 = vector.broadcast %83 : f32 to vector<128x256xf32>
    %85 = arith.mulf %81, %84 : vector<128x256xf32>
    %86 = arith.mulf %85, %77 : vector<128x256xf32>
    %87 = arith.addf %86, %79 : vector<128x256xf32>
    %c0_35 = arith.constant 0 : index
    %c0_36 = arith.constant 0 : index
    %c0_37 = arith.constant 0 : index
    %88 = vector.load %arg2[%c0_35, %c0_36, %c0_37] : memref<1x128x256xf32, #tpu.memory_space<vmem>>, vector<1x128x256xf32>
    %89 = vector.shape_cast %88 : vector<1x128x256xf32> to vector<128x256xf32>
    %90 = arith.addf %89, %55 : vector<128x256xf32>
    %cst_38 = arith.constant dense<0.000000e+00> : vector<128xf32>
    %91 = vector.multi_reduction <add>, %90, %cst_38 [1] : vector<128x256xf32> to vector<128xf32>
    %92 = vector.shape_cast %91 : vector<128xf32> to vector<128x1xf32>
    %93 = arith.mulf %90, %90 : vector<128x256xf32>
    %cst_39 = arith.constant dense<0.000000e+00> : vector<128xf32>
    %94 = vector.multi_reduction <add>, %93, %cst_39 [1] : vector<128x256xf32> to vector<128xf32>
    %95 = vector.shape_cast %94 : vector<128xf32> to vector<128x1xf32>
    %96 = vector.shape_cast %92 : vector<128x1xf32> to vector<1x128x1xf32>
    %cst_40 = arith.constant dense<0.000000e+00> : vector<1xf32>
    %97 = vector.multi_reduction <add>, %96, %cst_40 [1, 2] : vector<1x128x1xf32> to vector<1xf32>
    %98 = vector.shape_cast %97 : vector<1xf32> to vector<1x1x1xf32>
    %99 = vector.extract %98[0, 0, 0] : f32 from vector<1x1x1xf32>
    %cst_41 = arith.constant 3.276800e+04 : f32
    %100 = arith.divf %99, %cst_41 : f32
    %101 = vector.shape_cast %95 : vector<128x1xf32> to vector<1x128x1xf32>
    %cst_42 = arith.constant dense<0.000000e+00> : vector<1xf32>
    %102 = vector.multi_reduction <add>, %101, %cst_42 [1, 2] : vector<1x128x1xf32> to vector<1xf32>
    %103 = vector.shape_cast %102 : vector<1xf32> to vector<1x1x1xf32>
    %104 = vector.extract %103[0, 0, 0] : f32 from vector<1x1x1xf32>
    %cst_43 = arith.constant 3.276800e+04 : f32
    %105 = arith.divf %104, %cst_43 : f32
    %106 = arith.mulf %100, %100 : f32
    %107 = arith.subf %105, %106 : f32
    %c0_44 = arith.constant 0 : index
    %c0_45 = arith.constant 0 : index
    %108 = vector.load %arg11[%c0_44, %c0_45] : memref<128x256xbf16, #tpu.memory_space<vmem>>, vector<128x256xbf16>
    %109 = arith.extf %108 : vector<128x256xbf16> to vector<128x256xf32>
    %c0_46 = arith.constant 0 : index
    %c0_47 = arith.constant 0 : index
    %110 = vector.load %arg12[%c0_46, %c0_47] : memref<128x256xbf16, #tpu.memory_space<vmem>>, vector<128x256xbf16>
    %111 = arith.extf %110 : vector<128x256xbf16> to vector<128x256xf32>
    %112 = vector.broadcast %100 : f32 to vector<128x256xf32>
    %113 = arith.subf %90, %112 : vector<128x256xf32>
    %cst_48 = arith.constant 9.99999974E-6 : f32
    %114 = arith.addf %107, %cst_48 : f32
    %115 = math.rsqrt %114 : f32
    %116 = vector.broadcast %115 : f32 to vector<128x256xf32>
    %117 = arith.mulf %113, %116 : vector<128x256xf32>
    %118 = arith.mulf %117, %109 : vector<128x256xf32>
    %119 = arith.addf %118, %111 : vector<128x256xf32>
    %120 = tpu.concatenate %87, %119 in 1 : vector<128x256xf32>, vector<128x256xf32> -> vector<128x512xf32>
    %121 = arith.truncf %120 : vector<128x512xf32> to vector<128x512xbf16>
    %c0_49 = arith.constant 0 : index
    %c0_50 = arith.constant 0 : index
    %122 = vector.load %arg7[%c0_49, %c0_50] : memref<128x128xbf16, #tpu.memory_space<vmem>>, vector<128x128xbf16>
    %cst_51 = arith.constant dense<0.000000e+00> : vector<128x512xf32>
    %123 = tpu.matmul %122, %121, %cst_51 {dimension_numbers = #tpu.dot_dimension_numbers<[1], [0], [0], [1], [0, 0, 1, 1], [], []>} : vector<128x128xbf16>, vector<128x512xbf16>, vector<128x512xf32> -> vector<128x512xf32>
    %c0_52 = arith.constant 0 : index
    %c0_53 = arith.constant 0 : index
    %124 = vector.load %arg8[%c0_52, %c0_53] : memref<128x1xf32, #tpu.memory_space<vmem>>, vector<128x1xf32>
    %125 = vector.broadcast %124 : vector<128x1xf32> to vector<128x512xf32>
    %126 = arith.addf %123, %125 : vector<128x512xf32>
    %cst_54 = arith.constant 0.000000e+00 : f32
    %127 = vector.broadcast %cst_54 : f32 to vector<128x512xf32>
    %128 = arith.maximumf %126, %127 : vector<128x512xf32>
    %c0_55 = arith.constant 0 : index
    %c0_56 = arith.constant 0 : index
    %129 = vector.load %arg9[%c0_55, %c0_56] : memref<128x128xbf16, #tpu.memory_space<vmem>>, vector<128x128xbf16>
    %130 = arith.truncf %128 : vector<128x512xf32> to vector<128x512xbf16>
    %cst_57 = arith.constant dense<0.000000e+00> : vector<128x512xf32>
    %131 = tpu.matmul %129, %130, %cst_57 {dimension_numbers = #tpu.dot_dimension_numbers<[1], [0], [0], [1], [0, 0, 1, 1], [], []>} : vector<128x128xbf16>, vector<128x512xbf16>, vector<128x512xf32> -> vector<128x512xf32>
    %c0_58 = arith.constant 0 : index
    %c0_59 = arith.constant 0 : index
    %132 = vector.load %arg10[%c0_58, %c0_59] : memref<128x1xf32, #tpu.memory_space<vmem>>, vector<128x1xf32>
    %133 = vector.broadcast %132 : vector<128x1xf32> to vector<128x512xf32>
    %134 = arith.addf %131, %133 : vector<128x512xf32>
    %135 = vector.extract_strided_slice %134 {offsets = [0, 0], sizes = [128, 256], strides = [1, 1]} : vector<128x512xf32> to vector<128x256xf32>
    %136 = arith.addf %87, %135 : vector<128x256xf32>
    %cst_60 = arith.constant dense<0.000000e+00> : vector<128xf32>
    %137 = vector.multi_reduction <add>, %136, %cst_60 [1] : vector<128x256xf32> to vector<128xf32>
    %138 = vector.shape_cast %137 : vector<128xf32> to vector<128x1xf32>
    %139 = arith.mulf %136, %136 : vector<128x256xf32>
    %cst_61 = arith.constant dense<0.000000e+00> : vector<128xf32>
    %140 = vector.multi_reduction <add>, %139, %cst_61 [1] : vector<128x256xf32> to vector<128xf32>
    %141 = vector.shape_cast %140 : vector<128xf32> to vector<128x1xf32>
    %142 = vector.shape_cast %138 : vector<128x1xf32> to vector<1x128x1xf32>
    %cst_62 = arith.constant dense<0.000000e+00> : vector<1xf32>
    %143 = vector.multi_reduction <add>, %142, %cst_62 [1, 2] : vector<1x128x1xf32> to vector<1xf32>
    %144 = vector.shape_cast %143 : vector<1xf32> to vector<1x1x1xf32>
    %145 = vector.extract %144[0, 0, 0] : f32 from vector<1x1x1xf32>
    %cst_63 = arith.constant 3.276800e+04 : f32
    %146 = arith.divf %145, %cst_63 : f32
    %147 = vector.shape_cast %141 : vector<128x1xf32> to vector<1x128x1xf32>
    %cst_64 = arith.constant dense<0.000000e+00> : vector<1xf32>
    %148 = vector.multi_reduction <add>, %147, %cst_64 [1, 2] : vector<1x128x1xf32> to vector<1xf32>
    %149 = vector.shape_cast %148 : vector<1xf32> to vector<1x1x1xf32>
    %150 = vector.extract %149[0, 0, 0] : f32 from vector<1x1x1xf32>
    %cst_65 = arith.constant 3.276800e+04 : f32
    %151 = arith.divf %150, %cst_65 : f32
    %152 = arith.mulf %146, %146 : f32
    %153 = arith.subf %151, %152 : f32
    %c0_66 = arith.constant 0 : index
    %c0_67 = arith.constant 0 : index
    %154 = vector.load %arg11[%c0_66, %c0_67] : memref<128x256xbf16, #tpu.memory_space<vmem>>, vector<128x256xbf16>
    %155 = arith.extf %154 : vector<128x256xbf16> to vector<128x256xf32>
    %c0_68 = arith.constant 0 : index
    %c0_69 = arith.constant 0 : index
    %156 = vector.load %arg12[%c0_68, %c0_69] : memref<128x256xbf16, #tpu.memory_space<vmem>>, vector<128x256xbf16>
    %157 = arith.extf %156 : vector<128x256xbf16> to vector<128x256xf32>
    %158 = vector.broadcast %146 : f32 to vector<128x256xf32>
    %159 = arith.subf %136, %158 : vector<128x256xf32>
    %cst_70 = arith.constant 9.99999974E-6 : f32
    %160 = arith.addf %153, %cst_70 : f32
    %161 = math.rsqrt %160 : f32
    %162 = vector.broadcast %161 : f32 to vector<128x256xf32>
    %163 = arith.mulf %159, %162 : vector<128x256xf32>
    %164 = arith.mulf %163, %155 : vector<128x256xf32>
    %165 = arith.addf %164, %157 : vector<128x256xf32>
    %c0_71 = arith.constant 0 : index
    %c0_72 = arith.constant 0 : index
    %c0_73 = arith.constant 0 : index
    %166 = vector.load %arg13[%c0_71, %c0_72, %c0_73] : memref<1x128x256xf32, #tpu.memory_space<vmem>>, vector<1x128x256xf32>
    %167 = vector.shape_cast %166 : vector<1x128x256xf32> to vector<128x256xf32>
    %168 = vector.shape_cast %165 : vector<128x256xf32> to vector<1x128x256xf32>
    tpu.vector_store %arg13[%c0_71, %c0_72, %c0_73], %168 {strides = array<i32>} : memref<1x128x256xf32, #tpu.memory_space<vmem>>, vector<1x128x256xf32>,
    %169 = vector.extract_strided_slice %134 {offsets = [0, 256], sizes = [128, 256], strides = [1, 1]} : vector<128x512xf32> to vector<128x256xf32>
    %170 = arith.addf %119, %169 : vector<128x256xf32>
    %cst_74 = arith.constant dense<0.000000e+00> : vector<128xf32>
    %171 = vector.multi_reduction <add>, %170, %cst_74 [1] : vector<128x256xf32> to vector<128xf32>
    %172 = vector.shape_cast %171 : vector<128xf32> to vector<128x1xf32>
    %173 = arith.mulf %170, %170 : vector<128x256xf32>
    %cst_75 = arith.constant dense<0.000000e+00> : vector<128xf32>
    %174 = vector.multi_reduction <add>, %173, %cst_75 [1] : vector<128x256xf32> to vector<128xf32>
    %175 = vector.shape_cast %174 : vector<128xf32> to vector<128x1xf32>
    %176 = vector.shape_cast %172 : vector<128x1xf32> to vector<1x128x1xf32>
    %cst_76 = arith.constant dense<0.000000e+00> : vector<1xf32>
    %177 = vector.multi_reduction <add>, %176, %cst_76 [1, 2] : vector<1x128x1xf32> to vector<1xf32>
    %178 = vector.shape_cast %177 : vector<1xf32> to vector<1x1x1xf32>
    %179 = vector.extract %178[0, 0, 0] : f32 from vector<1x1x1xf32>
    %cst_77 = arith.constant 3.276800e+04 : f32
    %180 = arith.divf %179, %cst_77 : f32
    %181 = vector.shape_cast %175 : vector<128x1xf32> to vector<1x128x1xf32>
    %cst_78 = arith.constant dense<0.000000e+00> : vector<1xf32>
    %182 = vector.multi_reduction <add>, %181, %cst_78 [1, 2] : vector<1x128x1xf32> to vector<1xf32>
    %183 = vector.shape_cast %182 : vector<1xf32> to vector<1x1x1xf32>
    %184 = vector.extract %183[0, 0, 0] : f32 from vector<1x1x1xf32>
    %cst_79 = arith.constant 3.276800e+04 : f32
    %185 = arith.divf %184, %cst_79 : f32
    %186 = arith.mulf %180, %180 : f32
    %187 = arith.subf %185, %186 : f32
    %c0_80 = arith.constant 0 : index
    %c0_81 = arith.constant 0 : index
    %188 = vector.load %arg11[%c0_80, %c0_81] : memref<128x256xbf16, #tpu.memory_space<vmem>>, vector<128x256xbf16>
    %189 = arith.extf %188 : vector<128x256xbf16> to vector<128x256xf32>
    %c0_82 = arith.constant 0 : index
    %c0_83 = arith.constant 0 : index
    %190 = vector.load %arg12[%c0_82, %c0_83] : memref<128x256xbf16, #tpu.memory_space<vmem>>, vector<128x256xbf16>
    %191 = arith.extf %190 : vector<128x256xbf16> to vector<128x256xf32>
    %192 = vector.broadcast %180 : f32 to vector<128x256xf32>
    %193 = arith.subf %170, %192 : vector<128x256xf32>
    %cst_84 = arith.constant 9.99999974E-6 : f32
    %194 = arith.addf %187, %cst_84 : f32
    %195 = math.rsqrt %194 : f32
    %196 = vector.broadcast %195 : f32 to vector<128x256xf32>
    %197 = arith.mulf %193, %196 : vector<128x256xf32>
    %198 = arith.mulf %197, %189 : vector<128x256xf32>
    %199 = arith.addf %198, %191 : vector<128x256xf32>
    %c0_85 = arith.constant 0 : index
    %c0_86 = arith.constant 0 : index
    %c0_87 = arith.constant 0 : index
    %200 = vector.load %arg14[%c0_85, %c0_86, %c0_87] : memref<1x128x256xf32, #tpu.memory_space<vmem>>, vector<1x128x256xf32>
    %201 = vector.shape_cast %200 : vector<1x128x256xf32> to vector<128x256xf32>
    %202 = vector.shape_cast %199 : vector<128x256xf32> to vector<1x128x256xf32>
    tpu.vector_store %arg14[%c0_85, %c0_86, %c0_87], %202 {strides = array<i32>} : memref<1x128x256xf32, #tpu.memory_space<vmem>>, vector<1x128x256xf32>,
    return
  }
  func.func @transform_0(%arg0: i32) -> (i32, i32, i32) {
    %c0_i32 = arith.constant 0 : i32
    %c0_i32_0 = arith.constant 0 : i32
    %c0_i32_1 = arith.constant 0 : i32
    return %arg0, %c0_i32, %c0_i32_0 : i32, i32, i32
  }
  func.func @transform_1(%arg0: i32) -> (i32, i32, i32) {
    %c0_i32 = arith.constant 0 : i32
    %c0_i32_0 = arith.constant 0 : i32
    %c0_i32_1 = arith.constant 0 : i32
    return %arg0, %c0_i32, %c0_i32_0 : i32, i32, i32
  }
  func.func @transform_2(%arg0: i32) -> (i32, i32) {
    %c0_i32 = arith.constant 0 : i32
    %c0_i32_0 = arith.constant 0 : i32
    %c0_i32_1 = arith.constant 0 : i32
    return %c0_i32, %c0_i32_0 : i32, i32
  }
  func.func @transform_3(%arg0: i32) -> (i32, i32) {
    %c0_i32 = arith.constant 0 : i32
    %c0_i32_0 = arith.constant 0 : i32
    %c0_i32_1 = arith.constant 0 : i32
    return %c0_i32, %c0_i32_0 : i32, i32
  }
  func.func @transform_4(%arg0: i32) -> (i32, i32) {
    %c0_i32 = arith.constant 0 : i32
    %c0_i32_0 = arith.constant 0 : i32
    %c0_i32_1 = arith.constant 0 : i32
    return %c0_i32, %c0_i32_0 : i32, i32
  }
  func.func @transform_5(%arg0: i32) -> (i32, i32) {
    %c0_i32 = arith.constant 0 : i32
    %c0_i32_0 = arith.constant 0 : i32
    %c0_i32_1 = arith.constant 0 : i32
    return %c0_i32, %c0_i32_0 : i32, i32
  }
  func.func @transform_6(%arg0: i32) -> (i32, i32) {
    %c0_i32 = arith.constant 0 : i32
    %c0_i32_0 = arith.constant 0 : i32
    %c0_i32_1 = arith.constant 0 : i32
    return %c0_i32, %c0_i32_0 : i32, i32
  }
  func.func @transform_7(%arg0: i32) -> (i32, i32) {
    %c0_i32 = arith.constant 0 : i32
    %c0_i32_0 = arith.constant 0 : i32
    %c0_i32_1 = arith.constant 0 : i32
    return %c0_i32, %c0_i32_0 : i32, i32
  }
  func.func @transform_8(%arg0: i32) -> (i32, i32) {
    %c0_i32 = arith.constant 0 : i32
    %c0_i32_0 = arith.constant 0 : i32
    %c0_i32_1 = arith.constant 0 : i32
    return %c0_i32, %c0_i32_0 : i32, i32
  }
  func.func @transform_9(%arg0: i32) -> (i32, i32) {
    %c0_i32 = arith.constant 0 : i32
    %c0_i32_0 = arith.constant 0 : i32
    %c0_i32_1 = arith.constant 0 : i32
    return %c0_i32, %c0_i32_0 : i32, i32
  }
  func.func @transform_10(%arg0: i32) -> (i32, i32) {
    %c0_i32 = arith.constant 0 : i32
    %c0_i32_0 = arith.constant 0 : i32
    %c0_i32_1 = arith.constant 0 : i32
    return %c0_i32, %c0_i32_0 : i32, i32
  }
  func.func @transform_11(%arg0: i32) -> (i32, i32) {
    %c0_i32 = arith.constant 0 : i32
    %c0_i32_0 = arith.constant 0 : i32
    %c0_i32_1 = arith.constant 0 : i32
    return %c0_i32, %c0_i32_0 : i32, i32
  }
  func.func @transform_12(%arg0: i32) -> (i32, i32, i32) {
    %c0_i32 = arith.constant 0 : i32
    %c0_i32_0 = arith.constant 0 : i32
    %c0_i32_1 = arith.constant 0 : i32
    return %arg0, %c0_i32, %c0_i32_0 : i32, i32, i32
  }
  func.func @transform_13(%arg0: i32) -> (i32, i32, i32) {
    %c0_i32 = arith.constant 0 : i32
    %c0_i32_0 = arith.constant 0 : i32
    %c0_i32_1 = arith.constant 0 : i32
    return %arg0, %c0_i32, %c0_i32_0 : i32, i32, i32
  }
}

</mosaic_0001>

<bundles_post_ra>
// kernel: cross_attention_pallas.1
= control target key start
LH: loop header
LB: loop body
LE: loop exit
PB: predicated region body
PF: predicated region fallthrough
CT: control target
= control target key end

     0   :  { %s6539_s25 = smov 0   ;;  %s11229_s0 = inlined_call_operand.vmem [shape: f32[2,128,256], index: 0, kind: input, shape index: {}]   ;;  %s11230_s1 = inlined_call_operand.vmem [shape: f32[2,128,256], index: 1, kind: input, shape index: {}]   ;;  %s11231_s2 = inlined_call_operand.vmem [shape: f32[1,256], index: 2, kind: input, shape index: {}]   ;;  %s11232_s3 = inlined_call_operand.vmem [shape: f32[1,256], index: 3, kind: input, shape index: {}]   ;;  %s11233_s4 = inlined_call_operand.vmem [shape: bf16[160,128], index: 4, kind: input, shape index: {}]   ;;  %s11234_s5 = inlined_call_operand.vmem [shape: f32[160,1], index: 5, kind: input, shape index: {}]   ;;  %s11235_s6 = inlined_call_operand.vmem [shape: bf16[128,128], index: 6, kind: input, shape index: {}]   ;;  %s11236_s7 = inlined_call_operand.vmem [shape: f32[128,1], index: 7, kind: input, shape index: {}]   ;;  %s11237_s8 = inlined_call_operand.vmem [shape: bf16[128,128], index: 8, kind: input, shape index: {}]   ;;  %s11238_s9 = inlined_call_operand.vmem [shape: f32[128,1], index: 9, kind: input, shape index: {}]   ;;  %s11239_s10 = inlined_call_operand.vmem [shape: bf16[128,256], index: 10, kind: input, shape index: {}]   ;;  %s11240_s11 = inlined_call_operand.vmem [shape: bf16[128,256], index: 11, kind: input, shape index: {}]   ;;  %s11241_s12 = inlined_call_operand.vmem [shape: f32[2,128,256], index: 12, kind: output, shape index: {0}]   ;;  %s11242_s13 = inlined_call_operand.vmem [shape: f32[2,128,256], index: 13, kind: output, shape index: {1}]  }
   0x1 LB: > { %s5839_s26 = sadd.s32 4294967295, %s6466_s25   ;;  %p5843_p0 = scmp.ge.s32.totalorder %s6466_s25, 1  ;;  %s6466_s25 = sphi %s6539_s25, %s24_s25  }
   0x2   : > { %p400_p1 = scmp.lt.s32.totalorder %s6466_s25, 3 }
   0x4   : > { %p401_p2 = pnand %p5843_p0, %p400_p1 }
   0x6   : > { %404 = sbr.rel (%p401_p2) target bundleno = 3743 (0xe9f), region = 68 }
   0xb   : > { %p454_p3 = scmp.lt.s32.totalorder %s5839_s26, 1  ;;  %v11243_v0 = vmov 0   ;;  %v591_v1 = vld [vmem:[%s11234_s5] sm:$0xff]  ;;  %v592_v2 = vld [vmem:[%s11234_s5 + $0x8] sm:$0xff]  ;;  %v593_v3 = vld [vmem:[%s11234_s5 + $0x10] sm:$0xff]  ;;  %vm1234_vm0 = vcmask 130048  }
   0xc   : > { %803 = vmatprep.mubr.bf16.mxu0 %v11243_v0  ;;  %936 = vmatprep.mubr.bf16.mxu1 %v11243_v0  ;;  %v594_v4 = vld [vmem:[%s11234_s5 + $0x18] sm:$0xff]  ;;  %vm3214_vm1 = vcmask 7168  }
   0xd   : > { %s12673_s26 = smov (!%p454_p3, %s5839_s26), 1  ;;  %5966 = vset.pattern.permute.xlu0 %v11243_v0  ;;  %5967 = vset.pattern.permute.xlu1 %v11243_v0 }
   0xe   : > { %613 = vperm.xlu0 %5966, %v591_v1   ;;  %s6560_s16 = sshll.u32 %s12673_s26, 8  ;;  %623 = vperm.xlu1 %5967, %v593_v3  }
   0xf   : > { %s6569_s21 = scalar_lea.vmem %s11229_s0, %s6560_s16  ;;  %s6577_s24 = scalar_lea.vmem %s11230_s1, %s6560_s16 }
  0x10   : > { %v504_v5 = vld [vmem:[%s6569_s21 + $0xe8] sm:$0xff]  ;;  %v506_v6 = vld [vmem:[%s6569_s21 + $0xf8] sm:$0xff]  ;;  %v503_v7 = vld [vmem:[%s6569_s21 + $0xe0] sm:$0xff]  ;;  %s10695_s28 = scalar_lea.vmem %s11241_s12, %s6560_s16 }
  0x11   : > { %v568_v8 = vpack.c.bf16 %v506_v6, %v504_v5  ;;  %v536_v9 = vld [vmem:[%s6577_s24 + $0xe8] sm:$0xff]  ;;  %v538_v10 = vld [vmem:[%s6577_s24 + $0xf8] sm:$0xff]  ;;  %v505_v11 = vld [vmem:[%s6569_s21 + $0xf0] sm:$0xff] }
  0x12   : > { %618 = vperm.xlu0 %5966, %v592_v2   ;;  %v570_v12 = vpack.c.bf16 %v538_v10, %v536_v9  ;;  %v567_v13 = vpack.c.bf16 %v505_v11, %v503_v7  ;;  %v535_v14 = vld [vmem:[%s6577_s24 + $0xe0] sm:$0xff]  ;;  %v537_v15 = vld [vmem:[%s6577_s24 + $0xf0] sm:$0xff]  ;;  %v500_v16 = vld [vmem:[%s6569_s21 + $0xc8] sm:$0xff]  ;;  %628 = vperm.xlu1 %5967, %v594_v4  }
  0x13   : > { %771 = vmatprep.subr.bf16.mxu0 %v568_v8  ;;  %v569_v17 = vpack.c.bf16 %v537_v15, %v535_v14  ;;  %v502_v18 = vld [vmem:[%s6569_s21 + $0xd8] sm:$0xff]  ;;  %v532_v19 = vld [vmem:[%s6577_s24 + $0xc8] sm:$0xff]  ;;  %v499_v23 = vld [vmem:[%s6569_s21 + $0xc0] sm:$0xff] }
  0x14   : > { %v534_v20 = vld [vmem:[%s6577_s24 + $0xd8] sm:$0xff]  ;;  %904 = vmatprep.subr.bf16.mxu1 %v570_v12  ;;  %772 = vmatpush1.bf16.msra.mxu0 %v567_v13  ;;  %v564_v21 = vpack.c.bf16 %v502_v18, %v500_v16  ;;  %v501_v24 = vld [vmem:[%s6569_s21 + $0xd0] sm:$0xff]  ;;  %v531_v25 = vld [vmem:[%s6577_s24 + $0xc0] sm:$0xff] }
  0x15   : > { %v566_v22 = vpack.c.bf16 %v534_v20, %v532_v19  ;;  %905 = vmatpush1.bf16.msra.mxu1 %v569_v17  ;;  %v563_v26 = vpack.c.bf16 %v501_v24, %v499_v23  ;;  %v533_v27 = vld [vmem:[%s6577_s24 + $0xd0] sm:$0xff]  ;;  %v496_v28 = vld [vmem:[%s6569_s21 + $0xa8] sm:$0xff]  ;;  %v498_v29 = vld [vmem:[%s6569_s21 + $0xb8] sm:$0xff] }
  0x16   : > { %773 = vmatprep.subr.bf16.mxu0 %v564_v21  ;;  %v565_v30 = vpack.c.bf16 %v533_v27, %v531_v25  ;;  %v560_v31 = vpack.c.bf16 %v498_v29, %v496_v28  ;;  %v528_v32 = vld [vmem:[%s6577_s24 + $0xa8] sm:$0xff]  ;;  %v530_v33 = vld [vmem:[%s6577_s24 + $0xb8] sm:$0xff]  ;;  %v495_v34 = vld [vmem:[%s6569_s21 + $0xa0] sm:$0xff] }
  0x17   : > { %906 = vmatprep.subr.bf16.mxu1 %v566_v22  ;;  %v562_v35 = vpack.c.bf16 %v530_v33, %v528_v32  ;;  %v497_v36 = vld [vmem:[%s6569_s21 + $0xb0] sm:$0xff]  ;;  %v527_v37 = vld [vmem:[%s6577_s24 + $0xa0] sm:$0xff]  ;;  %v492_v40 = vld [vmem:[%s6569_s21 + $0x88] sm:$0xff] }
  0x18   : > { %v529_v38 = vld [vmem:[%s6577_s24 + $0xb0] sm:$0xff]  ;;  %774 = vmatpush1.bf16.msra.mxu0 %v563_v26  ;;  %v559_v39 = vpack.c.bf16 %v497_v36, %v495_v34  ;;  %v494_v41 = vld [vmem:[%s6569_s21 + $0x98] sm:$0xff]  ;;  %v524_v42 = vld [vmem:[%s6577_s24 + $0x88] sm:$0xff] }
  0x19   : > { %907 = vmatpush1.bf16.msra.mxu1 %v565_v30  ;;  %775 = vmatprep.subr.bf16.mxu0 %v560_v31  ;;  %v561_v43 = vpack.c.bf16 %v529_v38, %v527_v37  ;;  %v556_v44 = vpack.c.bf16 %v494_v41, %v492_v40  ;;  %v526_v45 = vld [vmem:[%s6577_s24 + $0x98] sm:$0xff]  ;;  %v491_v46 = vld [vmem:[%s6569_s21 + $0x80] sm:$0xff]  ;;  %v493_v47 = vld [vmem:[%s6569_s21 + $0x90] sm:$0xff] }
  0x1a   : > { %908 = vmatprep.subr.bf16.mxu1 %v562_v35  ;;  %v558_v48 = vpack.c.bf16 %v526_v45, %v524_v42  ;;  %v523_v49 = vld [vmem:[%s6577_s24 + $0x80] sm:$0xff]  ;;  %v525_v50 = vld [vmem:[%s6577_s24 + $0x90] sm:$0xff]  ;;  %v488_v51 = vld [vmem:[%s6569_s21 + $0x68] sm:$0xff]  ;;  %v555_v55 = vpack.c.bf16 %v493_v47, %v491_v46 }
  0x1b   : > { %v490_v52 = vld [vmem:[%s6569_s21 + $0x78] sm:$0xff]  ;;  %v520_v53 = vld [vmem:[%s6577_s24 + $0x68] sm:$0xff]  ;;  %v557_v56 = vpack.c.bf16 %v525_v50, %v523_v49  ;;  %v487_v58 = vld [vmem:[%s6569_s21 + $0x60] sm:$0xff] }
  0x1c   : > { %v522_v54 = vld [vmem:[%s6577_s24 + $0x78] sm:$0xff]  ;;  %776 = vmatpush1.bf16.msra.mxu0 %v559_v39  ;;  %v552_v57 = vpack.c.bf16 %v490_v52, %v488_v51  ;;  %v489_v59 = vld [vmem:[%s6569_s21 + $0x70] sm:$0xff]  ;;  %v519_v60 = vld [vmem:[%s6577_s24 + $0x60] sm:$0xff] }
  0x1d   : > { %909 = vmatpush1.bf16.msra.mxu1 %v561_v43  ;;  %777 = vmatprep.subr.bf16.mxu0 %v556_v44  ;;  %v554_v61 = vpack.c.bf16 %v522_v54, %v520_v53  ;;  %v521_v62 = vld [vmem:[%s6577_s24 + $0x70] sm:$0xff]  ;;  %v484_v63 = vld [vmem:[%s6569_s21 + $0x48] sm:$0xff]  ;;  %v486_v1 = vld [vmem:[%s6569_s21 + $0x58] sm:$0xff]  ;;  %v551_v4 = vpack.c.bf16 %v489_v59, %v487_v58 }
  0x1e   : > { %910 = vmatprep.subr.bf16.mxu1 %v558_v48  ;;  %v516_v2 = vld [vmem:[%s6577_s24 + $0x48] sm:$0xff]  ;;  %v518_v3 = vld [vmem:[%s6577_s24 + $0x58] sm:$0xff]  ;;  %v483_v5 = vld [vmem:[%s6569_s21 + $0x40] sm:$0xff]  ;;  %v553_v6 = vpack.c.bf16 %v521_v62, %v519_v60  ;;  %v548_v7 = vpack.c.bf16 %v486_v1, %v484_v63 }
  0x1f   : > { %v485_v8 = vld [vmem:[%s6569_s21 + $0x50] sm:$0xff]  ;;  %v515_v9 = vld [vmem:[%s6577_s24 + $0x40] sm:$0xff]  ;;  %v550_v11 = vpack.c.bf16 %v518_v3, %v516_v2  ;;  %v480_v12 = vld [vmem:[%s6569_s21 + $0x28] sm:$0xff] }
  0x20   : > { %778 = vmatpush1.bf16.msra.mxu0 %v555_v55  ;;  %v517_v10 = vld [vmem:[%s6577_s24 + $0x50] sm:$0xff]  ;;  %v482_v13 = vld [vmem:[%s6569_s21 + $0x38] sm:$0xff]  ;;  %v512_v14 = vld [vmem:[%s6577_s24 + $0x28] sm:$0xff]  ;;  %v547_v18 = vpack.c.bf16 %v485_v8, %v483_v5 }
  0x21   : > { %911 = vmatpush1.bf16.msra.mxu1 %v557_v56  ;;  %779 = vmatprep.subr.bf16.mxu0 %v552_v57  ;;  %v514_v15 = vld [vmem:[%s6577_s24 + $0x38] sm:$0xff]  ;;  %v479_v16 = vld [vmem:[%s6569_s21 + $0x20] sm:$0xff]  ;;  %v481_v17 = vld [vmem:[%s6569_s21 + $0x30] sm:$0xff]  ;;  %v549_v23 = vpack.c.bf16 %v517_v10, %v515_v9  ;;  %v544_v24 = vpack.c.bf16 %v482_v13, %v480_v12 }
  0x22   : > { %912 = vmatprep.subr.bf16.mxu1 %v554_v61  ;;  %v511_v19 = vld [vmem:[%s6577_s24 + $0x20] sm:$0xff]  ;;  %v513_v20 = vld [vmem:[%s6577_s24 + $0x30] sm:$0xff]  ;;  %v476_v21 = vld [vmem:[%s6569_s21 + $0x8] sm:$0xff]  ;;  %v546_v27 = vpack.c.bf16 %v514_v15, %v512_v14  ;;  %v543_v30 = vpack.c.bf16 %v481_v17, %v479_v16 }
  0x23   : > { %v478_v22 = vld [vmem:[%s6569_s21 + $0x18] sm:$0xff]  ;;  %v508_v25 = vld [vmem:[%s6577_s24 + $0x8] sm:$0xff]  ;;  %v475_v28 = vld [vmem:[%s6569_s21] sm:$0xff]  ;;  %v545_v33 = vpack.c.bf16 %v513_v20, %v511_v19 }
  0x24   : > { %780 = vmatpush1.bf16.msra.mxu0 %v551_v4  ;;  %v510_v26 = vld [vmem:[%s6577_s24 + $0x18] sm:$0xff]  ;;  %v477_v29 = vld [vmem:[%s6569_s21 + $0x10] sm:$0xff]  ;;  %v507_v31 = vld [vmem:[%s6577_s24] sm:$0xff]  ;;  %v540_v34 = vpack.c.bf16 %v478_v22, %v476_v21 }
  0x25   : > { %913 = vmatpush1.bf16.msra.mxu1 %v553_v6  ;;  %781 = vmatprep.subr.bf16.mxu0 %v548_v7  ;;  %v509_v32 = vld [vmem:[%s6577_s24 + $0x10] sm:$0xff]  ;;  %v542_v35 = vpack.c.bf16 %v510_v26, %v508_v25  ;;  %v539_v36 = vpack.c.bf16 %v477_v29, %v475_v28  ;;  %v5968_v38 = vld [vmem:[%s11233_s4] sm:$0xff]   ;;  %v5969_v39 = vld [vmem:[%s11233_s4 + $0x8] sm:$0xff]  }
  0x26   : > { %914 = vmatprep.subr.bf16.mxu1 %v550_v11  ;;  %v541_v37 = vpack.c.bf16 %v509_v32, %v507_v31  ;;  %v5970_v40 = vld [vmem:[%s11233_s4 + $0x10] sm:$0xff]   ;;  %v5971_v41 = vld [vmem:[%s11233_s4 + $0x18] sm:$0xff]   ;;  %v5972_v42 = vld [vmem:[%s11233_s4 + $0x20] sm:$0xff]  }
  0x27   : > { %v5973_v43 = vld [vmem:[%s11233_s4 + $0x28] sm:$0xff]   ;;  %v5974_v44 = vld [vmem:[%s11233_s4 + $0x30] sm:$0xff]   ;;  %v5975_v45 = vld [vmem:[%s11233_s4 + $0x38] sm:$0xff]  }
  0x28   : > { %782 = vmatpush1.bf16.msra.mxu0 %v547_v18  ;;  %v5976_v46 = vld [vmem:[%s11233_s4 + $0x40] sm:$0xff]   ;;  %v5977_v47 = vld [vmem:[%s11233_s4 + $0x48] sm:$0xff]  }
  0x29   : > { %915 = vmatpush1.bf16.msra.mxu1 %v549_v23  ;;  %783 = vmatprep.subr.bf16.mxu0 %v544_v24 }
  0x2a   : > { %916 = vmatprep.subr.bf16.mxu1 %v546_v27 }
  0x2c   : > { %784 = vmatpush1.bf16.msra.mxu0 %v543_v30 }
  0x2d   : > { %917 = vmatpush1.bf16.msra.mxu1 %v545_v33  ;;  %785 = vmatprep.subr.bf16.mxu0 %v540_v34 }
  0x2e   : > { %918 = vmatprep.subr.bf16.mxu1 %v542_v35 }
  0x30   : > { %786 = vmatpush1.bf16.msra.mxu0 %v539_v36 }
  0x31   : > { %919 = vmatpush1.bf16.msra.mxu1 %v541_v37 }
  0x33   : > { %804 = vmatmul.mubr.bf16.vlgmr.msra.gmra.mxu0 %v5968_v38 }
  0x34   : > { %937 = vmatmul.mubr.bf16.vlgmr.msra.gmra.mxu1 %v5968_v38  ;;  %813 = vmatprep.mubr.bf16.mxu0 %v11243_v0 }
  0x35   : > { %946 = vmatprep.mubr.bf16.mxu1 %v11243_v0 }
  0x3b   : > { %814 = vmatmul.mubr.bf16.gmra.mxu0 %v5969_v39 }
  0x3c   : > { %947 = vmatmul.mubr.bf16.gmra.mxu1 %v5969_v39  ;;  %823 = vmatprep.mubr.bf16.mxu0 %v11243_v0 }
  0x3d   : > { %956 = vmatprep.mubr.bf16.mxu1 %v11243_v0 }
  0x43   : > { %824 = vmatmul.mubr.bf16.gmra.mxu0 %v5970_v40 }
  0x44   : > { %957 = vmatmul.mubr.bf16.gmra.mxu1 %v5970_v40  ;;  %833 = vmatprep.mubr.bf16.mxu0 %v11243_v0 }
  0x45   : > { %966 = vmatprep.mubr.bf16.mxu1 %v11243_v0 }
  0x4b   : > { %834 = vmatmul.mubr.bf16.gmra.mxu0 %v5971_v41 }
  0x4c   : > { %967 = vmatmul.mubr.bf16.gmra.mxu1 %v5971_v41  ;;  %843 = vmatprep.mubr.bf16.mxu0 %v11243_v0 }
  0x4d   : > { %976 = vmatprep.mubr.bf16.mxu1 %v11243_v0 }
  0x53   : > { %844 = vmatmul.mubr.bf16.gmra.mxu0 %v5972_v42 }
  0x54   : > { %977 = vmatmul.mubr.bf16.gmra.mxu1 %v5972_v42  ;;  %853 = vmatprep.mubr.bf16.mxu0 %v11243_v0 }
  0x55   : > { %986 = vmatprep.mubr.bf16.mxu1 %v11243_v0 }
  0x5b   : > { %854 = vmatmul.mubr.bf16.gmra.mxu0 %v5973_v43 }
  0x5c   : > { %987 = vmatmul.mubr.bf16.gmra.mxu1 %v5973_v43  ;;  %863 = vmatprep.mubr.bf16.mxu0 %v11243_v0 }
  0x5d   : > { %996 = vmatprep.mubr.bf16.mxu1 %v11243_v0 }
  0x63   : > { %864 = vmatmul.mubr.bf16.gmra.mxu0 %v5974_v44 }
  0x64   : > { %997 = vmatmul.mubr.bf16.gmra.mxu1 %v5974_v44  ;;  %873 = vmatprep.mubr.bf16.mxu0 %v11243_v0 }
  0x65   : > { %1006 = vmatprep.mubr.bf16.mxu1 %v11243_v0 }
  0x6b   : > { %874 = vmatmul.mubr.bf16.gmra.mxu0 %v5975_v45 }
  0x6c   : > { %1007 = vmatmul.mubr.bf16.gmra.mxu1 %v5975_v45  ;;  %883 = vmatprep.mubr.bf16.mxu0 %v11243_v0 }
  0x6d   : > { %1016 = vmatprep.mubr.bf16.mxu1 %v11243_v0 }
  0x73   : > { %884 = vmatmul.mubr.bf16.gmra.mxu0 %v5976_v46 }
  0x74   : > { %1017 = vmatmul.mubr.bf16.gmra.mxu1 %v5976_v46  ;;  %893 = vmatprep.mubr.bf16.mxu0 %v11243_v0 }
  0x75   : > { %1026 = vmatprep.mubr.bf16.mxu1 %v11243_v0 }
  0x7b   : > { %894 = vmatmul.mubr.bf16.gmra.mxu0 %v5977_v47 }
  0x7c   : > { %1027 = vmatmul.mubr.bf16.gmra.mxu1 %v5977_v47  ;;  %1315 = vmatprep.mubr.bf16.mxu0 %v11243_v0 }
  0x89   : > { %v6690_v48 = vpop.permute.xlu0 %613  ;;  %v6703_v59 = vpop.permute.xlu1 %623 }
  0x8a   : > { %11674 = vst [vmem:[#allocation2_spill] sm:$0xff] %v6690_v48  ;;  %11679 = vst [vmem:[#allocation7_spill] sm:$0xff] %v6703_v59 }
  0x8d   : > { %v6698_v55 = vpop.permute.xlu0 %618  ;;  %v6713_v5 = vpop.permute.xlu1 %628 }
  0x8e   : > { %11677 = vst [vmem:[#allocation5_spill] sm:$0xff] %v6698_v55  ;;  %11683 = vst [vmem:[#allocation11_spill] sm:$0xff] %v6713_v5 }
  0xf3   : > { %v805_v49 = vpop.f32.mrf.mxu0 }
  0xf4   : > { %v806_v50 = vadd.f32 %v805_v49, %v6690_v48  ;;  %v6693_v51 = vpop.f32.mrf.mxu1 }
  0xf5   : > { %11675 = vst [vmem:[#allocation3_spill] sm:$0xff] %v6693_v51  ;;  %v807_v52 = vpop.f32.mrf.mxu0 }
  0xf6   : > { %v808_v53 = vadd.f32 %v807_v52, %v6690_v48  ;;  %v6696_v54 = vpop.f32.mrf.mxu1  ;;  %1037 = vxpose.xlu0.b32.start [1/2] (short) %v806_v50, 128 }
  0xf7   : > { %11676 = vst [vmem:[#allocation4_spill] sm:$0xff] %v6696_v54  ;;  %v809_v56 = vpop.f32.mrf.mxu0 }
  0xf8   : > { %v810_v57 = vadd.f32 %v809_v56, %v6698_v55  ;;  %v6701_v58 = vpop.f32.mrf.mxu1  ;;  %1069 = vxpose.xlu1.b32.start [1/2] (short) %v808_v53, 128 }
  0xf9   : > { %11678 = vst [vmem:[#allocation6_spill] sm:$0xff] %v6701_v58  ;;  %v811_v60 = vpop.f32.mrf.mxu0 }
  0xfa   : > { %v812_v61 = vadd.f32 %v811_v60, %v6698_v55  ;;  %v6706_v62 = vpop.f32.mrf.mxu1  ;;  %1038 = vxpose.xlu0.b32.end [2/2] (short) %v810_v57, 128 }
  0xfb   : > { %11680 = vst [vmem:[#allocation8_spill] sm:$0xff] %v6706_v62  ;;  %v815_v63 = vpop.f32.mrf.mxu0 }
  0xfc   : > { %1070 = vxpose.xlu1.b32.end [2/2] (short) %v812_v61, 128  ;;  %v948_v1 = vpop.f32.mrf.mxu1  ;;  %v6711_v4 = vadd.f32 %v815_v63, %v6703_v59 }
  0xfd   : > { %v6708_v2 = vpop.f32.mrf.mxu0  ;;  %v949_v7 = vadd.f32 %v948_v1, %v6703_v59 }
  0xfe   : > { %11681 = vst [vmem:[#allocation9_spill] sm:$0xff] %v6708_v2  ;;  %v950_v3 = vpop.f32.mrf.mxu1  ;;  %11682 = vst [vmem:[#allocation10_spill] sm:$0xff] %v6711_v4 }
  0xff   : > { %v819_v6 = vpop.f32.mrf.mxu0  ;;  %v951_v10 = vadd.f32 %v950_v3, %v6703_v59 }
 0x100   : > { %v952_v8 = vpop.f32.mrf.mxu1  ;;  %v6717_v9 = vadd.f32 %v819_v6, %v6713_v5 }
 0x101   : > { %v953_v11 = vadd.f32 %v952_v8, %v6713_v5  ;;  %v6740_v50 = vpop.f32.mrf.mxu0 }
 0x102   : > { %11684 = vst [vmem:[#allocation12_spill] sm:$0xff] %v6717_v9  ;;  %v954_v12 = vpop.f32.mrf.mxu1  ;;  %11685 = vst [vmem:[#allocation13_spill] sm:$0xff] %v6740_v50 }
 0x103   : > { %v955_v14 = vadd.f32 %v954_v12, %v6713_v5  ;;  %v1199_v15 = vpack.c.bf16 %v953_v11, %v949_v7  ;;  %v6744_v53 = vpop.f32.mrf.mxu0 }
 0x104   : > { %11686 = vst [vmem:[#allocation14_spill] sm:$0xff] %v6744_v53 }
 0x105   : > { %v1200_v16 = vpack.c.bf16 %v955_v14, %v951_v10  ;;  %v6746_v57 = vpop.f32.mrf.mxu0 }
 0x106   : > { %11687 = vst [vmem:[#allocation15_spill] sm:$0xff] %v6746_v57 }
 0x107   : > { %1297 = vmatprep.subr.bf16.mxu0 %v1200_v16  ;;  %v6750_v61 = vpop.f32.mrf.mxu0 }
 0x108   : > { %1298 = vmatpush1.bf16.msra.mxu0 %v1199_v15  ;;  %11688 = vst [vmem:[#allocation16_spill] sm:$0xff] %v6750_v61 }
 0x109   : > { %v6752_v3 = vpop.f32.mrf.mxu0 }
 0x10a   : > { %11689 = vst [vmem:[#allocation17_spill] sm:$0xff] %v6752_v3 }
 0x10b   : > { %v6756_v6 = vpop.f32.mrf.mxu0 }
 0x10c   : > { %11690 = vst [vmem:[#allocation18_spill] sm:$0xff] %v6756_v6 }
 0x10d   : > { %v6758_v10 = vpop.f32.mrf.mxu0 }
 0x10e   : > { %11691 = vst [vmem:[#allocation19_spill] sm:$0xff] %v6758_v10 }
 0x10f   : > { %v6762_v12 = vpop.f32.mrf.mxu0 }
 0x110   : > { %11692 = vst [vmem:[#allocation20_spill] sm:$0xff] %v6762_v12 }
 0x111   : > { %v6764_v15 = vpop.f32.mrf.mxu0 }
 0x112   : > { %11693 = vst [vmem:[#allocation21_spill] sm:$0xff] %v6764_v15 }
 0x172   : > { %v1053_v17 = vpop.trf.xlu0 }
 0x174   : > { %v1085_v29 = vpop.trf.xlu1 }
 0x176   : > { %v1054_v18 = vpop.trf.xlu0 }
 0x177   : > { %v1165_v19 = vpack.c.bf16 %v1054_v18, %v1053_v17  ;;  %v6768_v17 = vpop.f32.mrf.mxu0 }
 0x178   : > { %v1086_v32 = vpop.trf.xlu1  ;;  %11694 = vst [vmem:[#allocation22_spill] sm:$0xff] %v6768_v17 }
 0x179   : > { %5862 = vmatmul.mubr.msk.bf16.vlgmr.msra.gmra.mxu0 %vm1234_vm0, %v1165_v19  ;;  %v1173_v49 = vpack.c.bf16 %v1086_v32, %v1085_v29 }
 0x17a   : > { %v1055_v20 = vpop.trf.xlu0  ;;  %1325 = vmatprep.mubr.bf16.mxu0 %v11243_v0 }
 0x17c   : > { %v1087_v35 = vpop.trf.xlu1 }
 0x17e   : > { %v1056_v21 = vpop.trf.xlu0 }
 0x17f   : > { %v1166_v22 = vpack.c.bf16 %v1056_v21, %v1055_v20  ;;  %v6770_v20 = vpop.f32.mrf.mxu0 }
 0x180   : > { %v1088_v39 = vpop.trf.xlu1  ;;  %11695 = vst [vmem:[#allocation23_spill] sm:$0xff] %v6770_v20 }
 0x181   : > { %5863 = vmatmul.mubr.msk.bf16.gmra.mxu0 %vm1234_vm0, %v1166_v22  ;;  %v1174_v56 = vpack.c.bf16 %v1088_v39, %v1087_v35  ;;  %v6774_v21 = vpop.f32.mrf.mxu0 }
 0x182   : > { %v1057_v23 = vpop.trf.xlu0  ;;  %1335 = vmatprep.mubr.bf16.mxu0 %v11243_v0  ;;  %11696 = vst [vmem:[#allocation24_spill] sm:$0xff] %v6774_v21 }
 0x184   : > { %v1089_v42 = vpop.trf.xlu1 }
 0x186   : > { %v1058_v24 = vpop.trf.xlu0 }
 0x187   : > { %v1167_v25 = vpack.c.bf16 %v1058_v24, %v1057_v23  ;;  %v6776_v24 = vpop.f32.mrf.mxu0 }
 0x188   : > { %v1090_v45 = vpop.trf.xlu1  ;;  %11697 = vst [vmem:[#allocation25_spill] sm:$0xff] %v6776_v24 }
 0x189   : > { %5864 = vmatmul.mubr.msk.bf16.gmra.mxu0 %vm1234_vm0, %v1167_v25  ;;  %v1175_v63 = vpack.c.bf16 %v1090_v45, %v1089_v42 }
 0x18a   : > { %v1059_v26 = vpop.trf.xlu0  ;;  %1345 = vmatprep.mubr.bf16.mxu0 %v11243_v0 }
 0x18c   : > { %v1091_v47 = vpop.trf.xlu1 }
 0x18e   : > { %v1060_v27 = vpop.trf.xlu0 }
 0x18f   : > { %v1168_v28 = vpack.c.bf16 %v1060_v27, %v1059_v26  ;;  %v6780_v26 = vpop.f32.mrf.mxu0 }
 0x190   : > { %v1092_v52 = vpop.trf.xlu1  ;;  %11698 = vst [vmem:[#allocation26_spill] sm:$0xff] %v6780_v26 }
 0x191   : > { %5865 = vmatmul.mubr.msk.bf16.gmra.mxu0 %vm1234_vm0, %v1168_v28  ;;  %v1176_v8 = vpack.c.bf16 %v1092_v52, %v1091_v47  ;;  %v6782_v28 = vpop.f32.mrf.mxu0 }
 0x192   : > { %v1061_v30 = vpop.trf.xlu0  ;;  %1355 = vmatprep.mubr.bf16.mxu0 %v11243_v0  ;;  %11699 = vst [vmem:[#allocation27_spill] sm:$0xff] %v6782_v28 }
 0x193   : > { %v6785_v29 = vpop.f32.mrf.mxu0 }
 0x194   : > { %v1093_v60 = vpop.trf.xlu1  ;;  %11700 = vst [vmem:[#allocation28_spill] sm:$0xff] %v6785_v29 }
 0x196   : > { %v1062_v31 = vpop.trf.xlu0 }
 0x197   : > { %v1169_v33 = vpack.c.bf16 %v1062_v31, %v1061_v30  ;;  %v6787_v30 = vpop.f32.mrf.mxu0 }
 0x198   : > { %v1094_v1 = vpop.trf.xlu1  ;;  %11701 = vst [vmem:[#allocation29_spill] sm:$0xff] %v6787_v30 }
 0x199   : > { %5866 = vmatmul.mubr.msk.bf16.gmra.mxu0 %vm1234_vm0, %v1169_v33  ;;  %v1177_v14 = vpack.c.bf16 %v1094_v1, %v1093_v60  ;;  %v6789_v31 = vpop.f32.mrf.mxu0 }
 0x19a   : > { %v1063_v34 = vpop.trf.xlu0  ;;  %1365 = vmatprep.mubr.bf16.mxu0 %v11243_v0  ;;  %11702 = vst [vmem:[#allocation30_spill] sm:$0xff] %v6789_v31 }
 0x19b   : > { %v6791_v32 = vpop.f32.mrf.mxu0 }
 0x19c   : > { %v1095_v7 = vpop.trf.xlu1  ;;  %11703 = vst [vmem:[#allocation31_spill] sm:$0xff] %v6791_v32 }
 0x19d   : > { %v6793_v33 = vpop.f32.mrf.mxu0 }
 0x19e   : > { %v1064_v36 = vpop.trf.xlu0  ;;  %11704 = vst [vmem:[#allocation32_spill] sm:$0xff] %v6793_v33 }
 0x19f   : > { %v1170_v37 = vpack.c.bf16 %v1064_v36, %v1063_v34  ;;  %v6795_v34 = vpop.f32.mrf.mxu0 }
 0x1a0   : > { %v1096_v11 = vpop.trf.xlu1  ;;  %11705 = vst [vmem:[#allocation33_spill] sm:$0xff] %v6795_v34 }
 0x1a1   : > { %5867 = vmatmul.mubr.msk.bf16.gmra.mxu0 %vm1234_vm0, %v1170_v37  ;;  %v1178_v18 = vpack.c.bf16 %v1096_v11, %v1095_v7  ;;  %v6797_v35 = vpop.f32.mrf.mxu0 }
 0x1a2   : > { %v1065_v38 = vpop.trf.xlu0  ;;  %1375 = vmatprep.mubr.bf16.mxu0 %v11243_v0  ;;  %11706 = vst [vmem:[#allocation34_spill] sm:$0xff] %v6797_v35 }
 0x1a3   : > { %v6799_v36 = vpop.f32.mrf.mxu0 }
 0x1a4   : > { %v1097_v16 = vpop.trf.xlu1  ;;  %11707 = vst [vmem:[#allocation35_spill] sm:$0xff] %v6799_v36 }
 0x1a5   : > { %v6801_v37 = vpop.f32.mrf.mxu0 }
 0x1a6   : > { %v1066_v40 = vpop.trf.xlu0  ;;  %11708 = vst [vmem:[#allocation36_spill] sm:$0xff] %v6801_v37 }
 0x1a7   : > { %v1171_v41 = vpack.c.bf16 %v1066_v40, %v1065_v38  ;;  %v6803_v38 = vpop.f32.mrf.mxu0 }
 0x1a8   : > { %v1098_v19 = vpop.trf.xlu1  ;;  %11709 = vst [vmem:[#allocation37_spill] sm:$0xff] %v6803_v38 }
 0x1a9   : > { %5868 = vmatmul.mubr.msk.bf16.gmra.mxu0 %vm1234_vm0, %v1171_v41  ;;  %v1179_v23 = vpack.c.bf16 %v1098_v19, %v1097_v16  ;;  %v6805_v39 = vpop.f32.mrf.mxu0 }
 0x1aa   : > { %v1067_v43 = vpop.trf.xlu0  ;;  %1385 = vmatprep.mubr.bf16.mxu0 %v11243_v0  ;;  %11710 = vst [vmem:[#allocation38_spill] sm:$0xff] %v6805_v39 }
 0x1ab   : > { %v6807_v40 = vpop.f32.mrf.mxu0 }
 0x1ac   : > { %v1099_v22 = vpop.trf.xlu1  ;;  %11711 = vst [vmem:[#allocation39_spill] sm:$0xff] %v6807_v40 }
 0x1ad   : > { %v6809_v41 = vpop.f32.mrf.mxu0 }
 0x1ae   : > { %v1068_v44 = vpop.trf.xlu0  ;;  %11712 = vst [vmem:[#allocation40_spill] sm:$0xff] %v6809_v41 }
 0x1af   : > { %v1172_v46 = vpack.c.bf16 %v1068_v44, %v1067_v43  ;;  %v6811_v42 = vpop.f32.mrf.mxu0 }
 0x1b0   : > { %v1100_v25 = vpop.trf.xlu1  ;;  %11713 = vst [vmem:[#allocation41_spill] sm:$0xff] %v6811_v42 }
 0x1b1   : > { %5869 = vmatmul.mubr.msk.bf16.gmra.mxu0 %vm1234_vm0, %v1172_v46  ;;  %v1180_v27 = vpack.c.bf16 %v1100_v25, %v1099_v22  ;;  %v6813_v43 = vpop.f32.mrf.mxu0 }
 0x1b2   : > { %1395 = vmatprep.mubr.bf16.mxu0 %v11243_v0  ;;  %11714 = vst [vmem:[#allocation42_spill] sm:$0xff] %v6813_v43 }
 0x1b3   : > { %v6815_v44 = vpop.f32.mrf.mxu0 }
 0x1b4   : > { %11715 = vst [vmem:[#allocation43_spill] sm:$0xff] %v6815_v44 }
 0x1b5   : > { %v6817_v45 = vpop.f32.mrf.mxu0 }
 0x1b6   : > { %11716 = vst [vmem:[#allocation44_spill] sm:$0xff] %v6817_v45 }
 0x1b7   : > { %v6819_v46 = vpop.f32.mrf.mxu0 }
 0x1b8   : > { %11717 = vst [vmem:[#allocation45_spill] sm:$0xff] %v6819_v46 }
 0x1b9   : > { %5870 = vmatmul.mubr.msk.bf16.gmra.mxu0 %vm1234_vm0, %v1173_v49 }
 0x1ba   : > { %1405 = vmatprep.mubr.bf16.mxu0 %v11243_v0 }
 0x1c1   : > { %5871 = vmatmul.mubr.msk.bf16.gmra.mxu0 %vm1234_vm0, %v1174_v56 }
 0x1c2   : > { %1415 = vmatprep.mubr.bf16.mxu0 %v11243_v0 }
 0x1c9   : > { %5872 = vmatmul.mubr.msk.bf16.gmra.mxu0 %vm1234_vm0, %v1175_v63 }
 0x1ca   : > { %1425 = vmatprep.mubr.bf16.mxu0 %v11243_v0 }
 0x1d1   : > { %5873 = vmatmul.mubr.msk.bf16.gmra.mxu0 %vm1234_vm0, %v1176_v8 }
 0x1d2   : > { %1435 = vmatprep.mubr.bf16.mxu0 %v11243_v0 }
 0x1d9   : > { %5874 = vmatmul.mubr.msk.bf16.gmra.mxu0 %vm1234_vm0, %v1177_v14 }
 0x1da   : > { %1445 = vmatprep.mubr.bf16.mxu0 %v11243_v0 }
 0x1e1   : > { %5875 = vmatmul.mubr.msk.bf16.gmra.mxu0 %vm1234_vm0, %v1178_v18 }
 0x1e2   : > { %1455 = vmatprep.mubr.bf16.mxu0 %v11243_v0 }
 0x1e9   : > { %5876 = vmatmul.mubr.msk.bf16.gmra.mxu0 %vm1234_vm0, %v1179_v23 }
 0x1ea   : > { %1465 = vmatprep.mubr.bf16.mxu0 %v11243_v0 }
 0x1f1   : > { %5877 = vmatmul.mubr.msk.bf16.gmra.mxu0 %vm1234_vm0, %v1180_v27 }
 0x239   : > { %v6821_v47 = vpop.f32.mrf.mxu0 }
 0x23b   : > { %v6823_v49 = vpop.f32.mrf.mxu0 }
 0x23d   : > { %v6825_v52 = vpop.f32.mrf.mxu0 }
 0x23f   : > { %v6827_v56 = vpop.f32.mrf.mxu0 }
 0x240   : > { %v1479_v4 = vmax.f32 %v6825_v52, %v6827_v56 }
 0x241   : > { %v6829_v60 = vpop.f32.mrf.mxu0 }
 0x243   : > { %v6831_v63 = vpop.f32.mrf.mxu0 }
 0x245   : > { %v6833_v1 = vpop.f32.mrf.mxu0 }
 0x247   : > { %v6835_v7 = vpop.f32.mrf.mxu0 }
 0x248   : > { %v1485_v15 = vmax.f32 %v6833_v1, %v6835_v7 }
 0x249   : > { %v6837_v8 = vpop.f32.mrf.mxu0 }
 0x24b   : > { %v6839_v11 = vpop.f32.mrf.mxu0 }
 0x24d   : > { %v6841_v14 = vpop.f32.mrf.mxu0 }
 0x24f   : > { %v6843_v16 = vpop.f32.mrf.mxu0 }
 0x250   : > { %v1491_v10 = vmax.f32 %v6841_v14, %v6843_v16 }
 0x251   : > { %v6845_v18 = vpop.f32.mrf.mxu0 }
 0x253   : > { %v6847_v19 = vpop.f32.mrf.mxu0 }
 0x255   : > { %v6849_v22 = vpop.f32.mrf.mxu0 }
 0x257   : > { %v6851_v23 = vpop.f32.mrf.mxu0 }
 0x258   : > { %v1497_v20 = vmax.f32 %v6849_v22, %v6851_v23 }
 0x259   : > { %v6853_v25 = vpop.f32.mrf.mxu0 }
 0x25b   : > { %v6855_v27 = vpop.f32.mrf.mxu0 }
 0x25d   : > { %v6857_v0 = vpop.f32.mrf.mxu0 }
 0x25f   : > { %v6859_v13 = vpop.f32.mrf.mxu0 }
 0x260   : > { %v1503_v6 = vmax.f32 %v6857_v0, %v6859_v13 }
 0x261   : > { %v6861_v43 = vpop.f32.mrf.mxu0 }
 0x263   : > { %v6863_v45 = vpop.f32.mrf.mxu0 }
 0x265   : > { %v6865_v46 = vpop.f32.mrf.mxu0 }
 0x267   : > { %v6867_v44 = vpop.f32.mrf.mxu0 }
 0x268   : > { %v1509_v17 = vmax.f32 %v6865_v46, %v6867_v44 }
 0x269   : > { %v6869_v39 = vpop.f32.mrf.mxu0 }
 0x26b   : > { %v6871_v41 = vpop.f32.mrf.mxu0 }
 0x26c   : > { %v1512_v33 = vmax.f32 %v6869_v39, %v6871_v41 }
 0x26d   : > { %v6873_v42 = vpop.f32.mrf.mxu0 }
 0x26f   : > { %v6875_v40 = vpop.f32.mrf.mxu0 }
 0x270   : > { %v1515_v29 = vmax.f32 %v6873_v42, %v6875_v40 }
 0x271   : > { %v6877_v35 = vpop.f32.mrf.mxu0 }
 0x273   : > { %v6879_v37 = vpop.f32.mrf.mxu0 }
 0x274   : > { %v1518_v38 = vmax.f32 %v6877_v35, %v6879_v37 }
 0x275   : > { %v6883_v36 = vpop.f32.mrf.mxu0 }
 0x276   : > { %1519 = vmax.xlane.f32.xlu0 %v1518_v38  ;;  %v1506_v38 = vmax.f32 %v6861_v43, %v6863_v45 }
 0x277   : > { %v6885_v31 = vpop.f32.mrf.mxu0 }
 0x278   : > { %v1521_v34 = vmax.f32 %v6883_v36, %v6885_v31 }
 0x279   : > { %v6891_v32 = vpop.f32.mrf.mxu0 }
 0x27a   : > { %11718 = vst [vmem:[#allocation46_spill] sm:$0xff] %v6891_v32  ;;  %1513 = vmax.xlane.f32.xlu0 %v1512_v33  ;;  %1522 = vmax.xlane.f32.xlu1 %v1521_v34  ;;  %v1500_v33 = vmax.f32 %v6853_v25, %v6855_v27 }
 0x27b   : > { %v6893_v26 = vpop.f32.mrf.mxu0 }
 0x27c   : > { %11719 = vst [vmem:[#allocation47_spill] sm:$0xff] %v6893_v26 }
 0x27d   : > { %v6899_v30 = vpop.f32.mrf.mxu0 }
 0x27e   : > { %11720 = vst [vmem:[#allocation48_spill] sm:$0xff] %v6899_v30  ;;  %1516 = vmax.xlane.f32.xlu0 %v1515_v29  ;;  %1507 = vmax.xlane.f32.xlu1 %v1506_v38  ;;  %v1494_v29 = vmax.f32 %v6845_v18, %v6847_v19 }
 0x27f   : > { %v6901_v28 = vpop.f32.mrf.mxu0 }
 0x280   : > { %11721 = vst [vmem:[#allocation49_spill] sm:$0xff] %v6901_v28 }
 0x281   : > { %v6907_v34 = vpop.f32.mrf.mxu0 }
 0x282   : > { %1510 = vmax.xlane.f32.xlu0 %v1509_v17  ;;  %1501 = vmax.xlane.f32.xlu1 %v1500_v33  ;;  %v1488_v17 = vmax.f32 %v6837_v8, %v6839_v11 }
 0x283   : > { %v6909_v21 = vpop.f32.mrf.mxu0 }
 0x285   : > { %v6915_v38 = vpop.f32.mrf.mxu0 }
 0x286   : > { %11722 = vst [vmem:[#allocation50_spill] sm:$0xff] %v6915_v38  ;;  %1504 = vmax.xlane.f32.xlu0 %v1503_v6  ;;  %1495 = vmax.xlane.f32.xlu1 %v1494_v29  ;;  %v1482_v6 = vmax.f32 %v6829_v60, %v6831_v63 }
 0x287   : > { %v6917_v24 = vpop.f32.mrf.mxu0 }
 0x289   : > { %v6923_v33 = vpop.f32.mrf.mxu0 }
 0x28a   : > { %1498 = vmax.xlane.f32.xlu0 %v1497_v20  ;;  %1489 = vmax.xlane.f32.xlu1 %v1488_v17  ;;  %v1476_v20 = vmax.f32 %v6821_v47, %v6823_v49 }
 0x28b   : > { %v6925_v12 = vpop.f32.mrf.mxu0 }
 0x28d   : > { %v6931_v29 = vpop.f32.mrf.mxu0 }
 0x28e   : > { %1492 = vmax.xlane.f32.xlu0 %v1491_v10  ;;  %1483 = vmax.xlane.f32.xlu1 %v1482_v6 }
 0x28f   : > { %v6933_v53 = vpop.f32.mrf.mxu0 }
 0x291   : > { %v6939_v17 = vpop.f32.mrf.mxu0 }
 0x292   : > { %1486 = vmax.xlane.f32.xlu0 %v1485_v15  ;;  %1477 = vmax.xlane.f32.xlu1 %v1476_v20 }
 0x293   : > { %v6941_v61 = vpop.f32.mrf.mxu0 }
 0x295   : > { %v6945_v9 = vpop.f32.mrf.mxu0 }
 0x296   : > { %1480 = vmax.xlane.f32.xlu0 %v1479_v4 }
 0x297   : > { %v6947_v10 = vpop.f32.mrf.mxu0 }
 0x299   : > { %v6949_v6 = vpop.f32.mrf.mxu0 }
 0x29b   : > { %v6951_v50 = vpop.f32.mrf.mxu0 }
 0x29c   : > { %11723 = vst [vmem:[#allocation51_spill] sm:$0xff] %v6951_v50 }
 0x29d   : > { %v6953_v5 = vpop.f32.mrf.mxu0 }
 0x29e   : > { %11724 = vst [vmem:[#allocation52_spill] sm:$0xff] %v6953_v5 }
 0x29f   : > { %v6955_v2 = vpop.f32.mrf.mxu0 }
 0x2a0   : > { %11725 = vst [vmem:[#allocation53_spill] sm:$0xff] %v6955_v2 }
 0x2a1   : > { %v6957_v15 = vpop.f32.mrf.mxu0 }
 0x2a2   : > { %11726 = vst [vmem:[#allocation54_spill] sm:$0xff] %v6957_v15 }
 0x2a3   : > { %v6959_v20 = vpop.f32.mrf.mxu0 }
 0x2a4   : > { %11727 = vst [vmem:[#allocation55_spill] sm:$0xff] %v6959_v20  ;;  %v1554_v26 = vmax.f32 %v6957_v15, %v6959_v20 }
 0x2a5   : > { %v6961_v59 = vpop.f32.mrf.mxu0 }
 0x2a6   : > { %11728 = vst [vmem:[#allocation56_spill] sm:$0xff] %v6961_v59 }
 0x2a7   : > { %v6963_v3 = vpop.f32.mrf.mxu0 }
 0x2a8   : > { %11729 = vst [vmem:[#allocation57_spill] sm:$0xff] %v6963_v3 }
 0x2a9   : > { %v6965_v57 = vpop.f32.mrf.mxu0 }
 0x2ab   : > { %v6967_v4 = vpop.f32.mrf.mxu0 }
 0x2ac   : > { %11730 = vst [vmem:[#allocation58_spill] sm:$0xff] %v6967_v4  ;;  %v1560_v30 = vmax.f32 %v6965_v57, %v6967_v4  ;;  %v1557_v4 = vmax.f32 %v6961_v59, %v6963_v3 }
 0x2ad   : > { %v6969_v62 = vpop.f32.mrf.mxu0 }
 0x2ae   : > { %11731 = vst [vmem:[#allocation59_spill] sm:$0xff] %v6969_v62 }
 0x2af   : > { %v6971_v54 = vpop.f32.mrf.mxu0 }
 0x2b0   : > { %11732 = vst [vmem:[#allocation60_spill] sm:$0xff] %v6971_v54  ;;  %v1563_v38 = vmax.f32 %v6969_v62, %v6971_v54 }
 0x2b1   : > { %v6973_v58 = vpop.f32.mrf.mxu0 }
 0x2b3   : > { %v6975_v55 = vpop.f32.mrf.mxu0 }
 0x2b4   : > { %v1566_v51 = vmax.f32 %v6973_v58, %v6975_v55 }
 0x2b5   : > { %v6979_v48 = vpop.f32.mrf.mxu0 }
 0x2b6   : > { %1567 = vmax.xlane.f32.xlu1 %v1566_v51  ;;  %v1548_v51 = vmax.f32 %v6949_v6, %v6951_v50 }
 0x2b7   : > { %v6983_v28 = vpop.f32.mrf.mxu0 }
 0x2b8   : > { %v1569_v32 = vmax.f32 %v6979_v48, %v6983_v28 }
 0x2ba   : > { %1561 = vmax.xlane.f32.xlu1 %v1560_v30  ;;  %1570 = vmax.xlane.f32.xlu0 %v1569_v32  ;;  %v1551_v30 = vmax.f32 %v6953_v5, %v6955_v2 }
 0x2be   : > { %1555 = vmax.xlane.f32.xlu1 %v1554_v26  ;;  %1564 = vmax.xlane.f32.xlu0 %v1563_v38 }
 0x2c2   : > { %1549 = vmax.xlane.f32.xlu1 %v1548_v51  ;;  %1558 = vmax.xlane.f32.xlu0 %v1557_v4 }
 0x2c6   : > { %1552 = vmax.xlane.f32.xlu0 %v1551_v30 }
 0x2ff   : > { %v1520_v32 = vpop.xlane.xlu0 %1519 }
 0x300   : > { %v1600_v20 = vsub.f32 %v6877_v35, %v1520_v32  ;;  %v1601_v15 = vsub.f32 %v6879_v37, %v1520_v32 }
 0x302   : > { %v1692_v54 = vmul.f32 1.442695, %v1600_v20  ;;  %v1694_v26 = vmul.f32 1.442695, %v1601_v15 }
 0x303   : > { %v1514_v38 = vpop.xlane.xlu0 %1513  ;;  %v1523_v62 = vpop.xlane.xlu1 %1522 }
 0x304   : > { %5994 = vpow2.f32 %v1692_v54  ;;  %v1596_v50 = vsub.f32 %v6869_v39, %v1514_v38  ;;  %v1597_v3 = vsub.f32 %v6871_v41, %v1514_v38  ;;  %v1602_v4 = vsub.f32 %v6883_v36, %v1523_v62 }
 0x305   : > { %5996 = vpow2.f32 %v1694_v26  ;;  %v1603_v51 = vsub.f32 %v6885_v31, %v1523_v62 }
 0x306   : > { %v1684_v30 = vmul.f32 1.442695, %v1596_v50  ;;  %v1686_v2 = vmul.f32 1.442695, %v1597_v3  ;;  %v1696_v5 = vmul.f32 1.442695, %v1602_v4 }
 0x307   : > { %v1698_v35 = vmul.f32 1.442695, %v1603_v51  ;;  %v1517_v59 = vpop.xlane.xlu0 %1516  ;;  %v1508_v37 = vpop.xlane.xlu1 %1507 }
 0x308   : > { %5998 = vpow2.f32 %v1684_v30  ;;  %v1598_v15 = vsub.f32 %v6873_v42, %v1517_v59  ;;  %v1599_v54 = vsub.f32 %v6875_v40, %v1517_v59  ;;  %v1592_v39 = vsub.f32 %v6861_v43, %v1508_v37 }
 0x309   : > { %6000 = vpow2.f32 %v1686_v2  ;;  %v1593_v36 = vsub.f32 %v6863_v45, %v1508_v37 }
 0x30a   : > { %6002 = vpow2.f32 %v1696_v5  ;;  %v1688_v50 = vmul.f32 1.442695, %v1598_v15  ;;  %v1690_v3 = vmul.f32 1.442695, %v1599_v54  ;;  %v1676_v31 = vmul.f32 1.442695, %v1592_v39 }
 0x30b   : > { %6004 = vpow2.f32 %v1698_v35  ;;  %v1511_v41 = vpop.xlane.xlu0 %1510  ;;  %v1502_v62 = vpop.xlane.xlu1 %1501  ;;  %v1678_v20 = vmul.f32 1.442695, %v1593_v36 }
 0x30c   : > { %6006 = vpow2.f32 %v1688_v50  ;;  %v1594_v32 = vsub.f32 %v6865_v46, %v1511_v41  ;;  %v1595_v59 = vsub.f32 %v6867_v44, %v1511_v41  ;;  %v1588_v42 = vsub.f32 %v6853_v25, %v1502_v62 }
 0x30d   : > { %6008 = vpow2.f32 %v1690_v3  ;;  %v1589_v43 = vsub.f32 %v6855_v27, %v1502_v62  ;;  %v1542_v25 = vmax.f32 %v6939_v17, %v6941_v61 }
 0x30e   : > { %6010 = vpow2.f32 %v1676_v31  ;;  %v1680_v38 = vmul.f32 1.442695, %v1594_v32  ;;  %v1682_v4 = vmul.f32 1.442695, %v1595_v59  ;;  %v1668_v44 = vmul.f32 1.442695, %v1588_v42 }
 0x30f   : > { %v1505_v2 = vpop.xlane.xlu0 %1504  ;;  %v1496_v5 = vpop.xlane.xlu1 %1495  ;;  %6012 = vpow2.f32 %v1678_v20  ;;  %v1670_v35 = vmul.f32 1.442695, %v1589_v43  ;;  %v1545_v32 = vmax.f32 %v6945_v9, %v6947_v10  ;;  %v1536_v43 = vmax.f32 %v6923_v33, %v6925_v12 }
 0x310   : > { %6014 = vpow2.f32 %v1680_v38  ;;  %v1590_v54 = vsub.f32 %v6857_v0, %v1505_v2  ;;  %v1591_v39 = vsub.f32 %v6859_v13, %v1505_v2  ;;  %v1584_v41 = vsub.f32 %v6845_v18, %v1496_v5 }
 0x311   : > { %v7008_v26 = vpop.eup %5994  ;;  %6016 = vpow2.f32 %v1682_v4  ;;  %v1585_v62 = vsub.f32 %v6847_v19, %v1496_v5 }
 0x312   : > { %v7011_v40 = vpop.eup %5996  ;;  %6018 = vpow2.f32 %v1668_v44  ;;  %v1672_v3 = vmul.f32 1.442695, %v1590_v54  ;;  %v1674_v0 = vmul.f32 1.442695, %v1591_v39  ;;  %v1660_v18 = vmul.f32 1.442695, %v1584_v41 }
 0x313   : > { %v1806_v45 = vadd.f32 %v7011_v40, %v7008_v26  ;;  %v1499_v37 = vpop.xlane.xlu0 %1498  ;;  %v1490_v15 = vpop.xlane.xlu1 %1489  ;;  %6020 = vpow2.f32 %v1670_v35  ;;  %v1662_v5 = vmul.f32 1.442695, %v1585_v62 }
 0x314   : > { %v1580_v2 = vsub.f32 %v6837_v8, %v1490_v15  ;;  %v1581_v42 = vsub.f32 %v6839_v11, %v1490_v15  ;;  %6022 = vpow2.f32 %v1672_v3  ;;  %v1586_v38 = vsub.f32 %v6849_v22, %v1499_v37 }
 0x315   : > { %v7017_v46 = vpop.eup %5998  ;;  %1807 = vadd.xlane.f32.xlu1 %v1806_v45  ;;  %6024 = vpow2.f32 %v1674_v0  ;;  %v1587_v4 = vsub.f32 %v6851_v23, %v1499_v37 }
 0x316   : > { %v7019_v51 = vpop.eup %6000  ;;  %6026 = vpow2.f32 %v1660_v18  ;;  %v1652_v44 = vmul.f32 1.442695, %v1580_v2  ;;  %v1654_v35 = vmul.f32 1.442695, %v1581_v42  ;;  %v1664_v39 = vmul.f32 1.442695, %v1586_v38 }
 0x317   : > { %v7021_v30 = vpop.eup %6002  ;;  %v1800_v50 = vadd.f32 %v7019_v51, %v7017_v46  ;;  %v1493_v20 = vpop.xlane.xlu0 %1492  ;;  %6028 = vpow2.f32 %v1662_v5 }
 0x318   : > { %v7025_v27 = vpop.eup %6004  ;;  %v1484_v13 = vpop.xlane.xlu1 %1483  ;;  %v1582_v23 = vsub.f32 %v6841_v14, %v1493_v20  ;;  %v1583_v41 = vsub.f32 %v6843_v16, %v1493_v20  ;;  %6030 = vpow2.f32 %v1652_v44  ;;  %v1530_v16 = vmax.f32 %v6907_v34, %v6909_v21  ;;  %v11733_v44 = vld [vmem:[#allocation50_spill] sm:$0xff] }
 0x319   : > { %1543 = vmax.xlane.f32.xlu1 %v1542_v25  ;;  %v1809_v36 = vadd.f32 %v7025_v27, %v7021_v30  ;;  %v7035_v31 = vpop.eup %6006  ;;  %v1576_v11 = vsub.f32 %v6829_v60, %v1484_v13  ;;  %v1577_v15 = vsub.f32 %v6831_v63, %v1484_v13  ;;  %v1539_v60 = vmax.f32 %v6931_v29, %v6933_v53 }
 0x31a   : > { %v7039_v59 = vpop.eup %6008  ;;  %6032 = vpow2.f32 %v1654_v35  ;;  %v1656_v13 = vmul.f32 1.442695, %v1582_v23  ;;  %v1658_v18 = vmul.f32 1.442695, %v1583_v41 }
 0x31b   : > { %1810 = vadd.xlane.f32.xlu0 %v1809_v36  ;;  %v7042_v19 = vpop.eup %6010  ;;  %v1803_v8 = vadd.f32 %v7039_v59, %v7035_v31  ;;  %v1487_v25 = vpop.xlane.xlu0 %1486  ;;  %v1666_v36 = vmul.f32 1.442695, %v1587_v4  ;;  %v1644_v63 = vmul.f32 1.442695, %v1576_v11  ;;  %v1646_v0 = vmul.f32 1.442695, %v1577_v15 }
 0x31c   : > { %v7047_v45 = vpop.eup %6012  ;;  %v1478_v54 = vpop.xlane.xlu1 %1477  ;;  %6034 = vpow2.f32 %v1664_v39  ;;  %v1533_v11 = vmax.f32 %v11733_v44, %v6917_v24 }
 0x31d   : > { %1801 = vadd.xlane.f32.xlu1 %v1800_v50  ;;  %v1794_v22 = vadd.f32 %v7047_v45, %v7042_v19  ;;  %v7058_v37 = vpop.eup %6014  ;;  %v1572_v50 = vsub.f32 %v6821_v47, %v1478_v54  ;;  %v1573_v14 = vsub.f32 %v6823_v49, %v1478_v54  ;;  %6036 = vpow2.f32 %v1666_v36  ;;  %v11735_v54 = vld [vmem:[#allocation46_spill] sm:$0xff] }
 0x31e   : > { %v7063_v62 = vpop.eup %6016  ;;  %v1579_v47 = vsub.f32 %v6835_v7, %v1487_v25  ;;  %6038 = vpow2.f32 %v1644_v63 }
 0x31f   : > { %1546 = vmax.xlane.f32.xlu0 %v1545_v32  ;;  %v7066_v3 = vpop.eup %6018  ;;  %v1578_v32 = vsub.f32 %v6833_v1, %v1487_v25  ;;  %v1481_v2 = vpop.xlane.xlu0 %1480  ;;  %v1797_v5 = vadd.f32 %v7063_v62, %v7058_v37  ;;  %v1636_v49 = vmul.f32 1.442695, %v1572_v50  ;;  %6040 = vpow2.f32 %v1646_v0  ;;  %v11734_v25 = vld [vmem:[#allocation47_spill] sm:$0xff]  ;;  %v11736_v50 = vld [vmem:[#allocation49_spill] sm:$0xff]  ;;  %v11737_v0 = vld [vmem:[#allocation48_spill] sm:$0xff] }
 0x320   : > { %v7071_v20 = vpop.eup %6020  ;;  %v1638_v42 = vmul.f32 1.442695, %v1573_v14  ;;  %6042 = vpow2.f32 %v1656_v13  ;;  %v1574_v1 = vsub.f32 %v6825_v52, %v1481_v2  ;;  %v1650_v7 = vmul.f32 1.442695, %v1579_v47 }
 0x321   : > { %1537 = vmax.xlane.f32.xlu1 %v1536_v43  ;;  %v1788_v43 = vadd.f32 %v7071_v20, %v7066_v3  ;;  %v1648_v38 = vmul.f32 1.442695, %v1578_v32  ;;  %v7080_v4 = vpop.eup %6022  ;;  %6044 = vpow2.f32 %v1658_v18  ;;  %v1524_v52 = vmax.f32 %v11735_v54, %v11734_v25 }
 0x322   : > { %v7085_v35 = vpop.eup %6024  ;;  %6046 = vpow2.f32 %v1636_v49  ;;  %v1640_v39 = vmul.f32 1.442695, %v1574_v1  ;;  %v1527_v14 = vmax.f32 %v11737_v0, %v11736_v50 }
 0x323   : > { %1804 = vadd.xlane.f32.xlu0 %v1803_v8  ;;  %v1575_v8 = vsub.f32 %v6827_v56, %v1481_v2  ;;  %v7087_v15 = vpop.eup %6026  ;;  %6048 = vpow2.f32 %v1638_v42  ;;  %v1791_v23 = vadd.f32 %v7085_v35, %v7080_v4 }
 0x324   : > { %6050 = vpow2.f32 %v1648_v38 }
 0x325   : > { %1795 = vadd.xlane.f32.xlu1 %v1794_v22  ;;  %v7091_v22 = vpop.eup %6028  ;;  %6052 = vpow2.f32 %v1650_v7  ;;  %v1642_v56 = vmul.f32 1.442695, %v1575_v8 }
 0x326   : > { %v7095_v36 = vpop.eup %6030  ;;  %v1782_v41 = vadd.f32 %v7091_v22, %v7087_v15  ;;  %6054 = vpow2.f32 %v1640_v39 }
 0x327   : > { %1540 = vmax.xlane.f32.xlu0 %v1539_v60  ;;  %v7099_v60 = vpop.eup %6032  ;;  %6056 = vpow2.f32 %v1642_v56 }
 0x328   : > { %v1776_v32 = vadd.f32 %v7099_v60, %v7095_v36 }
 0x329   : > { %1531 = vmax.xlane.f32.xlu1 %v1530_v16  ;;  %v7101_v63 = vpop.eup %6034 }
 0x32a   : > { %v7105_v16 = vpop.eup %6036 }
 0x32b   : > { %1798 = vadd.xlane.f32.xlu0 %v1797_v5  ;;  %v7107_v13 = vpop.eup %6038  ;;  %v1785_v2 = vadd.f32 %v7105_v16, %v7101_v63 }
 0x32c   : > { %11738 = vst [vmem:[#allocation50_spill] sm:$0xff] %v7107_v13  ;;  %v7111_v18 = vpop.eup %6040 }
 0x32d   : > { %1789 = vadd.xlane.f32.xlu1 %v1788_v43  ;;  %11739 = vst [vmem:[#allocation47_spill] sm:$0xff] %v7111_v18  ;;  %v7113_v47 = vpop.eup %6042  ;;  %v1770_v42 = vadd.f32 %v7111_v18, %v7107_v13  ;;  %v11747_v18 = vld [vmem:[#allocation55_spill] sm:$0xff] }
 0x32e   : > { %v7117_v5 = vpop.eup %6044 }
 0x32f   : > { %1534 = vmax.xlane.f32.xlu0 %v1533_v11  ;;  %v7119_v49 = vpop.eup %6046  ;;  %v1779_v1 = vadd.f32 %v7117_v5, %v7113_v47 }
 0x330   : > { %11740 = vst [vmem:[#allocation46_spill] sm:$0xff] %v7119_v49  ;;  %v7123_v43 = vpop.eup %6048 }
 0x331   : > { %1525 = vmax.xlane.f32.xlu1 %v1524_v52  ;;  %11741 = vst [vmem:[#allocation49_spill] sm:$0xff] %v7123_v43  ;;  %v7125_v38 = vpop.eup %6050  ;;  %v1764_v11 = vadd.f32 %v7123_v43, %v7119_v49  ;;  %v11745_v49 = vld [vmem:[#allocation58_spill] sm:$0xff] }
 0x332   : > { %11742 = vst [vmem:[#allocation48_spill] sm:$0xff] %v7125_v38  ;;  %v7129_v7 = vpop.eup %6052 }
 0x333   : > { %1792 = vadd.xlane.f32.xlu0 %v1791_v23  ;;  %v7135_v56 = vpop.eup %6054  ;;  %v1773_v23 = vadd.f32 %v7129_v7, %v7125_v38 }
 0x334   : > { %11743 = vst [vmem:[#allocation61_spill] sm:$0xff] %v7135_v56 }
 0x335   : > { %1783 = vadd.xlane.f32.xlu1 %v1782_v41  ;;  %v7139_v41 = vpop.eup %6056 }
 0x336   : > { %11744 = vst [vmem:[#allocation62_spill] sm:$0xff] %v7139_v41 }
 0x337   : > { %1528 = vmax.xlane.f32.xlu0 %v1527_v14 }
 0x339   : > { %1777 = vadd.xlane.f32.xlu1 %v1776_v32 }
 0x33b   : > { %1786 = vadd.xlane.f32.xlu0 %v1785_v2 }
 0x33d   : > { %1771 = vadd.xlane.f32.xlu1 %v1770_v42 }
 0x33f   : > { %1780 = vadd.xlane.f32.xlu0 %v1779_v1  ;;  %v1568_v8 = vpop.xlane.xlu1 %1567 }
 0x340   : > { %v1632_v52 = vsub.f32 %v6973_v58, %v1568_v8  ;;  %v1633_v39 = vsub.f32 %v6975_v55, %v1568_v8 }
 0x341   : > { %1765 = vadd.xlane.f32.xlu1 %v1764_v11  ;;  %v1767_v11 = vadd.f32 %v7139_v41, %v7135_v56  ;;  %v11751_v41 = vld [vmem:[#allocation56_spill] sm:$0xff] }
 0x342   : > { %v1756_v14 = vmul.f32 1.442695, %v1632_v52  ;;  %v1758_v32 = vmul.f32 1.442695, %v1633_v39 }
 0x343   : > { %1774 = vadd.xlane.f32.xlu0 %v1773_v23  ;;  %v1562_v2 = vpop.xlane.xlu1 %1561  ;;  %v1571_v42 = vpop.xlane.xlu0 %1570 }
 0x344   : > { %6058 = vpow2.f32 %v1756_v14  ;;  %v1628_v1 = vsub.f32 %v6965_v57, %v1562_v2  ;;  %v1629_v58 = vsub.f32 %v11745_v49, %v1562_v2  ;;  %v1634_v55 = vsub.f32 %v6979_v48, %v1571_v42  ;;  %v11746_v14 = vld [vmem:[#allocation54_spill] sm:$0xff]  ;;  %v11748_v2 = vld [vmem:[#allocation59_spill] sm:$0xff] }
 0x345   : > { %6060 = vpow2.f32 %v1758_v32  ;;  %v1635_v8 = vsub.f32 %v6983_v28, %v1571_v42  ;;  %v11749_v32 = vld [vmem:[#allocation60_spill] sm:$0xff] }
 0x346   : > { %v1748_v43 = vmul.f32 1.442695, %v1628_v1  ;;  %v1750_v13 = vmul.f32 1.442695, %v1629_v58  ;;  %v1760_v52 = vmul.f32 1.442695, %v1634_v55 }
 0x347   : > { %v1762_v39 = vmul.f32 1.442695, %v1635_v8  ;;  %1768 = vadd.xlane.f32.xlu0 %v1767_v11  ;;  %v1556_v23 = vpop.xlane.xlu1 %1555  ;;  %v1565_v38 = vpop.xlane.xlu0 %1564  ;;  %v11750_v11 = vld [vmem:[#allocation51_spill] sm:$0xff] }
 0x348   : > { %6062 = vpow2.f32 %v1748_v43  ;;  %v1624_v57 = vsub.f32 %v11746_v14, %v1556_v23  ;;  %v1625_v49 = vsub.f32 %v11747_v18, %v1556_v23  ;;  %v1630_v48 = vsub.f32 %v11748_v2, %v1565_v38  ;;  %v11752_v23 = vld [vmem:[#allocation57_spill] sm:$0xff]  ;;  %v11753_v2 = vld [vmem:[#allocation52_spill] sm:$0xff] }
 0x349   : > { %6064 = vpow2.f32 %v1750_v13  ;;  %v1631_v28 = vsub.f32 %v11749_v32, %v1565_v38  ;;  %v11754_v32 = vld [vmem:[#allocation53_spill] sm:$0xff] }
 0x34a   : > { %6066 = vpow2.f32 %v1760_v52  ;;  %v1740_v42 = vmul.f32 1.442695, %v1624_v57  ;;  %v1742_v56 = vmul.f32 1.442695, %v1625_v49  ;;  %v1752_v1 = vmul.f32 1.442695, %v1630_v48 }
 0x34b   : > { %6068 = vpow2.f32 %v1762_v39  ;;  %v1754_v58 = vmul.f32 1.442695, %v1631_v28  ;;  %v1550_v55 = vpop.xlane.xlu1 %1549  ;;  %v1559_v8 = vpop.xlane.xlu0 %1558 }
 0x34c   : > { %6070 = vpow2.f32 %v1740_v42  ;;  %v1620_v43 = vsub.f32 %v6949_v6, %v1550_v55  ;;  %v1621_v14 = vsub.f32 %v11750_v11, %v1550_v55  ;;  %v1626_v18 = vsub.f32 %v11751_v41, %v1559_v8 }
 0x34d   : > { %6072 = vpow2.f32 %v1742_v56  ;;  %v1627_v13 = vsub.f32 %v11752_v23, %v1559_v8 }
 0x34e   : > { %6074 = vpow2.f32 %v1752_v1  ;;  %v1732_v38 = vmul.f32 1.442695, %v1620_v43  ;;  %v1734_v52 = vmul.f32 1.442695, %v1621_v14  ;;  %v1744_v57 = vmul.f32 1.442695, %v1626_v18 }
 0x34f   : > { %6076 = vpow2.f32 %v1754_v58  ;;  %v1746_v49 = vmul.f32 1.442695, %v1627_v13  ;;  %v1553_v39 = vpop.xlane.xlu0 %1552 }
 0x350   : > { %6078 = vpow2.f32 %v1732_v38  ;;  %v1622_v48 = vsub.f32 %v11753_v2, %v1553_v39  ;;  %v1623_v28 = vsub.f32 %v11754_v32, %v1553_v39 }
 0x351   : > { %v7157_v6 = vpop.eup %6058  ;;  %6080 = vpow2.f32 %v1734_v52 }
 0x352   : > { %v7159_v42 = vpop.eup %6060  ;;  %6082 = vpow2.f32 %v1744_v57  ;;  %v1736_v56 = vmul.f32 1.442695, %v1622_v48  ;;  %v1738_v41 = vmul.f32 1.442695, %v1623_v28 }
 0x353   : > { %6084 = vpow2.f32 %v1746_v49  ;;  %v1854_v1 = vadd.f32 %v7159_v42, %v7157_v6 }
 0x354   : > { %6086 = vpow2.f32 %v1736_v56 }
 0x355   : > { %v7163_v58 = vpop.eup %6062  ;;  %6088 = vpow2.f32 %v1738_v41  ;;  %1855 = vadd.xlane.f32.xlu1 %v1854_v1 }
 0x356   : > { %v7165_v55 = vpop.eup %6064 }
 0x357   : > { %v7167_v8 = vpop.eup %6066  ;;  %v1848_v43 = vadd.f32 %v7165_v55, %v7163_v58 }
 0x358   : > { %v7171_v11 = vpop.eup %6068 }
 0x359   : > { %v7173_v14 = vpop.eup %6070  ;;  %1849 = vadd.xlane.f32.xlu1 %v1848_v43  ;;  %v1857_v18 = vadd.f32 %v7171_v11, %v7167_v8 }
 0x35a   : > { %11755 = vst [vmem:[#allocation58_spill] sm:$0xff] %v7173_v14  ;;  %v7177_v23 = vpop.eup %6072 }
 0x35b   : > { %11756 = vst [vmem:[#allocation54_spill] sm:$0xff] %v7177_v23  ;;  %v7179_v13 = vpop.eup %6074  ;;  %1858 = vadd.xlane.f32.xlu0 %v1857_v18  ;;  %v1842_v38 = vadd.f32 %v7177_v23, %v7173_v14 }
 0x35c   : > { %v7183_v52 = vpop.eup %6076 }
 0x35d   : > { %v7185_v57 = vpop.eup %6078  ;;  %1843 = vadd.xlane.f32.xlu1 %v1842_v38  ;;  %v1851_v49 = vadd.f32 %v7183_v52, %v7179_v13 }
 0x35e   : > { %11757 = vst [vmem:[#allocation55_spill] sm:$0xff] %v7185_v57  ;;  %v7189_v39 = vpop.eup %6080 }
 0x35f   : > { %11758 = vst [vmem:[#allocation59_spill] sm:$0xff] %v7189_v39  ;;  %v7191_v2 = vpop.eup %6082  ;;  %1852 = vadd.xlane.f32.xlu0 %v1851_v49  ;;  %v1836_v48 = vadd.f32 %v7189_v39, %v7185_v57 }
 0x360   : > { %11759 = vst [vmem:[#allocation60_spill] sm:$0xff] %v7191_v2  ;;  %v7195_v32 = vpop.eup %6084 }
 0x361   : > { %v7197_v28 = vpop.eup %6086  ;;  %1837 = vadd.xlane.f32.xlu1 %v1836_v48  ;;  %v1845_v56 = vadd.f32 %v7195_v32, %v7191_v2 }
 0x362   : > { %11760 = vst [vmem:[#allocation51_spill] sm:$0xff] %v7197_v28  ;;  %v7201_v41 = vpop.eup %6088 }
 0x363   : > { %11761 = vst [vmem:[#allocation56_spill] sm:$0xff] %v7201_v41  ;;  %1846 = vadd.xlane.f32.xlu0 %v1845_v56  ;;  %v1839_v1 = vadd.f32 %v7201_v41, %v7197_v28 }
 0x367   : > { %1840 = vadd.xlane.f32.xlu0 %v1839_v1 }
 0x39e   : > { %v1808_v43 = vpop.xlane.xlu1 %1807 }
 0x39f   : > { %6090 = vrcp.f32 %v1808_v43 }
 0x3a2   : > { %v1544_v18 = vpop.xlane.xlu1 %1543 }
 0x3a3   : > { %v1616_v38 = vsub.f32 %v6939_v17, %v1544_v18  ;;  %v1617_v49 = vsub.f32 %v6941_v61, %v1544_v18 }
 0x3a4   : > { %v1811_v57 = vpop.xlane.xlu0 %1810 }
 0x3a5   : > { %v1724_v39 = vmul.f32 1.442695, %v1616_v38  ;;  %v1726_v48 = vmul.f32 1.442695, %v1617_v49  ;;  %6092 = vrcp.f32 %v1811_v57 }
 0x3a6   : > { %v1802_v14 = vpop.xlane.xlu1 %1801 }
 0x3a7   : > { %6094 = vpow2.f32 %v1724_v39 }
 0x3a8   : > { %6096 = vpow2.f32 %v1726_v48  ;;  %v1547_v2 = vpop.xlane.xlu0 %1546 }
 0x3a9   : > { %v1618_v56 = vsub.f32 %v6945_v9, %v1547_v2  ;;  %v1619_v28 = vsub.f32 %v6947_v10, %v1547_v2  ;;  %6098 = vrcp.f32 %v1802_v14 }
 0x3aa   : > { %v1538_v1 = vpop.xlane.xlu1 %1537 }
 0x3ab   : > { %v1728_v41 = vmul.f32 1.442695, %v1618_v56  ;;  %v1730_v43 = vmul.f32 1.442695, %v1619_v28  ;;  %v1612_v23 = vsub.f32 %v6923_v33, %v1538_v1  ;;  %v1613_v17 = vsub.f32 %v6925_v12, %v1538_v1 }
 0x3ac   : > { %v1805_v61 = vpop.xlane.xlu0 %1804  ;;  %v6091_v38 = vpop.eup %6090 }
 0x3ad   : > { %6100 = vpow2.f32 %v1728_v41  ;;  %v1716_v18 = vmul.f32 1.442695, %v1612_v23  ;;  %v1718_v57 = vmul.f32 1.442695, %v1613_v17  ;;  %v1921_v12 = vmul.f32 %v6091_v38, %v7011_v40 }
 0x3ae   : > { %6102 = vpow2.f32 %v1730_v43  ;;  %v1796_v39 = vpop.xlane.xlu1 %1795 }
 0x3af   : > { %6104 = vpow2.f32 %v1716_v18 }
 0x3b0   : > { %6106 = vpow2.f32 %v1718_v57  ;;  %v1541_v9 = vpop.xlane.xlu0 %1540 }
 0x3b1   : > { %6108 = vrcp.f32 %v1805_v61  ;;  %v1614_v10 = vsub.f32 %v6931_v29, %v1541_v9  ;;  %v1615_v2 = vsub.f32 %v6933_v53, %v1541_v9  ;;  %v1920_v29 = vmul.f32 %v6091_v38, %v7008_v26 }
 0x3b2   : > { %v6093_v28 = vpop.eup %6092  ;;  %v1532_v33 = vpop.xlane.xlu1 %1531  ;;  %6110 = vrcp.f32 %v1796_v39 }
 0x3b3   : > { %v1720_v14 = vmul.f32 1.442695, %v1614_v10  ;;  %v1722_v49 = vmul.f32 1.442695, %v1615_v2  ;;  %v1608_v23 = vsub.f32 %v6907_v34, %v1532_v33  ;;  %v1609_v41 = vsub.f32 %v6909_v21, %v1532_v33 }
 0x3b4   : > { %v7216_v48 = vpop.eup %6094  ;;  %v1799_v56 = vpop.xlane.xlu0 %1798  ;;  %v1923_v1 = vmul.f32 %v6093_v28, %v7025_v27  ;;  %v1922_v53 = vmul.f32 %v6093_v28, %v7021_v30 }
 0x3b5   : > { %v7221_v43 = vpop.eup %6096  ;;  %6112 = vpow2.f32 %v1720_v14  ;;  %v1708_v40 = vmul.f32 1.442695, %v1608_v23  ;;  %v1710_v17 = vmul.f32 1.442695, %v1609_v41 }
 0x3b6   : > { %6114 = vpow2.f32 %v1722_v49  ;;  %v1971_v61 = vpack.c.bf16 %v1923_v1, %v1921_v12  ;;  %v1790_v34 = vpop.xlane.xlu1 %1789  ;;  %v1970_v18 = vpack.c.bf16 %v1922_v53, %v1920_v29  ;;  %v1830_v21 = vadd.f32 %v7221_v43, %v7216_v48  ;;  %v6099_v26 = vpop.eup %6098 }
 0x3b7   : > { %6116 = vpow2.f32 %v1708_v40  ;;  %v1916_v29 = vmul.f32 %v6099_v26, %v7017_v46 }
 0x3b8   : > { %6118 = vpow2.f32 %v1710_v17  ;;  %1988 = vmatprep.subr.bf16.mxu1 %v1971_v61  ;;  %v1535_v27 = vpop.xlane.xlu0 %1534  ;;  %1831 = vadd.xlane.f32.xlu1 %v1830_v21 }
 0x3b9   : > { %6120 = vrcp.f32 %v1799_v56  ;;  %1989 = vmatpush1.bf16.xpose.msra.mxu1 %v1970_v18  ;;  %v1610_v30 = vsub.f32 %v11733_v44, %v1535_v27  ;;  %v1611_v57 = vsub.f32 %v6917_v24, %v1535_v27  ;;  %v1917_v56 = vmul.f32 %v6099_v26, %v7019_v51 }
 0x3ba   : > { %v7227_v39 = vpop.eup %6100  ;;  %v1526_v38 = vpop.xlane.xlu1 %1525  ;;  %6122 = vrcp.f32 %v1790_v34 }
 0x3bb   : > { %v7229_v9 = vpop.eup %6102  ;;  %v1712_v10 = vmul.f32 1.442695, %v1610_v30  ;;  %v1714_v2 = vmul.f32 1.442695, %v1611_v57  ;;  %v1604_v28 = vsub.f32 %v11735_v54, %v1526_v38  ;;  %v1605_v33 = vsub.f32 %v11734_v25, %v1526_v38 }
 0x3bc   : > { %v7233_v12 = vpop.eup %6104  ;;  %v1793_v14 = vpop.xlane.xlu0 %1792  ;;  %v1833_v44 = vadd.f32 %v7229_v9, %v7227_v39 }
 0x3bd   : > { %v7237_v49 = vpop.eup %6106  ;;  %6124 = vpow2.f32 %v1712_v10  ;;  %v1700_v24 = vmul.f32 1.442695, %v1604_v28  ;;  %v1702_v23 = vmul.f32 1.442695, %v1605_v33 }
 0x3be   : > { %v6109_v41 = vpop.eup %6108  ;;  %6126 = vpow2.f32 %v1714_v2  ;;  %1834 = vadd.xlane.f32.xlu0 %v1833_v44  ;;  %v1784_v54 = vpop.xlane.xlu1 %1783  ;;  %v1824_v25 = vadd.f32 %v7237_v49, %v7233_v12 }
 0x3bf   : > { %6128 = vpow2.f32 %v1700_v24  ;;  %v1919_v1 = vmul.f32 %v6109_v41, %v7039_v59  ;;  %v1918_v53 = vmul.f32 %v6109_v41, %v7035_v31  ;;  %v6111_v17 = vpop.eup %6110 }
 0x3c0   : > { %6130 = vpow2.f32 %v1702_v23  ;;  %v1529_v40 = vpop.xlane.xlu0 %1528  ;;  %1825 = vadd.xlane.f32.xlu1 %v1824_v25  ;;  %v1912_v28 = vmul.f32 %v6111_v17, %v7042_v19 }
 0x3c1   : > { %6132 = vrcp.f32 %v1793_v14  ;;  %v1969_v61 = vpack.c.bf16 %v1919_v1, %v1917_v56  ;;  %v1968_v34 = vpack.c.bf16 %v1918_v53, %v1916_v29  ;;  %v1606_v51 = vsub.f32 %v11737_v0, %v1529_v40 }
 0x3c2   : > { %v7246_v18 = vpop.eup %6112  ;;  %v1607_v21 = vsub.f32 %v11736_v50, %v1529_v40  ;;  %v1778_v27 = vpop.xlane.xlu1 %1777  ;;  %6134 = vrcp.f32 %v1784_v54  ;;  %v1913_v50 = vmul.f32 %v6111_v17, %v7047_v45 }
 0x3c3   : > { %v7249_v30 = vpop.eup %6114  ;;  %1990 = vmatprep.subr.bf16.mxu1 %v1969_v61  ;;  %v1704_v46 = vmul.f32 1.442695, %v1606_v51  ;;  %6136 = vrcp.f32 %v1778_v27 }
 0x3c4   : > { %v7251_v31 = vpop.eup %6116  ;;  %1991 = vmatpush1.bf16.xpose.msra.mxu1 %v1968_v34  ;;  %v1706_v59 = vmul.f32 1.442695, %v1607_v21  ;;  %v1787_v26 = vpop.xlane.xlu0 %1786  ;;  %v1827_v57 = vadd.f32 %v7249_v30, %v7246_v18 }
 0x3c5   : > { %v7255_v0 = vpop.eup %6118  ;;  %6138 = vpow2.f32 %v1704_v46 }
 0x3c6   : > { %v6121_v38 = vpop.eup %6120  ;;  %6140 = vpow2.f32 %v1706_v59  ;;  %1828 = vadd.xlane.f32.xlu0 %v1827_v57  ;;  %v1818_v10 = vadd.f32 %v7255_v0, %v7251_v31  ;;  %v1772_v25 = vpop.xlane.xlu1 %1771 }
 0x3c7   : > { %6142 = vrcp.f32 %v1787_v26  ;;  %v1915_v2 = vmul.f32 %v6121_v38, %v7063_v62  ;;  %v1914_v33 = vmul.f32 %v6121_v38, %v7058_v37  ;;  %v6123_v44 = vpop.eup %6122 }
 0x3c8   : > { %v1781_v14 = vpop.xlane.xlu0 %1780  ;;  %1819 = vadd.xlane.f32.xlu1 %v1818_v10  ;;  %v1909_v1 = vmul.f32 %v6123_v44, %v7071_v20  ;;  %v1908_v40 = vmul.f32 %v6123_v44, %v7066_v3 }
 0x3c9   : > { %v1967_v24 = vpack.c.bf16 %v1915_v2, %v1913_v50  ;;  %v1966_v23 = vpack.c.bf16 %v1914_v33, %v1912_v28  ;;  %6144 = vrcp.f32 %v1781_v14 }
 0x3ca   : > { %v7263_v41 = vpop.eup %6124  ;;  %v1766_v38 = vpop.xlane.xlu1 %1765 }
 0x3cb   : > { %v7265_v56 = vpop.eup %6126  ;;  %1992 = vmatprep.subr.bf16.mxu1 %v1967_v24 }
 0x3cc   : > { %v7267_v45 = vpop.eup %6128  ;;  %1993 = vmatpush1.bf16.xpose.msra.mxu1 %v1966_v23  ;;  %v1775_v54 = vpop.xlane.xlu0 %1774  ;;  %v1821_v19 = vadd.f32 %v7265_v56, %v7263_v41 }
 0x3cd   : > { %v7271_v62 = vpop.eup %6130  ;;  %6146 = vrcp.f32 %v1775_v54 }
 0x3ce   : > { %v6133_v37 = vpop.eup %6132  ;;  %1822 = vadd.xlane.f32.xlu0 %v1821_v19  ;;  %v1812_v29 = vadd.f32 %v7271_v62, %v7267_v45  ;;  %6148 = vrcp.f32 %v1772_v25  ;;  %v597_v19 = vld [vmem:[%s11234_s5 + $0x30] sm:$0xff] }
 0x3cf   : > { %v1911_v53 = vmul.f32 %v6133_v37, %v7085_v35  ;;  %v1910_v17 = vmul.f32 %v6133_v37, %v7080_v4  ;;  %v6135_v61 = vpop.eup %6134 }
 0x3d0   : > { %1813 = vadd.xlane.f32.xlu1 %v1812_v29  ;;  %v6137_v34 = vpop.eup %6136  ;;  %v1769_v59 = vpop.xlane.xlu0 %1768  ;;  %v1905_v3 = vmul.f32 %v6135_v61, %v7091_v22  ;;  %v1904_v50 = vmul.f32 %v6135_v61, %v7087_v15  ;;  %v595_v15 = vld [vmem:[%s11234_s5 + $0x20] sm:$0xff]  ;;  %v11763_v29 = vld [vmem:[#allocation48_spill] sm:$0xff] }
 0x3d1   : > { %v1965_v51 = vpack.c.bf16 %v1911_v53, %v1909_v1  ;;  %v1964_v21 = vpack.c.bf16 %v1910_v17, %v1908_v40  ;;  %6150 = vrcp.f32 %v1769_v59  ;;  %v1901_v2 = vmul.f32 %v6137_v34, %v7099_v60  ;;  %v598_v53 = vld [vmem:[%s11234_s5 + $0x38] sm:$0xff]  ;;  %v11764_v40 = vld [vmem:[#allocation62_spill] sm:$0xff]  ;;  %v596_v59 = vld [vmem:[%s11234_s5 + $0x28] sm:$0xff] }
 0x3d2   : > { %v7279_v27 = vpop.eup %6138  ;;  %6152 = vrcp.f32 %v1766_v38  ;;  %v1900_v60 = vmul.f32 %v6137_v34, %v7095_v36  ;;  %v11765_v61 = vld [vmem:[#allocation50_spill] sm:$0xff] }
 0x3d3   : > { %v7281_v46 = vpop.eup %6140  ;;  %1994 = vmatprep.subr.bf16.mxu1 %v1965_v51 }
 0x3d4   : > { %v6143_v20 = vpop.eup %6142  ;;  %1995 = vmatpush1.bf16.xpose.msra.mxu1 %v1964_v21  ;;  %v1815_v35 = vadd.f32 %v7281_v46, %v7279_v27  ;;  %v11766_v21 = vld [vmem:[#allocation49_spill] sm:$0xff] }
 0x3d5   : > { %v1907_v4 = vmul.f32 %v6143_v20, %v7105_v16  ;;  %v1906_v26 = vmul.f32 %v6143_v20, %v7101_v63 }
 0x3d6   : > { %v6145_v57 = vpop.eup %6144  ;;  %1816 = vadd.xlane.f32.xlu0 %v1815_v35 }
 0x3d7   : > { %v1963_v10 = vpack.c.bf16 %v1907_v4, %v1905_v3  ;;  %v1903_v28 = vmul.f32 %v6145_v57, %v7117_v5  ;;  %v1962_v33 = vpack.c.bf16 %v1906_v26, %v1904_v50  ;;  %v1902_v44 = vmul.f32 %v6145_v57, %v7113_v47  ;;  %v11762_v5 = vld [vmem:[#allocation47_spill] sm:$0xff]  ;;  %v599_v57 = vld [vmem:[%s11234_s5 + $0x40] sm:$0xff]  ;;  %v11767_v50 = vld [vmem:[#allocation61_spill] sm:$0xff] }
 0x3d8   : > { %v600_v3 = vld [vmem:[%s11234_s5 + $0x48] sm:$0xff] }
 0x3d9   : > { %1996 = vmatprep.subr.bf16.mxu1 %v1963_v10  ;;  %v1961_v14 = vpack.c.bf16 %v1903_v28, %v1901_v2  ;;  %v1960_v54 = vpack.c.bf16 %v1902_v44, %v1900_v60  ;;  %v602_v2 = vld [vmem:[%s11234_s5 + $0x58] sm:$0xff]  ;;  %v604_v44 = vld [vmem:[%s11234_s5 + $0x68] sm:$0xff] }
 0x3da   : > { %v6147_v22 = vpop.eup %6146 }
 0x3db   : > { %v6149_v16 = vpop.eup %6148  ;;  %v1899_v24 = vmul.f32 %v6147_v22, %v7129_v7  ;;  %v1898_v36 = vmul.f32 %v6147_v22, %v11763_v29  ;;  %v601_v22 = vld [vmem:[%s11234_s5 + $0x50] sm:$0xff] }
 0x3dc   : > { %1997 = vmatpush1.bf16.xpose.msra.mxu1 %v1962_v33  ;;  %v1897_v23 = vmul.f32 %v6149_v16, %v11762_v5  ;;  %v1896_v34 = vmul.f32 %v6149_v16, %v11765_v61  ;;  %v11768_v33 = vld [vmem:[#allocation46_spill] sm:$0xff] }
 0x3dd   : > { %1998 = vmatprep.subr.bf16.mxu1 %v1961_v14 }
 0x3de   : > { %v1856_v63 = vpop.xlane.xlu1 %1855  ;;  %v1959_v37 = vpack.c.bf16 %v1899_v24, %v1897_v23  ;;  %v6151_v25 = vpop.eup %6150  ;;  %v1958_v35 = vpack.c.bf16 %v1898_v36, %v1896_v34  ;;  %v11769_v34 = vld [vmem:[#allocation54_spill] sm:$0xff] }
 0x3df   : > { %6154 = vrcp.f32 %v1856_v63  ;;  %v6153_v7 = vpop.eup %6152  ;;  %v1895_v17 = vmul.f32 %v6151_v25, %v11764_v40  ;;  %v1894_v10 = vmul.f32 %v6151_v25, %v11767_v50  ;;  %v610_v40 = vld [vmem:[%s11234_s5 + $0x98] sm:$0xff] }
 0x3e0   : > { %v1893_v20 = vmul.f32 %v6153_v7, %v11766_v21  ;;  %v1892_v14 = vmul.f32 %v6153_v7, %v11768_v33  ;;  %v605_v7 = vld [vmem:[%s11234_s5 + $0x70] sm:$0xff] }
 0x3e1   : > { %633 = vperm.xlu1 %5967, %v595_v15   ;;  %v609_v21 = vld [vmem:[%s11234_s5 + $0x90] sm:$0xff] }
 0x3e2   : > { %v1850_v47 = vpop.xlane.xlu1 %1849  ;;  %v1957_v4 = vpack.c.bf16 %v1895_v17, %v1893_v20  ;;  %v1956_v63 = vpack.c.bf16 %v1894_v10, %v1892_v14  ;;  %v11775_v14 = vld [vmem:[#allocation55_spill] sm:$0xff] }
 0x3e4   : > { %1999 = vmatpush1.bf16.xpose.msra.mxu1 %v1960_v54  ;;  %v1859_v1 = vpop.xlane.xlu0 %1858  ;;  %v603_v54 = vld [vmem:[%s11234_s5 + $0x60] sm:$0xff] }
 0x3e5   : > { %2000 = vmatprep.subr.bf16.mxu1 %v1959_v37  ;;  %6156 = vrcp.f32 %v1859_v1  ;;  %643 = vperm.xlu1 %5967, %v597_v19  }
 0x3e6   : > { %6158 = vrcp.f32 %v1850_v47  ;;  %v1844_v38 = vpop.xlane.xlu1 %1843 }
 0x3e8   : > { %v1853_v51 = vpop.xlane.xlu0 %1852 }
 0x3e9   : > { %6160 = vrcp.f32 %v1853_v51  ;;  %648 = vperm.xlu1 %5967, %v598_v53  }
 0x3ea   : > { %v1838_v25 = vpop.xlane.xlu1 %1837 }
 0x3ec   : > { %2001 = vmatpush1.bf16.xpose.msra.mxu1 %v1958_v35  ;;  %638 = vperm.xlu0 %5966, %v596_v59   ;;  %v1847_v26 = vpop.xlane.xlu0 %1846  ;;  %v6155_v28 = vpop.eup %6154 }
 0x3ed   : > { %2002 = vmatprep.subr.bf16.mxu1 %v1957_v4  ;;  %658 = vperm.xlu1 %5967, %v600_v3   ;;  %6162 = vrcp.f32 %v1847_v26  ;;  %v1953_v15 = vmul.f32 %v6155_v28, %v7159_v42  ;;  %v1952_v47 = vmul.f32 %v6155_v28, %v7157_v6  ;;  %v606_v42 = vld [vmem:[%s11234_s5 + $0x78] sm:$0xff]  ;;  %v608_v6 = vld [vmem:[%s11234_s5 + $0x88] sm:$0xff]  ;;  %v11770_v3 = vld [vmem:[#allocation60_spill] sm:$0xff] }
 0x3ee   : > { %6164 = vrcp.f32 %v1844_v38  ;;  %v11773_v38 = vld [vmem:[#allocation59_spill] sm:$0xff] }
 0x3ef   : > { %v11774_v28 = vld [vmem:[#allocation51_spill] sm:$0xff] }
 0x3f0   : > { %653 = vperm.xlu0 %5966, %v599_v57   ;;  %v1841_v5 = vpop.xlane.xlu0 %1840  ;;  %v11772_v57 = vld [vmem:[#allocation58_spill] sm:$0xff] }
 0x3f1   : > { %668 = vperm.xlu1 %5967, %v602_v2   ;;  %6166 = vrcp.f32 %v1841_v5 }
 0x3f2   : > { %v6157_v16 = vpop.eup %6156  ;;  %6168 = vrcp.f32 %v1838_v25  ;;  %v11781_v25 = vld [vmem:[#allocation8_spill] sm:$0xff] }
 0x3f3   : > { %v1955_v24 = vmul.f32 %v6157_v16, %v7171_v11  ;;  %v6159_v60 = vpop.eup %6158  ;;  %v1954_v23 = vmul.f32 %v6157_v16, %v7167_v8 }
 0x3f4   : > { %2003 = vmatpush1.bf16.xpose.msra.mxu1 %v1956_v63  ;;  %663 = vperm.xlu0 %5966, %v601_v22   ;;  %v1949_v11 = vmul.f32 %v6159_v60, %v7165_v55  ;;  %v607_v55 = vld [vmem:[%s11234_s5 + $0x80] sm:$0xff]  ;;  %v1948_v61 = vmul.f32 %v6159_v60, %v7163_v58 }
 0x3f5   : > { %678 = vperm.xlu1 %5967, %v604_v44   ;;  %v1987_v19 = vpack.c.bf16 %v1955_v24, %v1953_v15  ;;  %v1986_v1 = vpack.c.bf16 %v1954_v23, %v1952_v47  ;;  %v11776_v63 = vld [vmem:[#allocation2_spill] sm:$0xff]  ;;  %v11777_v44 = vld [vmem:[#allocation3_spill] sm:$0xff]  ;;  %v11778_v24 = vld [vmem:[#allocation5_spill] sm:$0xff]  ;;  %v7369_v23 = vpop.f32.mrf.mxu1 }
 0x3f6   : > { %v6161_v37 = vpop.eup %6160  ;;  %v939_v15 = vadd.f32 %v11777_v44, %v11776_v63  ;;  %v11779_v60 = vld [vmem:[#allocation6_spill] sm:$0xff]  ;;  %v945_v47 = vadd.f32 %v11781_v25, %v11778_v24  ;;  %v11784_v25 = vld [vmem:[#allocation15_spill] sm:$0xff] }
 0x3f7   : > { %2004 = vmatprep.subr.bf16.mxu1 %v1987_v19  ;;  %v1951_v8 = vmul.f32 %v6161_v37, %v7183_v52  ;;  %v1950_v53 = vmul.f32 %v6161_v37, %v7179_v13  ;;  %v943_v5 = vadd.f32 %v11779_v60, %v11778_v24  ;;  %v7373_v37 = vpop.f32.mrf.mxu1 }
 0x3f8   : > { %673 = vperm.xlu0 %5966, %v603_v54   ;;  %v11780_v54 = vld [vmem:[#allocation4_spill] sm:$0xff] }
 0x3f9   : > { %688 = vperm.xlu1 %5967, %v606_v42   ;;  %v1985_v29 = vpack.c.bf16 %v1951_v8, %v1949_v11  ;;  %v1984_v20 = vpack.c.bf16 %v1950_v53, %v1948_v61  ;;  %v941_v19 = vadd.f32 %v11780_v54, %v11776_v63  ;;  %v7377_v42 = vpop.f32.mrf.mxu1 }
 0x3fa   : > { %v6163_v36 = vpop.eup %6162 }
 0x3fb   : > { %v6165_v52 = vpop.eup %6164  ;;  %v1947_v17 = vmul.f32 %v6163_v36, %v7195_v32  ;;  %v1946_v4 = vmul.f32 %v6163_v36, %v11770_v3  ;;  %v11771_v32 = vld [vmem:[#allocation56_spill] sm:$0xff]  ;;  %v964_v11 = vpop.f32.mrf.mxu1 }
 0x3fc   : > { %2005 = vmatpush2.bf16.xpose.msra.mxu1 %v1986_v1  ;;  %683 = vperm.xlu0 %5966, %v605_v7   ;;  %v1945_v51 = vmul.f32 %v6165_v52, %v11769_v34  ;;  %v1944_v58 = vmul.f32 %v6165_v52, %v11772_v57 }
 0x3fd   : > { %2006 = vmatprep.subr.bf16.mxu1 %v1985_v29  ;;  %698 = vperm.xlu1 %5967, %v608_v6   ;;  %v7379_v8 = vpop.f32.mrf.mxu1 }
 0x3fe   : > { %v1983_v59 = vpack.c.bf16 %v1947_v17, %v1945_v51  ;;  %v6167_v35 = vpop.eup %6166  ;;  %v1982_v10 = vpack.c.bf16 %v1946_v4, %v1944_v58 }
 0x3ff   : > { %v6169_v13 = vpop.eup %6168  ;;  %v1943_v26 = vmul.f32 %v6167_v35, %v11771_v32  ;;  %v1942_v33 = vmul.f32 %v6167_v35, %v11774_v28  ;;  %v7381_v1 = vpop.f32.mrf.mxu1 }
 0x400   : > { %693 = vperm.xlu0 %5966, %v607_v55   ;;  %v1941_v50 = vmul.f32 %v6169_v13, %v11773_v38  ;;  %v1940_v22 = vmul.f32 %v6169_v13, %v11775_v14 }
 0x401   : > { %708 = vperm.xlu1 %5967, %v610_v40   ;;  %v7383_v7 = vpop.f32.mrf.mxu1 }
 0x402   : > { %v1981_v2 = vpack.c.bf16 %v1943_v26, %v1941_v50  ;;  %v1980_v16 = vpack.c.bf16 %v1942_v33, %v1940_v22 }
 0x403   : > { %v7385_v29 = vpop.f32.mrf.mxu1 }
 0x404   : > { %2007 = vmatpush2.bf16.xpose.msra.mxu1 %v1984_v20  ;;  %703 = vperm.xlu0 %5966, %v609_v21  }
 0x405   : > { %2008 = vmatprep.subr.bf16.mxu1 %v1983_v59  ;;  %v7387_v36 = vpop.f32.mrf.mxu1 }
 0x407   : > { %v7389_v52 = vpop.f32.mrf.mxu1 }
 0x409   : > { %v7391_v40 = vpop.f32.mrf.mxu1 }
 0x40b   : > { %v7393_v61 = vpop.f32.mrf.mxu1 }
 0x40c   : > { %2009 = vmatpush2.bf16.xpose.msra.mxu1 %v1982_v10 }
 0x40d   : > { %2010 = vmatprep.subr.bf16.mxu1 %v1981_v2  ;;  %v7395_v20 = vpop.f32.mrf.mxu1 }
 0x40f   : > { %v7401_v57 = vpop.f32.mrf.mxu1 }
 0x411   : > { %v7403_v10 = vpop.f32.mrf.mxu1 }
 0x413   : > { %v7409_v14 = vpop.f32.mrf.mxu1 }
 0x414   : > { %2011 = vmatpush2.bf16.xpose.msra.mxu1 %v1980_v16 }
 0x415   : > { %v7411_v63 = vpop.f32.mrf.mxu1 }
 0x422   : > { %1101 = vxpose.xlu0.b32.start [1/2] (short) %v939_v15, 128 }
 0x426   : > { %1102 = vxpose.xlu0.b32.end [2/2] (short) %v943_v5, 128  ;;  %v7421_v5 = vpop.f32.mrf.mxu1 }
 0x42a   : > { %1133 = vxpose.xlu1.b32.start [1/2] (short) %v941_v19, 128 }
 0x42e   : > { %1134 = vxpose.xlu1.b32.end [2/2] (short) %v945_v47, 128 }
 0x441   : > { %v1832_v6 = vpop.xlane.xlu1 %1831 }
 0x442   : > { %6170 = vrcp.f32 %v1832_v6 }
 0x447   : > { %v1835_v55 = vpop.xlane.xlu0 %1834 }
 0x448   : > { %6172 = vrcp.f32 %v1835_v55 }
 0x449   : > { %v1826_v53 = vpop.xlane.xlu1 %1825 }
 0x44a   : > { %6174 = vrcp.f32 %v1826_v53 }
 0x44f   : > { %v1829_v17 = vpop.xlane.xlu0 %1828  ;;  %v6171_v34 = vpop.eup %6170 }
 0x450   : > { %6176 = vrcp.f32 %v1829_v17  ;;  %v1937_v59 = vmul.f32 %v6171_v34, %v7221_v43  ;;  %v1936_v13 = vmul.f32 %v6171_v34, %v7216_v48  ;;  %v11787_v17 = vld [vmem:[#allocation7_spill] sm:$0xff]  ;;  %v11788_v34 = vld [vmem:[#allocation9_spill] sm:$0xff] }
 0x451   : > { %v1820_v51 = vpop.xlane.xlu1 %1819 }
 0x452   : > { %6178 = vrcp.f32 %v1820_v51  ;;  %v818_v51 = vadd.f32 %v11788_v34, %v11787_v17 }
 0x455   : > { %v6173_v21 = vpop.eup %6172 }
 0x456   : > { %v1939_v35 = vmul.f32 %v6173_v21, %v7229_v9  ;;  %v1938_v3 = vmul.f32 %v6173_v21, %v7227_v39  ;;  %v11790_v21 = vld [vmem:[#allocation13_spill] sm:$0xff] }
 0x457   : > { %v1823_v4 = vpop.xlane.xlu0 %1822  ;;  %v6175_v58 = vpop.eup %6174 }
 0x458   : > { %6180 = vrcp.f32 %v1823_v4  ;;  %v1979_v32 = vpack.c.bf16 %v1939_v35, %v1937_v59  ;;  %v1978_v26 = vpack.c.bf16 %v1938_v3, %v1936_v13  ;;  %v1933_v43 = vmul.f32 %v6175_v58, %v7237_v49  ;;  %v7436_v59 = vpop.f32.mrf.mxu1 }
 0x459   : > { %v1814_v38 = vpop.xlane.xlu1 %1813  ;;  %v1932_v39 = vmul.f32 %v6175_v58, %v7233_v12 }
 0x45a   : > { %2012 = vmatprep.subr.bf16.mxu1 %v1979_v32  ;;  %6182 = vrcp.f32 %v1814_v38  ;;  %v1004_v58 = vpop.f32.mrf.mxu1 }
 0x45b   : > { %2013 = vmatpush2.bf16.xpose.msra.mxu1 %v1978_v26 }
 0x45d   : > { %v6177_v50 = vpop.eup %6176  ;;  %v7413_v49 = vpop.permute.xlu1 %633 }
 0x45e   : > { %v1935_v48 = vmul.f32 %v6177_v50, %v7249_v30  ;;  %v1934_v9 = vmul.f32 %v6177_v50, %v7246_v18  ;;  %11782 = vst [vmem:[#allocation57_spill] sm:$0xff] %v7413_v49  ;;  %v961_v54 = vadd.f32 %v7373_v37, %v7413_v49  ;;  %v11789_v37 = vld [vmem:[#allocation11_spill] sm:$0xff] }
 0x45f   : > { %v1817_v2 = vpop.xlane.xlu0 %1816  ;;  %v6179_v22 = vpop.eup %6178 }
 0x460   : > { %6184 = vrcp.f32 %v1817_v2  ;;  %v1977_v28 = vpack.c.bf16 %v1935_v48, %v1933_v43  ;;  %v1976_v33 = vpack.c.bf16 %v1934_v9, %v1932_v39  ;;  %v1929_v30 = vmul.f32 %v6179_v22, %v7255_v0  ;;  %v1008_v48 = vpop.f32.mrf.mxu1 }
 0x461   : > { %v1928_v18 = vmul.f32 %v6179_v22, %v7251_v31  ;;  %v828_v0 = vadd.f32 %v11784_v25, %v7413_v49  ;;  %v7430_v55 = vpop.permute.xlu1 %643 }
 0x462   : > { %2014 = vmatprep.subr.bf16.mxu1 %v1977_v28  ;;  %11786 = vst [vmem:[#allocation53_spill] sm:$0xff] %v7430_v55  ;;  %v1010_v39 = vpop.f32.mrf.mxu1 }
 0x463   : > { %2015 = vmatpush2.bf16.xpose.msra.mxu1 %v1976_v33  ;;  %v11795_v33 = vld [vmem:[#allocation10_spill] sm:$0xff] }
 0x465   : > { %v6181_v16 = vpop.eup %6180  ;;  %v7442_v50 = vpop.permute.xlu1 %648 }
 0x466   : > { %v1931_v12 = vmul.f32 %v6181_v16, %v7265_v56  ;;  %v1930_v44 = vmul.f32 %v6181_v16, %v7263_v41  ;;  %v11785_v56 = vld [vmem:[#allocation17_spill] sm:$0xff]  ;;  %11791 = vst [vmem:[#allocation47_spill] sm:$0xff] %v7442_v50 }
 0x467   : > { %v7419_v15 = vpop.permute.xlu0 %638  ;;  %v6183_v31 = vpop.eup %6182 }
 0x468   : > { %11783 = vst [vmem:[#allocation52_spill] sm:$0xff] %v7419_v15  ;;  %v1975_v24 = vpack.c.bf16 %v1931_v12, %v1929_v30  ;;  %v1974_v60 = vpack.c.bf16 %v1930_v44, %v1928_v18  ;;  %v965_v19 = vadd.f32 %v964_v11, %v7419_v15  ;;  %v832_v47 = vadd.f32 %v11785_v56, %v7419_v15 }
 0x469   : > { %v822_v11 = vadd.f32 %v11790_v21, %v11789_v37  ;;  %v1925_v35 = vmul.f32 %v6183_v31, %v7271_v62  ;;  %v1924_v3 = vmul.f32 %v6183_v31, %v7267_v45  ;;  %v963_v43 = vadd.f32 %v7377_v42, %v7419_v15  ;;  %v7452_v2 = vpop.permute.xlu1 %658  ;;  %v11794_v42 = vld [vmem:[#allocation12_spill] sm:$0xff] }
 0x46a   : > { %2016 = vmatprep.subr.bf16.mxu1 %v1975_v24  ;;  %v1204_v41 = vpack.c.bf16 %v965_v19, %v961_v54  ;;  %v1202_v6 = vpack.c.bf16 %v832_v47, %v828_v0  ;;  %v975_v62 = vadd.f32 %v7385_v29, %v7442_v50  ;;  %v959_v45 = vadd.f32 %v7369_v23, %v7413_v49  ;;  %v1012_v23 = vpop.f32.mrf.mxu1 }
 0x46b   : > { %2017 = vmatpush2.bf16.xpose.msra.mxu1 %v1974_v60  ;;  %v1198_v38 = vpack.c.bf16 %v822_v11, %v818_v51  ;;  %11792 = vst [vmem:[#allocation48_spill] sm:$0xff] %v7452_v2  ;;  %v7454_v28 = vpop.permute.xlu0 %653  ;;  %v11796_v22 = vpack.c.bf16 %v11794_v42, %v11795_v33  ;;  %v973_v29 = vadd.f32 %v7383_v7, %v7442_v50 }
 0x46c   : > { %2020 = vmatprep.mubr.bf16.mxu1 %v1204_v41  ;;  %2930 = vmatprep.mubr.bf16.mxu0 %v1202_v6  ;;  %11793 = vst [vmem:[#allocation62_spill] sm:$0xff] %v7454_v28  ;;  %v985_v16 = vadd.f32 %v7393_v61, %v7452_v2  ;;  %v969_v30 = vadd.f32 %v7379_v8, %v7430_v55  ;;  %v1014_v18 = vpop.f32.mrf.mxu1 }
 0x46d   : > { %v6185_v53 = vpop.eup %6184  ;;  %v7467_v24 = vpop.permute.xlu1 %668  ;;  %v979_v7 = vadd.f32 %v7387_v36, %v7454_v28 }
 0x46e   : > { %v1927_v13 = vmul.f32 %v6185_v53, %v7281_v46  ;;  %v1926_v4 = vmul.f32 %v6185_v53, %v7279_v27  ;;  %v971_v27 = vadd.f32 %v7381_v1, %v7430_v55  ;;  %v1203_v46 = vpack.c.bf16 %v963_v43, %v959_v45  ;;  %11797 = vst [vmem:[#allocation50_spill] sm:$0xff] %v7467_v24  ;;  %v1018_v54 = vpop.f32.mrf.mxu1 }
 0x46f   : > { %v981_v1 = vadd.f32 %v7389_v52, %v7454_v28  ;;  %v1207_v12 = vpack.c.bf16 %v973_v29, %v969_v30  ;;  %v7469_v60 = vpop.permute.xlu0 %663  ;;  %v983_v52 = vadd.f32 %v7391_v40, %v7452_v2  ;;  %v995_v8 = vadd.f32 %v7409_v14, %v7467_v24 }
 0x470   : > { %v1973_v32 = vpack.c.bf16 %v1927_v13, %v1925_v35  ;;  %v1972_v26 = vpack.c.bf16 %v1926_v4, %v1924_v3  ;;  %v1208_v9 = vpack.c.bf16 %v975_v62, %v971_v27  ;;  %11798 = vst [vmem:[#allocation49_spill] sm:$0xff] %v7469_v60  ;;  %v991_v61 = vadd.f32 %v7401_v57, %v7469_v60  ;;  %v1020_v0 = vpop.f32.mrf.mxu1 }
 0x471   : > { %v1212_v44 = vpack.c.bf16 %v985_v16, %v981_v1  ;;  %v1211_v25 = vpack.c.bf16 %v983_v52, %v979_v7  ;;  %v7481_v47 = vpop.permute.xlu1 %678  ;;  %v989_v36 = vadd.f32 %v7395_v20, %v7469_v60  ;;  %v993_v40 = vadd.f32 %v7403_v10, %v7467_v24 }
 0x472   : > { %2018 = vmatprep.subr.bf16.mxu1 %v1973_v32  ;;  %v1216_v56 = vpack.c.bf16 %v995_v8, %v991_v61  ;;  %11800 = vst [vmem:[#allocation46_spill] sm:$0xff] %v7481_v47  ;;  %v1022_v31 = vpop.f32.mrf.mxu1  ;;  %v1005_v14 = vadd.f32 %v1004_v58, %v7481_v47  ;;  %v1003_v10 = vadd.f32 %v7436_v59, %v7481_v47 }
 0x473   : > { %2019 = vmatpush2.bf16.xpose.msra.mxu1 %v1972_v26  ;;  %v7479_v19 = vpop.permute.xlu0 %673  ;;  %v1215_v6 = vpack.c.bf16 %v993_v40, %v989_v36 }
 0x474   : > { %2207 = vmatprep.subr.bf16.mxu1 %v1198_v38  ;;  %11799 = vst [vmem:[#allocation61_spill] sm:$0xff] %v7479_v19  ;;  %v1001_v57 = vadd.f32 %v7421_v5, %v7479_v19  ;;  %v1024_v53 = vpop.f32.mrf.mxu1  ;;  %v999_v20 = vadd.f32 %v7411_v63, %v7479_v19 }
 0x475   : > { %v7492_v34 = vpop.permute.xlu1 %688 }
 0x476   : > { %v1220_v17 = vpack.c.bf16 %v1005_v14, %v1001_v57  ;;  %11802 = vst [vmem:[#allocation60_spill] sm:$0xff] %v7492_v34  ;;  %v1028_v5 = vpop.f32.mrf.mxu1  ;;  %v1015_v21 = vadd.f32 %v1014_v18, %v7492_v34  ;;  %v1219_v11 = vpack.c.bf16 %v1003_v10, %v999_v20  ;;  %v1013_v63 = vadd.f32 %v1012_v23, %v7492_v34 }
 0x477   : > { %v7490_v41 = vpop.permute.xlu0 %683 }
 0x478   : > { %11801 = vst [vmem:[#allocation54_spill] sm:$0xff] %v7490_v41  ;;  %v1011_v37 = vadd.f32 %v1010_v39, %v7490_v41  ;;  %v1030_v35 = vpop.f32.mrf.mxu1  ;;  %v1009_v32 = vadd.f32 %v1008_v48, %v7490_v41 }
 0x479   : > { %v7502_v3 = vpop.permute.xlu1 %698 }
 0x47a   : > { %2021 = vmatmul.mubr.bf16.vlgmr.msra.gmra.mxu1 %v1203_v46  ;;  %v1224_v13 = vpack.c.bf16 %v1015_v21, %v1011_v37  ;;  %11804 = vst [vmem:[#allocation58_spill] sm:$0xff] %v7502_v3  ;;  %v1032_v26 = vpop.f32.mrf.mxu1  ;;  %v1025_v58 = vadd.f32 %v1024_v53, %v7502_v3  ;;  %v1223_v43 = vpack.c.bf16 %v1013_v63, %v1009_v32 }
 0x47b   : > { %2030 = vmatprep.mubr.bf16.mxu1 %v1208_v9  ;;  %2208 = vmatpush1.bf16.msra.mxu1 %v11796_v22  ;;  %v7494_v51 = vpop.permute.xlu0 %693  ;;  %v1023_v48 = vadd.f32 %v1022_v31, %v7502_v3 }
 0x47c   : > { %11803 = vst [vmem:[#allocation56_spill] sm:$0xff] %v7494_v51  ;;  %v1021_v59 = vadd.f32 %v1020_v0, %v7494_v51  ;;  %v1034_v62 = vpop.f32.mrf.mxu1  ;;  %v1019_v39 = vadd.f32 %v1018_v54, %v7494_v51 }
 0x47d   : > { %v7510_v27 = vpop.permute.xlu1 %708 }
 0x47e   : > { %v1228_v45 = vpack.c.bf16 %v1025_v58, %v1021_v59  ;;  %11806 = vst [vmem:[#allocation51_spill] sm:$0xff] %v7510_v27  ;;  %v1035_v42 = vadd.f32 %v1034_v62, %v7510_v27  ;;  %v1227_v22 = vpack.c.bf16 %v1023_v48, %v1019_v39  ;;  %v1033_v16 = vadd.f32 %v1032_v26, %v7510_v27 }
 0x47f   : > { %v7504_v4 = vpop.permute.xlu0 %703 }
 0x480   : > { %11805 = vst [vmem:[#allocation59_spill] sm:$0xff] %v7504_v4  ;;  %v1031_v9 = vadd.f32 %v1030_v35, %v7504_v4  ;;  %v1029_v1 = vadd.f32 %v1028_v5, %v7504_v4 }
 0x482   : > { %2031 = vmatmul.mubr.bf16.gmra.mxu1 %v1207_v12  ;;  %v1232_v29 = vpack.c.bf16 %v1035_v42, %v1031_v9  ;;  %v1231_v12 = vpack.c.bf16 %v1033_v16, %v1029_v1 }
 0x483   : > { %2040 = vmatprep.mubr.bf16.mxu1 %v1212_v44  ;;  %v11807_v44 = vmov 0  }
 0x48a   : > { %2041 = vmatmul.mubr.bf16.gmra.mxu1 %v1211_v25 }
 0x48b   : > { %2050 = vmatprep.mubr.bf16.mxu1 %v1216_v56 }
 0x492   : > { %2051 = vmatmul.mubr.bf16.gmra.mxu1 %v1215_v6 }
 0x493   : > { %2060 = vmatprep.mubr.bf16.mxu1 %v1220_v17 }
 0x49a   : > { %2061 = vmatmul.mubr.bf16.gmra.mxu1 %v1219_v11 }
 0x49b   : > { %2070 = vmatprep.mubr.bf16.mxu1 %v1224_v13 }
 0x49e   : > { %v1117_v38 = vpop.trf.xlu0 }
 0x4a2   : > { %2071 = vmatmul.mubr.bf16.gmra.mxu1 %v1223_v43  ;;  %v1118_v46 = vpop.trf.xlu0 }
 0x4a3   : > { %2080 = vmatprep.mubr.bf16.mxu1 %v1228_v45  ;;  %v1181_v52 = vpack.c.bf16 %v1118_v46, %v1117_v38 }
 0x4a6   : > { %v1119_v33 = vpop.trf.xlu0  ;;  %v1149_v40 = vpop.trf.xlu1 }
 0x4aa   : > { %2081 = vmatmul.mubr.bf16.gmra.mxu1 %v1227_v22  ;;  %v1120_v23 = vpop.trf.xlu0  ;;  %v1150_v57 = vpop.trf.xlu1 }
 0x4ab   : > { %2090 = vmatprep.mubr.bf16.mxu1 %v1232_v29  ;;  %v1182_v61 = vpack.c.bf16 %v1120_v23, %v1119_v33  ;;  %v1189_v63 = vpack.c.bf16 %v1150_v57, %v1149_v40 }
 0x4ae   : > { %v1121_v30 = vpop.trf.xlu0  ;;  %v1151_v53 = vpop.trf.xlu1 }
 0x4b2   : > { %2091 = vmatmul.mubr.bf16.gmra.mxu1 %v1231_v12  ;;  %v1122_v18 = vpop.trf.xlu0  ;;  %v1152_v10 = vpop.trf.xlu1 }
 0x4b3   : > { %2225 = vmatprep.mubr.bf16.mxu1 %v11807_v44  ;;  %v1183_v25 = vpack.c.bf16 %v1122_v18, %v1121_v30  ;;  %v1190_v59 = vpack.c.bf16 %v1152_v10, %v1151_v53 }
 0x4b6   : > { %v1123_v7 = vpop.trf.xlu0  ;;  %v1153_v21 = vpop.trf.xlu1 }
 0x4ba   : > { %5878 = vmatmul.mubr.msk.bf16.vlgmr.msra.gmra.mxu1 %vm1234_vm0, %v1181_v52  ;;  %v1124_v54 = vpop.trf.xlu0  ;;  %v1154_v35 = vpop.trf.xlu1 }
 0x4bb   : > { %2235 = vmatprep.mubr.bf16.mxu1 %v11807_v44  ;;  %v1184_v36 = vpack.c.bf16 %v1124_v54, %v1123_v7  ;;  %v1191_v38 = vpack.c.bf16 %v1154_v35, %v1153_v21 }
 0x4be   : > { %v1125_v8 = vpop.trf.xlu0  ;;  %v1155_v32 = vpop.trf.xlu1 }
 0x4c2   : > { %5879 = vmatmul.mubr.msk.bf16.gmra.mxu1 %vm1234_vm0, %v1182_v61  ;;  %v1126_v0 = vpop.trf.xlu0  ;;  %v1156_v26 = vpop.trf.xlu1 }
 0x4c3   : > { %2245 = vmatprep.mubr.bf16.mxu1 %v11807_v44  ;;  %v1185_v14 = vpack.c.bf16 %v1126_v0, %v1125_v8  ;;  %v1192_v45 = vpack.c.bf16 %v1156_v26, %v1155_v32 }
 0x4c6   : > { %v1127_v56 = vpop.trf.xlu0  ;;  %v1157_v58 = vpop.trf.xlu1 }
 0x4ca   : > { %5880 = vmatmul.mubr.msk.bf16.gmra.mxu1 %vm1234_vm0, %v1183_v25  ;;  %v1128_v31 = vpop.trf.xlu0  ;;  %v1158_v43 = vpop.trf.xlu1 }
 0x4cb   : > { %2255 = vmatprep.mubr.bf16.mxu1 %v11807_v44  ;;  %v1186_v17 = vpack.c.bf16 %v1128_v31, %v1127_v56  ;;  %v1193_v39 = vpack.c.bf16 %v1158_v43, %v1157_v58 }
 0x4ce   : > { %v1129_v6 = vpop.trf.xlu0  ;;  %v1159_v62 = vpop.trf.xlu1 }
 0x4d2   : > { %5881 = vmatmul.mubr.msk.bf16.gmra.mxu1 %vm1234_vm0, %v1184_v36  ;;  %v1130_v20 = vpop.trf.xlu0  ;;  %v1160_v46 = vpop.trf.xlu1 }
 0x4d3   : > { %2265 = vmatprep.mubr.bf16.mxu1 %v11807_v44  ;;  %v1187_v37 = vpack.c.bf16 %v1130_v20, %v1129_v6  ;;  %v1194_v9 = vpack.c.bf16 %v1160_v46, %v1159_v62 }
 0x4d6   : > { %v1131_v5 = vpop.trf.xlu0  ;;  %v1161_v48 = vpop.trf.xlu1 }
 0x4da   : > { %5882 = vmatmul.mubr.msk.bf16.gmra.mxu1 %vm1234_vm0, %v1185_v14  ;;  %v1132_v11 = vpop.trf.xlu0  ;;  %v1162_v42 = vpop.trf.xlu1 }
 0x4db   : > { %2275 = vmatprep.mubr.bf16.mxu1 %v11807_v44  ;;  %v1188_v13 = vpack.c.bf16 %v1132_v11, %v1131_v5  ;;  %v1195_v22 = vpack.c.bf16 %v1162_v42, %v1161_v48 }
 0x4de   : > { %v1163_v33 = vpop.trf.xlu1 }
 0x4e2   : > { %5883 = vmatmul.mubr.msk.bf16.gmra.mxu1 %vm1234_vm0, %v1186_v17  ;;  %v1164_v29 = vpop.trf.xlu1 }
 0x4e3   : > { %2285 = vmatprep.mubr.bf16.mxu1 %v11807_v44  ;;  %v1196_v23 = vpack.c.bf16 %v1164_v29, %v1163_v33 }
 0x4ea   : > { %5884 = vmatmul.mubr.msk.bf16.gmra.mxu1 %vm1234_vm0, %v1187_v37 }
 0x4eb   : > { %2295 = vmatprep.mubr.bf16.mxu1 %v11807_v44 }
 0x4f2   : > { %5885 = vmatmul.mubr.msk.bf16.gmra.mxu1 %vm1234_vm0, %v1188_v13 }
 0x4f3   : > { %2305 = vmatprep.mubr.bf16.mxu1 %v11807_v44 }
 0x4fa   : > { %5886 = vmatmul.mubr.msk.bf16.gmra.mxu1 %vm1234_vm0, %v1189_v63 }
 0x4fb   : > { %2315 = vmatprep.mubr.bf16.mxu1 %v11807_v44 }
 0x502   : > { %5887 = vmatmul.mubr.msk.bf16.gmra.mxu1 %vm1234_vm0, %v1190_v59 }
 0x503   : > { %2325 = vmatprep.mubr.bf16.mxu1 %v11807_v44 }
 0x50a   : > { %5888 = vmatmul.mubr.msk.bf16.gmra.mxu1 %vm1234_vm0, %v1191_v38 }
 0x50b   : > { %2335 = vmatprep.mubr.bf16.mxu1 %v11807_v44 }
 0x512   : > { %5889 = vmatmul.mubr.msk.bf16.gmra.mxu1 %vm1234_vm0, %v1192_v45 }
 0x513   : > { %2345 = vmatprep.mubr.bf16.mxu1 %v11807_v44 }
 0x51a   : > { %5890 = vmatmul.mubr.msk.bf16.gmra.mxu1 %vm1234_vm0, %v1193_v39 }
 0x51b   : > { %2355 = vmatprep.mubr.bf16.mxu1 %v11807_v44 }
 0x522   : > { %5891 = vmatmul.mubr.msk.bf16.gmra.mxu1 %vm1234_vm0, %v1194_v9 }
 0x523   : > { %2365 = vmatprep.mubr.bf16.mxu1 %v11807_v44 }
 0x52a   : > { %5892 = vmatmul.mubr.msk.bf16.gmra.mxu1 %vm1234_vm0, %v1195_v22 }
 0x52b   : > { %2375 = vmatprep.mubr.bf16.mxu1 %v11807_v44 }
 0x532   : > { %5893 = vmatmul.mubr.msk.bf16.gmra.mxu1 %vm1234_vm0, %v1196_v23 }
 0x533   : > { %4252 = vmatprep.mubr.bf16.mxu1 %v11807_v44 }
 0x53a   : > { %v7551_v1 = vpop.f32.mrf.mxu1 }
 0x53b   : > { %11808 = vst [vmem:[#allocation55_spill] sm:$0xff] %v7551_v1 }
 0x53c   : > { %v7553_v16 = vpop.f32.mrf.mxu1 }
 0x53d   : > { %11809 = vst [vmem:[#allocation2_spill] sm:$0xff] %v7553_v16 }
 0x53e   : > { %v7555_v30 = vpop.f32.mrf.mxu1 }
 0x53f   : > { %11810 = vst [vmem:[#allocation3_spill] sm:$0xff] %v7555_v30 }
 0x540   : > { %v7557_v12 = vpop.f32.mrf.mxu1 }
 0x541   : > { %11811 = vst [vmem:[#allocation5_spill] sm:$0xff] %v7557_v12 }
 0x542   : > { %v7559_v18 = vpop.f32.mrf.mxu1 }
 0x543   : > { %11812 = vst [vmem:[#allocation6_spill] sm:$0xff] %v7559_v18 }
 0x544   : > { %v7561_v7 = vpop.f32.mrf.mxu1 }
 0x545   : > { %11813 = vst [vmem:[#allocation4_spill] sm:$0xff] %v7561_v7 }
 0x546   : > { %v7563_v52 = vpop.f32.mrf.mxu1 }
 0x547   : > { %11814 = vst [vmem:[#allocation8_spill] sm:$0xff] %v7563_v52 }
 0x548   : > { %v7565_v54 = vpop.f32.mrf.mxu1 }
 0x549   : > { %11815 = vst [vmem:[#allocation15_spill] sm:$0xff] %v7565_v54 }
 0x54a   : > { %v7567_v61 = vpop.f32.mrf.mxu1 }
 0x54b   : > { %11816 = vst [vmem:[#allocation17_spill] sm:$0xff] %v7567_v61 }
 0x54c   : > { %v7569_v8 = vpop.f32.mrf.mxu1 }
 0x54d   : > { %11817 = vst [vmem:[#allocation7_spill] sm:$0xff] %v7569_v8 }
 0x54e   : > { %v7571_v25 = vpop.f32.mrf.mxu1 }
 0x54f   : > { %11818 = vst [vmem:[#allocation9_spill] sm:$0xff] %v7571_v25 }
 0x550   : > { %v7573_v0 = vpop.f32.mrf.mxu1 }
 0x551   : > { %11819 = vst [vmem:[#allocation11_spill] sm:$0xff] %v7573_v0 }
 0x552   : > { %v7575_v56 = vpop.f32.mrf.mxu1 }
 0x553   : > { %11820 = vst [vmem:[#allocation13_spill] sm:$0xff] %v7575_v56 }
 0x554   : > { %v7577_v36 = vpop.f32.mrf.mxu1 }
 0x555   : > { %11821 = vst [vmem:[#allocation12_spill] sm:$0xff] %v7577_v36 }
 0x556   : > { %v7579_v40 = vpop.f32.mrf.mxu1 }
 0x557   : > { %11822 = vst [vmem:[#allocation10_spill] sm:$0xff] %v7579_v40 }
 0x558   : > { %v7581_v31 = vpop.f32.mrf.mxu1 }
 0x559   : > { %11823 = vst [vmem:[#allocation63_spill] sm:$0xff] %v7581_v31 }
 0x55a   : > { %v7583_v57 = vpop.f32.mrf.mxu1 }
 0x55b   : > { %11824 = vst [vmem:[#allocation64_spill] sm:$0xff] %v7583_v57 }
 0x55c   : > { %v7585_v14 = vpop.f32.mrf.mxu1 }
 0x55d   : > { %11825 = vst [vmem:[#allocation65_spill] sm:$0xff] %v7585_v14 }
 0x55e   : > { %v7587_v6 = vpop.f32.mrf.mxu1 }
 0x55f   : > { %11826 = vst [vmem:[#allocation66_spill] sm:$0xff] %v7587_v6 }
 0x560   : > { %v7589_v53 = vpop.f32.mrf.mxu1 }
 0x561   : > { %11827 = vst [vmem:[#allocation67_spill] sm:$0xff] %v7589_v53 }
 0x562   : > { %v7591_v17 = vpop.f32.mrf.mxu1 }
 0x563   : > { %11828 = vst [vmem:[#allocation68_spill] sm:$0xff] %v7591_v17 }
 0x564   : > { %v7593_v20 = vpop.f32.mrf.mxu1 }
 0x565   : > { %11829 = vst [vmem:[#allocation69_spill] sm:$0xff] %v7593_v20 }
 0x566   : > { %v7595_v10 = vpop.f32.mrf.mxu1 }
 0x567   : > { %11830 = vst [vmem:[#allocation70_spill] sm:$0xff] %v7595_v10 }
 0x568   : > { %v7597_v5 = vpop.f32.mrf.mxu1 }
 0x569   : > { %11831 = vst [vmem:[#allocation71_spill] sm:$0xff] %v7597_v5 }
 0x56a   : > { %v7599_v37 = vpop.f32.mrf.mxu1 }
 0x56b   : > { %11832 = vst [vmem:[#allocation72_spill] sm:$0xff] %v7599_v37 }
 0x56c   : > { %v7601_v21 = vpop.f32.mrf.mxu1 }
 0x56d   : > { %11833 = vst [vmem:[#allocation73_spill] sm:$0xff] %v7601_v21 }
 0x56e   : > { %v7603_v11 = vpop.f32.mrf.mxu1 }
 0x56f   : > { %11834 = vst [vmem:[#allocation74_spill] sm:$0xff] %v7603_v11 }
 0x570   : > { %v7605_v35 = vpop.f32.mrf.mxu1 }
 0x571   : > { %11835 = vst [vmem:[#allocation75_spill] sm:$0xff] %v7605_v35 }
 0x572   : > { %v7607_v13 = vpop.f32.mrf.mxu1 }
 0x573   : > { %11836 = vst [vmem:[#allocation76_spill] sm:$0xff] %v7607_v13 }
 0x574   : > { %v7609_v32 = vpop.f32.mrf.mxu1 }
 0x575   : > { %11837 = vst [vmem:[#allocation77_spill] sm:$0xff] %v7609_v32 }
 0x576   : > { %v7611_v63 = vpop.f32.mrf.mxu1 }
 0x577   : > { %11838 = vst [vmem:[#allocation78_spill] sm:$0xff] %v7611_v63 }
 0x578   : > { %v7613_v26 = vpop.f32.mrf.mxu1 }
 0x579   : > { %11839 = vst [vmem:[#allocation79_spill] sm:$0xff] %v7613_v26 }
 0x57a   : > { %v7615_v59 = vpop.f32.mrf.mxu1 }
 0x57c   : > { %v7617_v58 = vpop.f32.mrf.mxu1 }
 0x57d   : > { %v2386_v40 = vmax.f32 %v7615_v59, %v7617_v58 }
 0x57e   : > { %v7619_v38 = vpop.f32.mrf.mxu1 }
 0x580   : > { %v7621_v43 = vpop.f32.mrf.mxu1 }
 0x581   : > { %11840 = vst [vmem:[#allocation80_spill] sm:$0xff] %v7621_v43  ;;  %v2389_v56 = vmax.f32 %v7619_v38, %v7621_v43 }
 0x582   : > { %v7623_v62 = vpop.f32.mrf.mxu1 }
 0x584   : > { %v7625_v45 = vpop.f32.mrf.mxu1 }
 0x585   : > { %v2392_v57 = vmax.f32 %v7623_v62, %v7625_v45 }
 0x586   : > { %v7627_v46 = vpop.f32.mrf.mxu1 }
 0x588   : > { %v7629_v39 = vpop.f32.mrf.mxu1 }
 0x58a   : > { %v7631_v48 = vpop.f32.mrf.mxu1 }
 0x58c   : > { %v7633_v9 = vpop.f32.mrf.mxu1 }
 0x58d   : > { %v2398_v6 = vmax.f32 %v7631_v48, %v7633_v9 }
 0x58e   : > { %v7635_v42 = vpop.f32.mrf.mxu1 }
 0x590   : > { %v7637_v33 = vpop.f32.mrf.mxu1 }
 0x592   : > { %v7639_v22 = vpop.f32.mrf.mxu1 }
 0x594   : > { %v7641_v29 = vpop.f32.mrf.mxu1 }
 0x595   : > { %v2404_v17 = vmax.f32 %v7639_v22, %v7641_v29 }
 0x596   : > { %v7643_v23 = vpop.f32.mrf.mxu1 }
 0x598   : > { %v7645_v44 = vpop.f32.mrf.mxu1 }
 0x59a   : > { %v7647_v27 = vpop.f32.mrf.mxu1 }
 0x59c   : > { %v7649_v4 = vpop.f32.mrf.mxu1 }
 0x59d   : > { %v2410_v10 = vmax.f32 %v7647_v27, %v7649_v4 }
 0x59e   : > { %v7651_v3 = vpop.f32.mrf.mxu1 }
 0x5a0   : > { %v7653_v51 = vpop.f32.mrf.mxu1 }
 0x5a2   : > { %v7655_v34 = vpop.f32.mrf.mxu1 }
 0x5a4   : > { %v7657_v41 = vpop.f32.mrf.mxu1 }
 0x5a5   : > { %v2416_v35 = vmax.f32 %v7655_v34, %v7657_v41 }
 0x5a6   : > { %v7659_v47 = vpop.f32.mrf.mxu1 }
 0x5a8   : > { %v7661_v19 = vpop.f32.mrf.mxu1 }
 0x5aa   : > { %v7663_v24 = vpop.f32.mrf.mxu1 }
 0x5ac   : > { %v7665_v60 = vpop.f32.mrf.mxu1 }
 0x5ad   : > { %v2422_v26 = vmax.f32 %v7663_v24, %v7665_v60 }
 0x5ae   : > { %v7667_v2 = vpop.f32.mrf.mxu1 }
 0x5b0   : > { %v7669_v28 = vpop.f32.mrf.mxu1 }
 0x5b2   : > { %v7671_v55 = vpop.f32.mrf.mxu1 }
 0x5b4   : > { %v7673_v49 = vpop.f32.mrf.mxu1 }
 0x5b5   : > { %v2428_v50 = vmax.f32 %v7671_v55, %v7673_v49 }
 0x5b6   : > { %v7677_v15 = vpop.f32.mrf.mxu1 }
 0x5b7   : > { %2429 = vmax.xlane.f32.xlu0 %v2428_v50  ;;  %v2425_v50 = vmax.f32 %v7667_v2, %v7669_v28 }
 0x5b8   : > { %v7679_v63 = vpop.f32.mrf.mxu1 }
 0x5b9   : > { %v2431_v13 = vmax.f32 %v7677_v15, %v7679_v63 }
 0x5ba   : > { %v7685_v32 = vpop.f32.mrf.mxu1 }
 0x5bb   : > { %11841 = vst [vmem:[#allocation81_spill] sm:$0xff] %v7685_v32  ;;  %2423 = vmax.xlane.f32.xlu0 %v2422_v26  ;;  %2432 = vmax.xlane.f32.xlu1 %v2431_v13  ;;  %v2419_v13 = vmax.f32 %v7659_v47, %v7661_v19 }
 0x5bc   : > { %v7687_v11 = vpop.f32.mrf.mxu1 }
 0x5bd   : > { %11842 = vst [vmem:[#allocation82_spill] sm:$0xff] %v7687_v11 }
 0x5be   : > { %v7693_v37 = vpop.f32.mrf.mxu1 }
 0x5bf   : > { %11843 = vst [vmem:[#allocation83_spill] sm:$0xff] %v7693_v37  ;;  %2426 = vmax.xlane.f32.xlu0 %v2425_v50  ;;  %2417 = vmax.xlane.f32.xlu1 %v2416_v35  ;;  %v2413_v35 = vmax.f32 %v7651_v3, %v7653_v51 }
 0x5c0   : > { %v7695_v21 = vpop.f32.mrf.mxu1 }
 0x5c1   : > { %11844 = vst [vmem:[#allocation84_spill] sm:$0xff] %v7695_v21 }
 0x5c2   : > { %v7701_v26 = vpop.f32.mrf.mxu1 }
 0x5c3   : > { %2420 = vmax.xlane.f32.xlu0 %v2419_v13  ;;  %2411 = vmax.xlane.f32.xlu1 %v2410_v10  ;;  %v2407_v10 = vmax.f32 %v7643_v23, %v7645_v44 }
 0x5c4   : > { %v7703_v5 = vpop.f32.mrf.mxu1 }
 0x5c6   : > { %v7709_v50 = vpop.f32.mrf.mxu1 }
 0x5c7   : > { %2414 = vmax.xlane.f32.xlu0 %v2413_v35  ;;  %2405 = vmax.xlane.f32.xlu1 %v2404_v17  ;;  %v2401_v17 = vmax.f32 %v7635_v42, %v7637_v33 }
 0x5c8   : > { %v7711_v20 = vpop.f32.mrf.mxu1 }
 0x5ca   : > { %v7717_v13 = vpop.f32.mrf.mxu1 }
 0x5cb   : > { %2408 = vmax.xlane.f32.xlu0 %v2407_v10  ;;  %2399 = vmax.xlane.f32.xlu1 %v2398_v6  ;;  %v2395_v6 = vmax.f32 %v7627_v46, %v7629_v39 }
 0x5cc   : > { %v7719_v53 = vpop.f32.mrf.mxu1 }
 0x5ce   : > { %v7725_v35 = vpop.f32.mrf.mxu1 }
 0x5cf   : > { %2402 = vmax.xlane.f32.xlu0 %v2401_v17  ;;  %2393 = vmax.xlane.f32.xlu1 %v2392_v57 }
 0x5d0   : > { %v7727_v14 = vpop.f32.mrf.mxu1 }
 0x5d2   : > { %v7733_v10 = vpop.f32.mrf.mxu1 }
 0x5d3   : > { %2396 = vmax.xlane.f32.xlu0 %v2395_v6  ;;  %2387 = vmax.xlane.f32.xlu1 %v2386_v40 }
 0x5d4   : > { %v7735_v31 = vpop.f32.mrf.mxu1 }
 0x5d6   : > { %v7739_v36 = vpop.f32.mrf.mxu1 }
 0x5d7   : > { %2390 = vmax.xlane.f32.xlu0 %v2389_v56 }
 0x5d8   : > { %v7741_v57 = vpop.f32.mrf.mxu1 }
 0x5da   : > { %v7743_v17 = vpop.f32.mrf.mxu1 }
 0x5dc   : > { %v7745_v25 = vpop.f32.mrf.mxu1 }
 0x5dd   : > { %11845 = vst [vmem:[#allocation85_spill] sm:$0xff] %v7745_v25 }
 0x5de   : > { %v7747_v0 = vpop.f32.mrf.mxu1 }
 0x5df   : > { %11846 = vst [vmem:[#allocation86_spill] sm:$0xff] %v7747_v0 }
 0x5e0   : > { %v7749_v61 = vpop.f32.mrf.mxu1 }
 0x5e1   : > { %11847 = vst [vmem:[#allocation87_spill] sm:$0xff] %v7749_v61 }
 0x5e2   : > { %v7751_v6 = vpop.f32.mrf.mxu1 }
 0x5e3   : > { %11848 = vst [vmem:[#allocation88_spill] sm:$0xff] %v7751_v6 }
 0x5e4   : > { %v7753_v40 = vpop.f32.mrf.mxu1 }
 0x5e5   : > { %11849 = vst [vmem:[#allocation89_spill] sm:$0xff] %v7753_v40  ;;  %v2464_v11 = vmax.f32 %v7751_v6, %v7753_v40 }
 0x5e6   : > { %v7755_v8 = vpop.f32.mrf.mxu1 }
 0x5e8   : > { %v7757_v52 = vpop.f32.mrf.mxu1 }
 0x5e9   : > { %11850 = vst [vmem:[#allocation90_spill] sm:$0xff] %v7757_v52 }
 0x5ea   : > { %v7759_v54 = vpop.f32.mrf.mxu1 }
 0x5ec   : > { %v7761_v56 = vpop.f32.mrf.mxu1 }
 0x5ed   : > { %11851 = vst [vmem:[#allocation91_spill] sm:$0xff] %v7761_v56  ;;  %v2470_v37 = vmax.f32 %v7759_v54, %v7761_v56  ;;  %v2467_v56 = vmax.f32 %v7755_v8, %v7757_v52 }
 0x5ee   : > { %v7763_v18 = vpop.f32.mrf.mxu1 }
 0x5ef   : > { %11852 = vst [vmem:[#allocation92_spill] sm:$0xff] %v7763_v18 }
 0x5f0   : > { %v7765_v30 = vpop.f32.mrf.mxu1 }
 0x5f1   : > { %11853 = vst [vmem:[#allocation93_spill] sm:$0xff] %v7765_v30  ;;  %v2473_v43 = vmax.f32 %v7763_v18, %v7765_v30 }
 0x5f2   : > { %v7767_v7 = vpop.f32.mrf.mxu1 }
 0x5f4   : > { %v7769_v12 = vpop.f32.mrf.mxu1 }
 0x5f5   : > { %11854 = vst [vmem:[#allocation94_spill] sm:$0xff] %v7769_v12  ;;  %v2476_v1 = vmax.f32 %v7767_v7, %v7769_v12  ;;  %v2458_v12 = vmax.f32 %v7743_v17, %v7745_v25 }
 0x5f6   : > { %v7773_v16 = vpop.f32.mrf.mxu1 }
 0x5f7   : > { %2477 = vmax.xlane.f32.xlu1 %v2476_v1  ;;  %v2461_v1 = vmax.f32 %v7747_v0, %v7749_v61 }
 0x5f8   : > { %v7777_v21 = vpop.f32.mrf.mxu1 }
 0x5f9   : > { %v2479_v32 = vmax.f32 %v7773_v16, %v7777_v21 }
 0x5fb   : > { %2471 = vmax.xlane.f32.xlu1 %v2470_v37  ;;  %2480 = vmax.xlane.f32.xlu0 %v2479_v32 }
 0x5ff   : > { %2465 = vmax.xlane.f32.xlu1 %v2464_v11  ;;  %2474 = vmax.xlane.f32.xlu0 %v2473_v43 }
 0x603   : > { %2459 = vmax.xlane.f32.xlu1 %v2458_v12  ;;  %2468 = vmax.xlane.f32.xlu0 %v2467_v56 }
 0x607   : > { %2462 = vmax.xlane.f32.xlu0 %v2461_v1 }
 0x640   : > { %v2430_v40 = vpop.xlane.xlu0 %2429 }
 0x641   : > { %v2510_v6 = vsub.f32 %v7671_v55, %v2430_v40  ;;  %v2511_v37 = vsub.f32 %v7673_v49, %v2430_v40 }
 0x643   : > { %v2602_v32 = vmul.f32 1.442695, %v2510_v6  ;;  %v2604_v30 = vmul.f32 1.442695, %v2511_v37 }
 0x644   : > { %v2424_v18 = vpop.xlane.xlu0 %2423  ;;  %v2433_v25 = vpop.xlane.xlu1 %2432 }
 0x645   : > { %6186 = vpow2.f32 %v2602_v32  ;;  %v2506_v52 = vsub.f32 %v7663_v24, %v2424_v18  ;;  %v2507_v11 = vsub.f32 %v7665_v60, %v2424_v18  ;;  %v2512_v43 = vsub.f32 %v7677_v15, %v2433_v25 }
 0x646   : > { %6188 = vpow2.f32 %v2604_v30  ;;  %v2513_v12 = vsub.f32 %v7679_v63, %v2433_v25 }
 0x647   : > { %v2594_v56 = vmul.f32 1.442695, %v2506_v52  ;;  %v2596_v1 = vmul.f32 1.442695, %v2507_v11  ;;  %v2606_v61 = vmul.f32 1.442695, %v2512_v43 }
 0x648   : > { %v2608_v55 = vmul.f32 1.442695, %v2513_v12  ;;  %v2427_v0 = vpop.xlane.xlu0 %2426  ;;  %v2418_v49 = vpop.xlane.xlu1 %2417 }
 0x649   : > { %6190 = vpow2.f32 %v2594_v56  ;;  %v2508_v6 = vsub.f32 %v7667_v2, %v2427_v0  ;;  %v2509_v40 = vsub.f32 %v7669_v28, %v2427_v0  ;;  %v2502_v24 = vsub.f32 %v7655_v34, %v2418_v49 }
 0x64a   : > { %6192 = vpow2.f32 %v2596_v1  ;;  %v2503_v15 = vsub.f32 %v7657_v41, %v2418_v49 }
 0x64b   : > { %6194 = vpow2.f32 %v2606_v61  ;;  %v2598_v18 = vmul.f32 1.442695, %v2508_v6  ;;  %v2600_v52 = vmul.f32 1.442695, %v2509_v40  ;;  %v2586_v25 = vmul.f32 1.442695, %v2502_v24 }
 0x64c   : > { %6196 = vpow2.f32 %v2608_v55  ;;  %v2421_v60 = vpop.xlane.xlu0 %2420  ;;  %v2412_v30 = vpop.xlane.xlu1 %2411  ;;  %v2588_v63 = vmul.f32 1.442695, %v2503_v15  ;;  %v2452_v55 = vmax.f32 %v7733_v10, %v7735_v31 }
 0x64d   : > { %6198 = vpow2.f32 %v2598_v18  ;;  %v2504_v37 = vsub.f32 %v7659_v47, %v2421_v60  ;;  %v2505_v2 = vsub.f32 %v7661_v19, %v2421_v60  ;;  %v2498_v41 = vsub.f32 %v7647_v27, %v2412_v30 }
 0x64e   : > { %6200 = vpow2.f32 %v2600_v52  ;;  %v2499_v0 = vsub.f32 %v7649_v4, %v2412_v30 }
 0x64f   : > { %6202 = vpow2.f32 %v2586_v25  ;;  %v2590_v43 = vmul.f32 1.442695, %v2504_v37  ;;  %v2592_v12 = vmul.f32 1.442695, %v2505_v2  ;;  %v2578_v19 = vmul.f32 1.442695, %v2498_v41 }
 0x650   : > { %v2415_v28 = vpop.xlane.xlu0 %2414  ;;  %v2406_v61 = vpop.xlane.xlu1 %2405  ;;  %6204 = vpow2.f32 %v2588_v63  ;;  %v2580_v27 = vmul.f32 1.442695, %v2499_v0 }
 0x651   : > { %6206 = vpow2.f32 %v2590_v43  ;;  %v2500_v40 = vsub.f32 %v7651_v3, %v2415_v28  ;;  %v2501_v24 = vsub.f32 %v7653_v51, %v2415_v28  ;;  %v2494_v60 = vsub.f32 %v7639_v22, %v2406_v61 }
 0x652   : > { %v7802_v32 = vpop.eup %6186  ;;  %6208 = vpow2.f32 %v2592_v12  ;;  %v2495_v30 = vsub.f32 %v7641_v29, %v2406_v61  ;;  %v2455_v51 = vmax.f32 %v7739_v36, %v7741_v57  ;;  %v2446_v61 = vmax.f32 %v7717_v13, %v7719_v53 }
 0x653   : > { %v7805_v34 = vpop.eup %6188  ;;  %6210 = vpow2.f32 %v2578_v19  ;;  %v2582_v52 = vmul.f32 1.442695, %v2500_v40  ;;  %v2584_v3 = vmul.f32 1.442695, %v2501_v24  ;;  %v2570_v22 = vmul.f32 1.442695, %v2494_v60 }
 0x654   : > { %v2716_v11 = vadd.f32 %v7805_v34, %v7802_v32  ;;  %v2409_v49 = vpop.xlane.xlu0 %2408  ;;  %v2400_v6 = vpop.xlane.xlu1 %2399  ;;  %6212 = vpow2.f32 %v2580_v27  ;;  %v2572_v41 = vmul.f32 1.442695, %v2495_v30 }
 0x655   : > { %v2490_v28 = vsub.f32 %v7631_v48, %v2400_v6  ;;  %v2491_v0 = vsub.f32 %v7633_v9, %v2400_v6  ;;  %6214 = vpow2.f32 %v2582_v52  ;;  %v2496_v43 = vsub.f32 %v7643_v23, %v2409_v49 }
 0x656   : > { %v7811_v47 = vpop.eup %6190  ;;  %2717 = vadd.xlane.f32.xlu1 %v2716_v11  ;;  %6216 = vpow2.f32 %v2584_v3  ;;  %v2497_v12 = vsub.f32 %v7645_v44, %v2409_v49 }
 0x657   : > { %v7813_v56 = vpop.eup %6192  ;;  %6218 = vpow2.f32 %v2570_v22  ;;  %v2562_v19 = vmul.f32 1.442695, %v2490_v28  ;;  %v2564_v27 = vmul.f32 1.442695, %v2491_v0  ;;  %v2574_v24 = vmul.f32 1.442695, %v2496_v43 }
 0x658   : > { %v7815_v1 = vpop.eup %6194  ;;  %v2710_v18 = vadd.f32 %v7813_v56, %v7811_v47  ;;  %v2403_v63 = vpop.xlane.xlu0 %2402  ;;  %6220 = vpow2.f32 %v2572_v41  ;;  %v2576_v60 = vmul.f32 1.442695, %v2497_v12 }
 0x659   : > { %v7819_v4 = vpop.eup %6196  ;;  %v2394_v37 = vpop.xlane.xlu1 %2393  ;;  %v2492_v44 = vsub.f32 %v7635_v42, %v2403_v63  ;;  %6222 = vpow2.f32 %v2562_v19  ;;  %v2440_v42 = vmax.f32 %v7701_v26, %v7703_v5  ;;  %v11855_v19 = vld [vmem:[#allocation80_spill] sm:$0xff] }
 0x65a   : > { %2453 = vmax.xlane.f32.xlu1 %v2452_v55  ;;  %v2719_v15 = vadd.f32 %v7819_v4, %v7815_v1  ;;  %v7829_v25 = vpop.eup %6198  ;;  %v2486_v55 = vsub.f32 %v7623_v62, %v2394_v37  ;;  %v2487_v9 = vsub.f32 %v7625_v45, %v2394_v37  ;;  %v2493_v62 = vsub.f32 %v7637_v33, %v2403_v63 }
 0x65b   : > { %v7833_v2 = vpop.eup %6200  ;;  %6224 = vpow2.f32 %v2564_v27  ;;  %v2566_v33 = vmul.f32 1.442695, %v2492_v44 }
 0x65c   : > { %2720 = vadd.xlane.f32.xlu0 %v2719_v15  ;;  %v7836_v29 = vpop.eup %6202  ;;  %v2713_v48 = vadd.f32 %v7833_v2, %v7829_v25  ;;  %v2397_v6 = vpop.xlane.xlu0 %2396  ;;  %v2449_v15 = vmax.f32 %v7725_v35, %v7727_v14  ;;  %v2554_v45 = vmul.f32 1.442695, %v2486_v55  ;;  %6226 = vpow2.f32 %v2574_v24 }
 0x65d   : > { %v7841_v11 = vpop.eup %6204  ;;  %v2388_v40 = vpop.xlane.xlu1 %2387  ;;  %v2488_v63 = vsub.f32 %v7627_v46, %v2397_v6  ;;  %6228 = vpow2.f32 %v2576_v60  ;;  %v2568_v22 = vmul.f32 1.442695, %v2493_v62 }
 0x65e   : > { %2711 = vadd.xlane.f32.xlu1 %v2710_v18  ;;  %v2704_v23 = vadd.f32 %v7841_v11, %v7836_v29  ;;  %v7852_v49 = vpop.eup %6206  ;;  %v2482_v18 = vsub.f32 %v7615_v59, %v2388_v40  ;;  %v2483_v3 = vsub.f32 %v7617_v58, %v2388_v40  ;;  %v2489_v59 = vsub.f32 %v7629_v39, %v2397_v6  ;;  %v11856_v6 = vld [vmem:[#allocation82_spill] sm:$0xff]  ;;  %v11857_v40 = vld [vmem:[#allocation81_spill] sm:$0xff] }
 0x65f   : > { %v7857_v30 = vpop.eup %6208  ;;  %6230 = vpow2.f32 %v2554_v45  ;;  %v2558_v43 = vmul.f32 1.442695, %v2488_v63  ;;  %v2443_v39 = vmax.f32 %v7709_v50, %v7711_v20 }
 0x660   : > { %2456 = vmax.xlane.f32.xlu0 %v2455_v51  ;;  %v7860_v52 = vpop.eup %6210  ;;  %v2556_v51 = vmul.f32 1.442695, %v2487_v9  ;;  %v2391_v28 = vpop.xlane.xlu0 %2390  ;;  %v2546_v41 = vmul.f32 1.442695, %v2482_v18  ;;  %v2548_v58 = vmul.f32 1.442695, %v2483_v3 }
 0x661   : > { %v7865_v37 = vpop.eup %6212  ;;  %v2484_v46 = vsub.f32 %v7619_v38, %v2391_v28  ;;  %v2485_v55 = vsub.f32 %v11855_v19, %v2391_v28 }
 0x662   : > { %2447 = vmax.xlane.f32.xlu1 %v2446_v61  ;;  %v2707_v61 = vadd.f32 %v7857_v30, %v7852_v49  ;;  %6232 = vpow2.f32 %v2556_v51  ;;  %v2698_v0 = vadd.f32 %v7865_v37, %v7860_v52  ;;  %v7874_v12 = vpop.eup %6214  ;;  %v11860_v51 = vld [vmem:[#allocation83_spill] sm:$0xff] }
 0x663   : > { %6234 = vpow2.f32 %v2566_v33  ;;  %v7879_v27 = vpop.eup %6216  ;;  %v2550_v24 = vmul.f32 1.442695, %v2484_v46  ;;  %v2552_v44 = vmul.f32 1.442695, %v2485_v55 }
 0x664   : > { %2714 = vadd.xlane.f32.xlu0 %v2713_v48  ;;  %6236 = vpow2.f32 %v2568_v22  ;;  %v2560_v48 = vmul.f32 1.442695, %v2489_v59  ;;  %v7881_v9 = vpop.eup %6218 }
 0x665   : > { %6238 = vpow2.f32 %v2546_v41  ;;  %v7885_v38 = vpop.eup %6220 }
 0x666   : > { %2705 = vadd.xlane.f32.xlu1 %v2704_v23  ;;  %v2434_v23 = vmax.f32 %v11857_v40, %v11856_v6  ;;  %6240 = vpow2.f32 %v2548_v58  ;;  %v7889_v60 = vpop.eup %6222  ;;  %v2692_v62 = vadd.f32 %v7885_v38, %v7881_v9 }
 0x667   : > { %6242 = vpow2.f32 %v2558_v43  ;;  %11858 = vst [vmem:[#allocation80_spill] sm:$0xff] %v7889_v60 }
 0x668   : > { %2450 = vmax.xlane.f32.xlu0 %v2449_v15  ;;  %6244 = vpow2.f32 %v2560_v48  ;;  %v2701_v15 = vadd.f32 %v7879_v27, %v7874_v12  ;;  %v7893_v45 = vpop.eup %6224 }
 0x669   : > { %6246 = vpow2.f32 %v2550_v24  ;;  %v7895_v18 = vpop.eup %6226  ;;  %v2686_v22 = vadd.f32 %v7893_v45, %v7889_v60  ;;  %v11866_v24 = vld [vmem:[#allocation94_spill] sm:$0xff]  ;;  %v11870_v60 = vld [vmem:[#allocation89_spill] sm:$0xff] }
 0x66a   : > { %2441 = vmax.xlane.f32.xlu1 %v2440_v42  ;;  %v11859_v42 = vld [vmem:[#allocation84_spill] sm:$0xff]  ;;  %6248 = vpow2.f32 %v2552_v44  ;;  %v7899_v33 = vpop.eup %6228 }
 0x66b   : > { %v2437_v3 = vmax.f32 %v11860_v51, %v11859_v42 }
 0x66c   : > { %2708 = vadd.xlane.f32.xlu0 %v2707_v61  ;;  %v7901_v63 = vpop.eup %6230  ;;  %v2695_v61 = vadd.f32 %v7899_v33, %v7895_v18 }
 0x66d   : > { %11861 = vst [vmem:[#allocation82_spill] sm:$0xff] %v7901_v63 }
 0x66e   : > { %2699 = vadd.xlane.f32.xlu1 %v2698_v0 }
 0x66f   : > { %v7905_v59 = vpop.eup %6232 }
 0x670   : > { %2444 = vmax.xlane.f32.xlu0 %v2443_v39  ;;  %11862 = vst [vmem:[#allocation81_spill] sm:$0xff] %v7905_v59  ;;  %v7907_v28 = vpop.eup %6234  ;;  %v2680_v0 = vadd.f32 %v7905_v59, %v7901_v63 }
 0x671   : > { %v7911_v41 = vpop.eup %6236 }
 0x672   : > { %2435 = vmax.xlane.f32.xlu1 %v2434_v23  ;;  %v7913_v58 = vpop.eup %6238  ;;  %v2689_v39 = vadd.f32 %v7911_v41, %v7907_v28 }
 0x673   : > { %11863 = vst [vmem:[#allocation84_spill] sm:$0xff] %v7913_v58  ;;  %v7917_v43 = vpop.eup %6240 }
 0x674   : > { %2702 = vadd.xlane.f32.xlu0 %v2701_v15  ;;  %11864 = vst [vmem:[#allocation83_spill] sm:$0xff] %v7917_v43  ;;  %v7919_v46 = vpop.eup %6242  ;;  %v2674_v55 = vadd.f32 %v7917_v43, %v7913_v58  ;;  %v11868_v43 = vld [vmem:[#allocation91_spill] sm:$0xff] }
 0x675   : > { %11865 = vst [vmem:[#allocation95_spill] sm:$0xff] %v7919_v46  ;;  %v7923_v48 = vpop.eup %6244 }
 0x676   : > { %2693 = vadd.xlane.f32.xlu1 %v2692_v62  ;;  %v7929_v15 = vpop.eup %6246  ;;  %v2683_v62 = vadd.f32 %v7923_v48, %v7919_v46 }
 0x677   : > { %11867 = vst [vmem:[#allocation94_spill] sm:$0xff] %v7929_v15 }
 0x678   : > { %2438 = vmax.xlane.f32.xlu0 %v2437_v3  ;;  %v7933_v3 = vpop.eup %6248 }
 0x67a   : > { %2687 = vadd.xlane.f32.xlu1 %v2686_v22 }
 0x67c   : > { %2696 = vadd.xlane.f32.xlu0 %v2695_v61 }
 0x67e   : > { %2681 = vadd.xlane.f32.xlu1 %v2680_v0 }
 0x680   : > { %2690 = vadd.xlane.f32.xlu0 %v2689_v39  ;;  %v2478_v19 = vpop.xlane.xlu1 %2477 }
 0x681   : > { %v2542_v23 = vsub.f32 %v7767_v7, %v2478_v19  ;;  %v2543_v44 = vsub.f32 %v11866_v24, %v2478_v19  ;;  %v2677_v24 = vadd.f32 %v7933_v3, %v7929_v15 }
 0x682   : > { %2675 = vadd.xlane.f32.xlu1 %v2674_v55 }
 0x683   : > { %v2666_v22 = vmul.f32 1.442695, %v2542_v23  ;;  %v2668_v61 = vmul.f32 1.442695, %v2543_v44 }
 0x684   : > { %2684 = vadd.xlane.f32.xlu0 %v2683_v62  ;;  %v2472_v0 = vpop.xlane.xlu1 %2471  ;;  %v2481_v39 = vpop.xlane.xlu0 %2480 }
 0x685   : > { %6250 = vpow2.f32 %v2666_v22  ;;  %v2538_v58 = vsub.f32 %v7759_v54, %v2472_v0  ;;  %v2539_v7 = vsub.f32 %v11868_v43, %v2472_v0  ;;  %v2544_v19 = vsub.f32 %v7773_v16, %v2481_v39  ;;  %v11869_v22 = vld [vmem:[#allocation88_spill] sm:$0xff] }
 0x686   : > { %6252 = vpow2.f32 %v2668_v61  ;;  %v2545_v55 = vsub.f32 %v7777_v21, %v2481_v39  ;;  %v11871_v0 = vld [vmem:[#allocation92_spill] sm:$0xff]  ;;  %v11872_v61 = vld [vmem:[#allocation93_spill] sm:$0xff] }
 0x687   : > { %v2658_v63 = vmul.f32 1.442695, %v2538_v58  ;;  %v2660_v46 = vmul.f32 1.442695, %v2539_v7  ;;  %v2670_v23 = vmul.f32 1.442695, %v2544_v19 }
 0x688   : > { %v2672_v44 = vmul.f32 1.442695, %v2545_v55  ;;  %2678 = vadd.xlane.f32.xlu0 %v2677_v24  ;;  %v2466_v62 = vpop.xlane.xlu1 %2465  ;;  %v2475_v59 = vpop.xlane.xlu0 %2474  ;;  %v11873_v24 = vld [vmem:[#allocation85_spill] sm:$0xff] }
 0x689   : > { %6254 = vpow2.f32 %v2658_v63  ;;  %v2534_v54 = vsub.f32 %v11869_v22, %v2466_v62  ;;  %v2535_v43 = vsub.f32 %v11870_v60, %v2466_v62  ;;  %v2540_v16 = vsub.f32 %v11871_v0, %v2475_v59  ;;  %v11874_v62 = vld [vmem:[#allocation90_spill] sm:$0xff] }
 0x68a   : > { %6256 = vpow2.f32 %v2660_v46  ;;  %v2541_v21 = vsub.f32 %v11872_v61, %v2475_v59  ;;  %v11875_v0 = vld [vmem:[#allocation86_spill] sm:$0xff]  ;;  %v11876_v61 = vld [vmem:[#allocation87_spill] sm:$0xff] }
 0x68b   : > { %6258 = vpow2.f32 %v2670_v23  ;;  %v2650_v39 = vmul.f32 1.442695, %v2534_v54  ;;  %v2652_v15 = vmul.f32 1.442695, %v2535_v43  ;;  %v2662_v58 = vmul.f32 1.442695, %v2540_v16 }
 0x68c   : > { %6260 = vpow2.f32 %v2672_v44  ;;  %v2664_v7 = vmul.f32 1.442695, %v2541_v21  ;;  %v2460_v19 = vpop.xlane.xlu1 %2459  ;;  %v2469_v55 = vpop.xlane.xlu0 %2468 }
 0x68d   : > { %6262 = vpow2.f32 %v2650_v39  ;;  %v2530_v63 = vsub.f32 %v7743_v17, %v2460_v19  ;;  %v2531_v22 = vsub.f32 %v11873_v24, %v2460_v19  ;;  %v2536_v60 = vsub.f32 %v7755_v8, %v2469_v55 }
 0x68e   : > { %6264 = vpow2.f32 %v2652_v15  ;;  %v2537_v46 = vsub.f32 %v11874_v62, %v2469_v55 }
 0x68f   : > { %6266 = vpow2.f32 %v2662_v58  ;;  %v2642_v59 = vmul.f32 1.442695, %v2530_v63  ;;  %v2644_v23 = vmul.f32 1.442695, %v2531_v22  ;;  %v2654_v54 = vmul.f32 1.442695, %v2536_v60 }
 0x690   : > { %6268 = vpow2.f32 %v2664_v7  ;;  %v2656_v43 = vmul.f32 1.442695, %v2537_v46  ;;  %v2463_v44 = vpop.xlane.xlu0 %2462 }
 0x691   : > { %6270 = vpow2.f32 %v2642_v59  ;;  %v2532_v16 = vsub.f32 %v11875_v0, %v2463_v44  ;;  %v2533_v21 = vsub.f32 %v11876_v61, %v2463_v44 }
 0x692   : > { %v7951_v17 = vpop.eup %6250  ;;  %6272 = vpow2.f32 %v2644_v23 }
 0x693   : > { %v7953_v39 = vpop.eup %6252  ;;  %6274 = vpow2.f32 %v2654_v54  ;;  %v2646_v8 = vmul.f32 1.442695, %v2532_v16  ;;  %v2648_v15 = vmul.f32 1.442695, %v2533_v21 }
 0x694   : > { %6276 = vpow2.f32 %v2656_v43  ;;  %v2764_v58 = vadd.f32 %v7953_v39, %v7951_v17 }
 0x695   : > { %6278 = vpow2.f32 %v2646_v8 }
 0x696   : > { %v7957_v7 = vpop.eup %6254  ;;  %6280 = vpow2.f32 %v2648_v15  ;;  %2765 = vadd.xlane.f32.xlu1 %v2764_v58 }
 0x697   : > { %v7959_v19 = vpop.eup %6256 }
 0x698   : > { %v7961_v55 = vpop.eup %6258  ;;  %v2758_v63 = vadd.f32 %v7959_v19, %v7957_v7 }
 0x699   : > { %v7965_v24 = vpop.eup %6260 }
 0x69a   : > { %v7967_v22 = vpop.eup %6262  ;;  %2759 = vadd.xlane.f32.xlu1 %v2758_v63  ;;  %v2767_v60 = vadd.f32 %v7965_v24, %v7961_v55 }
 0x69b   : > { %11877 = vst [vmem:[#allocation91_spill] sm:$0xff] %v7967_v22  ;;  %v7971_v62 = vpop.eup %6264 }
 0x69c   : > { %11878 = vst [vmem:[#allocation88_spill] sm:$0xff] %v7971_v62  ;;  %v7973_v46 = vpop.eup %6266  ;;  %2768 = vadd.xlane.f32.xlu0 %v2767_v60  ;;  %v2752_v59 = vadd.f32 %v7971_v62, %v7967_v22 }
 0x69d   : > { %v7977_v23 = vpop.eup %6268 }
 0x69e   : > { %v7979_v54 = vpop.eup %6270  ;;  %2753 = vadd.xlane.f32.xlu1 %v2752_v59  ;;  %v2761_v43 = vadd.f32 %v7977_v23, %v7973_v46 }
 0x69f   : > { %11879 = vst [vmem:[#allocation89_spill] sm:$0xff] %v7979_v54  ;;  %v7983_v44 = vpop.eup %6272 }
 0x6a0   : > { %11880 = vst [vmem:[#allocation92_spill] sm:$0xff] %v7983_v44  ;;  %v7985_v0 = vpop.eup %6274  ;;  %2762 = vadd.xlane.f32.xlu0 %v2761_v43  ;;  %v2746_v16 = vadd.f32 %v7983_v44, %v7979_v54 }
 0x6a1   : > { %11881 = vst [vmem:[#allocation93_spill] sm:$0xff] %v7985_v0  ;;  %v7989_v61 = vpop.eup %6276 }
 0x6a2   : > { %v7991_v21 = vpop.eup %6278  ;;  %2747 = vadd.xlane.f32.xlu1 %v2746_v16  ;;  %v2755_v8 = vadd.f32 %v7989_v61, %v7985_v0 }
 0x6a3   : > { %11882 = vst [vmem:[#allocation85_spill] sm:$0xff] %v7991_v21  ;;  %v7995_v15 = vpop.eup %6280 }
 0x6a4   : > { %11883 = vst [vmem:[#allocation90_spill] sm:$0xff] %v7995_v15  ;;  %2756 = vadd.xlane.f32.xlu0 %v2755_v8  ;;  %v2749_v58 = vadd.f32 %v7995_v15, %v7991_v21 }
 0x6a8   : > { %2750 = vadd.xlane.f32.xlu0 %v2749_v58 }
 0x6df   : > { %v2718_v63 = vpop.xlane.xlu1 %2717 }
 0x6e0   : > { %6282 = vrcp.f32 %v2718_v63 }
 0x6e3   : > { %v2454_v60 = vpop.xlane.xlu1 %2453 }
 0x6e4   : > { %v2526_v59 = vsub.f32 %v7733_v10, %v2454_v60  ;;  %v2527_v43 = vsub.f32 %v7735_v31, %v2454_v60 }
 0x6e5   : > { %v2721_v54 = vpop.xlane.xlu0 %2720 }
 0x6e6   : > { %v2634_v44 = vmul.f32 1.442695, %v2526_v59  ;;  %v2636_v16 = vmul.f32 1.442695, %v2527_v43  ;;  %6284 = vrcp.f32 %v2721_v54 }
 0x6e7   : > { %v2712_v22 = vpop.xlane.xlu1 %2711 }
 0x6e8   : > { %6286 = vpow2.f32 %v2634_v44 }
 0x6e9   : > { %6288 = vpow2.f32 %v2636_v16  ;;  %v2457_v0 = vpop.xlane.xlu0 %2456 }
 0x6ea   : > { %v2528_v8 = vsub.f32 %v7739_v36, %v2457_v0  ;;  %v2529_v21 = vsub.f32 %v7741_v57, %v2457_v0  ;;  %6290 = vrcp.f32 %v2712_v22 }
 0x6eb   : > { %v2448_v58 = vpop.xlane.xlu1 %2447 }
 0x6ec   : > { %v2638_v15 = vmul.f32 1.442695, %v2528_v8  ;;  %v2640_v63 = vmul.f32 1.442695, %v2529_v21  ;;  %v2522_v62 = vsub.f32 %v7717_v13, %v2448_v58  ;;  %v2523_v10 = vsub.f32 %v7719_v53, %v2448_v58 }
 0x6ed   : > { %v2715_v31 = vpop.xlane.xlu0 %2714  ;;  %v6283_v59 = vpop.eup %6282 }
 0x6ee   : > { %6292 = vpow2.f32 %v2638_v15  ;;  %v2626_v60 = vmul.f32 1.442695, %v2522_v62  ;;  %v2628_v54 = vmul.f32 1.442695, %v2523_v10  ;;  %v2831_v53 = vmul.f32 %v6283_v59, %v7805_v34 }
 0x6ef   : > { %6294 = vpow2.f32 %v2640_v63  ;;  %v2706_v44 = vpop.xlane.xlu1 %2705 }
 0x6f0   : > { %6296 = vpow2.f32 %v2626_v60 }
 0x6f1   : > { %6298 = vpow2.f32 %v2628_v54  ;;  %v2451_v36 = vpop.xlane.xlu0 %2450 }
 0x6f2   : > { %6300 = vrcp.f32 %v2715_v31  ;;  %v2524_v57 = vsub.f32 %v7725_v35, %v2451_v36  ;;  %v2525_v0 = vsub.f32 %v7727_v14, %v2451_v36  ;;  %v2830_v35 = vmul.f32 %v6283_v59, %v7802_v32 }
 0x6f3   : > { %v6285_v21 = vpop.eup %6284  ;;  %v2442_v13 = vpop.xlane.xlu1 %2441  ;;  %6302 = vrcp.f32 %v2706_v44  ;;  %v2102_v59 = vlaneseq }
 0x6f4   : > { %v2630_v22 = vmul.f32 1.442695, %v2524_v57  ;;  %v2632_v43 = vmul.f32 1.442695, %v2525_v0  ;;  %v2518_v62 = vsub.f32 %v7701_v26, %v2442_v13  ;;  %v2519_v15 = vsub.f32 %v7703_v5, %v2442_v13 }
 0x6f5   : > { %v8010_v16 = vpop.eup %6286  ;;  %v2709_v8 = vpop.xlane.xlu0 %2708  ;;  %v2833_v58 = vmul.f32 %v6285_v21, %v7819_v4  ;;  %v2832_v14 = vmul.f32 %v6285_v21, %v7815_v1 }
 0x6f6   : > { %v8015_v63 = vpop.eup %6288  ;;  %6304 = vpow2.f32 %v2630_v22  ;;  %v2618_v34 = vmul.f32 1.442695, %v2518_v62  ;;  %v2620_v10 = vmul.f32 1.442695, %v2519_v15 }
 0x6f7   : > { %6306 = vpow2.f32 %v2632_v43  ;;  %v2881_v31 = vpack.c.bf16 %v2833_v58, %v2831_v53  ;;  %v2700_v26 = vpop.xlane.xlu1 %2699  ;;  %v2880_v60 = vpack.c.bf16 %v2832_v14, %v2830_v35  ;;  %v2740_v5 = vadd.f32 %v8015_v63, %v8010_v16  ;;  %v6291_v32 = vpop.eup %6290 }
 0x6f8   : > { %6308 = vpow2.f32 %v2618_v34  ;;  %v8033_v58 = vshrl.u32 %v2102_v59, 7  ;;  %v2826_v34 = vmul.f32 %v6291_v32, %v7811_v47 }
 0x6f9   : > { %6310 = vpow2.f32 %v2620_v10  ;;  %2898 = vmatprep.subr.bf16.mxu0 %v2881_v31  ;;  %v2445_v4 = vpop.xlane.xlu0 %2444  ;;  %2741 = vadd.xlane.f32.xlu1 %v2740_v5 }
 0x6fa   : > { %6312 = vrcp.f32 %v2709_v8  ;;  %2899 = vmatpush1.bf16.xpose.msra.mxu0 %v2880_v60  ;;  %v2520_v1 = vsub.f32 %v7709_v50, %v2445_v4  ;;  %v2521_v54 = vsub.f32 %v7711_v20, %v2445_v4  ;;  %v11342_v31 = vsub.s32 1, %v8033_v58 }
 0x6fb   : > { %v8021_v44 = vpop.eup %6292  ;;  %v2436_v36 = vpop.xlane.xlu1 %2435  ;;  %6314 = vrcp.f32 %v2700_v26 }
 0x6fc   : > { %v8023_v57 = vpop.eup %6294  ;;  %v2622_v0 = vmul.f32 1.442695, %v2520_v1  ;;  %v2624_v21 = vmul.f32 1.442695, %v2521_v54  ;;  %v2514_v13 = vsub.f32 %v11857_v40, %v2436_v36  ;;  %v2515_v53 = vsub.f32 %v11856_v6, %v2436_v36 }
 0x6fd   : > { %v8027_v22 = vpop.eup %6296  ;;  %v2703_v43 = vpop.xlane.xlu0 %2702  ;;  %v2743_v50 = vadd.f32 %v8023_v57, %v8021_v44  ;;  %v2827_v40 = vmul.f32 %v6291_v32, %v7813_v56  ;;  %v1233_v32 = vld [vmem:[%s11231_s2] sm:$0x3]  ;;  %v11343_v36 = vsub.s32 0, %v8033_v58 }
 0x6fe   : > { %v8031_v20 = vpop.eup %6298  ;;  %6316 = vpow2.f32 %v2622_v0  ;;  %v2610_v62 = vmul.f32 1.442695, %v2514_v13  ;;  %v2612_v15 = vmul.f32 1.442695, %v2515_v53  ;;  %v8060_v13 = vrot.slane %v1233_v32, %v11342_v31 }
 0x6ff   : > { %v6301_v8 = vpop.eup %6300  ;;  %6318 = vpow2.f32 %v2624_v21  ;;  %2744 = vadd.xlane.f32.xlu0 %v2743_v50  ;;  %v2694_v6 = vpop.xlane.xlu1 %2693  ;;  %v2734_v35 = vadd.f32 %v8031_v20, %v8027_v22 }
 0x700   : > { %6320 = vpow2.f32 %v2610_v62  ;;  %v2829_v14 = vmul.f32 %v6301_v8, %v7833_v2  ;;  %v2828_v10 = vmul.f32 %v6301_v8, %v7829_v25  ;;  %v6303_v60 = vpop.eup %6302 }
 0x701   : > { %6322 = vpow2.f32 %v2612_v15  ;;  %v2439_v26 = vpop.xlane.xlu0 %2438  ;;  %2735 = vadd.xlane.f32.xlu1 %v2734_v35  ;;  %v2822_v15 = vmul.f32 %v6303_v60, %v7836_v29 }
 0x702   : > { %6324 = vrcp.f32 %v2703_v43  ;;  %v2879_v5 = vpack.c.bf16 %v2829_v14, %v2827_v40  ;;  %v2878_v56 = vpack.c.bf16 %v2828_v10, %v2826_v34  ;;  %v2516_v4 = vsub.f32 %v11860_v51, %v2439_v26  ;;  %v11884_v14 = vld [vmem:[#allocation2_spill] sm:$0xff] }
 0x703   : > { %v8043_v1 = vpop.eup %6304  ;;  %v2517_v54 = vsub.f32 %v11859_v42, %v2439_v26  ;;  %v2688_v2 = vpop.xlane.xlu1 %2687  ;;  %6326 = vrcp.f32 %v2694_v6  ;;  %v2823_v43 = vmul.f32 %v6303_v60, %v7841_v11  ;;  %v8070_v40 = vrot.slane %v1233_v32, %v11343_v36  ;;  %v11886_v32 = vld [vmem:[#allocation5_spill] sm:$0xff]  ;;  %v11908_v36 = vld [vmem:[#allocation82_spill] sm:$0xff] }
 0x704   : > { %v8046_v59 = vpop.eup %6306  ;;  %2900 = vmatprep.subr.bf16.mxu0 %v2879_v5  ;;  %v2614_v47 = vmul.f32 1.442695, %v2516_v4  ;;  %6328 = vrcp.f32 %v2688_v2  ;;  %v2113_v11 = vmul.f32 %v8060_v13, %v11884_v14  ;;  %v6387_v14 = vld [vmem:[%s6569_s21] sm:$0xff] }
 0x705   : > { %v8048_v25 = vpop.eup %6308  ;;  %2901 = vmatpush1.bf16.xpose.msra.mxu0 %v2878_v56  ;;  %v2616_v51 = vmul.f32 1.442695, %v2517_v54  ;;  %v2697_v0 = vpop.xlane.xlu0 %2696  ;;  %v2737_v42 = vadd.f32 %v8046_v59, %v8043_v1  ;;  %v6386_v54 = vld [vmem:[%s6569_s21 + $0x8] sm:$0xff] }
 0x706   : > { %v8056_v21 = vpop.eup %6310  ;;  %6330 = vpow2.f32 %v2614_v47  ;;  %v8087_v2 = vadd.f32 %v6386_v54, %v2113_v11 }
 0x707   : > { %v6313_v53 = vpop.eup %6312  ;;  %6332 = vpow2.f32 %v2616_v51  ;;  %2738 = vadd.xlane.f32.xlu0 %v2737_v42  ;;  %v2728_v50 = vadd.f32 %v8056_v21, %v8048_v25  ;;  %v2115_v51 = vmul.f32 %v8060_v13, %v11886_v32 }
 0x708   : > { %6334 = vrcp.f32 %v2697_v0  ;;  %v2825_v62 = vmul.f32 %v6313_v53, %v7857_v30  ;;  %v2824_v8 = vmul.f32 %v6313_v53, %v7852_v49  ;;  %v6315_v35 = vpop.eup %6314  ;;  %v11885_v49 = vld [vmem:[#allocation55_spill] sm:$0xff]  ;;  %v11887_v0 = vld [vmem:[#allocation4_spill] sm:$0xff]  ;;  %v2682_v53 = vpop.xlane.xlu1 %2681 }
 0x709   : > { %v2691_v6 = vpop.xlane.xlu0 %2690  ;;  %2729 = vadd.xlane.f32.xlu1 %v2728_v50  ;;  %v2112_v60 = vmul.f32 %v8070_v40, %v11885_v49  ;;  %v2117_v42 = vmul.f32 %v8060_v13, %v11887_v0 }
 0x70a   : > { %v2877_v34 = vpack.c.bf16 %v2825_v62, %v2823_v43  ;;  %v2876_v10 = vpack.c.bf16 %v2824_v8, %v2822_v15  ;;  %6336 = vrcp.f32 %v2691_v6  ;;  %v2819_v43 = vmul.f32 %v6315_v35, %v7865_v37  ;;  %v11890_v37 = vld [vmem:[#allocation6_spill] sm:$0xff] }
 0x70b   : > { %v8074_v26 = vpop.eup %6316  ;;  %v2818_v15 = vmul.f32 %v6315_v35, %v7860_v52  ;;  %v8100_v11 = vadd.f32 %v6387_v14, %v2112_v60  ;;  %v2116_v49 = vmul.f32 %v8070_v40, %v11890_v37  ;;  %v6389_v60 = vld [vmem:[%s6569_s21 + $0x28] sm:$0xff] }
 0x70c   : > { %v8076_v30 = vpop.eup %6318  ;;  %2902 = vmatprep.subr.bf16.mxu0 %v2877_v34  ;;  %v11889_v34 = vld [vmem:[#allocation3_spill] sm:$0xff]  ;;  %v8114_v54 = vadd.f32 %v6389_v60, %v2117_v42 }
 0x70d   : > { %v8078_v29 = vpop.eup %6320  ;;  %2903 = vmatpush1.bf16.xpose.msra.mxu0 %v2876_v10  ;;  %v2685_v5 = vpop.xlane.xlu0 %2684  ;;  %v2731_v56 = vadd.f32 %v8076_v30, %v8074_v26  ;;  %11888 = vst [vmem:[#allocation86_spill] sm:$0xff] %v8100_v11  ;;  %v2114_v10 = vmul.f32 %v8070_v40, %v11889_v34  ;;  %v11893_v42 = vld [vmem:[#allocation15_spill] sm:$0xff] }
 0x70e   : > { %v8084_v4 = vpop.eup %6322  ;;  %6338 = vrcp.f32 %v2685_v5 }
 0x70f   : > { %v6325_v47 = vpop.eup %6324  ;;  %2732 = vadd.xlane.f32.xlu0 %v2731_v56  ;;  %v2722_v50 = vadd.f32 %v8084_v4, %v8078_v29  ;;  %6340 = vrcp.f32 %v2682_v53  ;;  %v6391_v53 = vld [vmem:[%s6569_s21 + $0x20] sm:$0xff] }
 0x710   : > { %v2821_v62 = vmul.f32 %v6325_v47, %v7879_v27  ;;  %v2820_v8 = vmul.f32 %v6325_v47, %v7874_v12  ;;  %v6327_v6 = vpop.eup %6326  ;;  %v6388_v12 = vld [vmem:[%s6569_s21 + $0x18] sm:$0xff]  ;;  %v3086_v47 = vadd.f32 %v8087_v2, %v8100_v11 }
 0x711   : > { %2723 = vadd.xlane.f32.xlu1 %v2722_v50  ;;  %v8106_v5 = vpop.eup %6328  ;;  %v8111_v56 = vadd.f32 %v6388_v12, %v2115_v51  ;;  %v6390_v50 = vld [vmem:[%s6569_s21 + $0x10] sm:$0xff]  ;;  %v2814_v12 = vmul.f32 %v6327_v6, %v7881_v9 }
 0x712   : > { %v2875_v27 = vpack.c.bf16 %v2821_v62, %v2819_v43  ;;  %v2874_v52 = vpack.c.bf16 %v2820_v8, %v2818_v15  ;;  %v8121_v14 = vadd.f32 %v6390_v50, %v2114_v10  ;;  %v8124_v43 = vadd.f32 %v6391_v53, %v2116_v49  ;;  %v2679_v62 = vpop.xlane.xlu0 %2678  ;;  %v6392_v53 = vld [vmem:[%s6569_s21 + $0x38] sm:$0xff] }
 0x713   : > { %v8108_v35 = vpop.eup %6330  ;;  %11891 = vst [vmem:[#allocation87_spill] sm:$0xff] %v8111_v56  ;;  %v2119_v15 = vmul.f32 %v8060_v13, %v11893_v42  ;;  %v2815_v8 = vmul.f32 %v6327_v6, %v7885_v38  ;;  %6342 = vrcp.f32 %v2679_v62  ;;  %v3135_v6 = vmul.f32 %v8087_v2, %v8087_v2 }
 0x714   : > { %v8118_v32 = vpop.eup %6332  ;;  %2904 = vmatprep.subr.bf16.mxu0 %v2875_v27  ;;  %11892 = vst [vmem:[#allocation2_spill] sm:$0xff] %v8121_v14  ;;  %v11894_v27 = vld [vmem:[#allocation8_spill] sm:$0xff]  ;;  %v3092_v60 = vadd.f32 %v8114_v54, %v8124_v43  ;;  %v3089_v50 = vadd.f32 %v8111_v56, %v8121_v14  ;;  %v3136_v9 = vmul.f32 %v8121_v14, %v8121_v14 }
 0x715   : > { %v6335_v0 = vpop.eup %6334  ;;  %2905 = vmatpush1.bf16.xpose.msra.mxu0 %v2874_v52  ;;  %3087 = vadd.xlane.f32.xlu1 %v3086_v47  ;;  %v2725_v51 = vadd.f32 %v8118_v32, %v8108_v35  ;;  %v2118_v49 = vmul.f32 %v8070_v40, %v11894_v27  ;;  %v2676_v52 = vpop.xlane.xlu1 %2675  ;;  %v3137_v47 = vmul.f32 %v8111_v56, %v8111_v56  ;;  %v11912_v56 = vld [vmem:[#allocation64_spill] sm:$0xff] }
 0x716   : > { %v2817_v34 = vmul.f32 %v6335_v0, %v7899_v33  ;;  %v2816_v37 = vmul.f32 %v6335_v0, %v7895_v18  ;;  %v2811_v18 = vmul.f32 %v8106_v5, %v7893_v45  ;;  %v8150_v62 = vadd.f32 %v6392_v53, %v2119_v15  ;;  %v11898_v15 = vld [vmem:[#allocation17_spill] sm:$0xff]  ;;  %v11916_v14 = vld [vmem:[#allocation84_spill] sm:$0xff] }
 0x717   : > { %v6337_v10 = vpop.eup %6336  ;;  %2726 = vadd.xlane.f32.xlu0 %v2725_v51  ;;  %6344 = vrcp.f32 %v2676_v52  ;;  %v11896_v51 = vld [vmem:[#allocation7_spill] sm:$0xff]  ;;  %v3169_v42 = vadd.f32 %v3137_v47, %v3136_v9  ;;  %v2120_v52 = vmul.f32 %v8070_v40, %v11898_v15  ;;  %v3138_v47 = vmul.f32 %v8124_v43, %v8124_v43  ;;  %v11901_v15 = vld [vmem:[#allocation80_spill] sm:$0xff] }
 0x718   : > { %v2873_v38 = vpack.c.bf16 %v2817_v34, %v2815_v8  ;;  %v2813_v33 = vmul.f32 %v6337_v10, %v7911_v41  ;;  %v2872_v0 = vpack.c.bf16 %v2816_v37, %v2814_v12  ;;  %11895 = vst [vmem:[#allocation55_spill] sm:$0xff] %v8150_v62  ;;  %v2121_v41 = vmul.f32 %v8060_v13, %v11896_v51  ;;  %v6393_v37 = vld [vmem:[%s6569_s21 + $0x30] sm:$0xff]  ;;  %v6395_v51 = vld [vmem:[%s6569_s21 + $0x40] sm:$0xff] }
 0x719   : > { %3093 = vadd.xlane.f32.xlu1 %v3092_v60  ;;  %v3134_v8 = vmul.f32 %v8100_v11, %v8100_v11  ;;  %v3139_v34 = vmul.f32 %v8114_v54, %v8114_v54  ;;  %v8159_v27 = vadd.f32 %v6393_v37, %v2118_v49  ;;  %v11899_v49 = vld [vmem:[#allocation11_spill] sm:$0xff]  ;;  %v11900_v37 = vld [vmem:[#allocation9_spill] sm:$0xff] }
 0x71a   : > { %2906 = vmatprep.subr.bf16.mxu0 %v2873_v38  ;;  %v2871_v45 = vpack.c.bf16 %v2813_v33, %v2811_v18  ;;  %v3141_v38 = vmul.f32 %v8150_v62, %v8150_v62  ;;  %v6394_v33 = vld [vmem:[%s6569_s21 + $0x48] sm:$0xff]  ;;  %v2123_v9 = vmul.f32 %v8060_v13, %v11899_v49 }
 0x71b   : > { %3090 = vadd.xlane.f32.xlu0 %v3089_v50  ;;  %11897 = vst [vmem:[#allocation5_spill] sm:$0xff] %v8159_v27  ;;  %v6339_v12 = vpop.eup %6338  ;;  %v3166_v60 = vadd.f32 %v3135_v6, %v3134_v8  ;;  %v8168_v50 = vadd.f32 %v6394_v33, %v2121_v41  ;;  %v3172_v6 = vadd.f32 %v3139_v34, %v3138_v47 }
 0x71c   : > { %v6341_v18 = vpop.eup %6340  ;;  %v3140_v8 = vmul.f32 %v8159_v27, %v8159_v27  ;;  %v2122_v41 = vmul.f32 %v8070_v40, %v11900_v37  ;;  %v2810_v33 = vmul.f32 %v8106_v5, %v11901_v15 }
 0x71d   : > { %2907 = vmatpush1.bf16.xpose.msra.mxu0 %v2872_v0  ;;  %3170 = vadd.xlane.f32.xlu1 %v3169_v42  ;;  %v2812_v0 = vmul.f32 %v6337_v10, %v7907_v28  ;;  %v8174_v42 = vadd.f32 %v6395_v51, %v2120_v52  ;;  %v3095_v28 = vadd.f32 %v8150_v62, %v8159_v27  ;;  %v11902_v10 = vld [vmem:[#allocation81_spill] sm:$0xff] }
 0x71e   : > { %2908 = vmatprep.subr.bf16.mxu0 %v2871_v45  ;;  %v2809_v45 = vmul.f32 %v6339_v12, %v7923_v48  ;;  %v2807_v34 = vmul.f32 %v6341_v18, %v11902_v10  ;;  %v3175_v52 = vadd.f32 %v3141_v38, %v3140_v8  ;;  %v11903_v48 = vld [vmem:[#allocation12_spill] sm:$0xff]  ;;  %v3143_v37 = vmul.f32 %v8168_v50, %v8168_v50 }
 0x71f   : > { %3167 = vadd.xlane.f32.xlu0 %v3166_v60  ;;  %v2766_v53 = vpop.xlane.xlu1 %2765  ;;  %v6396_v60 = vld [vmem:[%s6569_s21 + $0x58] sm:$0xff]  ;;  %v2125_v49 = vmul.f32 %v8060_v13, %v11903_v48  ;;  %v2870_v51 = vpack.c.bf16 %v2812_v0, %v2810_v33  ;;  %v6397_v10 = vld [vmem:[%s6569_s21 + $0x50] sm:$0xff]  ;;  %v11905_v33 = vld [vmem:[#allocation63_spill] sm:$0xff] }
 0x720   : > { %v8187_v47 = vadd.f32 %v6396_v60, %v2123_v9  ;;  %6346 = vrcp.f32 %v2766_v53  ;;  %v2869_v5 = vpack.c.bf16 %v2809_v45, %v2807_v34  ;;  %v6343_v15 = vpop.eup %6342  ;;  %v8196_v38 = vadd.f32 %v6397_v10, %v2122_v41  ;;  %v11904_v9 = vld [vmem:[#allocation13_spill] sm:$0xff]  ;;  %v6398_v34 = vld [vmem:[%s6569_s21 + $0x68] sm:$0xff] }
 0x721   : > { %3173 = vadd.xlane.f32.xlu1 %v3172_v6  ;;  %v3142_v6 = vmul.f32 %v8174_v42, %v8174_v42  ;;  %v2124_v8 = vmul.f32 %v8070_v40, %v11904_v9  ;;  %v3098_v53 = vadd.f32 %v8168_v50, %v8174_v42  ;;  %v2127_v45 = vmul.f32 %v8060_v13, %v11905_v33  ;;  %v11906_v48 = vld [vmem:[#allocation95_spill] sm:$0xff]  ;;  %v11907_v9 = vld [vmem:[#allocation10_spill] sm:$0xff] }
 0x722   : > { %v8205_v41 = vadd.f32 %v6398_v34, %v2125_v49  ;;  %v2126_v31 = vmul.f32 %v8070_v40, %v11907_v9  ;;  %v2805_v33 = vmul.f32 %v6343_v15, %v7933_v3  ;;  %v2806_v49 = vmul.f32 %v6341_v18, %v11908_v36 }
 0x723   : > { %3096 = vadd.xlane.f32.xlu0 %v3095_v28  ;;  %v2760_v60 = vpop.xlane.xlu1 %2759  ;;  %v3178_v10 = vadd.f32 %v3143_v37, %v3142_v6  ;;  %v3144_v37 = vmul.f32 %v8196_v38, %v8196_v38  ;;  %v6400_v6 = vld [vmem:[%s6569_s21 + $0x78] sm:$0xff] }
 0x724   : > { %v6345_v28 = vpop.eup %6344  ;;  %v3147_v18 = vmul.f32 %v8205_v41, %v8205_v41 }
 0x725   : > { %2909 = vmatpush1.bf16.xpose.msra.mxu0 %v2870_v51  ;;  %v2769_v0 = vpop.xlane.xlu0 %2768  ;;  %3176 = vadd.xlane.f32.xlu1 %v3175_v52  ;;  %v2808_v51 = vmul.f32 %v6339_v12, %v11906_v48  ;;  %v3145_v52 = vmul.f32 %v8187_v47, %v8187_v47  ;;  %v3101_v12 = vadd.f32 %v8187_v47, %v8196_v38  ;;  %v11910_v48 = vld [vmem:[#allocation65_spill] sm:$0xff] }
 0x726   : > { %2910 = vmatprep.subr.bf16.mxu0 %v2869_v5  ;;  %6348 = vrcp.f32 %v2769_v0  ;;  %v6399_v5 = vld [vmem:[%s6569_s21 + $0x60] sm:$0xff] }
 0x727   : > { %3099 = vadd.xlane.f32.xlu0 %v3098_v53  ;;  %6350 = vrcp.f32 %v2760_v60  ;;  %v8214_v0 = vadd.f32 %v6399_v5, %v2124_v8  ;;  %v8222_v53 = vadd.f32 %v6400_v6, %v2127_v45  ;;  %v11909_v60 = vld [vmem:[#allocation83_spill] sm:$0xff]  ;;  %v2129_v8 = vmul.f32 %v8060_v13, %v11910_v48 }
 0x728   : > { %v2803_v3 = vmul.f32 %v6345_v28, %v11909_v60  ;;  %v2868_v9 = vpack.c.bf16 %v2808_v51, %v2806_v49  ;;  %v3181_v36 = vadd.f32 %v3145_v52, %v3144_v37  ;;  %v2128_v45 = vmul.f32 %v8070_v40, %v11912_v56  ;;  %v11914_v37 = vld [vmem:[#allocation94_spill] sm:$0xff] }
 0x729   : > { %v2763_v34 = vpop.xlane.xlu0 %2762  ;;  %3179 = vadd.xlane.f32.xlu1 %v3178_v10  ;;  %v6401_v10 = vld [vmem:[%s6569_s21 + $0x70] sm:$0xff]  ;;  %v3104_v60 = vadd.f32 %v8205_v41, %v8214_v0  ;;  %v3146_v51 = vmul.f32 %v8214_v0, %v8214_v0  ;;  %v3149_v52 = vmul.f32 %v8222_v53, %v8222_v53 }
 0x72a   : > { %6352 = vrcp.f32 %v2763_v34  ;;  %v8230_v5 = vadd.f32 %v6401_v10, %v2126_v31  ;;  %v2867_v34 = vpack.c.bf16 %v2805_v33, %v2803_v3  ;;  %v6402_v31 = vld [vmem:[%s6569_s21 + $0x88] sm:$0xff]  ;;  %v2754_v33 = vpop.xlane.xlu1 %2753  ;;  %v2804_v3 = vmul.f32 %v6343_v15, %v11914_v37  ;;  %v11915_v10 = vld [vmem:[#allocation66_spill] sm:$0xff]  ;;  %v11917_v37 = vld [vmem:[#allocation69_spill] sm:$0xff] }
 0x72b   : > { %3102 = vadd.xlane.f32.xlu0 %v3101_v12  ;;  %v8241_v49 = vadd.f32 %v6402_v31, %v2129_v8  ;;  %v11913_v12 = vld [vmem:[#allocation67_spill] sm:$0xff]  ;;  %v3184_v48 = vadd.f32 %v3147_v18, %v3146_v51 }
 0x72c   : > { %11911 = vst [vmem:[#allocation4_spill] sm:$0xff] %v8230_v5  ;;  %v2131_v56 = vmul.f32 %v8060_v13, %v11913_v12  ;;  %v3148_v8 = vmul.f32 %v8230_v5, %v8230_v5  ;;  %v2802_v12 = vmul.f32 %v6345_v28, %v11916_v14  ;;  %v6405_v14 = vld [vmem:[%s6569_s21 + $0x90] sm:$0xff] }
 0x72d   : > { %2911 = vmatpush1.bf16.xpose.msra.mxu0 %v2868_v9  ;;  %v2757_v6 = vpop.xlane.xlu0 %2756  ;;  %3182 = vadd.xlane.f32.xlu1 %v3181_v36  ;;  %v6403_v9 = vld [vmem:[%s6569_s21 + $0x80] sm:$0xff]  ;;  %v6347_v31 = vpop.eup %6346 }
 0x72e   : > { %2912 = vmatprep.subr.bf16.mxu0 %v2867_v34  ;;  %v8247_v36 = vadd.f32 %v6403_v9, %v2128_v45  ;;  %v2130_v34 = vmul.f32 %v8070_v40, %v11915_v10  ;;  %6354 = vrcp.f32 %v2757_v6  ;;  %v3187_v15 = vadd.f32 %v3149_v52, %v3148_v8  ;;  %v6404_v45 = vld [vmem:[%s6569_s21 + $0x98] sm:$0xff]  ;;  %v11918_v8 = vld [vmem:[#allocation68_spill] sm:$0xff]  ;;  %v2748_v27 = vpop.xlane.xlu1 %2747 }
 0x72f   : > { %3105 = vadd.xlane.f32.xlu0 %v3104_v60  ;;  %v3107_v60 = vadd.f32 %v8222_v53, %v8230_v5  ;;  %6356 = vrcp.f32 %v2754_v33  ;;  %v8257_v51 = vadd.f32 %v6404_v45, %v2131_v56  ;;  %v2133_v9 = vmul.f32 %v8060_v13, %v11917_v37  ;;  %v11920_v5 = vld [vmem:[#allocation70_spill] sm:$0xff] }
 0x730   : > { %v2866_v6 = vpack.c.bf16 %v2804_v3, %v2802_v12  ;;  %v3151_v10 = vmul.f32 %v8241_v49, %v8241_v49  ;;  %v8264_v28 = vadd.f32 %v6405_v14, %v2130_v34  ;;  %v3150_v56 = vmul.f32 %v8247_v36, %v8247_v36  ;;  %v6406_v14 = vld [vmem:[%s6569_s21 + $0xa8] sm:$0xff] }
 0x731   : > { %3185 = vadd.xlane.f32.xlu1 %v3184_v48  ;;  %v2863_v48 = vmul.f32 %v6347_v31, %v7953_v39  ;;  %v2132_v45 = vmul.f32 %v8070_v40, %v11918_v8  ;;  %v2751_v3 = vpop.xlane.xlu0 %2750  ;;  %v3110_v12 = vadd.f32 %v8241_v49, %v8247_v36  ;;  %v8278_v62 = vadd.f32 %v6406_v14, %v2133_v9  ;;  %v11922_v14 = vld [vmem:[#allocation72_spill] sm:$0xff] }
 0x732   : > { %v3153_v8 = vmul.f32 %v8257_v51, %v8257_v51  ;;  %6358 = vrcp.f32 %v2751_v3 }
 0x733   : > { %v6349_v18 = vpop.eup %6348  ;;  %3108 = vadd.xlane.f32.xlu0 %v3107_v60  ;;  %v11919_v60 = vld [vmem:[#allocation71_spill] sm:$0xff]  ;;  %6360 = vrcp.f32 %v2748_v27  ;;  %v3155_v3 = vmul.f32 %v8278_v62, %v8278_v62 }
 0x734   : > { %v2865_v52 = vmul.f32 %v6349_v18, %v7965_v24  ;;  %v6351_v33 = vpop.eup %6350  ;;  %v2864_v34 = vmul.f32 %v6349_v18, %v7961_v55  ;;  %v2135_v39 = vmul.f32 %v8060_v13, %v11919_v60  ;;  %v2134_v55 = vmul.f32 %v8070_v40, %v11920_v5 }
 0x735   : > { %2913 = vmatpush1.bf16.xpose.msra.mxu0 %v2866_v6  ;;  %3188 = vadd.xlane.f32.xlu1 %v3187_v15  ;;  %v2862_v6 = vmul.f32 %v6347_v31, %v7951_v17  ;;  %v3190_v15 = vadd.f32 %v3151_v10, %v3150_v56  ;;  %v2859_v18 = vmul.f32 %v6351_v33, %v7959_v19  ;;  %v6408_v10 = vld [vmem:[%s6569_s21 + $0xb8] sm:$0xff] }
 0x736   : > { %v2897_v24 = vpack.c.bf16 %v2865_v52, %v2863_v48  ;;  %v6407_v48 = vld [vmem:[%s6569_s21 + $0xa0] sm:$0xff]  ;;  %v3113_v17 = vadd.f32 %v8257_v51, %v8264_v28  ;;  %v3152_v31 = vmul.f32 %v8264_v28, %v8264_v28  ;;  %v8295_v5 = vadd.f32 %v6408_v10, %v2135_v39  ;;  %v11921_v19 = vld [vmem:[#allocation73_spill] sm:$0xff] }
 0x737   : > { %v6353_v37 = vpop.eup %6352  ;;  %3111 = vadd.xlane.f32.xlu0 %v3110_v12  ;;  %v8288_v52 = vadd.f32 %v6407_v48, %v2132_v45  ;;  %v2896_v12 = vpack.c.bf16 %v2864_v34, %v2862_v6  ;;  %v6409_v34 = vld [vmem:[%s6569_s21 + $0xb0] sm:$0xff]  ;;  %v2136_v6 = vmul.f32 %v8070_v40, %v11922_v14 }
 0x738   : > { %2914 = vmatprep.subr.bf16.mxu0 %v2897_v24  ;;  %v2861_v9 = vmul.f32 %v6353_v37, %v7977_v23  ;;  %v2137_v23 = vmul.f32 %v8060_v13, %v11921_v19  ;;  %v3193_v45 = vadd.f32 %v3153_v8, %v3152_v31  ;;  %v8302_v60 = vadd.f32 %v6409_v34, %v2134_v55  ;;  %v6410_v55 = vld [vmem:[%s6569_s21 + $0xc8] sm:$0xff]  ;;  %v11925_v31 = vld [vmem:[#allocation74_spill] sm:$0xff] }
 0x739   : > { %3191 = vadd.xlane.f32.xlu1 %v3190_v15  ;;  %v3116_v27 = vadd.f32 %v8278_v62, %v8288_v52  ;;  %v3154_v39 = vmul.f32 %v8288_v52, %v8288_v52  ;;  %v3157_v15 = vmul.f32 %v8295_v5, %v8295_v5  ;;  %v2138_v10 = vmul.f32 %v8070_v40, %v11925_v31 }
 0x73a   : > { %v2895_v56 = vpack.c.bf16 %v2861_v9, %v2859_v18  ;;  %v8313_v18 = vadd.f32 %v6410_v55, %v2137_v23  ;;  %v11924_v9 = vld [vmem:[#allocation75_spill] sm:$0xff]  ;;  %v3156_v19 = vmul.f32 %v8302_v60, %v8302_v60  ;;  %v2858_v23 = vmul.f32 %v6351_v33, %v7957_v7  ;;  %v11927_v55 = vld [vmem:[#allocation77_spill] sm:$0xff]  ;;  %v6413_v7 = vld [vmem:[%s6569_s21 + $0xd0] sm:$0xff] }
 0x73b   : > { %3114 = vadd.xlane.f32.xlu0 %v3113_v17  ;;  %v6355_v24 = vpop.eup %6354  ;;  %v2139_v48 = vmul.f32 %v8060_v13, %v11924_v9  ;;  %v3196_v17 = vadd.f32 %v3155_v3, %v3154_v39  ;;  %v3119_v14 = vadd.f32 %v8295_v5, %v8302_v60  ;;  %v8338_v33 = vadd.f32 %v6413_v7, %v2138_v10  ;;  %v11929_v10 = vld [vmem:[#allocation93_spill] sm:$0xff] }
 0x73c   : > { %v6357_v8 = vpop.eup %6356  ;;  %11923 = vst [vmem:[#allocation3_spill] sm:$0xff] %v8313_v18  ;;  %v3199_v3 = vadd.f32 %v3157_v15, %v3156_v19 }
 0x73d   : > { %2915 = vmatpush2.bf16.xpose.msra.mxu0 %v2896_v12  ;;  %3194 = vadd.xlane.f32.xlu1 %v3193_v45  ;;  %v2860_v12 = vmul.f32 %v6353_v37, %v7973_v46  ;;  %v6411_v45 = vld [vmem:[%s6569_s21 + $0xc0] sm:$0xff]  ;;  %v11926_v46 = vld [vmem:[#allocation88_spill] sm:$0xff] }
 0x73e   : > { %2916 = vmatprep.subr.bf16.mxu0 %v2895_v56  ;;  %v2857_v56 = vmul.f32 %v6355_v24, %v7989_v61  ;;  %v8324_v34 = vadd.f32 %v6411_v45, %v2136_v6  ;;  %v2855_v37 = vmul.f32 %v6357_v8, %v11926_v46  ;;  %v2141_v61 = vmul.f32 %v8060_v13, %v11927_v55  ;;  %v11928_v45 = vld [vmem:[#allocation76_spill] sm:$0xff] }
 0x73f   : > { %3117 = vadd.xlane.f32.xlu0 %v3116_v27  ;;  %v6412_v27 = vld [vmem:[%s6569_s21 + $0xd8] sm:$0xff]  ;;  %v2894_v9 = vpack.c.bf16 %v2860_v12, %v2858_v23  ;;  %v3159_v6 = vmul.f32 %v8313_v18, %v8313_v18  ;;  %v6359_v31 = vpop.eup %6358  ;;  %v2140_v15 = vmul.f32 %v8070_v40, %v11928_v45  ;;  %v6414_v23 = vld [vmem:[%s6569_s21 + $0xe8] sm:$0xff]  ;;  %v3160_v55 = vmul.f32 %v8338_v33, %v8338_v33 }
 0x740   : > { %v8331_v39 = vadd.f32 %v6412_v27, %v2139_v48  ;;  %v3122_v48 = vadd.f32 %v8313_v18, %v8324_v34  ;;  %v3158_v12 = vmul.f32 %v8324_v34, %v8324_v34  ;;  %v6361_v19 = vpop.eup %6360  ;;  %v11930_v27 = vld [vmem:[#allocation90_spill] sm:$0xff]  ;;  %v11932_v45 = vld [vmem:[#allocation91_spill] sm:$0xff] }
 0x741   : > { %3197 = vadd.xlane.f32.xlu1 %v3196_v17  ;;  %v2893_v17 = vpack.c.bf16 %v2857_v56, %v2855_v37  ;;  %v2856_v56 = vmul.f32 %v6355_v24, %v11929_v10 }
 0x742   : > { %v3202_v46 = vadd.f32 %v3159_v6, %v3158_v12  ;;  %v3161_v37 = vmul.f32 %v8331_v39, %v8331_v39  ;;  %v3125_v24 = vadd.f32 %v8331_v39, %v8338_v33  ;;  %v11933_v6 = vld [vmem:[#allocation92_spill] sm:$0xff] }
 0x743   : > { %3120 = vadd.xlane.f32.xlu0 %v3119_v14  ;;  %v8347_v14 = vadd.f32 %v6414_v23, %v2141_v61  ;;  %v2851_v12 = vmul.f32 %v6361_v19, %v11933_v6  ;;  %v11934_v23 = vld [vmem:[#allocation78_spill] sm:$0xff] }
 0x744   : > { %v2142_v10 = vmul.f32 %v8070_v40, %v11934_v23  ;;  %v3205_v18 = vadd.f32 %v3161_v37, %v3160_v55  ;;  %v6417_v40 = vld [vmem:[%s6569_s21 + $0xf0] sm:$0xff]  ;;  %v11935_v37 = vld [vmem:[#allocation85_spill] sm:$0xff] }
 0x745   : > { %2917 = vmatpush2.bf16.xpose.msra.mxu0 %v2894_v9  ;;  %3200 = vadd.xlane.f32.xlu1 %v3199_v3  ;;  %v2853_v3 = vmul.f32 %v6359_v31, %v11930_v27  ;;  %v6415_v9 = vld [vmem:[%s6569_s21 + $0xe0] sm:$0xff]  ;;  %v2852_v55 = vmul.f32 %v6359_v31, %v11935_v37 }
 0x746   : > { %2918 = vmatprep.subr.bf16.mxu0 %v2893_v17  ;;  %v8356_v7 = vadd.f32 %v6415_v9, %v2140_v15  ;;  %v11931_v17 = vld [vmem:[#allocation79_spill] sm:$0xff]  ;;  %v3163_v15 = vmul.f32 %v8347_v14, %v8347_v14 }
 0x747   : > { %3123 = vadd.xlane.f32.xlu0 %v3122_v48  ;;  %v2143_v61 = vmul.f32 %v8060_v13, %v11931_v17  ;;  %v2854_v48 = vmul.f32 %v6357_v8, %v11932_v45  ;;  %v2891_v9 = vpack.c.bf16 %v2853_v3, %v2851_v12  ;;  %v6416_v13 = vld [vmem:[%s6569_s21 + $0xf8] sm:$0xff] }
 0x748   : > { %v3128_v8 = vadd.f32 %v8347_v14, %v8356_v7  ;;  %v11936_v3 = vld [vmem:[#allocation89_spill] sm:$0xff] }
 0x749   : > { %3203 = vadd.xlane.f32.xlu1 %v3202_v46  ;;  %v2892_v27 = vpack.c.bf16 %v2856_v56, %v2854_v48  ;;  %v8369_v17 = vadd.f32 %v6416_v13, %v2143_v61  ;;  %v3162_v46 = vmul.f32 %v8356_v7, %v8356_v7  ;;  %v8376_v56 = vadd.f32 %v6417_v40, %v2142_v10 }
 0x74a   : > { %v2850_v48 = vmul.f32 %v6361_v19, %v11936_v3 }
 0x74b   : > { %3126 = vadd.xlane.f32.xlu0 %v3125_v24  ;;  %v3208_v45 = vadd.f32 %v3163_v15, %v3162_v46  ;;  %v3165_v61 = vmul.f32 %v8369_v17, %v8369_v17  ;;  %v3164_v6 = vmul.f32 %v8376_v56, %v8376_v56 }
 0x74c   : > { %v2890_v24 = vpack.c.bf16 %v2852_v55, %v2850_v48 }
 0x74d   : > { %2919 = vmatpush2.bf16.xpose.msra.mxu0 %v2892_v27  ;;  %3206 = vadd.xlane.f32.xlu1 %v3205_v18  ;;  %v3131_v18 = vadd.f32 %v8369_v17, %v8376_v56  ;;  %v3211_v12 = vadd.f32 %v3165_v61, %v3164_v6 }
 0x74e   : > { %2920 = vmatprep.subr.bf16.mxu0 %v2891_v9 }
 0x74f   : > { %3129 = vadd.xlane.f32.xlu0 %v3128_v8 }
 0x751   : > { %3209 = vadd.xlane.f32.xlu1 %v3208_v45 }
 0x753   : > { %3132 = vadd.xlane.f32.xlu0 %v3131_v18 }
 0x755   : > { %2921 = vmatpush2.bf16.xpose.msra.mxu0 %v2890_v24 }
 0x757   : > { %3212 = vadd.xlane.f32.xlu0 %v3211_v12 }
 0x782   : > { %v2742_v23 = vpop.xlane.xlu1 %2741 }
 0x783   : > { %6362 = vrcp.f32 %v2742_v23 }
 0x788   : > { %v2745_v31 = vpop.xlane.xlu0 %2744 }
 0x789   : > { %6364 = vrcp.f32 %v2745_v31 }
 0x78a   : > { %v2736_v19 = vpop.xlane.xlu1 %2735 }
 0x78b   : > { %6366 = vrcp.f32 %v2736_v19 }
 0x790   : > { %v2739_v10 = vpop.xlane.xlu0 %2738  ;;  %v6363_v27 = vpop.eup %6362 }
 0x791   : > { %6368 = vrcp.f32 %v2739_v10  ;;  %v2847_v13 = vmul.f32 %v6363_v27, %v8015_v63  ;;  %v2846_v46 = vmul.f32 %v6363_v27, %v8010_v16 }
 0x792   : > { %v2730_v15 = vpop.xlane.xlu1 %2729 }
 0x793   : > { %6370 = vrcp.f32 %v2730_v15 }
 0x796   : > { %v6365_v9 = vpop.eup %6364 }
 0x797   : > { %v2849_v8 = vmul.f32 %v6365_v9, %v8023_v57  ;;  %v2848_v40 = vmul.f32 %v6365_v9, %v8021_v44 }
 0x798   : > { %v2733_v37 = vpop.xlane.xlu0 %2732  ;;  %v6367_v48 = vpop.eup %6366 }
 0x799   : > { %6372 = vrcp.f32 %v2733_v37  ;;  %v2889_v55 = vpack.c.bf16 %v2849_v8, %v2847_v13  ;;  %v2888_v45 = vpack.c.bf16 %v2848_v40, %v2846_v46  ;;  %v2843_v24 = vmul.f32 %v6367_v48, %v8031_v20 }
 0x79a   : > { %v2724_v3 = vpop.xlane.xlu1 %2723  ;;  %v2842_v57 = vmul.f32 %v6367_v48, %v8027_v22 }
 0x79b   : > { %2922 = vmatprep.subr.bf16.mxu0 %v2889_v55  ;;  %6374 = vrcp.f32 %v2724_v3 }
 0x79c   : > { %2923 = vmatpush2.bf16.xpose.msra.mxu0 %v2888_v45 }
 0x79e   : > { %v6369_v18 = vpop.eup %6368  ;;  %v3088_v61 = vpop.xlane.xlu1 %3087 }
 0x79f   : > { %v2845_v63 = vmul.f32 %v6369_v18, %v8046_v59  ;;  %v2844_v16 = vmul.f32 %v6369_v18, %v8043_v1 }
 0x7a0   : > { %v2727_v44 = vpop.xlane.xlu0 %2726  ;;  %v6371_v31 = vpop.eup %6370 }
 0x7a1   : > { %6376 = vrcp.f32 %v2727_v44  ;;  %v2887_v6 = vpack.c.bf16 %v2845_v63, %v2843_v24  ;;  %v2886_v12 = vpack.c.bf16 %v2844_v16, %v2842_v57  ;;  %v2839_v20 = vmul.f32 %v6371_v31, %v8056_v21  ;;  %v11937_v63 = vld [vmem:[#allocation52_spill] sm:$0xff] }
 0x7a2   : > { %v3094_v23 = vpop.xlane.xlu1 %3093  ;;  %v2838_v59 = vmul.f32 %v6371_v31, %v8048_v25  ;;  %v11938_v57 = vld [vmem:[#allocation16_spill] sm:$0xff]  ;;  %v11941_v31 = vld [vmem:[#allocation57_spill] sm:$0xff] }
 0x7a3   : > { %2924 = vmatprep.subr.bf16.mxu0 %v2887_v6  ;;  %v830_v16 = vadd.f32 %v11938_v57, %v11937_v63  ;;  %v11939_v6 = vld [vmem:[#allocation47_spill] sm:$0xff]  ;;  %v11949_v63 = vld [vmem:[#allocation25_spill] sm:$0xff] }
 0x7a4   : > { %2925 = vmatpush2.bf16.xpose.msra.mxu0 %v2886_v12  ;;  %v3091_v19 = vpop.xlane.xlu0 %3090  ;;  %v11940_v12 = vld [vmem:[#allocation21_spill] sm:$0xff] }
 0x7a6   : > { %v6373_v10 = vpop.eup %6372  ;;  %v3171_v27 = vpop.xlane.xlu1 %3170 }
 0x7a7   : > { %v2841_v15 = vmul.f32 %v6373_v10, %v8076_v30  ;;  %v2840_v22 = vmul.f32 %v6373_v10, %v8074_v26 }
 0x7a8   : > { %v3168_v1 = vpop.xlane.xlu0 %3167  ;;  %v6375_v46 = vpop.eup %6374 }
 0x7a9   : > { %v2885_v9 = vpack.c.bf16 %v2841_v15, %v2839_v20  ;;  %v2884_v13 = vpack.c.bf16 %v2840_v22, %v2838_v59  ;;  %v2835_v45 = vmul.f32 %v6375_v46, %v8084_v4  ;;  %v2834_v30 = vmul.f32 %v6375_v46, %v8078_v29  ;;  %v11943_v20 = vld [vmem:[#allocation53_spill] sm:$0xff] }
 0x7aa   : > { %v3174_v8 = vpop.xlane.xlu1 %3173  ;;  %v842_v4 = vadd.f32 %v11940_v12, %v11939_v6  ;;  %v3216_v46 = vsel %vm3214_vm1, %v3091_v19, 0.0  ;;  %v11950_v12 = vld [vmem:[#allocation18_spill] sm:$0xff] }
 0x7ab   : > { %2926 = vmatprep.subr.bf16.mxu0 %v2885_v9 }
 0x7ac   : > { %2927 = vmatpush2.bf16.xpose.msra.mxu0 %v2884_v13  ;;  %v3097_v40 = vpop.xlane.xlu0 %3096 }
 0x7ae   : > { %v6377_v37 = vpop.eup %6376  ;;  %v3177_v55 = vpop.xlane.xlu1 %3176 }
 0x7af   : > { %v2837_v21 = vmul.f32 %v6377_v37, %v8118_v32  ;;  %v2836_v25 = vmul.f32 %v6377_v37, %v8108_v35  ;;  %v11942_v32 = vld [vmem:[#allocation14_spill] sm:$0xff]  ;;  %v11944_v35 = vld [vmem:[#allocation19_spill] sm:$0xff]  ;;  %v11945_v37 = vld [vmem:[#allocation20_spill] sm:$0xff] }
 0x7b0   : > { %v3100_v3 = vpop.xlane.xlu0 %3099  ;;  %v826_v10 = vadd.f32 %v11942_v32, %v11941_v31  ;;  %v838_v15 = vadd.f32 %v11944_v35, %v11943_v20 }
 0x7b1   : > { %v2883_v26 = vpack.c.bf16 %v2837_v21, %v2835_v45  ;;  %v2882_v48 = vpack.c.bf16 %v2836_v25, %v2834_v30  ;;  %v840_v45 = vadd.f32 %v11945_v37, %v11939_v6  ;;  %v11946_v30 = vld [vmem:[#allocation62_spill] sm:$0xff]  ;;  %v11947_v25 = vld [vmem:[#allocation23_spill] sm:$0xff]  ;;  %v3259_v6 = vsel %vm3214_vm1, %v3171_v27, 0.0 }
 0x7b2   : > { %v3180_v18 = vpop.xlane.xlu1 %3179  ;;  %v1201_v59 = vpack.c.bf16 %v830_v16, %v826_v10  ;;  %v1206_v9 = vpack.c.bf16 %v842_v4, %v838_v15  ;;  %v3215_v16 = vsel %vm3214_vm1, %v3088_v61, 0.0  ;;  %v836_v4 = vadd.f32 %v11950_v12, %v11943_v20  ;;  %v11955_v12 = vld [vmem:[#allocation50_spill] sm:$0xff] }
 0x7b3   : > { %2928 = vmatprep.subr.bf16.mxu0 %v2883_v26  ;;  %v848_v26 = vadd.f32 %v11947_v25, %v11946_v30  ;;  %v3217_v31 = vadd.f32 %v3216_v46, %v3215_v16  ;;  %v3218_v15 = vsel %vm3214_vm1, %v3094_v23, 0.0  ;;  %v11951_v25 = vld [vmem:[#allocation24_spill] sm:$0xff]  ;;  %v11952_v46 = vld [vmem:[#allocation22_spill] sm:$0xff]  ;;  %v3222_v23 = vsel %vm3214_vm1, %v3100_v3, 0.0  ;;  %v11954_v16 = vld [vmem:[#allocation27_spill] sm:$0xff] }
 0x7b4   : > { %2929 = vmatpush2.bf16.xpose.msra.mxu0 %v2882_v48  ;;  %v3103_v24 = vpop.xlane.xlu0 %3102  ;;  %v11948_v48 = vld [vmem:[#allocation48_spill] sm:$0xff]  ;;  %v1205_v10 = vpack.c.bf16 %v840_v45, %v836_v4  ;;  %v846_v45 = vadd.f32 %v11952_v46, %v11946_v30  ;;  %v11956_v4 = vld [vmem:[#allocation29_spill] sm:$0xff] }
 0x7b5   : > { %v852_v57 = vadd.f32 %v11949_v63, %v11948_v48  ;;  %v3219_v37 = vadd.f32 %v3218_v15, %v3217_v31  ;;  %v850_v20 = vadd.f32 %v11951_v25, %v11948_v48  ;;  %v862_v31 = vadd.f32 %v11956_v4, %v11955_v12 }
 0x7b6   : > { %v3183_v44 = vpop.xlane.xlu1 %3182  ;;  %v3224_v48 = vsel %vm3214_vm1, %v3103_v24, 0.0 }
 0x7b7   : > { %v1210_v19 = vpack.c.bf16 %v852_v57, %v848_v26  ;;  %v3261_v26 = vsel %vm3214_vm1, %v3174_v8, 0.0  ;;  %v3265_v8 = vsel %vm3214_vm1, %v3180_v18, 0.0  ;;  %v3267_v46 = vsel %vm3214_vm1, %v3183_v44, 0.0  ;;  %v11958_v18 = vld [vmem:[#allocation26_spill] sm:$0xff] }
 0x7b8   : > { %v3106_v29 = vpop.xlane.xlu0 %3105 }
 0x7b9   : > { %v3226_v3 = vsel %vm3214_vm1, %v3106_v29, 0.0 }
 0x7ba   : > { %v3186_v22 = vpop.xlane.xlu1 %3185 }
 0x7bb   : > { %2931 = vmatmul.mubr.bf16.vlgmr.msra.gmra.mxu0 %v1201_v59  ;;  %v3258_v59 = vsel %vm3214_vm1, %v3168_v1, 0.0  ;;  %v11953_v1 = vld [vmem:[#allocation49_spill] sm:$0xff] }
 0x7bc   : > { %2940 = vmatprep.mubr.bf16.mxu0 %v1206_v9  ;;  %v3109_v13 = vpop.xlane.xlu0 %3108  ;;  %v3220_v9 = vsel %vm3214_vm1, %v3097_v40, 0.0  ;;  %v3260_v63 = vadd.f32 %v3259_v6, %v3258_v59  ;;  %v858_v40 = vadd.f32 %v11954_v16, %v11953_v1  ;;  %v1209_v6 = vpack.c.bf16 %v850_v20, %v846_v45 }
 0x7bd   : > { %v3221_v27 = vadd.f32 %v3220_v9, %v3219_v37  ;;  %v3228_v16 = vsel %vm3214_vm1, %v3109_v13, 0.0  ;;  %v856_v29 = vadd.f32 %v11958_v18, %v11953_v1  ;;  %v3269_v20 = vsel %vm3214_vm1, %v3186_v22, 0.0  ;;  %v11960_v13 = vld [vmem:[#allocation31_spill] sm:$0xff] }
 0x7be   : > { %v3189_v21 = vpop.xlane.xlu1 %3188  ;;  %v1214_v25 = vpack.c.bf16 %v862_v31, %v858_v40  ;;  %v11959_v40 = vld [vmem:[#allocation61_spill] sm:$0xff] }
 0x7bf   : > { %v3223_v15 = vadd.f32 %v3222_v23, %v3221_v27  ;;  %v868_v31 = vadd.f32 %v11960_v13, %v11959_v40  ;;  %v11967_v13 = vld [vmem:[#allocation60_spill] sm:$0xff] }
 0x7c0   : > { %v3112_v32 = vpop.xlane.xlu0 %3111 }
 0x7c1   : > { %v3225_v9 = vadd.f32 %v3224_v48, %v3223_v15  ;;  %v3230_v45 = vsel %vm3214_vm1, %v3112_v32, 0.0  ;;  %v11962_v48 = vld [vmem:[#allocation33_spill] sm:$0xff]  ;;  %v3271_v15 = vsel %vm3214_vm1, %v3189_v21, 0.0 }
 0x7c2   : > { %v3192_v35 = vpop.xlane.xlu1 %3191 }
 0x7c3   : > { %2941 = vmatmul.mubr.bf16.gmra.mxu0 %v1205_v10  ;;  %v3263_v10 = vsel %vm3214_vm1, %v3177_v55, 0.0  ;;  %v3227_v4 = vadd.f32 %v3226_v3, %v3225_v9  ;;  %v3273_v22 = vsel %vm3214_vm1, %v3192_v35, 0.0  ;;  %v11964_v35 = vld [vmem:[#allocation30_spill] sm:$0xff] }
 0x7c4   : > { %2950 = vmatprep.mubr.bf16.mxu0 %v1210_v19  ;;  %v3115_v61 = vpop.xlane.xlu0 %3114  ;;  %v3262_v19 = vadd.f32 %v3261_v26, %v3260_v63  ;;  %v11957_v26 = vld [vmem:[#allocation28_spill] sm:$0xff] }
 0x7c5   : > { %v860_v23 = vadd.f32 %v11957_v26, %v11955_v12  ;;  %v3229_v27 = vadd.f32 %v3228_v16, %v3227_v4  ;;  %v3232_v12 = vsel %vm3214_vm1, %v3115_v61, 0.0  ;;  %v11963_v26 = vld [vmem:[#allocation32_spill] sm:$0xff] }
 0x7c6   : > { %v3195_v57 = vpop.xlane.xlu1 %3194  ;;  %v3264_v59 = vadd.f32 %v3263_v10, %v3262_v19  ;;  %v11961_v10 = vld [vmem:[#allocation46_spill] sm:$0xff] }
 0x7c7   : > { %v872_v19 = vadd.f32 %v11962_v48, %v11961_v10  ;;  %v3231_v3 = vadd.f32 %v3230_v45, %v3229_v27  ;;  %v3275_v16 = vsel %vm3214_vm1, %v3195_v57, 0.0  ;;  %v870_v18 = vadd.f32 %v11963_v26, %v11961_v10 }
 0x7c8   : > { %v3118_v30 = vpop.xlane.xlu0 %3117  ;;  %v3266_v55 = vadd.f32 %v3265_v8, %v3264_v59 }
 0x7c9   : > { %v3234_v32 = vsel %vm3214_vm1, %v3118_v30, 0.0  ;;  %v3233_v9 = vadd.f32 %v3232_v12, %v3231_v3  ;;  %v866_v30 = vadd.f32 %v11964_v35, %v11959_v40  ;;  %v11971_v35 = vld [vmem:[#allocation56_spill] sm:$0xff] }
 0x7ca   : > { %v3198_v37 = vpop.xlane.xlu1 %3197  ;;  %v3268_v63 = vadd.f32 %v3267_v46, %v3266_v55  ;;  %v1218_v46 = vpack.c.bf16 %v872_v19, %v868_v31  ;;  %v11968_v31 = vld [vmem:[#allocation37_spill] sm:$0xff] }
 0x7cb   : > { %2951 = vmatmul.mubr.bf16.gmra.mxu0 %v1209_v6  ;;  %v1213_v6 = vpack.c.bf16 %v860_v23, %v856_v29  ;;  %v3235_v4 = vadd.f32 %v3234_v32, %v3233_v9  ;;  %v3277_v23 = vsel %vm3214_vm1, %v3198_v37, 0.0  ;;  %v882_v48 = vadd.f32 %v11968_v31, %v11967_v13 }
 0x7cc   : > { %2960 = vmatprep.mubr.bf16.mxu0 %v1214_v25  ;;  %v3121_v24 = vpop.xlane.xlu0 %3120  ;;  %v3270_v8 = vadd.f32 %v3269_v20, %v3268_v63  ;;  %v11965_v63 = vld [vmem:[#allocation54_spill] sm:$0xff]  ;;  %v1217_v3 = vpack.c.bf16 %v870_v18, %v866_v30  ;;  %v11972_v30 = vld [vmem:[#allocation39_spill] sm:$0xff] }
 0x7cd   : > { %v3236_v55 = vsel %vm3214_vm1, %v3121_v24, 0.0  ;;  %v11966_v24 = vld [vmem:[#allocation35_spill] sm:$0xff] }
 0x7ce   : > { %v3201_v44 = vpop.xlane.xlu1 %3200  ;;  %v3272_v59 = vadd.f32 %v3271_v15, %v3270_v8  ;;  %v3237_v45 = vadd.f32 %v3236_v55, %v3235_v4  ;;  %v878_v27 = vadd.f32 %v11966_v24, %v11965_v63 }
 0x7cf   : > { %v3279_v19 = vsel %vm3214_vm1, %v3201_v44, 0.0 }
 0x7d0   : > { %v3124_v1 = vpop.xlane.xlu0 %3123  ;;  %v3274_v21 = vadd.f32 %v3273_v22, %v3272_v59 }
 0x7d1   : > { %v3238_v29 = vsel %vm3214_vm1, %v3124_v1, 0.0 }
 0x7d2   : > { %v3204_v25 = vpop.xlane.xlu1 %3203  ;;  %v3276_v20 = vadd.f32 %v3275_v16, %v3274_v21  ;;  %v3239_v12 = vadd.f32 %v3238_v29, %v3237_v45  ;;  %v11969_v16 = vld [vmem:[#allocation36_spill] sm:$0xff]  ;;  %v11970_v21 = vld [vmem:[#allocation34_spill] sm:$0xff] }
 0x7d3   : > { %2961 = vmatmul.mubr.bf16.gmra.mxu0 %v1213_v6  ;;  %v3281_v37 = vsel %vm3214_vm1, %v3204_v25, 0.0  ;;  %v1222_v6 = vpack.c.bf16 %v882_v48, %v878_v27  ;;  %v880_v55 = vadd.f32 %v11969_v16, %v11967_v13  ;;  %v876_v25 = vadd.f32 %v11970_v21, %v11965_v63  ;;  %v11973_v29 = vld [vmem:[#allocation58_spill] sm:$0xff]  ;;  %v11975_v48 = vld [vmem:[#allocation40_spill] sm:$0xff] }
 0x7d4   : > { %2970 = vmatprep.mubr.bf16.mxu0 %v1218_v46  ;;  %v3127_v61 = vpop.xlane.xlu0 %3126  ;;  %v3278_v15 = vadd.f32 %v3277_v23, %v3276_v20  ;;  %v888_v23 = vadd.f32 %v11972_v30, %v11971_v35  ;;  %v11974_v20 = vld [vmem:[#allocation41_spill] sm:$0xff]  ;;  %v11983_v16 = vmov 0  }
 0x7d5   : > { %v3240_v10 = vsel %vm3214_vm1, %v3127_v61, 0.0  ;;  %v892_v45 = vadd.f32 %v11974_v20, %v11973_v29  ;;  %v1221_v13 = vpack.c.bf16 %v880_v55, %v876_v25 }
 0x7d6   : > { %v3207_v57 = vpop.xlane.xlu1 %3206  ;;  %v3280_v1 = vadd.f32 %v3279_v19, %v3278_v15  ;;  %v3241_v22 = vadd.f32 %v3240_v10, %v3239_v12  ;;  %v890_v19 = vadd.f32 %v11975_v48, %v11973_v29  ;;  %v11976_v10 = vld [vmem:[#allocation38_spill] sm:$0xff]  ;;  %v11977_v12 = vld [vmem:[#allocation59_spill] sm:$0xff] }
 0x7d7   : > { %v3283_v59 = vsel %vm3214_vm1, %v3207_v57, 0.0  ;;  %v1226_v63 = vpack.c.bf16 %v892_v45, %v888_v23  ;;  %v886_v15 = vadd.f32 %v11976_v10, %v11971_v35  ;;  %v2144_v45 = vld [vmem:[%s11232_s3] sm:$0x3] }
 0x7d8   : > { %v3130_v40 = vpop.xlane.xlu0 %3129  ;;  %v3282_v9 = vadd.f32 %v3281_v37, %v3280_v1 }
 0x7d9   : > { %v3242_v8 = vsel %vm3214_vm1, %v3130_v40, 0.0  ;;  %v11978_v40 = vld [vmem:[#allocation43_spill] sm:$0xff] }
 0x7da   : > { %v3210_v32 = vpop.xlane.xlu1 %3209  ;;  %v3243_v46 = vadd.f32 %v3242_v8, %v3241_v22  ;;  %v3284_v26 = vadd.f32 %v3283_v59, %v3282_v9  ;;  %v898_v37 = vadd.f32 %v11978_v40, %v11977_v12  ;;  %v11979_v8 = vld [vmem:[#allocation51_spill] sm:$0xff]  ;;  %v1225_v22 = vpack.c.bf16 %v890_v19, %v886_v15  ;;  %v11982_v9 = vld [vmem:[#allocation42_spill] sm:$0xff] }
 0x7db   : > { %2971 = vmatmul.mubr.bf16.gmra.mxu0 %v1217_v3  ;;  %v3285_v4 = vsel %vm3214_vm1, %v3210_v32, 0.0  ;;  %v11980_v3 = vld [vmem:[#allocation45_spill] sm:$0xff]  ;;  %v6418_v15 = vld [vmem:[%s6577_s24] sm:$0xff] }
 0x7dc   : > { %2980 = vmatprep.mubr.bf16.mxu0 %v1222_v6  ;;  %v3133_v44 = vpop.xlane.xlu0 %3132  ;;  %v3286_v57 = vadd.f32 %v3285_v4, %v3284_v26  ;;  %v902_v1 = vadd.f32 %v11980_v3, %v11979_v8  ;;  %v11981_v6 = vld [vmem:[#allocation44_spill] sm:$0xff] }
 0x7dd   : > { %v3244_v61 = vsel %vm3214_vm1, %v3133_v44, 0.0  ;;  %v900_v59 = vadd.f32 %v11981_v6, %v11979_v8  ;;  %v6419_v8 = vld [vmem:[%s6577_s24 + $0x8] sm:$0xff] }
 0x7de   : > { %v3245_v18 = vadd.f32 %v3244_v61, %v3243_v46  ;;  %v1230_v32 = vpack.c.bf16 %v902_v1, %v898_v37  ;;  %v896_v46 = vadd.f32 %v11982_v9, %v11977_v12 }
 0x7e0   : > { %3246 = vadd.xlane.f32.xlu0 %v3245_v18  ;;  %v3213_v24 = vpop.xlane.xlu0 %3212  ;;  %v1229_v44 = vpack.c.bf16 %v900_v59, %v896_v46 }
 0x7e1   : > { %v3287_v27 = vsel %vm3214_vm1, %v3213_v24, 0.0 }
 0x7e2   : > { %v3288_v31 = vadd.f32 %v3287_v27, %v3286_v57  ;;  %v11984_v27 = vsub.s32 0, %v8033_v58 }
 0x7e3   : > { %2981 = vmatmul.mubr.bf16.gmra.mxu0 %v1221_v13 }
 0x7e4   : > { %2990 = vmatprep.mubr.bf16.mxu0 %v1226_v63  ;;  %3289 = vadd.xlane.f32.xlu1 %v3288_v31  ;;  %v8500_v13 = vrot.slane %v2144_v45, %v11984_v27  ;;  %v11985_v31 = vsub.s32 1, %v8033_v58  ;;  %v6423_v27 = vld [vmem:[%s6577_s24 + $0x20] sm:$0xff] }
 0x7e6   : > { %v8504_v63 = vrot.slane %v2144_v45, %v11985_v31 }
 0x7eb   : > { %2991 = vmatmul.mubr.bf16.gmra.mxu0 %v1225_v22 }
 0x7ec   : > { %3000 = vmatprep.mubr.bf16.mxu0 %v1230_v32  ;;  %v6420_v32 = vld [vmem:[%s6577_s24 + $0x10] sm:$0xff] }
 0x7f3   : > { %3001 = vmatmul.mubr.bf16.gmra.mxu0 %v1229_v44 }
 0x7f4   : > { %4139 = vmatprep.mubr.bf16.mxu0 %v11983_v16 }
 0x869   : > { %v3247_v55 = vpop.xlane.xlu0 %3246 }
 0x86a   : > { %v3248_v21 = vrot.slane %v3247_v55, 4 }
 0x86c   : > { %v3249_v25 = vadd.f32 %v3248_v21, %v3247_v55  ;;  %v6421_v55 = vld [vmem:[%s6577_s24 + $0x18] sm:$0xff] }
 0x86d   : > { %v3290_v4 = vpop.xlane.xlu1 %3289 }
 0x86e   : > { %v3291_v61 = vrot.slane %v3290_v4, 4  ;;  %v3250_v26 = vrot.slane %v3249_v25, 2 }
 0x870   : > { %v3292_v18 = vadd.f32 %v3291_v61, %v3290_v4  ;;  %v3251_v35 = vadd.f32 %v3250_v26, %v3249_v25 }
 0x872   : > { %v3252_v30 = vrot.slane %v3251_v35, 1  ;;  %v3293_v23 = vrot.slane %v3292_v18, 2 }
 0x874   : > { %v3253_v29 = vadd.f32 %v3252_v30, %v3251_v35  ;;  %v3294_v20 = vadd.f32 %v3293_v23, %v3292_v18  ;;  %v6422_v23 = vld [vmem:[%s6577_s24 + $0x28] sm:$0xff] }
 0x876   : > { %5932 = vpush %v3253_v29  ;;  %v3295_v57 = vrot.slane %v3294_v20, 1 }
 0x878   : > { %v3296_v24 = vadd.f32 %v3295_v57, %v3294_v20 }
 0x87a   : > { %5934 = vpush %v3296_v24 }
 0x87b   : > { %v2932_v48 = vpop.f32.mrf.mxu0 }
 0x87c   : > { %v3022_v19 = vmul.f32 %v8500_v13, %v2932_v48 }
 0x87d   : > { %v2934_v10 = vpop.f32.mrf.mxu0 }
 0x87e   : > { %v8508_v12 = vadd.f32 %v6418_v15, %v3022_v19  ;;  %v3023_v40 = vmul.f32 %v8504_v63, %v2934_v10  ;;  %v6424_v19 = vld [vmem:[%s6577_s24 + $0x30] sm:$0xff] }
 0x87f   : > { %v2936_v37 = vpop.f32.mrf.mxu0 }
 0x880   : > { %11986 = vst [vmem:[#allocation6_spill] sm:$0xff] %v8508_v12  ;;  %v8512_v3 = vadd.f32 %v6419_v8, %v3023_v40  ;;  %v3024_v1 = vmul.f32 %v8500_v13, %v2936_v37  ;;  %v3613_v58 = vmul.f32 %v8508_v12, %v8508_v12  ;;  %v6425_v40 = vld [vmem:[%s6577_s24 + $0x38] sm:$0xff] }
 0x881   : > { %v2938_v22 = vpop.f32.mrf.mxu0 }
 0x882   : > { %11987 = vst [vmem:[#allocation15_spill] sm:$0xff] %v8512_v3  ;;  %v8518_v6 = vadd.f32 %v6420_v32, %v3024_v1  ;;  %v3025_v59 = vmul.f32 %v8504_v63, %v2938_v22  ;;  %v3565_v9 = vadd.f32 %v8512_v3, %v8508_v12  ;;  %v3614_v46 = vmul.f32 %v8512_v3, %v8512_v3  ;;  %v6441_v12 = vld [vmem:[%s6577_s24 + $0xb8] sm:$0xff] }
 0x883   : > { %v2942_v44 = vpop.f32.mrf.mxu0 }
 0x884   : > { %11988 = vst [vmem:[#allocation8_spill] sm:$0xff] %v8518_v6  ;;  %v8526_v21 = vadd.f32 %v6421_v55, %v3025_v59  ;;  %3566 = vadd.xlane.f32.xlu1 %v3565_v9  ;;  %v3645_v25 = vadd.f32 %v3614_v46, %v3613_v58  ;;  %v3026_v61 = vmul.f32 %v8500_v13, %v2942_v44  ;;  %v6426_v44 = vld [vmem:[%s6577_s24 + $0x40] sm:$0xff] }
 0x885   : > { %v2944_v4 = vpop.f32.mrf.mxu0  ;;  %v3615_v18 = vmul.f32 %v8518_v6, %v8518_v6 }
 0x886   : > { %11989 = vst [vmem:[#allocation7_spill] sm:$0xff] %v8526_v21  ;;  %v3027_v26 = vmul.f32 %v8504_v63, %v2944_v4  ;;  %3646 = vadd.xlane.f32.xlu0 %v3645_v25  ;;  %v3616_v35 = vmul.f32 %v8526_v21, %v8526_v21  ;;  %v3568_v45 = vadd.f32 %v8526_v21, %v8518_v6  ;;  %v6427_v25 = vld [vmem:[%s6577_s24 + $0x48] sm:$0xff] }
 0x887   : > { %v2946_v30 = vpop.f32.mrf.mxu0  ;;  %v8541_v31 = vadd.f32 %v6423_v27, %v3026_v61 }
 0x888   : > { %v8535_v29 = vadd.f32 %v6422_v23, %v3027_v26  ;;  %v3028_v20 = vmul.f32 %v8500_v13, %v2946_v30  ;;  %v3648_v57 = vadd.f32 %v3616_v35, %v3615_v18 }
 0x889   : > { %v2948_v24 = vpop.f32.mrf.mxu0  ;;  %11991 = vst [vmem:[#allocation11_spill] sm:$0xff] %v8541_v31  ;;  %v3617_v9 = vmul.f32 %v8541_v31, %v8541_v31 }
 0x88a   : > { %11990 = vst [vmem:[#allocation17_spill] sm:$0xff] %v8535_v29  ;;  %v3029_v48 = vmul.f32 %v8504_v63, %v2948_v24  ;;  %3569 = vadd.xlane.f32.xlu0 %v3568_v45  ;;  %3649 = vadd.xlane.f32.xlu1 %v3648_v57  ;;  %v8545_v10 = vadd.f32 %v6424_v19, %v3028_v20  ;;  %v6428_v24 = vld [vmem:[%s6577_s24 + $0x58] sm:$0xff] }
 0x88b   : > { %v2952_v15 = vpop.f32.mrf.mxu0  ;;  %v3571_v1 = vadd.f32 %v8535_v29, %v8541_v31  ;;  %v3618_v22 = vmul.f32 %v8535_v29, %v8535_v29 }
 0x88c   : > { %11992 = vst [vmem:[#allocation9_spill] sm:$0xff] %v8545_v10  ;;  %v8548_v37 = vadd.f32 %v6425_v40, %v3029_v48  ;;  %v3030_v8 = vmul.f32 %v8500_v13, %v2952_v15  ;;  %v3619_v20 = vmul.f32 %v8545_v10, %v8545_v10  ;;  %v6429_v40 = vld [vmem:[%s6577_s24 + $0x50] sm:$0xff] }
 0x88d   : > { %v2954_v58 = vpop.f32.mrf.mxu0  ;;  %v3651_v61 = vadd.f32 %v3618_v22, %v3617_v9  ;;  %v6430_v9 = vld [vmem:[%s6577_s24 + $0x60] sm:$0xff] }
 0x88e   : > { %11993 = vst [vmem:[#allocation80_spill] sm:$0xff] %v8548_v37  ;;  %v3031_v32 = vmul.f32 %v8504_v63, %v2954_v58  ;;  %3572 = vadd.xlane.f32.xlu1 %v3571_v1  ;;  %v3574_v59 = vadd.f32 %v8548_v37, %v8545_v10  ;;  %v8561_v55 = vadd.f32 %v6426_v44, %v3030_v8  ;;  %v6431_v44 = vld [vmem:[%s6577_s24 + $0x68] sm:$0xff] }
 0x88f   : > { %v2956_v46 = vpop.f32.mrf.mxu0  ;;  %v3620_v26 = vmul.f32 %v8548_v37, %v8548_v37  ;;  %v3363_v37 = vld [vmem:[%s11240_s11 + $0x60] sm:$0xff] }
 0x890   : > { %11994 = vst [vmem:[#allocation81_spill] sm:$0xff] %v8561_v55  ;;  %v8564_v4 = vadd.f32 %v6427_v25, %v3031_v32  ;;  %3575 = vadd.xlane.f32.xlu0 %v3574_v59  ;;  %v3032_v18 = vmul.f32 %v8500_v13, %v2956_v46  ;;  %v3621_v15 = vmul.f32 %v8561_v55, %v8561_v55 }
 0x891   : > { %v2958_v35 = vpop.f32.mrf.mxu0  ;;  %v3654_v19 = vadd.f32 %v3620_v26, %v3619_v20 }
 0x892   : > { %11995 = vst [vmem:[#allocation12_spill] sm:$0xff] %v8564_v4  ;;  %v3033_v30 = vmul.f32 %v8504_v63, %v2958_v35  ;;  %3652 = vadd.xlane.f32.xlu1 %v3651_v61  ;;  %v3577_v23 = vadd.f32 %v8564_v4, %v8561_v55  ;;  %v3622_v45 = vmul.f32 %v8564_v4, %v8564_v4 }
 0x893   : > { %v2962_v57 = vpop.f32.mrf.mxu0  ;;  %v8583_v8 = vadd.f32 %v6429_v40, %v3032_v18 }
 0x894   : > { %v8577_v27 = vadd.f32 %v6428_v24, %v3033_v30  ;;  %v3034_v48 = vmul.f32 %v8500_v13, %v2962_v57  ;;  %3578 = vadd.xlane.f32.xlu0 %v3577_v23  ;;  %v3657_v58 = vadd.f32 %v3622_v45, %v3621_v15  ;;  %v6432_v57 = vld [vmem:[%s6577_s24 + $0x70] sm:$0xff] }
 0x895   : > { %11997 = vst [vmem:[#allocation63_spill] sm:$0xff] %v8583_v8  ;;  %v2964_v1 = vpop.f32.mrf.mxu0  ;;  %v3623_v35 = vmul.f32 %v8583_v8, %v8583_v8 }
 0x896   : > { %11996 = vst [vmem:[#allocation13_spill] sm:$0xff] %v8577_v27  ;;  %v3035_v22 = vmul.f32 %v8504_v63, %v2964_v1  ;;  %3655 = vadd.xlane.f32.xlu1 %v3654_v19  ;;  %v3624_v59 = vmul.f32 %v8577_v27, %v8577_v27  ;;  %v8589_v46 = vadd.f32 %v6430_v9, %v3034_v48  ;;  %v6433_v48 = vld [vmem:[%s6577_s24 + $0x78] sm:$0xff] }
 0x897   : > { %v2966_v32 = vpop.f32.mrf.mxu0  ;;  %v3580_v26 = vadd.f32 %v8577_v27, %v8583_v8  ;;  %v6444_v8 = vld [vmem:[%s6577_s24 + $0xd8] sm:$0xff] }
 0x898   : > { %11998 = vst [vmem:[#allocation95_spill] sm:$0xff] %v8589_v46  ;;  %v8592_v25 = vadd.f32 %v6431_v44, %v3035_v22  ;;  %v3036_v61 = vmul.f32 %v8500_v13, %v2966_v32  ;;  %3658 = vadd.xlane.f32.xlu0 %v3657_v58  ;;  %v3660_v45 = vadd.f32 %v3624_v59, %v3623_v35  ;;  %v6434_v44 = vld [vmem:[%s6577_s24 + $0x80] sm:$0xff] }
 0x899   : > { %v2968_v18 = vpop.f32.mrf.mxu0  ;;  %v3625_v32 = vmul.f32 %v8589_v46, %v8589_v46 }
 0x89a   : > { %11999 = vst [vmem:[#allocation10_spill] sm:$0xff] %v8592_v25  ;;  %v3037_v30 = vmul.f32 %v8504_v63, %v2968_v18  ;;  %3581 = vadd.xlane.f32.xlu1 %v3580_v26  ;;  %v3583_v23 = vadd.f32 %v8592_v25, %v8589_v46  ;;  %v8603_v24 = vadd.f32 %v6432_v57, %v3036_v61  ;;  %v6435_v26 = vld [vmem:[%s6577_s24 + $0x88] sm:$0xff] }
 0x89b   : > { %v2972_v20 = vpop.f32.mrf.mxu0  ;;  %v3626_v40 = vmul.f32 %v8592_v25, %v8592_v25 }
 0x89c   : > { %12000 = vst [vmem:[#allocation82_spill] sm:$0xff] %v8603_v24  ;;  %v8606_v19 = vadd.f32 %v6433_v48, %v3037_v30  ;;  %v3038_v15 = vmul.f32 %v8500_v13, %v2972_v20  ;;  %3584 = vadd.xlane.f32.xlu0 %v3583_v23  ;;  %v3627_v20 = vmul.f32 %v8603_v24, %v8603_v24 }
 0x89d   : > { %v2974_v1 = vpop.f32.mrf.mxu0  ;;  %v3663_v30 = vadd.f32 %v3626_v40, %v3625_v32 }
 0x89e   : > { %12001 = vst [vmem:[#allocation83_spill] sm:$0xff] %v8606_v19  ;;  %v3039_v22 = vmul.f32 %v8504_v63, %v2974_v1  ;;  %3661 = vadd.xlane.f32.xlu1 %v3660_v45  ;;  %v3586_v58 = vadd.f32 %v8606_v19, %v8603_v24  ;;  %v3628_v9 = vmul.f32 %v8606_v19, %v8606_v19  ;;  %v6436_v1 = vld [vmem:[%s6577_s24 + $0x90] sm:$0xff]  ;;  %v3366_v24 = vld [vmem:[%s11240_s11 + $0x78] sm:$0xff] }
 0x89f   : > { %v2976_v59 = vpop.f32.mrf.mxu0  ;;  %v8619_v61 = vadd.f32 %v6434_v44, %v3038_v15 }
 0x8a0   : > { %v8622_v18 = vadd.f32 %v6435_v26, %v3039_v22  ;;  %v3040_v35 = vmul.f32 %v8500_v13, %v2976_v59  ;;  %3587 = vadd.xlane.f32.xlu0 %v3586_v58  ;;  %v3666_v15 = vadd.f32 %v3628_v9, %v3627_v20  ;;  %v6437_v59 = vld [vmem:[%s6577_s24 + $0x98] sm:$0xff] }
 0x8a1   : > { %12002 = vst [vmem:[#allocation65_spill] sm:$0xff] %v8619_v61  ;;  %v2978_v23 = vpop.f32.mrf.mxu0 }
 0x8a2   : > { %12003 = vst [vmem:[#allocation64_spill] sm:$0xff] %v8622_v18  ;;  %v3041_v45 = vmul.f32 %v8504_v63, %v2978_v23  ;;  %3664 = vadd.xlane.f32.xlu1 %v3663_v30  ;;  %v3589_v57 = vadd.f32 %v8622_v18, %v8619_v61  ;;  %v8631_v22 = vadd.f32 %v6436_v1, %v3040_v35  ;;  %v6438_v23 = vld [vmem:[%s6577_s24 + $0xa0] sm:$0xff] }
 0x8a3   : > { %v2982_v48 = vpop.f32.mrf.mxu0  ;;  %v3630_v32 = vmul.f32 %v8622_v18, %v8622_v18  ;;  %v3629_v35 = vmul.f32 %v8619_v61, %v8619_v61 }
 0x8a4   : > { %12004 = vst [vmem:[#allocation67_spill] sm:$0xff] %v8631_v22  ;;  %v8634_v58 = vadd.f32 %v6437_v59, %v3041_v45  ;;  %v3042_v40 = vmul.f32 %v8500_v13, %v2982_v48  ;;  %3590 = vadd.xlane.f32.xlu0 %v3589_v57  ;;  %v6439_v45 = vld [vmem:[%s6577_s24 + $0xa8] sm:$0xff] }
 0x8a5   : > { %v2984_v44 = vpop.f32.mrf.mxu0  ;;  %v3669_v48 = vadd.f32 %v3630_v32, %v3629_v35 }
 0x8a6   : > { %12005 = vst [vmem:[#allocation94_spill] sm:$0xff] %v8634_v58  ;;  %v3043_v26 = vmul.f32 %v8504_v63, %v2984_v44  ;;  %3667 = vadd.xlane.f32.xlu1 %v3666_v15  ;;  %v3592_v9 = vadd.f32 %v8634_v58, %v8631_v22  ;;  %v8645_v20 = vadd.f32 %v6438_v23, %v3042_v40 }
 0x8a7   : > { %v2986_v30 = vpop.f32.mrf.mxu0  ;;  %s5933_s29 = spop %5932  ;;  %v3632_v15 = vmul.f32 %v8634_v58, %v8634_v58  ;;  %v3631_v40 = vmul.f32 %v8631_v22, %v8631_v22  ;;  %v3365_v58 = vld [vmem:[%s11240_s11 + $0x70] sm:$0xff] }
 0x8a8   : > { %12006 = vst [vmem:[#allocation66_spill] sm:$0xff] %v8645_v20  ;;  %v8648_v57 = vadd.f32 %v6439_v45, %v3043_v26  ;;  %s8650_s30 = smul.f32 3.0517578e-05, %s5933_s29  ;;  %3593 = vadd.xlane.f32.xlu0 %v3592_v9  ;;  %v3044_v9 = vmul.f32 %v8500_v13, %v2986_v30  ;;  %v8845_v16 = vunpack.c.l.bf16 %v3365_v58 }
 0x8a9   : > { %v2988_v1 = vpop.f32.mrf.mxu0  ;;  %v3672_v32 = vadd.f32 %v3632_v15, %v3631_v40 }
 0x8aa   : > { %12007 = vst [vmem:[#allocation84_spill] sm:$0xff] %v8648_v57  ;;  %3670 = vadd.xlane.f32.xlu1 %v3669_v48  ;;  %v3595_v59 = vadd.f32 %v8648_v57, %v8645_v20  ;;  %s3301_s14 = smul.f32 %s8650_s30, %s8650_s30  ;;  %v3045_v35 = vmul.f32 %v8504_v63, %v2988_v1  ;;  %v6440_v48 = vld [vmem:[%s6577_s24 + $0xb0] sm:$0xff]  ;;  %12036 = vst [vmem:[#allocation62_spill] sm:$0xff] %v8845_v16 }
 0x8ab   : > { %v2992_v44 = vpop.f32.mrf.mxu0  ;;  %s5935_s15 = spop %5934  ;;  %v8663_v6 = vadd.f32 %v6440_v48, %v3044_v9  ;;  %v3634_v9 = vmul.f32 %v8648_v57, %v8648_v57  ;;  %v6442_v48 = vld [vmem:[%s6577_s24 + $0xc0] sm:$0xff]  ;;  %v6446_v57 = vld [vmem:[%s6577_s24 + $0xe8] sm:$0xff] }
 0x8ac   : > { %s3300_s17 = smul.f32 3.0517578e-05, %s5935_s15  ;;  %3596 = vadd.xlane.f32.xlu0 %v3595_v59  ;;  %v8666_v10 = vadd.f32 %v6441_v12, %v3045_v35  ;;  %v3046_v15 = vmul.f32 %v8500_v13, %v2992_v44  ;;  %v6443_v12 = vld [vmem:[%s6577_s24 + $0xc8] sm:$0xff] }
 0x8ad   : > { %v2994_v26 = vpop.f32.mrf.mxu0  ;;  %12008 = vst [vmem:[#allocation69_spill] sm:$0xff] %v8663_v6 }
 0x8ae   : > { %s3302_s18 = ssub.f32 %s3300_s17, %s3301_s14  ;;  %3673 = vadd.xlane.f32.xlu1 %v3672_v32  ;;  %12009 = vst [vmem:[#allocation68_spill] sm:$0xff] %v8666_v10  ;;  %v3047_v30 = vmul.f32 %v8504_v63, %v2994_v26  ;;  %v3633_v32 = vmul.f32 %v8645_v20, %v8645_v20  ;;  %v8676_v31 = vadd.f32 %v6442_v48, %v3046_v15  ;;  %v3318_v20 = vld [vmem:[%s11239_s10 + $0x78] sm:$0xff] }
 0x8af   : > { %v2996_v23 = vpop.f32.mrf.mxu0  ;;  %v3598_v26 = vadd.f32 %v8666_v10, %v8663_v6  ;;  %v8839_v29 = vunpack.c.l.bf16 %v3318_v20  ;;  %v8843_v3 = vunpack.c.h.bf16 %v3318_v20  ;;  %v3362_v20 = vld [vmem:[%s11240_s11 + $0x58] sm:$0xff] }
 0x8b0   : > { %s3432_s19 = sadd.f32 1e-05, %s3302_s18  ;;  %12010 = vst [vmem:[#allocation71_spill] sm:$0xff] %v8676_v31  ;;  %v8679_v44 = vadd.f32 %v6443_v12, %v3047_v30  ;;  %v3048_v35 = vmul.f32 %v8500_v13, %v2996_v23  ;;  %v3636_v30 = vmul.f32 %v8666_v10, %v8666_v10  ;;  %v3635_v23 = vmul.f32 %v8663_v6, %v8663_v6 }
 0x8b1   : > { %v2998_v45 = vpop.f32.mrf.mxu0  ;;  %3599 = vadd.xlane.f32.xlu0 %v3598_v26  ;;  %12033 = vst [vmem:[#allocation53_spill] sm:$0xff] %v8839_v29  ;;  %12035 = vst [vmem:[#allocation20_spill] sm:$0xff] %v8843_v3 }
 0x8b2   : > { %v3433_v59 = vstv %s3432_s19  ;;  %v3049_v1 = vmul.f32 %v8504_v63, %v2998_v45  ;;  %12011 = vst [vmem:[#allocation70_spill] sm:$0xff] %v8679_v44  ;;  %v3675_v45 = vadd.f32 %v3634_v9, %v3633_v32  ;;  %v3601_v15 = vadd.f32 %v8679_v44, %v8676_v31  ;;  %v6445_v32 = vld [vmem:[%s6577_s24 + $0xd0] sm:$0xff] }
 0x8b3   : > { %v3002_v40 = vpop.f32.mrf.mxu0  ;;  %6378 = vrsqrt.f32 %v3433_v59  ;;  %v8695_v9 = vadd.f32 %v6445_v32, %v3048_v35  ;;  %v3678_v26 = vadd.f32 %v3636_v30, %v3635_v23  ;;  %v6447_v35 = vld [vmem:[%s6577_s24 + $0xe0] sm:$0xff] }
 0x8b4   : > { %v8685_v55 = vadd.f32 %v6444_v8, %v3049_v1  ;;  %3676 = vadd.xlane.f32.xlu1 %v3675_v45  ;;  %v3050_v8 = vmul.f32 %v8500_v13, %v3002_v40  ;;  %v3637_v40 = vmul.f32 %v8676_v31, %v8676_v31  ;;  %v3315_v31 = vld [vmem:[%s11239_s10 + $0x60] sm:$0xff] }
 0x8b5   : > { %v3004_v59 = vpop.f32.mrf.mxu0  ;;  %12013 = vst [vmem:[#allocation72_spill] sm:$0xff] %v8695_v9  ;;  %3602 = vadd.xlane.f32.xlu0 %v3601_v15  ;;  %v6448_v15 = vld [vmem:[%s6577_s24 + $0xf8] sm:$0xff]  ;;  %v8830_v46 = vunpack.c.l.bf16 %v3315_v31 }
 0x8b6   : > { %12012 = vst [vmem:[#allocation73_spill] sm:$0xff] %v8685_v55  ;;  %v3051_v48 = vmul.f32 %v8504_v63, %v3004_v59  ;;  %v3638_v59 = vmul.f32 %v8679_v44, %v8679_v44  ;;  %v3604_v45 = vadd.f32 %v8685_v55, %v8695_v9  ;;  %v8709_v32 = vadd.f32 %v6447_v35, %v3050_v8  ;;  %v6449_v8 = vld [vmem:[%s6577_s24 + $0xf0] sm:$0xff] }
 0x8b7   : > { %v3006_v12 = vpop.f32.mrf.mxu0  ;;  %12030 = vst [vmem:[#allocation21_spill] sm:$0xff] %v8830_v46 }
 0x8b8   : > { %v8701_v10 = vadd.f32 %v6446_v57, %v3051_v48  ;;  %3679 = vadd.xlane.f32.xlu1 %v3678_v26  ;;  %12015 = vst [vmem:[#allocation74_spill] sm:$0xff] %v8709_v32  ;;  %v3052_v30 = vmul.f32 %v8500_v13, %v3006_v12  ;;  %v3681_v23 = vadd.f32 %v3638_v59, %v3637_v40 }
 0x8b9   : > { %v3008_v1 = vpop.f32.mrf.mxu0  ;;  %v3640_v57 = vmul.f32 %v8685_v55, %v8685_v55  ;;  %3605 = vadd.xlane.f32.xlu0 %v3604_v45  ;;  %v3641_v59 = vmul.f32 %v8709_v32, %v8709_v32 }
 0x8ba   : > { %12014 = vst [vmem:[#allocation75_spill] sm:$0xff] %v8701_v10  ;;  %v3053_v6 = vmul.f32 %v8504_v63, %v3008_v1  ;;  %v3607_v63 = vadd.f32 %v8701_v10, %v8709_v32  ;;  %v3639_v1 = vmul.f32 %v8695_v9, %v8695_v9  ;;  %v8722_v35 = vadd.f32 %v6449_v8, %v3052_v30  ;;  %v8762_v8 = vld [vmem:[%s11239_s10 + $0x28] sm:$0xff] }
 0x8bb   : > { %v3642_v12 = vmul.f32 %v8701_v10, %v8701_v10  ;;  %v3317_v10 = vld [vmem:[%s11239_s10 + $0x70] sm:$0xff] }
 0x8bc   : > { %v8715_v48 = vadd.f32 %v6448_v15, %v3053_v6  ;;  %3682 = vadd.xlane.f32.xlu1 %v3681_v23  ;;  %12017 = vst [vmem:[#allocation77_spill] sm:$0xff] %v8722_v35  ;;  %v3684_v13 = vadd.f32 %v3640_v57, %v3639_v1  ;;  %v3643_v30 = vmul.f32 %v8722_v35, %v8722_v35  ;;  %v8737_v57 = vld [vmem:[%s11239_s10] sm:$0xff]  ;;  %v8742_v15 = vld [vmem:[%s11239_s10 + $0x8] sm:$0xff]  ;;  %v8752_v1 = vld [vmem:[%s11239_s10 + $0x18] sm:$0xff]  ;;  %v8834_v4 = vunpack.c.l.bf16 %v3317_v10 }
 0x8bd   : > { %3608 = vadd.xlane.f32.xlu0 %v3607_v63  ;;  %v3687_v40 = vadd.f32 %v3642_v12, %v3641_v59  ;;  %v8747_v63 = vld [vmem:[%s11239_s10 + $0x10] sm:$0xff]  ;;  %v3310_v12 = vld [vmem:[%s11239_s10 + $0x38] sm:$0xff]  ;;  %v3312_v59 = vld [vmem:[%s11239_s10 + $0x48] sm:$0xff]  ;;  %v8801_v55 = vunpack.c.l.bf16 %v8752_v1  ;;  %v8841_v21 = vunpack.c.h.bf16 %v3317_v10  ;;  %v8859_v10 = vunpack.c.h.bf16 %v3315_v31 }
 0x8be   : > { %12016 = vst [vmem:[#allocation88_spill] sm:$0xff] %v8715_v48  ;;  %v3610_v6 = vadd.f32 %v8715_v48, %v8722_v35  ;;  %v3644_v45 = vmul.f32 %v8715_v48, %v8715_v48  ;;  %v8789_v9 = vunpack.c.l.bf16 %v8747_v63  ;;  %v3316_v48 = vld [vmem:[%s11239_s10 + $0x68] sm:$0xff]  ;;  %v8807_v35 = vunpack.c.l.bf16 %v8762_v8  ;;  %12032 = vst [vmem:[#allocation14_spill] sm:$0xff] %v8834_v4 }
 0x8bf   : > { %12021 = vst [vmem:[#allocation79_spill] sm:$0xff] %v8801_v55  ;;  %v8817_v22 = vunpack.c.l.bf16 %v3310_v12  ;;  %v8821_v61 = vunpack.c.l.bf16 %v3312_v59  ;;  %v8832_v27 = vunpack.c.l.bf16 %v3316_v48  ;;  %12034 = vst [vmem:[#allocation19_spill] sm:$0xff] %v8841_v21  ;;  %v8853_v55 = vunpack.c.h.bf16 %v3365_v58  ;;  %v3359_v58 = vld [vmem:[%s11240_s11 + $0x40] sm:$0xff]  ;;  %v3360_v31 = vld [vmem:[%s11240_s11 + $0x48] sm:$0xff] }
 0x8c0   : > { %v6379_v26 = vpop.eup %6378  ;;  %3685 = vadd.xlane.f32.xlu1 %v3684_v13  ;;  %v3690_v23 = vadd.f32 %v3644_v45, %v3643_v30  ;;  %v3309_v13 = vld [vmem:[%s11239_s10 + $0x30] sm:$0xff]  ;;  %v8783_v30 = vunpack.c.l.bf16 %v8737_v57  ;;  %12020 = vst [vmem:[#allocation90_spill] sm:$0xff] %v8789_v9  ;;  %12023 = vst [vmem:[#allocation92_spill] sm:$0xff] %v8807_v35  ;;  %v8855_v9 = vunpack.c.l.bf16 %v3366_v24  ;;  %v8857_v35 = vunpack.c.h.bf16 %v3366_v24 }
 0x8c1   : > { %5936 = vpush %v6379_v26  ;;  %3611 = vadd.xlane.f32.xlu0 %v3610_v6  ;;  %v8757_v26 = vld [vmem:[%s11239_s10 + $0x20] sm:$0xff]  ;;  %v3313_v45 = vld [vmem:[%s11239_s10 + $0x50] sm:$0xff]  ;;  %v8809_v32 = vunpack.c.l.bf16 %v3309_v13  ;;  %12025 = vst [vmem:[#allocation85_spill] sm:$0xff] %v8817_v22  ;;  %v8866_v22 = vunpack.c.l.bf16 %v3363_v37 }
 0x8c2   : > { %v3311_v6 = vld [vmem:[%s11239_s10 + $0x40] sm:$0xff]  ;;  %12018 = vst [vmem:[#allocation76_spill] sm:$0xff] %v8783_v30  ;;  %v8804_v44 = vunpack.c.l.bf16 %v8757_v26  ;;  %12027 = vst [vmem:[#allocation52_spill] sm:$0xff] %v8821_v61  ;;  %v8823_v19 = vunpack.c.l.bf16 %v3313_v45  ;;  %v3361_v30 = vld [vmem:[%s11240_s11 + $0x50] sm:$0xff]  ;;  %v8870_v61 = vunpack.c.h.bf16 %v3313_v45 }
 0x8c3   : > { %12024 = vst [vmem:[#allocation78_spill] sm:$0xff] %v8809_v32  ;;  %v8819_v18 = vunpack.c.l.bf16 %v3311_v6  ;;  %12031 = vst [vmem:[#allocation57_spill] sm:$0xff] %v8832_v27  ;;  %v8868_v32 = vunpack.c.h.bf16 %v3363_v37  ;;  %v3357_v37 = vld [vmem:[%s11240_s11 + $0x30] sm:$0xff]  ;;  %v8889_v45 = vunpack.c.h.bf16 %v3361_v30 }
 0x8c4   : > { %3688 = vadd.xlane.f32.xlu1 %v3687_v40  ;;  %v3314_v40 = vld [vmem:[%s11239_s10 + $0x58] sm:$0xff]  ;;  %12022 = vst [vmem:[#allocation91_spill] sm:$0xff] %v8804_v44  ;;  %12028 = vst [vmem:[#allocation16_spill] sm:$0xff] %v8823_v19  ;;  %v8864_v44 = vunpack.c.h.bf16 %v3316_v48 }
 0x8c5   : > { %3691 = vadd.xlane.f32.xlu0 %v3690_v23  ;;  %v8786_v23 = vunpack.c.l.bf16 %v8742_v15  ;;  %12026 = vst [vmem:[#allocation89_spill] sm:$0xff] %v8819_v18  ;;  %v8828_v25 = vunpack.c.l.bf16 %v3314_v40  ;;  %12037 = vst [vmem:[#allocation23_spill] sm:$0xff] %v8853_v55  ;;  %v8882_v48 = vunpack.c.h.bf16 %v3314_v40  ;;  %v8900_v40 = vunpack.c.h.bf16 %v3312_v59  ;;  %v3356_v59 = vld [vmem:[%s11240_s11 + $0x28] sm:$0xff] }
 0x8c6   : > { %12038 = vst [vmem:[#allocation48_spill] sm:$0xff] %v8855_v9  ;;  %12039 = vst [vmem:[#allocation25_spill] sm:$0xff] %v8857_v35 }
 0x8c7   : > { %12019 = vst [vmem:[#allocation93_spill] sm:$0xff] %v8786_v23  ;;  %12029 = vst [vmem:[#allocation47_spill] sm:$0xff] %v8828_v25  ;;  %v3364_v23 = vld [vmem:[%s11240_s11 + $0x68] sm:$0xff]  ;;  %v8884_v25 = vunpack.c.l.bf16 %v3361_v30  ;;  %v3355_v30 = vld [vmem:[%s11240_s11 + $0x20] sm:$0xff] }
 0x8c8   : > { %12040 = vst [vmem:[#allocation18_spill] sm:$0xff] %v8859_v10  ;;  %12041 = vst [vmem:[#allocation24_spill] sm:$0xff] %v8864_v44  ;;  %v8878_v24 = vunpack.c.l.bf16 %v3364_v23  ;;  %v8880_v18 = vunpack.c.h.bf16 %v3364_v23  ;;  %v3358_v23 = vld [vmem:[%s11240_s11 + $0x38] sm:$0xff] }
 0x8c9   : > { %12042 = vst [vmem:[#allocation22_spill] sm:$0xff] %v8866_v22  ;;  %12043 = vst [vmem:[#allocation49_spill] sm:$0xff] %v8868_v32  ;;  %v8891_v22 = vunpack.c.l.bf16 %v3362_v20  ;;  %v8895_v32 = vunpack.c.h.bf16 %v3311_v6  ;;  %v8913_v6 = vunpack.c.h.bf16 %v3309_v13  ;;  %v8934_v13 = vld [vmem:[%s11240_s11 + $0x10] sm:$0xff] }
 0x8ca   : > { %12044 = vst [vmem:[#allocation27_spill] sm:$0xff] %v8870_v61  ;;  %12045 = vst [vmem:[#allocation50_spill] sm:$0xff] %v8878_v24  ;;  %v8893_v61 = vunpack.c.h.bf16 %v3362_v20  ;;  %v8911_v20 = vunpack.c.h.bf16 %v3360_v31 }
 0x8cb   : > { %12046 = vst [vmem:[#allocation29_spill] sm:$0xff] %v8880_v18  ;;  %12047 = vst [vmem:[#allocation28_spill] sm:$0xff] %v8882_v48  ;;  %v8904_v18 = vunpack.c.h.bf16 %v3359_v58  ;;  %v8906_v48 = vunpack.c.l.bf16 %v3360_v31  ;;  %v8942_v31 = vstv %s8650_s30 }
 0x8cc   : > { %12048 = vst [vmem:[#allocation26_spill] sm:$0xff] %v8884_v25  ;;  %12049 = vst [vmem:[#allocation61_spill] sm:$0xff] %v8889_v45  ;;  %v8902_v25 = vunpack.c.l.bf16 %v3359_v58  ;;  %v8922_v58 = vunpack.c.h.bf16 %v3357_v37 }
 0x8cd   : > { %12050 = vst [vmem:[#allocation31_spill] sm:$0xff] %v8891_v22  ;;  %12051 = vst [vmem:[#allocation46_spill] sm:$0xff] %v8893_v61  ;;  %v8915_v22 = vunpack.c.h.bf16 %v3310_v12  ;;  %v8939_v12 = vld [vmem:[%s11240_s11 + $0x18] sm:$0xff] }
 0x8ce   : > { %12052 = vst [vmem:[#allocation33_spill] sm:$0xff] %v8895_v32  ;;  %12053 = vst [vmem:[#allocation32_spill] sm:$0xff] %v8900_v40  ;;  %v8917_v32 = vunpack.c.l.bf16 %v3357_v37  ;;  %v8945_v37 = vunpack.c.h.bf16 %v8762_v8  ;;  %v8965_v8 = vunpack.c.h.bf16 %v8939_v12 }
 0x8cf   : > { %12054 = vst [vmem:[#allocation30_spill] sm:$0xff] %v8902_v25  ;;  %12055 = vst [vmem:[#allocation54_spill] sm:$0xff] %v8904_v18  ;;  %v8924_v25 = vunpack.c.l.bf16 %v3358_v23  ;;  %v8929_v18 = vunpack.c.h.bf16 %v8757_v26  ;;  %v8951_v26 = vunpack.c.l.bf16 %v3356_v59 }
 0x8d0   : > { %12056 = vst [vmem:[#allocation35_spill] sm:$0xff] %v8906_v48  ;;  %12057 = vst [vmem:[#allocation60_spill] sm:$0xff] %v8911_v20  ;;  %v8926_v48 = vunpack.c.h.bf16 %v3358_v23  ;;  %v8947_v23 = vunpack.c.l.bf16 %v3355_v30 }
 0x8d1   : > { %12058 = vst [vmem:[#allocation37_spill] sm:$0xff] %v8913_v6  ;;  %12059 = vst [vmem:[#allocation36_spill] sm:$0xff] %v8915_v22 }
 0x8d2   : > { %12060 = vst [vmem:[#allocation34_spill] sm:$0xff] %v8917_v32  ;;  %12061 = vst [vmem:[#allocation56_spill] sm:$0xff] %v8922_v58  ;;  %v8953_v32 = vunpack.c.h.bf16 %v3356_v59  ;;  %v8962_v58 = vunpack.c.h.bf16 %v8934_v13  ;;  %v3419_v59 = vsub.f32 %v8257_v51, %v8942_v31  ;;  %v3426_v51 = vsub.f32 %v8338_v33, %v8942_v31 }
 0x8d3   : > { %12062 = vst [vmem:[#allocation39_spill] sm:$0xff] %v8924_v25  ;;  %12063 = vst [vmem:[#allocation58_spill] sm:$0xff] %v8926_v48  ;;  %v8949_v25 = vunpack.c.h.bf16 %v3355_v30  ;;  %v8956_v48 = vunpack.c.h.bf16 %v8747_v63  ;;  %v8971_v30 = vunpack.c.h.bf16 %v8742_v15  ;;  %v3417_v15 = vsub.f32 %v8241_v49, %v8942_v31 }
 0x8d4   : > { %12064 = vst [vmem:[#allocation41_spill] sm:$0xff] %v8929_v18  ;;  %12065 = vst [vmem:[#allocation40_spill] sm:$0xff] %v8939_v12  ;;  %v8959_v18 = vunpack.c.h.bf16 %v8752_v1  ;;  %v3413_v1 = vsub.f32 %v8205_v41, %v8942_v31  ;;  %v3420_v41 = vsub.f32 %v8288_v52, %v8942_v31  ;;  %v3429_v49 = vsub.f32 %v8347_v14, %v8942_v31 }
 0x8d5   : > { %12066 = vst [vmem:[#allocation38_spill] sm:$0xff] %v8945_v37  ;;  %12067 = vst [vmem:[#allocation59_spill] sm:$0xff] %v8947_v23  ;;  %v8968_v23 = vunpack.c.h.bf16 %v8737_v57  ;;  %v3416_v57 = vsub.f32 %v8247_v36, %v8942_v31  ;;  %v3422_v36 = vsub.f32 %v8302_v60, %v8942_v31  ;;  %v3428_v63 = vsub.f32 %v8356_v7, %v8942_v31  ;;  %v12077_v60 = vld [vmem:[#allocation3_spill] sm:$0xff] }
 0x8d6   : > { %12068 = vst [vmem:[#allocation43_spill] sm:$0xff] %v8949_v25  ;;  %12069 = vst [vmem:[#allocation51_spill] sm:$0xff] %v8951_v26  ;;  %v3431_v52 = vsub.f32 %v8369_v17, %v8942_v31  ;;  %v3430_v14 = vsub.f32 %v8376_v56, %v8942_v31  ;;  %v3427_v17 = vsub.f32 %v8331_v39, %v8942_v31 }
 0x8d7   : > { %12070 = vst [vmem:[#allocation45_spill] sm:$0xff] %v8953_v32  ;;  %12071 = vst [vmem:[#allocation44_spill] sm:$0xff] %v8956_v48 }
 0x8d8   : > { %12072 = vst [vmem:[#allocation42_spill] sm:$0xff] %v8959_v18  ;;  %12073 = vst [vmem:[#allocation96_spill] sm:$0xff] %v8962_v58  ;;  %v3421_v58 = vsub.f32 %v8278_v62, %v8942_v31  ;;  %v3423_v62 = vsub.f32 %v8295_v5, %v8942_v31 }
 0x8d9   : > { %12074 = vst [vmem:[#allocation97_spill] sm:$0xff] %v8965_v8  ;;  %12075 = vst [vmem:[#allocation98_spill] sm:$0xff] %v8968_v23  ;;  %v3425_v8 = vsub.f32 %v12077_v60, %v8942_v31 }
 0x8da   : > { %12076 = vst [vmem:[#allocation99_spill] sm:$0xff] %v8971_v30  ;;  %v3418_v30 = vsub.f32 %v8264_v28, %v8942_v31  ;;  %v3424_v28 = vsub.f32 %v8324_v34, %v8942_v31 }
 0x8f2   : > { %s5937_s30 = spop %5936 }
 0x8f3   : > { %v9003_v23 = vstv %s5937_s30 }
 0x8f4   : > { %v3466_v34 = vmul.f32 %v9003_v23, %v3429_v49  ;;  %v3461_v26 = vmul.f32 %v9003_v23, %v3424_v28  ;;  %v3463_v33 = vmul.f32 %v9003_v23, %v3426_v51  ;;  %v3465_v7 = vmul.f32 %v9003_v23, %v3428_v63 }
 0x8f5   : > { %v3468_v11 = vmul.f32 %v9003_v23, %v3431_v52  ;;  %v3462_v5 = vmul.f32 %v9003_v23, %v3425_v8  ;;  %v3467_v60 = vmul.f32 %v9003_v23, %v3430_v14  ;;  %v3450_v56 = vmul.f32 %v9003_v23, %v3413_v1 }
 0x8f6   : > { %v3498_v12 = vmul.f32 %v3466_v34, %v8841_v21  ;;  %v3453_v49 = vmul.f32 %v9003_v23, %v3416_v57  ;;  %v3457_v28 = vmul.f32 %v9003_v23, %v3420_v41  ;;  %v3454_v63 = vmul.f32 %v9003_v23, %v3417_v15 }
 0x8f7   : > { %v3500_v51 = vmul.f32 %v3468_v11, %v8843_v3  ;;  %v3458_v52 = vmul.f32 %v9003_v23, %v3421_v58  ;;  %v3459_v39 = vmul.f32 %v9003_v23, %v3422_v36  ;;  %v3493_v1 = vmul.f32 %v3461_v26, %v8830_v46 }
 0x8f8   : > { %v9045_v8 = vadd.f32 %v3498_v12, %v8853_v55  ;;  %v3495_v57 = vmul.f32 %v3463_v33, %v8832_v27  ;;  %v3497_v41 = vmul.f32 %v3465_v7, %v8834_v4  ;;  %v3499_v11 = vmul.f32 %v3467_v60, %v8839_v29  ;;  %v12086_v55 = vld [vmem:[#allocation22_spill] sm:$0xff] }
 0x8f9   : > { %v9048_v14 = vadd.f32 %v3500_v51, %v8857_v35  ;;  %v3464_v15 = vmul.f32 %v9003_v23, %v3427_v17  ;;  %v3494_v58 = vmul.f32 %v3462_v5, %v8859_v10  ;;  %v3460_v36 = vmul.f32 %v9003_v23, %v3423_v62  ;;  %v12082_v17 = vld [vmem:[#allocation49_spill] sm:$0xff]  ;;  %v12084_v5 = vld [vmem:[#allocation27_spill] sm:$0xff] }
 0x8fa   : > { %12078 = vst [vmem:[#allocation3_spill] sm:$0xff] %v9045_v8  ;;  %v3455_v12 = vmul.f32 %v9003_v23, %v3418_v30  ;;  %v3489_v51 = vmul.f32 %v3457_v28, %v8823_v19  ;;  %v9062_v26 = vadd.f32 %v3497_v41, %v8845_v16  ;;  %v9065_v33 = vadd.f32 %v3499_v11, %v8855_v9  ;;  %v12085_v30 = vld [vmem:[#allocation47_spill] sm:$0xff]  ;;  %v12089_v41 = vld [vmem:[#allocation28_spill] sm:$0xff] }
 0x8fb   : > { %12079 = vst [vmem:[#allocation100_spill] sm:$0xff] %v9048_v14  ;;  %v3944_v34 = vpack.c.bf16 %v9048_v14, %v9045_v8  ;;  %v3496_v7 = vmul.f32 %v3464_v15, %v8864_v44  ;;  %v9069_v60 = vadd.f32 %v3494_v58, %v12082_v17  ;;  %v3490_v62 = vmul.f32 %v3458_v52, %v12084_v5  ;;  %v12090_v15 = vld [vmem:[#allocation29_spill] sm:$0xff] }
 0x8fc   : > { %12080 = vst [vmem:[#allocation101_spill] sm:$0xff] %v9062_v26  ;;  %12081 = vst [vmem:[#allocation102_spill] sm:$0xff] %v9065_v33  ;;  %v3491_v35 = vmul.f32 %v3459_v39, %v12085_v30  ;;  %v9074_v14 = vadd.f32 %v3493_v1, %v12086_v55  ;;  %v9077_v28 = vadd.f32 %v3495_v57, %v8878_v24  ;;  %v12093_v39 = vld [vmem:[#allocation4_spill] sm:$0xff] }
 0x8fd   : > { %12083 = vst [vmem:[#allocation103_spill] sm:$0xff] %v9069_v60  ;;  %4107 = vmatprep.subr.bf16.mxu0 %v3944_v34  ;;  %v3492_v8 = vmul.f32 %v3460_v36, %v12089_v41  ;;  %v3943_v11 = vpack.c.bf16 %v9065_v33, %v9062_v26  ;;  %v9083_v19 = vadd.f32 %v3496_v7, %v12090_v15  ;;  %v12096_v33 = vld [vmem:[#allocation33_spill] sm:$0xff] }
 0x8fe   : > { %12087 = vst [vmem:[#allocation104_spill] sm:$0xff] %v9074_v14  ;;  %12088 = vst [vmem:[#allocation105_spill] sm:$0xff] %v9077_v28  ;;  %v9086_v58 = vadd.f32 %v3490_v62, %v8889_v45  ;;  %v3456_v52 = vmul.f32 %v9003_v23, %v3419_v59  ;;  %v3414_v1 = vsub.f32 %v12093_v39, %v8942_v31 }
 0x8ff   : > { %12091 = vst [vmem:[#allocation106_spill] sm:$0xff] %v9083_v19  ;;  %v12094_v57 = vsub.f32 %v8168_v50, %v8942_v31  ;;  %v9096_v36 = vadd.f32 %v3492_v8, %v8893_v61  ;;  %v3486_v26 = vmul.f32 %v3454_v63, %v12096_v33  ;;  %v12097_v7 = vsub.f32 %v8214_v0, %v8942_v31  ;;  %v12099_v61 = vld [vmem:[#allocation89_spill] sm:$0xff]  ;;  %v12100_v33 = vld [vmem:[#allocation26_spill] sm:$0xff]  ;;  %v12102_v0 = vld [vmem:[#allocation31_spill] sm:$0xff] }
 0x900   : > { %12092 = vst [vmem:[#allocation107_spill] sm:$0xff] %v9086_v58  ;;  %4108 = vmatpush1.bf16.msra.mxu0 %v3943_v11  ;;  %v3940_v59 = vpack.c.bf16 %v9083_v19, %v9069_v60  ;;  %v3488_v39 = vmul.f32 %v3456_v52, %v8900_v40  ;;  %v12098_v50 = vsub.f32 %v8222_v53, %v8942_v31  ;;  %v12104_v11 = vld [vmem:[#allocation52_spill] sm:$0xff]  ;;  %v12110_v60 = vld [vmem:[#allocation55_spill] sm:$0xff] }
 0x901   : > { %v3446_v34 = vmul.f32 %v9003_v23, %v12094_v57  ;;  %12095 = vst [vmem:[#allocation4_spill] sm:$0xff] %v9096_v36  ;;  %v3449_v62 = vmul.f32 %v9003_v23, %v12097_v7  ;;  %v3451_v8 = vmul.f32 %v9003_v23, %v3414_v1  ;;  %v3485_v63 = vmul.f32 %v3453_v49, %v12099_v61  ;;  %v12105_v1 = vld [vmem:[#allocation54_spill] sm:$0xff] }
 0x902   : > { %v3452_v57 = vmul.f32 %v9003_v23, %v12098_v50  ;;  %v9113_v45 = vadd.f32 %v3489_v51, %v12100_v33  ;;  %v9116_v7 = vadd.f32 %v3491_v35, %v12102_v0  ;;  %v3487_v24 = vmul.f32 %v3455_v12, %v12104_v11  ;;  %4109 = vmatprep.subr.bf16.mxu0 %v3940_v59  ;;  %v12109_v59 = vld [vmem:[#allocation5_spill] sm:$0xff] }
 0x903   : > { %v3939_v52 = vpack.c.bf16 %v9077_v28, %v9074_v14  ;;  %v3936_v53 = vpack.c.bf16 %v9096_v36, %v9086_v58  ;;  %v3482_v50 = vmul.f32 %v3450_v56, %v8913_v6  ;;  %v9125_v19 = vadd.f32 %v3486_v26, %v12105_v1  ;;  %v12115_v58 = vld [vmem:[#allocation85_spill] sm:$0xff] }
 0x904   : > { %12101 = vst [vmem:[#allocation108_spill] sm:$0xff] %v9113_v45  ;;  %12103 = vst [vmem:[#allocation109_spill] sm:$0xff] %v9116_v7  ;;  %v9128_v49 = vadd.f32 %v3488_v39, %v8911_v20  ;;  %v3484_v35 = vmul.f32 %v3452_v57, %v8915_v22  ;;  %v12108_v12 = vsub.f32 %v8187_v47, %v8942_v31 }
 0x905   : > { %12106 = vst [vmem:[#allocation110_spill] sm:$0xff] %v9125_v19  ;;  %v3406_v28 = vsub.f32 %v12109_v59, %v8942_v31  ;;  %v3407_v14 = vsub.f32 %v12110_v60, %v8942_v31  ;;  %v12111_v56 = vsub.f32 %v8114_v54, %v8942_v31  ;;  %v12112_v39 = vsub.f32 %v8174_v42, %v8942_v31  ;;  %v12114_v59 = vld [vmem:[#allocation78_spill] sm:$0xff]  ;;  %v12118_v42 = vld [vmem:[#allocation35_spill] sm:$0xff] }
 0x906   : > { %12107 = vst [vmem:[#allocation111_spill] sm:$0xff] %v9128_v49  ;;  %v3448_v51 = vmul.f32 %v9003_v23, %v12108_v12  ;;  %4110 = vmatpush1.bf16.msra.mxu0 %v3939_v52  ;;  %v12113_v47 = vsub.f32 %v8196_v38, %v8942_v31  ;;  %v3481_v36 = vmul.f32 %v3449_v62, %v12114_v59  ;;  %v12120_v52 = vld [vmem:[#allocation56_spill] sm:$0xff]  ;;  %v12122_v38 = vld [vmem:[#allocation41_spill] sm:$0xff] }
 0x907   : > { %v3442_v26 = vmul.f32 %v9003_v23, %v12111_v56  ;;  %v3445_v57 = vmul.f32 %v9003_v23, %v12112_v39  ;;  %v3483_v60 = vmul.f32 %v3451_v8, %v12115_v58  ;;  %4111 = vmatprep.subr.bf16.mxu0 %v3936_v53  ;;  %v3935_v54 = vpack.c.bf16 %v9116_v7, %v9113_v45  ;;  %v12116_v56 = vld [vmem:[#allocation30_spill] sm:$0xff] }
 0x908   : > { %v3447_v12 = vmul.f32 %v9003_v23, %v12113_v47  ;;  %v9156_v22 = vadd.f32 %v3485_v63, %v12116_v56  ;;  %v9159_v20 = vadd.f32 %v3487_v24, %v12118_v42  ;;  %v9162_v39 = vadd.f32 %v3482_v50, %v12120_v52  ;;  %v12123_v47 = vld [vmem:[#allocation58_spill] sm:$0xff]  ;;  %v12126_v24 = vld [vmem:[#allocation87_spill] sm:$0xff] }
 0x909   : > { %v3478_v1 = vmul.f32 %v3446_v34, %v12122_v38  ;;  %v3932_v62 = vpack.c.bf16 %v9128_v49, %v9125_v19  ;;  %v9168_v8 = vadd.f32 %v3484_v35, %v12123_v47  ;;  %v3480_v53 = vmul.f32 %v3448_v51, %v8945_v37  ;;  %v12125_v63 = vld [vmem:[#allocation2_spill] sm:$0xff]  ;;  %v12130_v37 = vld [vmem:[#allocation92_spill] sm:$0xff] }
 0x90a   : > { %12117 = vst [vmem:[#allocation5_spill] sm:$0xff] %v9156_v22  ;;  %12119 = vst [vmem:[#allocation55_spill] sm:$0xff] %v9159_v20  ;;  %v3444_v7 = vmul.f32 %v9003_v23, %v3407_v14  ;;  %v3402_v45 = vsub.f32 %v12125_v63, %v8942_v31  ;;  %v3403_v42 = vsub.f32 %v12126_v24, %v8942_v31  ;;  %4112 = vmatpush1.bf16.msra.mxu0 %v3935_v54  ;;  %v12129_v14 = vld [vmem:[#allocation91_spill] sm:$0xff]  ;;  %v12131_v24 = vld [vmem:[#allocation34_spill] sm:$0xff] }
 0x90b   : > { %12121 = vst [vmem:[#allocation112_spill] sm:$0xff] %v9162_v39  ;;  %12124 = vst [vmem:[#allocation113_spill] sm:$0xff] %v9168_v8  ;;  %v12127_v50 = vsub.f32 %v8087_v2, %v8942_v31  ;;  %v12128_v49 = vsub.f32 %v8124_v43, %v8942_v31  ;;  %v3443_v51 = vmul.f32 %v9003_v23, %v3406_v28  ;;  %4113 = vmatprep.subr.bf16.mxu0 %v3932_v62  ;;  %v3351_v43 = vld [vmem:[%s11240_s11] sm:$0xff]  ;;  %v3352_v28 = vld [vmem:[%s11240_s11 + $0x8] sm:$0xff] }
 0x90c   : > { %v3477_v19 = vmul.f32 %v3445_v57, %v12129_v14  ;;  %v3479_v63 = vmul.f32 %v3447_v12, %v12130_v37  ;;  %v9190_v47 = vadd.f32 %v3481_v36, %v12131_v24  ;;  %v12133_v57 = vld [vmem:[#allocation39_spill] sm:$0xff]  ;;  %v9206_v54 = vadd.f32 %v3478_v1, %v8949_v25  ;;  %v12142_v25 = vld [vmem:[#allocation86_spill] sm:$0xff] }
 0x90d   : > { %v3438_v34 = vmul.f32 %v9003_v23, %v12127_v50  ;;  %v3441_v35 = vmul.f32 %v9003_v23, %v12128_v49  ;;  %v9187_v38 = vpop.xlane.xlu1 %3566  ;;  %v3931_v49 = vpack.c.bf16 %v9159_v20, %v9156_v22  ;;  %v9203_v12 = vadd.f32 %v3483_v60, %v12133_v57  ;;  %v12138_v60 = vld [vmem:[#allocation40_spill] sm:$0xff]  ;;  %v12148_v57 = vld [vmem:[#allocation51_spill] sm:$0xff] }
 0x90e   : > { %12132 = vst [vmem:[#allocation2_spill] sm:$0xff] %v9190_v47  ;;  %12135 = vst [vmem:[#allocation114_spill] sm:$0xff] %v9206_v54  ;;  %v3474_v36 = vmul.f32 %v3442_v26, %v8956_v48  ;;  %v3928_v62 = vpack.c.bf16 %v9168_v8, %v9162_v39  ;;  %v9212_v50 = vadd.f32 %v3480_v53, %v8953_v32  ;;  %v9217_v20 = vunpack.c.l.bf16 %v8934_v13  ;;  %v12144_v39 = vld [vmem:[#allocation90_spill] sm:$0xff]  ;;  %v12146_v32 = vld [vmem:[#allocation59_spill] sm:$0xff] }
 0x90f   : > { %v9192_v2 = vpop.xlane.xlu0 %3646  ;;  %12134 = vst [vmem:[#allocation87_spill] sm:$0xff] %v9203_v12  ;;  %v3476_v24 = vmul.f32 %v3444_v7, %v8959_v18  ;;  %v3440_v37 = vmul.f32 %v9003_v23, %v3403_v42  ;;  %4114 = vmatpush1.bf16.msra.mxu0 %v3931_v49  ;;  %v9220_v22 = vunpack.c.l.bf16 %v12138_v60  ;;  %v9222_v1 = vunpack.c.h.bf16 %v3351_v43  ;;  %v12145_v49 = vld [vmem:[#allocation79_spill] sm:$0xff] }
 0x910   : > { %12136 = vst [vmem:[#allocation115_spill] sm:$0xff] %v9212_v50  ;;  %12137 = vst [vmem:[#allocation116_spill] sm:$0xff] %v9217_v20  ;;  %v9224_v26 = vunpack.c.h.bf16 %v3352_v28  ;;  %v12143_v8 = vsub.f32 %v12142_v25, %v8942_v31  ;;  %v3439_v7 = vmul.f32 %v9003_v23, %v3402_v45  ;;  %v3473_v42 = vmul.f32 %v3441_v35, %v12144_v39  ;;  %v12150_v25 = vld [vmem:[#allocation96_spill] sm:$0xff] }
 0x911   : > { %12139 = vst [vmem:[#allocation40_spill] sm:$0xff] %v9220_v22  ;;  %12140 = vst [vmem:[#allocation117_spill] sm:$0xff] %v9222_v1  ;;  %v3475_v18 = vmul.f32 %v3443_v51, %v12145_v49  ;;  %4115 = vmatprep.subr.bf16.mxu0 %v3928_v62  ;;  %v3927_v60 = vpack.c.bf16 %v9203_v12, %v9190_v47  ;;  %v9236_v48 = vadd.f32 %v3477_v19, %v12146_v32  ;;  %v12154_v51 = vld [vmem:[#allocation98_spill] sm:$0xff]  ;;  %v12155_v49 = vld [vmem:[#allocation99_spill] sm:$0xff] }
 0x912   : > { %12141 = vst [vmem:[#allocation118_spill] sm:$0xff] %v9224_v26  ;;  %v3437_v53 = vmul.f32 %v9003_v23, %v12143_v8  ;;  %v9239_v14 = vadd.f32 %v3479_v63, %v12148_v57  ;;  %v9242_v31 = vadd.f32 %v3474_v36, %v12150_v25  ;;  %v3924_v45 = vpack.c.bf16 %v9212_v50, %v9206_v54  ;;  %v12152_v23 = vld [vmem:[#allocation97_spill] sm:$0xff]  ;;  %v12156_v19 = vld [vmem:[#allocation76_spill] sm:$0xff] }
 0x913   : > { %v3650_v13 = vpop.xlane.xlu1 %3649  ;;  %12147 = vst [vmem:[#allocation86_spill] sm:$0xff] %v9236_v48  ;;  %v9247_v8 = vadd.f32 %v3476_v24, %v12152_v23  ;;  %v3570_v35 = vpop.xlane.xlu0 %3569  ;;  %v3470_v62 = vmul.f32 %v3438_v34, %v12154_v51  ;;  %v3472_v12 = vmul.f32 %v3440_v37, %v12155_v49  ;;  %4116 = vmatpush1.bf16.msra.mxu0 %v3927_v60  ;;  %v9252_v63 = vunpack.c.l.bf16 %v3351_v43  ;;  %v12159_v25 = vld [vmem:[#allocation93_spill] sm:$0xff] }
 0x914   : > { %12149 = vst [vmem:[#allocation119_spill] sm:$0xff] %v9239_v14  ;;  %12151 = vst [vmem:[#allocation120_spill] sm:$0xff] %v9242_v31  ;;  %v3469_v47 = vmul.f32 %v3437_v53, %v12156_v19  ;;  %4117 = vmatprep.subr.bf16.mxu0 %v3924_v45  ;;  %v9254_v57 = vunpack.c.l.bf16 %v3352_v28  ;;  %v3471_v32 = vmul.f32 %v3439_v7, %v12159_v25  ;;  %v12166_v54 = vmov 0  }
 0x915   : > { %12153 = vst [vmem:[#allocation121_spill] sm:$0xff] %v9247_v8  ;;  %12157 = vst [vmem:[#allocation122_spill] sm:$0xff] %v9252_v63  ;;  %v3923_v24 = vpack.c.bf16 %v9239_v14, %v9236_v48  ;;  %v9260_v50 = vadd.f32 %v3473_v42, %v9217_v20  ;;  %v9263_v34 = vadd.f32 %v3475_v18, %v9220_v22 }
 0x916   : > { %12158 = vst [vmem:[#allocation123_spill] sm:$0xff] %v9254_v57  ;;  %v3920_v37 = vpack.c.bf16 %v9247_v8, %v9242_v31  ;;  %v9268_v43 = vadd.f32 %v3470_v62, %v9222_v1  ;;  %v9271_v28 = vadd.f32 %v3472_v12, %v9224_v26  ;;  %v9276_v60 = vadd.f32 %v3469_v47, %v9252_v63 }
 0x917   : > { %v3573_v36 = vpop.xlane.xlu1 %3572  ;;  %12160 = vst [vmem:[#allocation124_spill] sm:$0xff] %v9260_v50  ;;  %12161 = vst [vmem:[#allocation125_spill] sm:$0xff] %v9263_v34  ;;  %4118 = vmatpush1.bf16.msra.mxu0 %v3923_v24  ;;  %v3919_v42 = vpack.c.bf16 %v9263_v34, %v9260_v50  ;;  %v9279_v18 = vadd.f32 %v3471_v32, %v9254_v57  ;;  %v3694_v31 = vsel %vm3214_vm1, %v3570_v35, 0.0  ;;  %v3736_v35 = vsel %vm3214_vm1, %v9192_v2, 0.0 }
 0x918   : > { %12162 = vst [vmem:[#allocation126_spill] sm:$0xff] %v9268_v43  ;;  %12163 = vst [vmem:[#allocation127_spill] sm:$0xff] %v9271_v28  ;;  %4119 = vmatprep.subr.bf16.mxu0 %v3920_v37  ;;  %v3916_v45 = vpack.c.bf16 %v9271_v28, %v9268_v43  ;;  %v5978_v37 = vld [vmem:[%s11235_s6] sm:$0xff]   ;;  %v5980_v28 = vld [vmem:[%s11235_s6 + $0x10] sm:$0xff]   ;;  %v3737_v43 = vsel %vm3214_vm1, %v3650_v13, 0.0 }
 0x919   : > { %v3576_v53 = vpop.xlane.xlu0 %3575  ;;  %12164 = vst [vmem:[#allocation128_spill] sm:$0xff] %v9276_v60  ;;  %12165 = vst [vmem:[#allocation129_spill] sm:$0xff] %v9279_v18  ;;  %v3915_v24 = vpack.c.bf16 %v9279_v18, %v9276_v60 }
 0x91a   : > { %v3698_v57 = vsel %vm3214_vm1, %v3576_v53, 0.0 }
 0x91b   : > { %v3653_v7 = vpop.xlane.xlu1 %3652  ;;  %4120 = vmatpush1.bf16.msra.mxu0 %v3919_v42  ;;  %v5979_v42 = vld [vmem:[%s11235_s6 + $0x8] sm:$0xff]  }
 0x91c   : > { %4121 = vmatprep.subr.bf16.mxu0 %v3916_v45 }
 0x91d   : > { %v3579_v62 = vpop.xlane.xlu0 %3578 }
 0x91e   : > { %v3700_v26 = vsel %vm3214_vm1, %v3579_v62, 0.0 }
 0x91f   : > { %v3656_v12 = vpop.xlane.xlu1 %3655  ;;  %4122 = vmatpush1.bf16.msra.mxu0 %v3915_v24  ;;  %v3693_v24 = vsel %vm3214_vm1, %v9187_v38, 0.0  ;;  %v3739_v38 = vsel %vm3214_vm1, %v3653_v7, 0.0 }
 0x920   : > { %v3695_v18 = vadd.f32 %v3694_v31, %v3693_v24  ;;  %v3741_v31 = vsel %vm3214_vm1, %v3656_v12, 0.0 }
 0x921   : > { %v3659_v14 = vpop.xlane.xlu0 %3658 }
 0x922   : > { %4140 = vmatmul.mubr.bf16.vlgmr.msra.gmra.mxu0 %v5978_v37  ;;  %v3696_v37 = vsel %vm3214_vm1, %v3573_v36, 0.0  ;;  %v3738_v36 = vadd.f32 %v3737_v43, %v3736_v35 }
 0x923   : > { %v3582_v47 = vpop.xlane.xlu1 %3581  ;;  %4149 = vmatprep.mubr.bf16.mxu0 %v12166_v54  ;;  %v3697_v60 = vadd.f32 %v3696_v37, %v3695_v18  ;;  %v3743_v37 = vsel %vm3214_vm1, %v3659_v14, 0.0 }
 0x924   : > { %v3740_v13 = vadd.f32 %v3739_v38, %v3738_v36  ;;  %v3702_v18 = vsel %vm3214_vm1, %v3582_v47, 0.0 }
 0x925   : > { %v3585_v32 = vpop.xlane.xlu0 %3584  ;;  %v3699_v1 = vadd.f32 %v3698_v57, %v3697_v60 }
 0x926   : > { %v3742_v24 = vadd.f32 %v3741_v31, %v3740_v13  ;;  %v3704_v62 = vsel %vm3214_vm1, %v3585_v32, 0.0  ;;  %v9325_v32 = vld [vmem:[%s11235_s6 + $0x20] sm:$0xff]  }
 0x927   : > { %v3662_v48 = vpop.xlane.xlu1 %3661  ;;  %v3701_v53 = vadd.f32 %v3700_v26, %v3699_v1  ;;  %12168 = vst [vmem:[#allocation131_spill] sm:$0xff] %v9325_v32 }
 0x928   : > { %v3745_v57 = vsel %vm3214_vm1, %v3662_v48, 0.0  ;;  %v3744_v60 = vadd.f32 %v3743_v37, %v3742_v24 }
 0x929   : > { %v3588_v45 = vpop.xlane.xlu0 %3587  ;;  %v3703_v43 = vadd.f32 %v3702_v18, %v3701_v53 }
 0x92a   : > { %4150 = vmatmul.mubr.bf16.gmra.mxu0 %v5979_v42  ;;  %v3706_v12 = vsel %vm3214_vm1, %v3588_v45, 0.0  ;;  %v3746_v35 = vadd.f32 %v3745_v57, %v3744_v60 }
 0x92b   : > { %v3665_v8 = vpop.xlane.xlu1 %3664  ;;  %4159 = vmatprep.mubr.bf16.mxu0 %v12166_v54  ;;  %v3705_v47 = vadd.f32 %v3704_v62, %v3703_v43 }
 0x92c   : > { %v3747_v1 = vsel %vm3214_vm1, %v3665_v8, 0.0 }
 0x92d   : > { %v3591_v34 = vpop.xlane.xlu0 %3590  ;;  %v3707_v36 = vadd.f32 %v3706_v12, %v3705_v47  ;;  %v3748_v31 = vadd.f32 %v3747_v1, %v3746_v35 }
 0x92e   : > { %v3708_v38 = vsel %vm3214_vm1, %v3591_v34, 0.0 }
 0x92f   : > { %v3668_v50 = vpop.xlane.xlu1 %3667  ;;  %v3709_v45 = vadd.f32 %v3708_v38, %v3707_v36 }
 0x930   : > { %v3749_v48 = vsel %vm3214_vm1, %v3668_v50, 0.0 }
 0x931   : > { %v3594_v42 = vpop.xlane.xlu0 %3593  ;;  %v3750_v53 = vadd.f32 %v3749_v48, %v3748_v31 }
 0x932   : > { %4160 = vmatmul.mubr.bf16.gmra.mxu0 %v5980_v28  ;;  %v9312_v28 = vld [vmem:[%s11235_s6 + $0x18] sm:$0xff]   ;;  %v3710_v13 = vsel %vm3214_vm1, %v3594_v42, 0.0 }
 0x933   : > { %v3671_v63 = vpop.xlane.xlu1 %3670  ;;  %4169 = vmatprep.mubr.bf16.mxu0 %v12166_v54  ;;  %12167 = vst [vmem:[#allocation130_spill] sm:$0xff] %v9312_v28  ;;  %v3711_v37 = vadd.f32 %v3710_v13, %v3709_v45 }
 0x934   : > { %v3751_v18 = vsel %vm3214_vm1, %v3671_v63, 0.0 }
 0x935   : > { %v3597_v2 = vpop.xlane.xlu0 %3596  ;;  %v3752_v62 = vadd.f32 %v3751_v18, %v3750_v53 }
 0x936   : > { %v3712_v24 = vsel %vm3214_vm1, %v3597_v2, 0.0  ;;  %v9340_v2 = vld [vmem:[%s11235_s6 + $0x28] sm:$0xff]  }
 0x937   : > { %v3674_v7 = vpop.xlane.xlu1 %3673  ;;  %v3713_v57 = vadd.f32 %v3712_v24, %v3711_v37  ;;  %12169 = vst [vmem:[#allocation132_spill] sm:$0xff] %v9340_v2 }
 0x938   : > { %v3753_v43 = vsel %vm3214_vm1, %v3674_v7, 0.0 }
 0x939   : > { %v3754_v63 = vadd.f32 %v3753_v43, %v3752_v62  ;;  %v9353_v62 = vld [vmem:[%s11235_s6 + $0x30] sm:$0xff]  }
 0x93a   : > { %4170 = vmatmul.mubr.bf16.gmra.mxu0 %v9312_v28  ;;  %v3600_v26 = vpop.xlane.xlu0 %3599  ;;  %12170 = vst [vmem:[#allocation133_spill] sm:$0xff] %v9353_v62 }
 0x93b   : > { %4179 = vmatprep.mubr.bf16.mxu0 %v12166_v54  ;;  %v3714_v50 = vsel %vm3214_vm1, %v3600_v26, 0.0 }
 0x93c   : > { %v3715_v1 = vadd.f32 %v3714_v50, %v3713_v57 }
 0x93d   : > { %v3677_v14 = vpop.xlane.xlu1 %3676 }
 0x93e   : > { %v3603_v8 = vpop.xlane.xlu0 %3602  ;;  %v3755_v42 = vsel %vm3214_vm1, %v3677_v14, 0.0 }
 0x93f   : > { %v3716_v12 = vsel %vm3214_vm1, %v3603_v8, 0.0  ;;  %v3756_v35 = vadd.f32 %v3755_v42, %v3754_v63 }
 0x940   : > { %v3717_v26 = vadd.f32 %v3716_v12, %v3715_v1  ;;  %v3977_v1 = vld [vmem:[%s11236_s7 + $0x70] sm:$0xff] }
 0x941   : > { %v3680_v34 = vpop.xlane.xlu1 %3679 }
 0x942   : > { %4180 = vmatmul.mubr.bf16.gmra.mxu0 %v9325_v32  ;;  %v3606_v60 = vpop.xlane.xlu0 %3605  ;;  %v3757_v7 = vsel %vm3214_vm1, %v3680_v34, 0.0 }
 0x943   : > { %4189 = vmatprep.mubr.bf16.mxu0 %v12166_v54  ;;  %v3718_v38 = vsel %vm3214_vm1, %v3606_v60, 0.0  ;;  %v3758_v48 = vadd.f32 %v3757_v7, %v3756_v35  ;;  %v3975_v7 = vld [vmem:[%s11236_s7 + $0x60] sm:$0xff]  ;;  %v3976_v35 = vld [vmem:[%s11236_s7 + $0x68] sm:$0xff] }
 0x944   : > { %v3719_v45 = vadd.f32 %v3718_v38, %v3717_v26  ;;  %v3978_v38 = vld [vmem:[%s11236_s7 + $0x78] sm:$0xff] }
 0x945   : > { %v3683_v47 = vpop.xlane.xlu1 %3682  ;;  %v3974_v26 = vld [vmem:[%s11236_s7 + $0x58] sm:$0xff] }
 0x946   : > { %v3759_v36 = vsel %vm3214_vm1, %v3683_v47, 0.0  ;;  %v3609_v14 = vpop.xlane.xlu0 %3608  ;;  %v9362_v47 = vld [vmem:[%s11235_s6 + $0x38] sm:$0xff]  }
 0x947   : > { %v3720_v31 = vsel %vm3214_vm1, %v3609_v14, 0.0  ;;  %v3760_v8 = vadd.f32 %v3759_v36, %v3758_v48  ;;  %12171 = vst [vmem:[#allocation134_spill] sm:$0xff] %v9362_v47  ;;  %v3973_v36 = vld [vmem:[%s11236_s7 + $0x50] sm:$0xff]  ;;  %v3972_v14 = vld [vmem:[%s11236_s7 + $0x48] sm:$0xff]  ;;  %v3971_v48 = vld [vmem:[%s11236_s7 + $0x40] sm:$0xff] }
 0x948   : > { %v3721_v53 = vadd.f32 %v3720_v31, %v3719_v45  ;;  %v3970_v31 = vld [vmem:[%s11236_s7 + $0x38] sm:$0xff]  ;;  %v3968_v45 = vld [vmem:[%s11236_s7 + $0x28] sm:$0xff] }
 0x949   : > { %v3686_v13 = vpop.xlane.xlu1 %3685 }
 0x94a   : > { %4190 = vmatmul.mubr.bf16.gmra.mxu0 %v9340_v2  ;;  %v3761_v18 = vsel %vm3214_vm1, %v3686_v13, 0.0  ;;  %v3612_v24 = vpop.xlane.xlu0 %3611  ;;  %v3969_v13 = vld [vmem:[%s11236_s7 + $0x30] sm:$0xff] }
 0x94b   : > { %4199 = vmatprep.mubr.bf16.mxu0 %v12166_v54  ;;  %v3762_v34 = vadd.f32 %v3761_v18, %v3760_v8  ;;  %v3722_v37 = vsel %vm3214_vm1, %v3612_v24, 0.0  ;;  %v3967_v18 = vld [vmem:[%s11236_s7 + $0x20] sm:$0xff]  ;;  %v3966_v8 = vld [vmem:[%s11236_s7 + $0x18] sm:$0xff]  ;;  %v3964_v24 = vld [vmem:[%s11236_s7 + $0x8] sm:$0xff] }
 0x94c   : > { %v3723_v50 = vadd.f32 %v3722_v37, %v3721_v53  ;;  %v3965_v53 = vld [vmem:[%s11236_s7 + $0x10] sm:$0xff]  ;;  %v4446_v37 = vld [vmem:[%s11238_s9 + $0x8] sm:$0xff] }
 0x94d   : > { %v3689_v43 = vpop.xlane.xlu1 %3688 }
 0x94e   : > { %v3763_v57 = vsel %vm3214_vm1, %v3689_v43, 0.0  ;;  %3724 = vadd.xlane.f32.xlu1 %v3723_v50  ;;  %v3692_v60 = vpop.xlane.xlu0 %3691  ;;  %v4445_v43 = vld [vmem:[%s11238_s9] sm:$0xff]  ;;  %v4448_v50 = vld [vmem:[%s11238_s9 + $0x18] sm:$0xff] }
 0x94f   : > { %v3764_v42 = vadd.f32 %v3763_v57, %v3762_v34  ;;  %v3765_v63 = vsel %vm3214_vm1, %v3692_v60, 0.0  ;;  %v3963_v34 = vld [vmem:[%s11236_s7] sm:$0xff]  ;;  %v4447_v57 = vld [vmem:[%s11238_s9 + $0x10] sm:$0xff] }
 0x950   : > { %v4449_v60 = vld [vmem:[%s11238_s9 + $0x20] sm:$0xff] }
 0x951   : > { %v3766_v12 = vadd.f32 %v3765_v63, %v3764_v42  ;;  %v4450_v42 = vld [vmem:[%s11238_s9 + $0x28] sm:$0xff]  ;;  %v4452_v63 = vld [vmem:[%s11238_s9 + $0x38] sm:$0xff] }
 0x952   : > { %4200 = vmatmul.mubr.bf16.gmra.mxu0 %v9353_v62 }
 0x953   : > { %4209 = vmatprep.mubr.bf16.mxu0 %v12166_v54  ;;  %3767 = vadd.xlane.f32.xlu0 %v3766_v12  ;;  %v4451_v12 = vld [vmem:[%s11238_s9 + $0x30] sm:$0xff] }
 0x95a   : > { %4210 = vmatmul.mubr.bf16.gmra.mxu0 %v9362_v47 }
 0x95b   : > { %4621 = vmatprep.mubr.bf16.mxu0 %v12166_v54 }
 0x95f   : > { %4051 = vperm.xlu1 %5967, %v3977_v1   ;;  %v4454_v1 = vld [vmem:[%s11238_s9 + $0x48] sm:$0xff] }
 0x963   : > { %4041 = vperm.xlu1 %5967, %v3975_v7   ;;  %v4453_v7 = vld [vmem:[%s11238_s9 + $0x40] sm:$0xff] }
 0x967   : > { %4046 = vperm.xlu1 %5967, %v3976_v35   ;;  %v4456_v35 = vld [vmem:[%s11238_s9 + $0x58] sm:$0xff] }
 0x969   : > { %4056 = vperm.xlu0 %5966, %v3978_v38   ;;  %v4455_v38 = vld [vmem:[%s11238_s9 + $0x50] sm:$0xff] }
 0x96b   : > { %4036 = vperm.xlu1 %5967, %v3974_v26   ;;  %v4458_v26 = vld [vmem:[%s11238_s9 + $0x68] sm:$0xff] }
 0x96d   : > { %4031 = vperm.xlu0 %5966, %v3973_v36   ;;  %v4457_v36 = vld [vmem:[%s11238_s9 + $0x60] sm:$0xff] }
 0x96f   : > { %4026 = vperm.xlu1 %5967, %v3972_v14   ;;  %v4460_v14 = vld [vmem:[%s11238_s9 + $0x78] sm:$0xff] }
 0x971   : > { %4021 = vperm.xlu0 %5966, %v3971_v48   ;;  %v4459_v48 = vld [vmem:[%s11238_s9 + $0x70] sm:$0xff] }
 0x973   : > { %4016 = vperm.xlu1 %5967, %v3970_v31  }
 0x975   : > { %4011 = vperm.xlu0 %5966, %v3969_v13  }
 0x977   : > { %4006 = vperm.xlu1 %5967, %v3968_v45  }
 0x979   : > { %4001 = vperm.xlu0 %5966, %v3967_v18  }
 0x97b   : > { %3996 = vperm.xlu1 %5967, %v3966_v8  }
 0x97d   : > { %3991 = vperm.xlu0 %5966, %v3965_v53  }
 0x97f   : > { %3986 = vperm.xlu1 %5967, %v3964_v24  }
 0x981   : > { %3981 = vperm.xlu0 %5966, %v3963_v34  }
 0x983   : > { %4468 = vperm.xlu1 %5967, %v4446_v37  }
 0x985   : > { %4463 = vperm.xlu0 %5966, %v4445_v43  }
 0x987   : > { %4478 = vperm.xlu1 %5967, %v4448_v50  }
 0x989   : > { %4473 = vperm.xlu0 %5966, %v4447_v57  }
 0x98b   : > { %4488 = vperm.xlu1 %5967, %v4450_v42  }
 0x98d   : > { %4483 = vperm.xlu0 %5966, %v4449_v60  }
 0x98f   : > { %4498 = vperm.xlu1 %5967, %v4452_v63  }
 0x991   : > { %4493 = vperm.xlu0 %5966, %v4451_v12  }
 0x993   : > { %4508 = vperm.xlu1 %5967, %v4454_v1  }
 0x995   : > { %4503 = vperm.xlu0 %5966, %v4453_v7  }
 0x997   : > { %4518 = vperm.xlu1 %5967, %v4456_v35  }
 0x999   : > { %4513 = vperm.xlu0 %5966, %v4455_v38  }
 0x99b   : > { %4528 = vperm.xlu1 %5967, %v4458_v26  }
 0x99d   : > { %4523 = vperm.xlu0 %5966, %v4457_v36  }
 0x99f   : > { %4538 = vperm.xlu1 %5967, %v4460_v14  }
 0x9a1   : > { %4533 = vperm.xlu0 %5966, %v4459_v48  }
 0x9d7   : > { %v3725_v31 = vpop.xlane.xlu1 %3724 }
 0x9d8   : > { %v3726_v13 = vrot.slane %v3725_v31, 4 }
 0x9da   : > { %v3727_v45 = vadd.f32 %v3726_v13, %v3725_v31 }
 0x9db   : > { %v9462_v18 = vpop.permute.xlu1 %4051 }
 0x9dc   : > { %12172 = vst [vmem:[#allocation135_spill] sm:$0xff] %v9462_v18  ;;  %v3768_v8 = vpop.xlane.xlu0 %3767  ;;  %v3728_v24 = vrot.slane %v3727_v45, 2 }
 0x9dd   : > { %v3769_v53 = vrot.slane %v3768_v8, 4 }
 0x9de   : > { %v3729_v37 = vadd.f32 %v3728_v24, %v3727_v45 }
 0x9df   : > { %v3770_v34 = vadd.f32 %v3769_v53, %v3768_v8  ;;  %v9464_v50 = vpop.permute.xlu1 %4041 }
 0x9e0   : > { %v3730_v57 = vrot.slane %v3729_v37, 1 }
 0x9e1   : > { %v3771_v42 = vrot.slane %v3770_v34, 2 }
 0x9e2   : > { %v4141_v43 = vpop.f32.mrf.mxu0  ;;  %v3731_v63 = vadd.f32 %v3730_v57, %v3729_v37 }
 0x9e3   : > { %v3772_v12 = vadd.f32 %v3771_v42, %v3770_v34  ;;  %v9466_v7 = vpop.permute.xlu1 %4046 }
 0x9e4   : > { %v4143_v60 = vpop.f32.mrf.mxu0  ;;  %v9468_v35 = vpop.permute.xlu0 %4056  ;;  %5938 = vpush %v3731_v63 }
 0x9e5   : > { %12173 = vst [vmem:[#allocation136_spill] sm:$0xff] %v9468_v35  ;;  %v3773_v38 = vrot.slane %v3772_v12, 1 }
 0x9e6   : > { %v4145_v1 = vpop.f32.mrf.mxu0 }
 0x9e7   : > { %v3774_v36 = vadd.f32 %v3773_v38, %v3772_v12  ;;  %v9470_v48 = vpop.permute.xlu1 %4036 }
 0x9e8   : > { %v4147_v26 = vpop.f32.mrf.mxu0  ;;  %v9472_v31 = vpop.permute.xlu0 %4031 }
 0x9e9   : > { %5940 = vpush %v3774_v36 }
 0x9ea   : > { %v4151_v14 = vpop.f32.mrf.mxu0 }
 0x9eb   : > { %v9474_v8 = vpop.permute.xlu1 %4026 }
 0x9ec   : > { %v4153_v13 = vpop.f32.mrf.mxu0  ;;  %v9476_v53 = vpop.permute.xlu0 %4021 }
 0x9ee   : > { %v4155_v45 = vpop.f32.mrf.mxu0 }
 0x9ef   : > { %v9480_v37 = vpop.permute.xlu1 %4016 }
 0x9f0   : > { %v4157_v24 = vpop.f32.mrf.mxu0  ;;  %v9482_v57 = vpop.permute.xlu0 %4011 }
 0x9f2   : > { %v9478_v34 = vpop.f32.mrf.mxu0 }
 0x9f3   : > { %v9488_v12 = vpop.permute.xlu1 %4006 }
 0x9f4   : > { %v9484_v42 = vpop.f32.mrf.mxu0  ;;  %v9490_v38 = vpop.permute.xlu0 %4001 }
 0x9f6   : > { %v9486_v63 = vpop.f32.mrf.mxu0 }
 0x9f7   : > { %v9496_v62 = vpop.permute.xlu1 %3996 }
 0x9f8   : > { %v9492_v36 = vpop.f32.mrf.mxu0  ;;  %12174 = vst [vmem:[#allocation137_spill] sm:$0xff] %v9496_v62  ;;  %v4156_v2 = vadd.f32 %v4155_v45, %v9496_v62  ;;  %v4158_v32 = vadd.f32 %v4157_v24, %v9496_v62  ;;  %v9500_v28 = vpop.permute.xlu0 %3991 }
 0x9f9   : > { %12175 = vst [vmem:[#allocation138_spill] sm:$0xff] %v9500_v28  ;;  %v4152_v20 = vadd.f32 %v4151_v14, %v9500_v28  ;;  %v4154_v25 = vadd.f32 %v4153_v13, %v9500_v28 }
 0x9fa   : > { %v9494_v47 = vpop.f32.mrf.mxu0  ;;  %v4345_v19 = vmax.f32 %v4156_v2, 0.0  ;;  %v4346_v52 = vmax.f32 %v4158_v32, 0.0 }
 0x9fb   : > { %v4341_v49 = vmax.f32 %v4152_v20, 0.0  ;;  %v9508_v23 = vpop.permute.xlu1 %3986  ;;  %v4342_v39 = vmax.f32 %v4154_v25, 0.0 }
 0x9fc   : > { %v9502_v22 = vpop.f32.mrf.mxu0  ;;  %12176 = vst [vmem:[#allocation139_spill] sm:$0xff] %v9508_v23  ;;  %v4146_v45 = vadd.f32 %v4145_v1, %v9508_v23  ;;  %v4148_v24 = vadd.f32 %v4147_v26, %v9508_v23  ;;  %v9512_v62 = vpop.permute.xlu0 %3981 }
 0x9fd   : > { %12177 = vst [vmem:[#allocation140_spill] sm:$0xff] %v9512_v62  ;;  %v4142_v14 = vadd.f32 %v4141_v43, %v9512_v62  ;;  %v4144_v13 = vadd.f32 %v4143_v60, %v9512_v62  ;;  %v9518_v2 = vpack.c.bf16 %v4346_v52, %v4342_v39  ;;  %v9520_v20 = vpack.c.bf16 %v4345_v19, %v4341_v49 }
 0x9fe   : > { %v9506_v51 = vpop.f32.mrf.mxu0  ;;  %v4337_v28 = vmax.f32 %v4146_v45, 0.0  ;;  %v4338_v58 = vmax.f32 %v4148_v24, 0.0 }
 0x9ff   : > { %v4333_v25 = vmax.f32 %v4142_v14, 0.0  ;;  %v4334_v1 = vmax.f32 %v4144_v13, 0.0 }
 0xa00   : > { %v9514_v56 = vpop.f32.mrf.mxu0 }
 0xa01   : > { %v9524_v26 = vpack.c.bf16 %v4338_v58, %v4334_v1  ;;  %v9526_v23 = vpack.c.bf16 %v4337_v28, %v4333_v25 }
 0xa02   : > { %v9522_v32 = vpop.f32.mrf.mxu0 }
 0xa04   : > { %v4183_v59 = vpop.f32.mrf.mxu0 }
 0xa06   : > { %v4185_v6 = vpop.f32.mrf.mxu0 }
 0xa08   : > { %v4187_v0 = vpop.f32.mrf.mxu0 }
 0xa0a   : > { %v4191_v43 = vpop.f32.mrf.mxu0 }
 0xa0c   : > { %v4193_v33 = vpop.f32.mrf.mxu0 }
 0xa0e   : > { %v4195_v60 = vpop.f32.mrf.mxu0 }
 0xa10   : > { %v4197_v52 = vpop.f32.mrf.mxu0 }
 0xa11   : > { %v4198_v55 = vadd.f32 %v4197_v52, %v9470_v48 }
 0xa12   : > { %v4201_v39 = vpop.f32.mrf.mxu0 }
 0xa13   : > { %v4378_v52 = vmax.f32 %v4198_v55, 0.0  ;;  %v4182_v55 = vadd.f32 %v9522_v32, %v9476_v53 }
 0xa14   : > { %v4203_v49 = vpop.f32.mrf.mxu0 }
 0xa15   : > { %s5939_s19 = spop %5938  ;;  %v4204_v11 = vadd.f32 %v4203_v49, %v9464_v50 }
 0xa16   : > { %v4205_v19 = vpop.f32.mrf.mxu0  ;;  %s9528_s24 = smul.f32 3.0517578e-05, %s5939_s19 }
 0xa17   : > { %v4206_v30 = vadd.f32 %v4205_v19, %v9466_v7  ;;  %v4192_v19 = vadd.f32 %v4191_v43, %v9472_v31  ;;  %v4164_v43 = vadd.f32 %v9484_v42, %v9490_v38 }
 0xa18   : > { %v4207_v45 = vpop.f32.mrf.mxu0  ;;  %s3779_s20 = smul.f32 %s9528_s24, %s9528_s24 }
 0xa19   : > { %v4208_v13 = vadd.f32 %v4207_v45, %v9466_v7  ;;  %v4350_v42 = vmax.f32 %v4164_v43, 0.0 }
 0xa1a   : > { %v4211_v24 = vpop.f32.mrf.mxu0  ;;  %s5941_s22 = spop %5940 }
 0xa1b   : > { %s3778_s23 = smul.f32 3.0517578e-05, %s5941_s22  ;;  %v4212_v25 = vadd.f32 %v4211_v24, %v9462_v18  ;;  %v4386_v41 = vmax.f32 %v4208_v13, 0.0  ;;  %v4202_v24 = vadd.f32 %v4201_v39, %v9464_v50  ;;  %v4365_v13 = vmax.f32 %v4182_v55, 0.0  ;;  %v12183_v55 = vld [vmem:[#allocation13_spill] sm:$0xff] }
 0xa1c   : > { %v4213_v58 = vpop.f32.mrf.mxu0 }
 0xa1d   : > { %s3780_s30 = ssub.f32 %s3778_s23, %s3779_s20  ;;  %v4214_v1 = vadd.f32 %v4213_v58, %v9462_v18  ;;  %v4389_v17 = vmax.f32 %v4212_v25, 0.0  ;;  %v4194_v58 = vadd.f32 %v4193_v33, %v9472_v31  ;;  %v4382_v18 = vmax.f32 %v4204_v11, 0.0 }
 0xa1e   : > { %v4215_v28 = vpop.f32.mrf.mxu0  ;;  %v4186_v33 = vadd.f32 %v4185_v6, %v9474_v8  ;;  %v4176_v6 = vadd.f32 %v9506_v51, %v9480_v37  ;;  %v4166_v51 = vadd.f32 %v9486_v63, %v9488_v12  ;;  %v5987_v63 = vld [vmem:[%s11237_s8 + $0x8] sm:$0xff]  }
 0xa1f   : > { %s3814_s26 = sadd.f32 1e-05, %s3780_s30  ;;  %v4216_v61 = vadd.f32 %v4215_v28, %v9468_v35  ;;  %v4390_v5 = vmax.f32 %v4214_v1, 0.0  ;;  %v4385_v28 = vmax.f32 %v4206_v30, 0.0  ;;  %v4374_v39 = vmax.f32 %v4194_v58, 0.0 }
 0xa20   : > { %v4217_v14 = vpop.f32.mrf.mxu0  ;;  %v4162_v1 = vadd.f32 %v9478_v34, %v9490_v38  ;;  %v5986_v34 = vld [vmem:[%s11237_s8] sm:$0xff]  }
 0xa21   : > { %v3815_v62 = vstv %s3814_s26  ;;  %v4218_v40 = vadd.f32 %v4217_v14, %v9468_v35  ;;  %v4393_v15 = vmax.f32 %v4216_v61, 0.0  ;;  %v4188_v14 = vadd.f32 %v4187_v0, %v9474_v8 }
 0xa22   : > { %6380 = vrsqrt.f32 %v3815_v62  ;;  %v4196_v62 = vadd.f32 %v4195_v60, %v9470_v48  ;;  %v4438_v35 = vpack.c.bf16 %v4386_v41, %v4382_v18  ;;  %v4381_v61 = vmax.f32 %v4202_v24, 0.0 }
 0xa23   : > { %v4394_v45 = vmax.f32 %v4218_v40, 0.0  ;;  %v4441_v9 = vpack.c.bf16 %v4393_v15, %v4389_v17  ;;  %v4184_v40 = vadd.f32 %v4183_v59, %v9476_v53  ;;  %v4178_v17 = vadd.f32 %v9514_v56, %v9480_v37 }
 0xa24   : > { %v4437_v11 = vpack.c.bf16 %v4385_v28, %v4381_v61  ;;  %v4370_v30 = vmax.f32 %v4188_v14, 0.0  ;;  %v4434_v15 = vpack.c.bf16 %v4378_v52, %v4374_v39  ;;  %v4373_v41 = vmax.f32 %v4192_v19, 0.0  ;;  %v12179_v61 = vld [vmem:[#allocation7_spill] sm:$0xff]  ;;  %v12180_v39 = vld [vmem:[#allocation17_spill] sm:$0xff] }
 0xa25   : > { %v4442_v49 = vpack.c.bf16 %v4394_v45, %v4390_v5  ;;  %v4377_v5 = vmax.f32 %v4196_v62, 0.0  ;;  %v4366_v0 = vmax.f32 %v4184_v40, 0.0  ;;  %v4369_v18 = vmax.f32 %v4186_v33, 0.0 }
 0xa26   : > { %v4168_v56 = vadd.f32 %v9492_v36, %v9488_v12  ;;  %v4362_v32 = vmax.f32 %v4178_v17, 0.0  ;;  %v4361_v36 = vmax.f32 %v4176_v6, 0.0  ;;  %v4353_v62 = vmax.f32 %v4166_v51, 0.0  ;;  %v5990_v17 = vld [vmem:[%s11237_s8 + $0x20] sm:$0xff]  }
 0xa27   : > { %4589 = vmatprep.subr.bf16.mxu0 %v4442_v49  ;;  %v4430_v60 = vpack.c.bf16 %v4370_v30, %v4366_v0  ;;  %v4429_v45 = vpack.c.bf16 %v4369_v18, %v4365_v13  ;;  %v12182_v30 = vld [vmem:[#allocation12_spill] sm:$0xff]  ;;  %v12186_v18 = vld [vmem:[#allocation82_spill] sm:$0xff] }
 0xa28   : > { %4590 = vmatpush1.bf16.msra.mxu0 %v4441_v9  ;;  %v4174_v9 = vadd.f32 %v9502_v22, %v9482_v57  ;;  %v4172_v22 = vadd.f32 %v9494_v47, %v9482_v57  ;;  %v4354_v58 = vmax.f32 %v4168_v56, 0.0  ;;  %v4349_v47 = vmax.f32 %v4162_v1, 0.0  ;;  %v12187_v56 = vld [vmem:[#allocation83_spill] sm:$0xff]  ;;  %v12191_v1 = vld [vmem:[#allocation94_spill] sm:$0xff] }
 0xa29   : > { %4591 = vmatprep.subr.bf16.mxu0 %v4438_v35  ;;  %v4433_v35 = vpack.c.bf16 %v4377_v5, %v4373_v41  ;;  %v12181_v5 = vld [vmem:[#allocation80_spill] sm:$0xff] }
 0xa2a   : > { %v4358_v25 = vmax.f32 %v4174_v9, 0.0  ;;  %v4357_v49 = vmax.f32 %v4172_v22, 0.0  ;;  %v4422_v14 = vpack.c.bf16 %v4354_v58, %v4350_v42  ;;  %v4421_v52 = vpack.c.bf16 %v4353_v62, %v4349_v47  ;;  %v12184_v9 = vld [vmem:[#allocation95_spill] sm:$0xff]  ;;  %v12189_v22 = vld [vmem:[#allocation64_spill] sm:$0xff]  ;;  %v12194_v62 = vld [vmem:[#allocation69_spill] sm:$0xff] }
 0xa2b   : > { %v12193_v58 = vld [vmem:[#allocation84_spill] sm:$0xff] }
 0xa2c   : > { %4592 = vmatpush1.bf16.msra.mxu0 %v4437_v11  ;;  %v4426_v24 = vpack.c.bf16 %v4362_v32, %v4358_v25  ;;  %v4425_v28 = vpack.c.bf16 %v4361_v36, %v4357_v49  ;;  %v12188_v32 = vld [vmem:[#allocation65_spill] sm:$0xff]  ;;  %v12190_v25 = vld [vmem:[#allocation67_spill] sm:$0xff] }
 0xa2d   : > { %4593 = vmatprep.subr.bf16.mxu0 %v4434_v15 }
 0xa2f   : > { %v6381_v59 = vpop.eup %6380 }
 0xa30   : > { %5942 = vpush %v6381_v59  ;;  %4594 = vmatpush1.bf16.msra.mxu0 %v4433_v35  ;;  %v12185_v59 = vld [vmem:[#allocation10_spill] sm:$0xff] }
 0xa31   : > { %4595 = vmatprep.subr.bf16.mxu0 %v4430_v60 }
 0xa34   : > { %4596 = vmatpush1.bf16.msra.mxu0 %v4429_v45  ;;  %v12192_v45 = vld [vmem:[#allocation66_spill] sm:$0xff] }
 0xa35   : > { %4597 = vmatprep.subr.bf16.mxu0 %v4426_v24 }
 0xa38   : > { %4598 = vmatpush1.bf16.msra.mxu0 %v4425_v28  ;;  %v12195_v28 = vld [vmem:[#allocation74_spill] sm:$0xff] }
 0xa39   : > { %4599 = vmatprep.subr.bf16.mxu0 %v4422_v14 }
 0xa3c   : > { %4600 = vmatpush1.bf16.msra.mxu0 %v4421_v52  ;;  %v12196_v52 = vld [vmem:[#allocation77_spill] sm:$0xff] }
 0xa3d   : > { %4601 = vmatprep.subr.bf16.mxu0 %v9518_v2  ;;  %v5988_v2 = vld [vmem:[%s11237_s8 + $0x10] sm:$0xff]  }
 0xa40   : > { %4602 = vmatpush1.bf16.msra.mxu0 %v9520_v20  ;;  %v9585_v20 = vstv %s9528_s24 }
 0xa41   : > { %4603 = vmatprep.subr.bf16.mxu0 %v9524_v26  ;;  %v12178_v26 = vld [vmem:[#allocation15_spill] sm:$0xff]  ;;  %v3795_v6 = vsub.f32 %v12185_v59, %v9585_v20  ;;  %v3797_v43 = vsub.f32 %v12187_v56, %v9585_v20  ;;  %v3798_v60 = vsub.f32 %v12188_v32, %v9585_v20  ;;  %v3799_v13 = vsub.f32 %v12189_v22, %v9585_v20  ;;  %v12200_v22 = vld [vmem:[#allocation88_spill] sm:$0xff] }
 0xa42   : > { %v3800_v51 = vsub.f32 %v12190_v25, %v9585_v20  ;;  %v3801_v36 = vsub.f32 %v12191_v1, %v9585_v20  ;;  %v3802_v24 = vsub.f32 %v12192_v45, %v9585_v20  ;;  %v3803_v49 = vsub.f32 %v12193_v58, %v9585_v20  ;;  %v12199_v56 = vld [vmem:[#allocation75_spill] sm:$0xff]  ;;  %v12202_v58 = vld [vmem:[#allocation72_spill] sm:$0xff] }
 0xa43   : > { %v3804_v47 = vsub.f32 %v12194_v62, %v9585_v20  ;;  %v3810_v14 = vsub.f32 %v12195_v28, %v9585_v20  ;;  %v3811_v32 = vsub.f32 %v12199_v56, %v9585_v20  ;;  %v3813_v25 = vsub.f32 %v12200_v22, %v9585_v20  ;;  %v12201_v1 = vld [vmem:[#allocation71_spill] sm:$0xff]  ;;  %v12203_v22 = vld [vmem:[#allocation68_spill] sm:$0xff] }
 0xa44   : > { %4604 = vmatpush1.bf16.msra.mxu0 %v9526_v23  ;;  %v5989_v23 = vld [vmem:[%s11237_s8 + $0x18] sm:$0xff]   ;;  %v3806_v45 = vsub.f32 %v12201_v1, %v9585_v20  ;;  %v3805_v40 = vsub.f32 %v12203_v22, %v9585_v20 }
 0xa47   : > { %4622 = vmatmul.mubr.bf16.vlgmr.msra.gmra.mxu0 %v5986_v34  ;;  %v3812_v34 = vsub.f32 %v12196_v52, %v9585_v20 }
 0xa48   : > { %4631 = vmatprep.mubr.bf16.mxu0 %v12166_v54 }
 0xa4f   : > { %4632 = vmatmul.mubr.bf16.gmra.mxu0 %v5987_v63  ;;  %v12197_v63 = vld [vmem:[#allocation70_spill] sm:$0xff] }
 0xa50   : > { %4641 = vmatprep.mubr.bf16.mxu0 %v12166_v54 }
 0xa57   : > { %4642 = vmatmul.mubr.bf16.gmra.mxu0 %v5988_v2  ;;  %v3807_v2 = vsub.f32 %v12197_v63, %v9585_v20 }
 0xa58   : > { %4651 = vmatprep.mubr.bf16.mxu0 %v12166_v54 }
 0xa5f   : > { %4652 = vmatmul.mubr.bf16.gmra.mxu0 %v5989_v23  ;;  %v12198_v23 = vld [vmem:[#allocation73_spill] sm:$0xff] }
 0xa60   : > { %4661 = vmatprep.mubr.bf16.mxu0 %v12166_v54  ;;  %v3809_v59 = vsub.f32 %v12198_v23, %v9585_v20 }
 0xa61   : > { %s5943_s19 = spop %5942 }
 0xa62   : > { %v9621_v42 = vstv %s5943_s19 }
 0xa63   : > { %v3847_v62 = vmul.f32 %v9621_v42, %v3810_v14  ;;  %v3849_v28 = vmul.f32 %v9621_v42, %v3812_v34  ;;  %v3844_v52 = vmul.f32 %v9621_v42, %v3807_v2  ;;  %v3846_v63 = vmul.f32 %v9621_v42, %v3809_v59  ;;  %v5991_v14 = vld [vmem:[%s11237_s8 + $0x28] sm:$0xff]  }
 0xa64   : > { %v3848_v23 = vmul.f32 %v9621_v42, %v3811_v32  ;;  %v3850_v56 = vmul.f32 %v9621_v42, %v3813_v25  ;;  %v3832_v1 = vmul.f32 %v9621_v42, %v3795_v6  ;;  %v3843_v19 = vmul.f32 %v9621_v42, %v3806_v45 }
 0xa65   : > { %v3836_v34 = vmul.f32 %v9621_v42, %v3799_v13  ;;  %v3838_v2 = vmul.f32 %v9621_v42, %v3801_v36  ;;  %v3839_v59 = vmul.f32 %v9621_v42, %v3802_v24  ;;  %v3840_v32 = vmul.f32 %v9621_v42, %v3803_v49 }
 0xa66   : > { %v3841_v25 = vmul.f32 %v9621_v42, %v3804_v47  ;;  %v3842_v6 = vmul.f32 %v9621_v42, %v3805_v40  ;;  %v3879_v45 = vmul.f32 %v3847_v62, %v8834_v4  ;;  %v3880_v22 = vmul.f32 %v3848_v23, %v8841_v21  ;;  %v12205_v40 = vld [vmem:[#allocation48_spill] sm:$0xff]  ;;  %v12209_v23 = vld [vmem:[#allocation25_spill] sm:$0xff] }
 0xa67   : > { %4662 = vmatmul.mubr.bf16.gmra.mxu0 %v5990_v17  ;;  %v3808_v17 = vsub.f32 %v12202_v58, %v9585_v20  ;;  %v3882_v11 = vmul.f32 %v3850_v56, %v8843_v3  ;;  %v3876_v13 = vmul.f32 %v3844_v52, %v8859_v10  ;;  %v3878_v36 = vmul.f32 %v3846_v63, %v8864_v44  ;;  %v12211_v52 = vld [vmem:[#allocation49_spill] sm:$0xff]  ;;  %v12246_v10 = vld [vmem:[#allocation36_spill] sm:$0xff] }
 0xa68   : > { %4671 = vmatprep.mubr.bf16.mxu0 %v12166_v54  ;;  %v3875_v24 = vmul.f32 %v3843_v19, %v8830_v46  ;;  %v9673_v47 = vadd.f32 %v3879_v45, %v8845_v16  ;;  %v12213_v63 = vld [vmem:[#allocation29_spill] sm:$0xff]  ;;  %v12215_v45 = vld [vmem:[#allocation27_spill] sm:$0xff]  ;;  %v3837_v41 = vmul.f32 %v9621_v42, %v3800_v51  ;;  %v12231_v4 = vsub.f32 %v12182_v30, %v9585_v20 }
 0xa69   : > { %v3845_v58 = vmul.f32 %v9621_v42, %v3808_v17  ;;  %v3881_v17 = vmul.f32 %v3849_v28, %v8839_v29  ;;  %v12207_v28 = vld [vmem:[#allocation23_spill] sm:$0xff]  ;;  %v9682_v56 = vadd.f32 %v3882_v11, %v12209_v23  ;;  %v9685_v35 = vadd.f32 %v3876_v13, %v12211_v52  ;;  %v12217_v13 = vld [vmem:[#allocation16_spill] sm:$0xff]  ;;  %v12223_v51 = vld [vmem:[#allocation61_spill] sm:$0xff] }
 0xa6a   : > { %12204 = vst [vmem:[#allocation15_spill] sm:$0xff] %v9673_v47  ;;  %v9679_v33 = vadd.f32 %v3880_v22, %v12207_v28  ;;  %v9688_v19 = vadd.f32 %v3878_v36, %v12213_v63  ;;  %v12216_v22 = vld [vmem:[#allocation28_spill] sm:$0xff]  ;;  %v3835_v11 = vmul.f32 %v9621_v42, %v3798_v60  ;;  %v3871_v15 = vmul.f32 %v3839_v59, %v12217_v13  ;;  %v12218_v23 = vld [vmem:[#allocation47_spill] sm:$0xff]  ;;  %v12219_v28 = vld [vmem:[#allocation22_spill] sm:$0xff] }
 0xa6b   : > { %v3877_v49 = vmul.f32 %v3845_v58, %v8832_v27  ;;  %v9676_v62 = vadd.f32 %v3881_v17, %v12205_v40  ;;  %12210 = vst [vmem:[#allocation80_spill] sm:$0xff] %v9682_v56  ;;  %12212 = vst [vmem:[#allocation12_spill] sm:$0xff] %v9685_v35  ;;  %v3834_v58 = vmul.f32 %v9621_v42, %v3797_v43  ;;  %v5992_v60 = vld [vmem:[%s11237_s8 + $0x30] sm:$0xff]  }
 0xa6c   : > { %12208 = vst [vmem:[#allocation17_spill] sm:$0xff] %v9679_v33  ;;  %12214 = vst [vmem:[#allocation13_spill] sm:$0xff] %v9688_v19  ;;  %v3872_v17 = vmul.f32 %v3840_v32, %v12215_v45  ;;  %v3874_v0 = vmul.f32 %v3842_v6, %v12216_v22  ;;  %v3946_v36 = vpack.c.bf16 %v9682_v56, %v9679_v33  ;;  %v12221_v32 = vld [vmem:[#allocation50_spill] sm:$0xff]  ;;  %v12228_v29 = vld [vmem:[#allocation32_spill] sm:$0xff] }
 0xa6d   : > { %12206 = vst [vmem:[#allocation7_spill] sm:$0xff] %v9676_v62  ;;  %v3873_v40 = vmul.f32 %v3841_v25, %v12218_v23  ;;  %v3942_v43 = vpack.c.bf16 %v9688_v19, %v9685_v35  ;;  %v9705_v16 = vadd.f32 %v3875_v24, %v12219_v28  ;;  %v9708_v63 = vadd.f32 %v3877_v49, %v12221_v32  ;;  %v12225_v6 = vld [vmem:[#allocation46_spill] sm:$0xff]  ;;  %v12227_v25 = vld [vmem:[#allocation33_spill] sm:$0xff]  ;;  %v12230_v49 = vld [vmem:[#allocation63_spill] sm:$0xff] }
 0xa6e   : > { %4220 = vmatprep.subr.bf16.mxu1 %v3946_v36  ;;  %v9714_v59 = vadd.f32 %v3872_v17, %v12223_v51  ;;  %v9717_v52 = vadd.f32 %v3874_v0, %v12225_v6  ;;  %v3868_v3 = vmul.f32 %v3836_v34, %v12227_v25  ;;  %v3870_v21 = vmul.f32 %v3838_v2, %v12228_v29  ;;  %v12229_v24 = vld [vmem:[#allocation81_spill] sm:$0xff]  ;;  %v12236_v51 = vld [vmem:[#allocation52_spill] sm:$0xff]  ;;  %v12255_v45 = vld [vmem:[#allocation35_spill] sm:$0xff] }
 0xa6f   : > { %4672 = vmatmul.mubr.bf16.gmra.mxu0 %v5991_v14  ;;  %v3945_v14 = vpack.c.bf16 %v9676_v62, %v9673_v47  ;;  %12220 = vst [vmem:[#allocation95_spill] sm:$0xff] %v9705_v16  ;;  %12222 = vst [vmem:[#allocation10_spill] sm:$0xff] %v9708_v63  ;;  %v3790_v28 = vsub.f32 %v12229_v24, %v9585_v20  ;;  %v3792_v32 = vsub.f32 %v12230_v49, %v9585_v20  ;;  %v12235_v6 = vld [vmem:[#allocation89_spill] sm:$0xff] }
 0xa70   : > { %4681 = vmatprep.mubr.bf16.mxu0 %v12166_v54  ;;  %12224 = vst [vmem:[#allocation82_spill] sm:$0xff] %v9714_v59  ;;  %12226 = vst [vmem:[#allocation83_spill] sm:$0xff] %v9717_v52  ;;  %v3828_v36 = vmul.f32 %v9621_v42, %v12231_v4  ;;  %v12232_v17 = vsub.f32 %v12183_v55, %v9585_v20  ;;  %v12233_v34 = vsub.f32 %v12184_v9, %v9585_v20  ;;  %v12239_v9 = vld [vmem:[#allocation31_spill] sm:$0xff]  ;;  %v12252_v22 = vld [vmem:[#allocation85_spill] sm:$0xff] }
 0xa71   : > { %4221 = vmatpush1.bf16.msra.mxu1 %v3945_v14  ;;  %v12234_v24 = vsub.f32 %v12186_v18, %v9585_v20  ;;  %v3867_v30 = vmul.f32 %v3835_v11, %v12235_v6  ;;  %v3869_v4 = vmul.f32 %v3837_v41, %v12236_v51  ;;  %v3941_v55 = vpack.c.bf16 %v9708_v63, %v9705_v16  ;;  %v12237_v14 = vld [vmem:[#allocation26_spill] sm:$0xff]  ;;  %v12244_v41 = vld [vmem:[#allocation60_spill] sm:$0xff] }
 0xa72   : > { %v3830_v0 = vmul.f32 %v9621_v42, %v12232_v17  ;;  %v3831_v2 = vmul.f32 %v9621_v42, %v12233_v34  ;;  %4222 = vmatprep.subr.bf16.mxu1 %v3942_v43  ;;  %v9746_v17 = vadd.f32 %v3871_v15, %v12237_v14  ;;  %v9749_v44 = vadd.f32 %v3873_v40, %v12239_v9  ;;  %v12241_v34 = vld [vmem:[#allocation37_spill] sm:$0xff]  ;;  %v12247_v15 = vld [vmem:[#allocation11_spill] sm:$0xff]  ;;  %v12267_v6 = vld [vmem:[#allocation92_spill] sm:$0xff] }
 0xa73   : > { %v3833_v49 = vmul.f32 %v9621_v42, %v12234_v24  ;;  %v3864_v27 = vmul.f32 %v3832_v1, %v12241_v34  ;;  %v3938_v18 = vpack.c.bf16 %v9717_v52, %v9714_v59  ;;  %v12242_v24 = vld [vmem:[#allocation54_spill] sm:$0xff]  ;;  %v9758_v43 = vadd.f32 %v3870_v21, %v12244_v41  ;;  %v12248_v40 = vld [vmem:[#allocation9_spill] sm:$0xff] }
 0xa74   : > { %12238 = vst [vmem:[#allocation65_spill] sm:$0xff] %v9746_v17  ;;  %12240 = vst [vmem:[#allocation64_spill] sm:$0xff] %v9749_v44  ;;  %v9755_v11 = vadd.f32 %v3868_v3, %v12242_v24  ;;  %v3866_v46 = vmul.f32 %v3834_v58, %v12246_v10  ;;  %v3788_v9 = vsub.f32 %v12248_v40, %v9585_v20  ;;  %v12251_v24 = vld [vmem:[#allocation78_spill] sm:$0xff] }
 0xa75   : > { %12245 = vst [vmem:[#allocation94_spill] sm:$0xff] %v9758_v43  ;;  %v12249_v1 = vsub.f32 %v12180_v39, %v9585_v20  ;;  %v12250_v3 = vsub.f32 %v12181_v5, %v9585_v20  ;;  %4223 = vmatpush1.bf16.msra.mxu1 %v3941_v55  ;;  %v3827_v58 = vmul.f32 %v9621_v42, %v3790_v28  ;;  %v12253_v40 = vld [vmem:[#allocation30_spill] sm:$0xff]  ;;  %v9792_v28 = vld [vmem:[%s11237_s8 + $0x38] sm:$0xff]  }
 0xa76   : > { %12243 = vst [vmem:[#allocation67_spill] sm:$0xff] %v9755_v11  ;;  %v3829_v41 = vmul.f32 %v9621_v42, %v3792_v32  ;;  %v3865_v23 = vmul.f32 %v3833_v49, %v12252_v22  ;;  %4224 = vmatprep.subr.bf16.mxu1 %v3938_v18  ;;  %v3937_v39 = vpack.c.bf16 %v9749_v44, %v9746_v17  ;;  %v12260_v18 = vld [vmem:[#allocation41_spill] sm:$0xff]  ;;  %v12276_v22 = vld [vmem:[#allocation42_spill] sm:$0xff] }
 0xa77   : > { %4682 = vmatmul.mubr.bf16.gmra.mxu0 %v5992_v60  ;;  %v3786_v60 = vsub.f32 %v12247_v15, %v9585_v20  ;;  %v3824_v14 = vmul.f32 %v9621_v42, %v12249_v1  ;;  %v3826_v21 = vmul.f32 %v9621_v42, %v12250_v3  ;;  %v3863_v15 = vmul.f32 %v3831_v2, %v12251_v24  ;;  %v12257_v3 = vld [vmem:[#allocation56_spill] sm:$0xff]  ;;  %v12258_v2 = vld [vmem:[#allocation58_spill] sm:$0xff] }
 0xa78   : > { %4691 = vmatprep.mubr.bf16.mxu0 %v12166_v54  ;;  %v9781_v1 = vadd.f32 %v3867_v30, %v12253_v40  ;;  %v9784_v5 = vadd.f32 %v3869_v4, %v12255_v45  ;;  %v9787_v55 = vadd.f32 %v3864_v27, %v12257_v3  ;;  %v3934_v32 = vpack.c.bf16 %v9758_v43, %v9755_v11  ;;  %v12261_v40 = vld [vmem:[#allocation38_spill] sm:$0xff]  ;;  %v12263_v27 = vld [vmem:[#allocation8_spill] sm:$0xff] }
 0xa79   : > { %v9797_v49 = vadd.f32 %v3866_v46, %v12258_v2  ;;  %v3860_v30 = vmul.f32 %v3828_v36, %v12260_v18  ;;  %v3862_v13 = vmul.f32 %v3830_v0, %v12261_v40  ;;  %v12262_v4 = vld [vmem:[#allocation6_spill] sm:$0xff]  ;;  %v3784_v3 = vsub.f32 %v12263_v27, %v9585_v20  ;;  %4225 = vmatpush1.bf16.msra.mxu1 %v3937_v39  ;;  %v12266_v2 = vld [vmem:[#allocation91_spill] sm:$0xff]  ;;  %v12283_v40 = vld [vmem:[#allocation96_spill] sm:$0xff] }
 0xa7a   : > { %12254 = vst [vmem:[#allocation66_spill] sm:$0xff] %v9781_v1  ;;  %12256 = vst [vmem:[#allocation84_spill] sm:$0xff] %v9784_v5  ;;  %v3782_v45 = vsub.f32 %v12262_v4, %v9585_v20  ;;  %v12264_v29 = vsub.f32 %v12178_v26, %v9585_v20  ;;  %v12265_v25 = vsub.f32 %v12179_v61, %v9585_v20  ;;  %4226 = vmatprep.subr.bf16.mxu1 %v3934_v32  ;;  %v12269_v20 = vld [vmem:[#allocation39_spill] sm:$0xff]  ;;  %v12289_v18 = vld [vmem:[#allocation76_spill] sm:$0xff] }
 0xa7b   : > { %12259 = vst [vmem:[#allocation69_spill] sm:$0xff] %v9797_v49  ;;  %v3823_v36 = vmul.f32 %v9621_v42, %v3786_v60  ;;  %v3825_v0 = vmul.f32 %v9621_v42, %v3788_v9  ;;  %v3859_v4 = vmul.f32 %v3827_v58, %v12266_v2  ;;  %v3861_v10 = vmul.f32 %v3829_v41, %v12267_v6  ;;  %v12272_v58 = vld [vmem:[#allocation43_spill] sm:$0xff]  ;;  %v12274_v41 = vld [vmem:[#allocation45_spill] sm:$0xff]  ;;  %v12293_v2 = vld [vmem:[#allocation40_spill] sm:$0xff] }
 0xa7c   : > { %v3820_v51 = vmul.f32 %v9621_v42, %v12264_v29  ;;  %v3822_v46 = vmul.f32 %v9621_v42, %v12265_v25  ;;  %v3933_v26 = vpack.c.bf16 %v9784_v5, %v9781_v1  ;;  %v12268_v29 = vld [vmem:[#allocation34_spill] sm:$0xff]  ;;  %v9824_v61 = vadd.f32 %v3865_v23, %v12269_v20  ;;  %v12271_v25 = vld [vmem:[#allocation44_spill] sm:$0xff] }
 0xa7d   : > { %v9821_v27 = vadd.f32 %v3863_v15, %v12268_v29  ;;  %v3856_v60 = vmul.f32 %v3824_v14, %v12271_v25  ;;  %v3930_v9 = vpack.c.bf16 %v9797_v49, %v9787_v55  ;;  %v9830_v39 = vadd.f32 %v3860_v30, %v12272_v58  ;;  %v12277_v20 = vld [vmem:[#allocation90_spill] sm:$0xff]  ;;  %v12278_v29 = vld [vmem:[#allocation79_spill] sm:$0xff] }
 0xa7e   : > { %12270 = vst [vmem:[#allocation74_spill] sm:$0xff] %v9824_v61  ;;  %v9833_v32 = vadd.f32 %v3862_v13, %v12274_v41  ;;  %v3858_v34 = vmul.f32 %v3826_v21, %v12276_v22  ;;  %4227 = vmatpush1.bf16.msra.mxu1 %v3933_v26  ;;  %v3819_v15 = vmul.f32 %v9621_v42, %v3782_v45  ;;  %v12279_v58 = vld [vmem:[#allocation59_spill] sm:$0xff]  ;;  %v12285_v45 = vld [vmem:[#allocation97_spill] sm:$0xff] }
 0xa7f   : > { %4692 = vmatmul.mubr.bf16.gmra.mxu0 %v9792_v28  ;;  %12273 = vst [vmem:[#allocation77_spill] sm:$0xff] %v9830_v39  ;;  %v3821_v23 = vmul.f32 %v9621_v42, %v3784_v3  ;;  %v3855_v14 = vmul.f32 %v3823_v36, %v12277_v20  ;;  %v3857_v24 = vmul.f32 %v3825_v0, %v12278_v29  ;;  %v12281_v41 = vld [vmem:[#allocation51_spill] sm:$0xff]  ;;  %v12287_v36 = vld [vmem:[#allocation98_spill] sm:$0xff]  ;;  %v12311_v20 = vld [vmem:[#allocation129_spill] sm:$0xff] }
 0xa80   : > { %12275 = vst [vmem:[#allocation70_spill] sm:$0xff] %v9833_v32  ;;  %4734 = vmatprep.mubr.bf16.mxu0 %v12166_v54  ;;  %4228 = vmatprep.subr.bf16.mxu1 %v3930_v9  ;;  %v3929_v30 = vpack.c.bf16 %v9824_v61, %v9821_v27  ;;  %v9844_v13 = vadd.f32 %v3859_v4, %v12279_v58  ;;  %v12288_v9 = vld [vmem:[#allocation99_spill] sm:$0xff]  ;;  %v12290_v58 = vld [vmem:[#allocation93_spill] sm:$0xff] }
 0xa81   : > { %v9847_v21 = vadd.f32 %v3861_v10, %v12281_v41  ;;  %v9850_v26 = vadd.f32 %v3856_v60, %v12283_v40  ;;  %v3926_v42 = vpack.c.bf16 %v9833_v32, %v9830_v39  ;;  %v9855_v3 = vadd.f32 %v3858_v34, %v12285_v45  ;;  %v12291_v41 = vld [vmem:[#allocation116_spill] sm:$0xff]  ;;  %v12295_v34 = vld [vmem:[#allocation117_spill] sm:$0xff]  ;;  %v12299_v45 = vld [vmem:[#allocation123_spill] sm:$0xff] }
 0xa82   : > { %12280 = vst [vmem:[#allocation73_spill] sm:$0xff] %v9844_v13  ;;  %v3852_v0 = vmul.f32 %v3820_v51, %v12287_v36  ;;  %v3854_v6 = vmul.f32 %v3822_v46, %v12288_v9  ;;  %4229 = vmatpush1.bf16.msra.mxu1 %v3929_v30  ;;  %v3851_v4 = vmul.f32 %v3819_v15, %v12289_v18  ;;  %v12296_v30 = vld [vmem:[#allocation118_spill] sm:$0xff] }
 0xa83   : > { %12282 = vst [vmem:[#allocation75_spill] sm:$0xff] %v9847_v21  ;;  %12284 = vst [vmem:[#allocation88_spill] sm:$0xff] %v9850_v26  ;;  %4230 = vmatprep.subr.bf16.mxu1 %v3926_v42  ;;  %v3853_v10 = vmul.f32 %v3821_v23, %v12290_v58  ;;  %v3925_v60 = vpack.c.bf16 %v9847_v21, %v9844_v13  ;;  %v9864_v40 = vadd.f32 %v3855_v14, %v12291_v41  ;;  %v12298_v42 = vld [vmem:[#allocation122_spill] sm:$0xff]  ;;  %v9915_v41 = vpop.permute.xlu1 %4468 }
 0xa84   : > { %12286 = vst [vmem:[#allocation71_spill] sm:$0xff] %v9855_v3  ;;  %v9867_v22 = vadd.f32 %v3857_v24, %v12293_v2  ;;  %v3922_v51 = vpack.c.bf16 %v9855_v3, %v9850_v26  ;;  %v9872_v46 = vadd.f32 %v3852_v0, %v12295_v34  ;;  %v9875_v15 = vadd.f32 %v3854_v6, %v12296_v30  ;;  %v6450_v0 = vld [vmem:[%s11235_s6] sm:$0xff]   ;;  %v12306_v30 = vld [vmem:[#allocation128_spill] sm:$0xff] }
 0xa85   : > { %12292 = vst [vmem:[#allocation72_spill] sm:$0xff] %v9864_v40  ;;  %v9880_v14 = vadd.f32 %v3851_v4, %v12298_v42  ;;  %v9883_v24 = vadd.f32 %v3853_v10, %v12299_v45  ;;  %v6451_v4 = vld [vmem:[%s11235_s6 + $0x8] sm:$0xff]   ;;  %v12301_v10 = vld [vmem:[#allocation130_spill] sm:$0xff] }
 0xa86   : > { %12294 = vst [vmem:[#allocation68_spill] sm:$0xff] %v9867_v22  ;;  %12297 = vst [vmem:[#allocation81_spill] sm:$0xff] %v9875_v15  ;;  %4231 = vmatpush1.bf16.msra.mxu1 %v3925_v60  ;;  %v3921_v23 = vpack.c.bf16 %v9867_v22, %v9864_v40  ;;  %v3918_v2 = vpack.c.bf16 %v9875_v15, %v9872_v46  ;;  %v12302_v60 = vld [vmem:[#allocation131_spill] sm:$0xff]  ;;  %v12387_v22 = vld [vmem:[#allocation136_spill] sm:$0xff] }
 0xa87   : > { %4232 = vmatprep.subr.bf16.mxu1 %v3922_v51  ;;  %12300 = vst [vmem:[#allocation63_spill] sm:$0xff] %v9883_v24  ;;  %v3917_v6 = vpack.c.bf16 %v9883_v24, %v9880_v14  ;;  %v12303_v51 = vld [vmem:[#allocation132_spill] sm:$0xff] }
 0xa8a   : > { %4233 = vmatpush1.bf16.msra.mxu1 %v3921_v23  ;;  %v12304_v23 = vld [vmem:[#allocation133_spill] sm:$0xff] }
 0xa8b   : > { %4234 = vmatprep.subr.bf16.mxu1 %v3918_v2  ;;  %v6452_v2 = vld [vmem:[%s11235_s6 + $0x10] sm:$0xff]  }
 0xa8e   : > { %4235 = vmatpush1.bf16.msra.mxu1 %v3917_v6  ;;  %v12305_v6 = vld [vmem:[#allocation134_spill] sm:$0xff] }
 0xa91   : > { %4253 = vmatmul.mubr.bf16.vlgmr.msra.gmra.mxu1 %v6450_v0  ;;  %v9911_v0 = vpop.permute.xlu0 %4463 }
 0xa92   : > { %4262 = vmatprep.mubr.bf16.mxu1 %v12166_v54 }
 0xa95   : > { %v9929_v25 = vpop.permute.xlu0 %4473 }
 0xa96   : > { %12310 = vst [vmem:[#allocation6_spill] sm:$0xff] %v9929_v25 }
 0xa99   : > { %4263 = vmatmul.mubr.bf16.gmra.mxu1 %v6451_v4  ;;  %v9961_v56 = vpop.permute.xlu0 %4483 }
 0xa9a   : > { %4272 = vmatprep.mubr.bf16.mxu1 %v12166_v54  ;;  %12320 = vst [vmem:[#allocation134_spill] sm:$0xff] %v9961_v56 }
 0xa9d   : > { %v9993_v33 = vpop.permute.xlu0 %4493 }
 0xaa1   : > { %4273 = vmatmul.mubr.bf16.gmra.mxu1 %v6452_v2  ;;  %v10025_v19 = vpop.permute.xlu0 %4503 }
 0xaa2   : > { %4282 = vmatprep.mubr.bf16.mxu1 %v12166_v54 }
 0xaa5   : > { %v10057_v35 = vpop.permute.xlu0 %4513 }
 0xaa9   : > { %4283 = vmatmul.mubr.bf16.gmra.mxu1 %v12301_v10  ;;  %v10089_v52 = vpop.permute.xlu0 %4523 }
 0xaaa   : > { %4292 = vmatprep.mubr.bf16.mxu1 %v12166_v54 }
 0xaad   : > { %v10121_v21 = vpop.permute.xlu0 %4533 }
 0xaae   : > { %12368 = vst [vmem:[#allocation142_spill] sm:$0xff] %v10121_v21 }
 0xab1   : > { %4293 = vmatmul.mubr.bf16.gmra.mxu1 %v12302_v60 }
 0xab2   : > { %4302 = vmatprep.mubr.bf16.mxu1 %v12166_v54 }
 0xab9   : > { %4303 = vmatmul.mubr.bf16.gmra.mxu1 %v12303_v51 }
 0xaba   : > { %4312 = vmatprep.mubr.bf16.mxu1 %v12166_v54 }
 0xac1   : > { %4313 = vmatmul.mubr.bf16.gmra.mxu1 %v12304_v23  ;;  %v12308_v23 = vld [vmem:[#allocation126_spill] sm:$0xff] }
 0xac2   : > { %4322 = vmatprep.mubr.bf16.mxu1 %v12166_v54 }
 0xac9   : > { %4323 = vmatmul.mubr.bf16.gmra.mxu1 %v12305_v6 }
 0xaca   : > { %4764 = vmatprep.mubr.bf16.mxu1 %v12166_v54 }
 0xb07   : > { %v4623_v4 = vpop.f32.mrf.mxu0 }
 0xb08   : > { %v4624_v2 = vadd.f32 %v4623_v4, %v9911_v0 }
 0xb09   : > { %v4625_v10 = vpop.f32.mrf.mxu0 }
 0xb0a   : > { %v4626_v60 = vadd.f32 %v4625_v10, %v9911_v0  ;;  %v9918_v45 = vadd.f32 %v4624_v2, %v12306_v30  ;;  %v12313_v2 = vld [vmem:[#allocation127_spill] sm:$0xff] }
 0xb0b   : > { %v4627_v51 = vpop.f32.mrf.mxu0 }
 0xb0c   : > { %12307 = vst [vmem:[#allocation11_spill] sm:$0xff] %v9918_v45  ;;  %v9921_v34 = vadd.f32 %v4626_v60, %v12308_v23  ;;  %v4628_v6 = vadd.f32 %v4627_v51, %v9915_v41 }
 0xb0d   : > { %v4629_v42 = vpop.f32.mrf.mxu0 }
 0xb0e   : > { %12309 = vst [vmem:[#allocation9_spill] sm:$0xff] %v9921_v34  ;;  %v4630_v29 = vadd.f32 %v4629_v42, %v9915_v41  ;;  %v4847_v4 = vadd.f32 %v9921_v34, %v9918_v45  ;;  %v4896_v10 = vmul.f32 %v9921_v34, %v9921_v34  ;;  %v9932_v9 = vadd.f32 %v4628_v6, %v12311_v20  ;;  %v9945_v6 = vpop.permute.xlu1 %4478  ;;  %v12318_v34 = vld [vmem:[#allocation120_spill] sm:$0xff] }
 0xb0f   : > { %v4633_v30 = vpop.f32.mrf.mxu0  ;;  %v4895_v42 = vmul.f32 %v9918_v45, %v9918_v45  ;;  %12315 = vst [vmem:[#allocation131_spill] sm:$0xff] %v9945_v6 }
 0xb10   : > { %12312 = vst [vmem:[#allocation8_spill] sm:$0xff] %v9932_v9  ;;  %v9935_v60 = vadd.f32 %v4630_v29, %v12313_v2  ;;  %v4634_v51 = vadd.f32 %v4633_v30, %v9929_v25  ;;  %4848 = vadd.xlane.f32.xlu0 %v4847_v4  ;;  %v4897_v30 = vmul.f32 %v9932_v9, %v9932_v9  ;;  %v12316_v4 = vld [vmem:[#allocation124_spill] sm:$0xff] }
 0xb11   : > { %v4635_v23 = vpop.f32.mrf.mxu0  ;;  %v4927_v18 = vadd.f32 %v4896_v10, %v4895_v42 }
 0xb12   : > { %12314 = vst [vmem:[#allocation130_spill] sm:$0xff] %v9935_v60  ;;  %v4636_v58 = vadd.f32 %v4635_v23, %v9929_v25  ;;  %v4850_v36 = vadd.f32 %v9935_v60, %v9932_v9  ;;  %v4898_v20 = vmul.f32 %v9935_v60, %v9935_v60  ;;  %v9950_v2 = vadd.f32 %v4634_v51, %v12316_v4  ;;  %v12321_v51 = vld [vmem:[#allocation125_spill] sm:$0xff] }
 0xb13   : > { %v4637_v29 = vpop.f32.mrf.mxu0 }
 0xb14   : > { %12317 = vst [vmem:[#allocation132_spill] sm:$0xff] %v9950_v2  ;;  %v9953_v45 = vadd.f32 %v4636_v58, %v12318_v34  ;;  %v4638_v23 = vadd.f32 %v4637_v29, %v9945_v6  ;;  %4851 = vadd.xlane.f32.xlu1 %v4850_v36  ;;  %4928 = vadd.xlane.f32.xlu0 %v4927_v18  ;;  %v12323_v34 = vld [vmem:[#allocation121_spill] sm:$0xff] }
 0xb15   : > { %v4639_v10 = vpop.f32.mrf.mxu0  ;;  %v4930_v60 = vadd.f32 %v4898_v20, %v4897_v30  ;;  %v4899_v36 = vmul.f32 %v9950_v2, %v9950_v2 }
 0xb16   : > { %12319 = vst [vmem:[#allocation133_spill] sm:$0xff] %v9953_v45  ;;  %v4640_v42 = vadd.f32 %v4639_v10, %v9945_v6  ;;  %v4853_v62 = vadd.f32 %v9953_v45, %v9950_v2  ;;  %v4900_v9 = vmul.f32 %v9953_v45, %v9953_v45  ;;  %v9964_v4 = vadd.f32 %v4638_v23, %v12321_v51  ;;  %v9977_v51 = vpop.permute.xlu1 %4488 }
 0xb17   : > { %v4643_v58 = vpop.f32.mrf.mxu0  ;;  %12325 = vst [vmem:[#allocation129_spill] sm:$0xff] %v9977_v51 }
 0xb18   : > { %12322 = vst [vmem:[#allocation128_spill] sm:$0xff] %v9964_v4  ;;  %v9967_v29 = vadd.f32 %v4640_v42, %v12323_v34  ;;  %v4644_v18 = vadd.f32 %v4643_v58, %v9961_v56  ;;  %4931 = vadd.xlane.f32.xlu1 %v4930_v60  ;;  %4854 = vadd.xlane.f32.xlu0 %v4853_v62  ;;  %v12326_v62 = vld [vmem:[#allocation86_spill] sm:$0xff] }
 0xb19   : > { %v4645_v20 = vpop.f32.mrf.mxu0  ;;  %v4933_v10 = vadd.f32 %v4900_v9, %v4899_v36  ;;  %v4901_v60 = vmul.f32 %v9964_v4, %v9964_v4  ;;  %v12328_v34 = vld [vmem:[#allocation114_spill] sm:$0xff] }
 0xb1a   : > { %12324 = vst [vmem:[#allocation126_spill] sm:$0xff] %v9967_v29  ;;  %v4646_v30 = vadd.f32 %v4645_v20, %v9961_v56  ;;  %v4856_v45 = vadd.f32 %v9967_v29, %v9964_v4  ;;  %v4902_v23 = vmul.f32 %v9967_v29, %v9967_v29  ;;  %v9982_v58 = vadd.f32 %v4644_v18, %v12326_v62  ;;  %v12330_v18 = vld [vmem:[#allocation119_spill] sm:$0xff] }
 0xb1b   : > { %v4647_v42 = vpop.f32.mrf.mxu0  ;;  %12338 = vst [vmem:[#allocation114_spill] sm:$0xff] %v10025_v19  ;;  %v12386_v56 = vld [vmem:[#allocation135_spill] sm:$0xff] }
 0xb1c   : > { %12327 = vst [vmem:[#allocation127_spill] sm:$0xff] %v9982_v58  ;;  %v9985_v2 = vadd.f32 %v4646_v30, %v12328_v34  ;;  %v4648_v9 = vadd.f32 %v4647_v42, %v9977_v51  ;;  %4934 = vadd.xlane.f32.xlu1 %v4933_v10  ;;  %4857 = vadd.xlane.f32.xlu0 %v4856_v45  ;;  %v12332_v34 = vld [vmem:[#allocation115_spill] sm:$0xff] }
 0xb1d   : > { %v4649_v36 = vpop.f32.mrf.mxu0  ;;  %v4936_v29 = vadd.f32 %v4902_v23, %v4901_v60  ;;  %v4903_v10 = vmul.f32 %v9982_v58, %v9982_v58 }
 0xb1e   : > { %12329 = vst [vmem:[#allocation124_spill] sm:$0xff] %v9985_v2  ;;  %v4650_v20 = vadd.f32 %v4649_v36, %v9977_v51  ;;  %v4859_v47 = vadd.f32 %v9985_v2, %v9982_v58  ;;  %v4904_v4 = vmul.f32 %v9985_v2, %v9985_v2  ;;  %v9996_v62 = vadd.f32 %v4648_v9, %v12330_v18  ;;  %v10009_v18 = vpop.permute.xlu1 %4498 }
 0xb1f   : > { %v4653_v30 = vpop.f32.mrf.mxu0 }
 0xb20   : > { %12331 = vst [vmem:[#allocation120_spill] sm:$0xff] %v9996_v62  ;;  %v9999_v42 = vadd.f32 %v4650_v20, %v12332_v34  ;;  %v4654_v45 = vadd.f32 %v4653_v30, %v9993_v33  ;;  %4937 = vadd.xlane.f32.xlu1 %v4936_v29  ;;  %4860 = vadd.xlane.f32.xlu0 %v4859_v47  ;;  %v12334_v47 = vld [vmem:[#allocation2_spill] sm:$0xff]  ;;  %v12336_v34 = vld [vmem:[#allocation112_spill] sm:$0xff] }
 0xb21   : > { %v4655_v23 = vpop.f32.mrf.mxu0  ;;  %v4939_v36 = vadd.f32 %v4904_v4, %v4903_v10  ;;  %v4905_v29 = vmul.f32 %v9996_v62, %v9996_v62 }
 0xb22   : > { %12333 = vst [vmem:[#allocation125_spill] sm:$0xff] %v9999_v42  ;;  %v4656_v60 = vadd.f32 %v4655_v23, %v9993_v33  ;;  %v4862_v2 = vadd.f32 %v9999_v42, %v9996_v62  ;;  %v4906_v9 = vmul.f32 %v9999_v42, %v9999_v42  ;;  %v10014_v30 = vadd.f32 %v4654_v45, %v12334_v47  ;;  %v12339_v45 = vld [vmem:[#allocation87_spill] sm:$0xff] }
 0xb23   : > { %v4657_v20 = vpop.f32.mrf.mxu0 }
 0xb24   : > { %12335 = vst [vmem:[#allocation121_spill] sm:$0xff] %v10014_v30  ;;  %v10017_v58 = vadd.f32 %v4656_v60, %v12336_v34  ;;  %v4658_v4 = vadd.f32 %v4657_v20, %v10009_v18  ;;  %4940 = vadd.xlane.f32.xlu1 %v4939_v36  ;;  %4863 = vadd.xlane.f32.xlu0 %v4862_v2  ;;  %v12341_v34 = vld [vmem:[#allocation113_spill] sm:$0xff] }
 0xb25   : > { %v4659_v10 = vpop.f32.mrf.mxu0  ;;  %v4942_v42 = vadd.f32 %v4906_v9, %v4905_v29  ;;  %v4907_v36 = vmul.f32 %v10014_v30, %v10014_v30  ;;  %12348 = vst [vmem:[#allocation113_spill] sm:$0xff] %v10057_v35 }
 0xb26   : > { %12337 = vst [vmem:[#allocation86_spill] sm:$0xff] %v10017_v58  ;;  %v4660_v23 = vadd.f32 %v4659_v10, %v10009_v18  ;;  %v4865_v63 = vadd.f32 %v10017_v58, %v10014_v30  ;;  %v4908_v62 = vmul.f32 %v10017_v58, %v10017_v58  ;;  %v10028_v47 = vadd.f32 %v4658_v4, %v12339_v45  ;;  %v10041_v45 = vpop.permute.xlu1 %4508 }
 0xb27   : > { %v4663_v60 = vpop.f32.mrf.mxu0  ;;  %12343 = vst [vmem:[#allocation2_spill] sm:$0xff] %v10041_v45 }
 0xb28   : > { %12340 = vst [vmem:[#allocation119_spill] sm:$0xff] %v10028_v47  ;;  %v10031_v20 = vadd.f32 %v4660_v23, %v12341_v34  ;;  %v4664_v2 = vadd.f32 %v4663_v60, %v10025_v19  ;;  %4943 = vadd.xlane.f32.xlu1 %v4942_v42  ;;  %4866 = vadd.xlane.f32.xlu0 %v4865_v63  ;;  %v12344_v63 = vld [vmem:[#allocation5_spill] sm:$0xff]  ;;  %v12346_v34 = vld [vmem:[#allocation110_spill] sm:$0xff] }
 0xb29   : > { %v4665_v9 = vpop.f32.mrf.mxu0  ;;  %v4945_v10 = vadd.f32 %v4908_v62, %v4907_v36  ;;  %v4909_v42 = vmul.f32 %v10028_v47, %v10028_v47 }
 0xb2a   : > { %12342 = vst [vmem:[#allocation115_spill] sm:$0xff] %v10031_v20  ;;  %v4666_v29 = vadd.f32 %v4665_v9, %v10025_v19  ;;  %v4868_v58 = vadd.f32 %v10031_v20, %v10028_v47  ;;  %v4910_v4 = vmul.f32 %v10031_v20, %v10031_v20  ;;  %v10046_v60 = vadd.f32 %v4664_v2, %v12344_v63  ;;  %v12349_v2 = vld [vmem:[#allocation55_spill] sm:$0xff] }
 0xb2b   : > { %v4667_v23 = vpop.f32.mrf.mxu0 }
 0xb2c   : > { %12345 = vst [vmem:[#allocation112_spill] sm:$0xff] %v10046_v60  ;;  %v10049_v30 = vadd.f32 %v4666_v29, %v12346_v34  ;;  %v4668_v62 = vadd.f32 %v4667_v23, %v10041_v45  ;;  %4946 = vadd.xlane.f32.xlu1 %v4945_v10  ;;  %4869 = vadd.xlane.f32.xlu0 %v4868_v58  ;;  %v12351_v34 = vld [vmem:[#allocation111_spill] sm:$0xff] }
 0xb2d   : > { %v4669_v36 = vpop.f32.mrf.mxu0  ;;  %v4948_v20 = vadd.f32 %v4910_v4, %v4909_v42  ;;  %v4911_v10 = vmul.f32 %v10046_v60, %v10046_v60 }
 0xb2e   : > { %12347 = vst [vmem:[#allocation87_spill] sm:$0xff] %v10049_v30  ;;  %v4670_v9 = vadd.f32 %v4669_v36, %v10041_v45  ;;  %v4871_v16 = vadd.f32 %v10049_v30, %v10046_v60  ;;  %v4912_v47 = vmul.f32 %v10049_v30, %v10049_v30  ;;  %v10060_v63 = vadd.f32 %v4668_v62, %v12349_v2  ;;  %v10073_v2 = vpop.permute.xlu1 %4518 }
 0xb2f   : > { %v4673_v29 = vpop.f32.mrf.mxu0  ;;  %12353 = vst [vmem:[#allocation55_spill] sm:$0xff] %v10073_v2 }
 0xb30   : > { %12350 = vst [vmem:[#allocation5_spill] sm:$0xff] %v10060_v63  ;;  %v10063_v23 = vadd.f32 %v4670_v9, %v12351_v34  ;;  %v4674_v58 = vadd.f32 %v4673_v29, %v10057_v35  ;;  %4949 = vadd.xlane.f32.xlu1 %v4948_v20  ;;  %4872 = vadd.xlane.f32.xlu0 %v4871_v16  ;;  %v12354_v16 = vld [vmem:[#allocation108_spill] sm:$0xff]  ;;  %v12356_v34 = vld [vmem:[#allocation107_spill] sm:$0xff] }
 0xb31   : > { %v4675_v4 = vpop.f32.mrf.mxu0  ;;  %v4951_v36 = vadd.f32 %v4912_v47, %v4911_v10  ;;  %v4913_v20 = vmul.f32 %v10060_v63, %v10060_v63  ;;  %12358 = vst [vmem:[#allocation107_spill] sm:$0xff] %v10089_v52 }
 0xb32   : > { %12352 = vst [vmem:[#allocation110_spill] sm:$0xff] %v10063_v23  ;;  %v4676_v42 = vadd.f32 %v4675_v4, %v10057_v35  ;;  %v4874_v30 = vadd.f32 %v10063_v23, %v10060_v63  ;;  %v4914_v62 = vmul.f32 %v10063_v23, %v10063_v23  ;;  %v10078_v29 = vadd.f32 %v4674_v58, %v12354_v16  ;;  %v12359_v58 = vld [vmem:[#allocation109_spill] sm:$0xff] }
 0xb33   : > { %v4677_v9 = vpop.f32.mrf.mxu0 }
 0xb34   : > { %12355 = vst [vmem:[#allocation111_spill] sm:$0xff] %v10078_v29  ;;  %v10081_v60 = vadd.f32 %v4676_v42, %v12356_v34  ;;  %v4678_v47 = vadd.f32 %v4677_v9, %v10073_v2  ;;  %4952 = vadd.xlane.f32.xlu1 %v4951_v36  ;;  %4875 = vadd.xlane.f32.xlu0 %v4874_v30  ;;  %v12361_v34 = vld [vmem:[#allocation4_spill] sm:$0xff] }
 0xb35   : > { %v4679_v10 = vpop.f32.mrf.mxu0  ;;  %v4954_v23 = vadd.f32 %v4914_v62, %v4913_v20  ;;  %v4915_v36 = vmul.f32 %v10078_v29, %v10078_v29 }
 0xb36   : > { %12357 = vst [vmem:[#allocation108_spill] sm:$0xff] %v10081_v60  ;;  %v4680_v4 = vadd.f32 %v4679_v10, %v10073_v2  ;;  %v4877_v44 = vadd.f32 %v10081_v60, %v10078_v29  ;;  %v4916_v63 = vmul.f32 %v10081_v60, %v10081_v60  ;;  %v10092_v16 = vadd.f32 %v4678_v47, %v12359_v58  ;;  %v10105_v58 = vpop.permute.xlu1 %4528 }
 0xb37   : > { %v4683_v42 = vpop.f32.mrf.mxu0  ;;  %12363 = vst [vmem:[#allocation141_spill] sm:$0xff] %v10105_v58 }
 0xb38   : > { %12360 = vst [vmem:[#allocation109_spill] sm:$0xff] %v10092_v16  ;;  %v10095_v9 = vadd.f32 %v4680_v4, %v12361_v34  ;;  %v4684_v30 = vadd.f32 %v4683_v42, %v10089_v52  ;;  %4955 = vadd.xlane.f32.xlu1 %v4954_v23  ;;  %4878 = vadd.xlane.f32.xlu0 %v4877_v44  ;;  %v12364_v44 = vld [vmem:[#allocation104_spill] sm:$0xff]  ;;  %v12366_v34 = vld [vmem:[#allocation103_spill] sm:$0xff] }
 0xb39   : > { %v4685_v62 = vpop.f32.mrf.mxu0  ;;  %v4957_v10 = vadd.f32 %v4916_v63, %v4915_v36  ;;  %v4917_v23 = vmul.f32 %v10092_v16, %v10092_v16 }
 0xb3a   : > { %12362 = vst [vmem:[#allocation4_spill] sm:$0xff] %v10095_v9  ;;  %v4686_v20 = vadd.f32 %v4685_v62, %v10089_v52  ;;  %v4880_v60 = vadd.f32 %v10095_v9, %v10092_v16  ;;  %v4918_v47 = vmul.f32 %v10095_v9, %v10095_v9  ;;  %v10110_v42 = vadd.f32 %v4684_v30, %v12364_v44  ;;  %v12369_v30 = vld [vmem:[#allocation105_spill] sm:$0xff] }
 0xb3b   : > { %v4687_v4 = vpop.f32.mrf.mxu0 }
 0xb3c   : > { %12365 = vst [vmem:[#allocation104_spill] sm:$0xff] %v10110_v42  ;;  %v10113_v29 = vadd.f32 %v4686_v20, %v12366_v34  ;;  %v4688_v63 = vadd.f32 %v4687_v4, %v10105_v58  ;;  %4958 = vadd.xlane.f32.xlu1 %v4957_v10  ;;  %4881 = vadd.xlane.f32.xlu0 %v4880_v60  ;;  %v12371_v34 = vld [vmem:[#allocation106_spill] sm:$0xff] }
 0xb3d   : > { %v4689_v36 = vpop.f32.mrf.mxu0  ;;  %v4960_v9 = vadd.f32 %v4918_v47, %v4917_v23  ;;  %v4919_v10 = vmul.f32 %v10110_v42, %v10110_v42 }
 0xb3e   : > { %12367 = vst [vmem:[#allocation103_spill] sm:$0xff] %v10113_v29  ;;  %v4690_v62 = vadd.f32 %v4689_v36, %v10105_v58  ;;  %v4883_v52 = vadd.f32 %v10113_v29, %v10110_v42  ;;  %v4920_v16 = vmul.f32 %v10113_v29, %v10113_v29  ;;  %v10124_v44 = vadd.f32 %v4688_v63, %v12369_v30  ;;  %v10137_v30 = vpop.permute.xlu1 %4538  ;;  %v12378_v58 = vld [vmem:[#allocation102_spill] sm:$0xff] }
 0xb3f   : > { %v4693_v20 = vpop.f32.mrf.mxu0  ;;  %12373 = vst [vmem:[#allocation143_spill] sm:$0xff] %v10137_v30 }
 0xb40   : > { %12370 = vst [vmem:[#allocation105_spill] sm:$0xff] %v10124_v44  ;;  %v10127_v4 = vadd.f32 %v4690_v62, %v12371_v34  ;;  %v4694_v60 = vadd.f32 %v4693_v20, %v10121_v21  ;;  %4961 = vadd.xlane.f32.xlu1 %v4960_v9  ;;  %4884 = vadd.xlane.f32.xlu0 %v4883_v52  ;;  %v12374_v52 = vld [vmem:[#allocation101_spill] sm:$0xff]  ;;  %v12376_v34 = vld [vmem:[#allocation3_spill] sm:$0xff] }
 0xb41   : > { %v4695_v47 = vpop.f32.mrf.mxu0  ;;  %v4963_v36 = vadd.f32 %v4920_v16, %v4919_v10  ;;  %v4921_v9 = vmul.f32 %v10124_v44, %v10124_v44 }
 0xb42   : > { %12372 = vst [vmem:[#allocation106_spill] sm:$0xff] %v10127_v4  ;;  %v4696_v23 = vadd.f32 %v4695_v47, %v10121_v21  ;;  %v4886_v29 = vadd.f32 %v10127_v4, %v10124_v44  ;;  %v4922_v63 = vmul.f32 %v10127_v4, %v10127_v4  ;;  %v10142_v20 = vadd.f32 %v4694_v60, %v12374_v52  ;;  %v12380_v52 = vld [vmem:[#allocation100_spill] sm:$0xff] }
 0xb43   : > { %v4697_v62 = vpop.f32.mrf.mxu0 }
 0xb44   : > { %12375 = vst [vmem:[#allocation101_spill] sm:$0xff] %v10142_v20  ;;  %v10145_v42 = vadd.f32 %v4696_v23, %v12376_v34  ;;  %v4698_v16 = vadd.f32 %v4697_v62, %v10137_v30  ;;  %4964 = vadd.xlane.f32.xlu1 %v4963_v36  ;;  %4887 = vadd.xlane.f32.xlu0 %v4886_v29 }
 0xb45   : > { %v4699_v10 = vpop.f32.mrf.mxu0  ;;  %v4966_v4 = vadd.f32 %v4922_v63, %v4921_v9  ;;  %v4923_v29 = vmul.f32 %v10142_v20, %v10142_v20 }
 0xb46   : > { %12377 = vst [vmem:[#allocation3_spill] sm:$0xff] %v10145_v42  ;;  %v4700_v47 = vadd.f32 %v4699_v10, %v10137_v30  ;;  %v4889_v21 = vadd.f32 %v10145_v42, %v10142_v20  ;;  %v4924_v44 = vmul.f32 %v10145_v42, %v10145_v42  ;;  %v10154_v60 = vadd.f32 %v4698_v16, %v12378_v58 }
 0xb48   : > { %12379 = vst [vmem:[#allocation102_spill] sm:$0xff] %v10154_v60  ;;  %v10157_v23 = vadd.f32 %v4700_v47, %v12380_v52  ;;  %4967 = vadd.xlane.f32.xlu1 %v4966_v4  ;;  %4890 = vadd.xlane.f32.xlu0 %v4889_v21  ;;  %v4969_v36 = vadd.f32 %v4924_v44, %v4923_v29  ;;  %v12382_v21 = vld [vmem:[#allocation140_spill] sm:$0xff]  ;;  %v12383_v47 = vld [vmem:[#allocation139_spill] sm:$0xff] }
 0xb49   : > { %v4925_v58 = vmul.f32 %v10154_v60, %v10154_v60 }
 0xb4a   : > { %12381 = vst [vmem:[#allocation100_spill] sm:$0xff] %v10157_v23  ;;  %v4892_v63 = vadd.f32 %v10157_v23, %v10154_v60  ;;  %v4926_v62 = vmul.f32 %v10157_v23, %v10157_v23  ;;  %v12384_v60 = vld [vmem:[#allocation138_spill] sm:$0xff] }
 0xb4c   : > { %4970 = vadd.xlane.f32.xlu1 %v4969_v36  ;;  %4893 = vadd.xlane.f32.xlu0 %v4892_v63  ;;  %v4972_v9 = vadd.f32 %v4926_v62, %v4925_v58 }
 0xb50   : > { %4973 = vadd.xlane.f32.xlu0 %v4972_v9 }
 0xb51   : > { %v4254_v34 = vpop.f32.mrf.mxu1 }
 0xb52   : > { %v4255_v16 = vadd.f32 %v4254_v34, %v12382_v21 }
 0xb53   : > { %v4256_v4 = vpop.f32.mrf.mxu1 }
 0xb54   : > { %v4257_v44 = vadd.f32 %v4256_v4, %v12382_v21  ;;  %v4335_v42 = vmax.f32 %v4255_v16, 0.0  ;;  %v12385_v21 = vld [vmem:[#allocation137_spill] sm:$0xff] }
 0xb55   : > { %v4258_v10 = vpop.f32.mrf.mxu1 }
 0xb56   : > { %v4259_v52 = vadd.f32 %v4258_v10, %v12383_v47  ;;  %v4336_v23 = vmax.f32 %v4257_v44, 0.0 }
 0xb57   : > { %v4260_v29 = vpop.f32.mrf.mxu1 }
 0xb58   : > { %v4339_v20 = vmax.f32 %v4259_v52, 0.0  ;;  %v4261_v36 = vadd.f32 %v4260_v29, %v12383_v47 }
 0xb59   : > { %v4264_v63 = vpop.f32.mrf.mxu1 }
 0xb5a   : > { %v10171_v30 = vpack.c.bf16 %v4339_v20, %v4335_v42  ;;  %v4340_v62 = vmax.f32 %v4261_v36, 0.0  ;;  %v4265_v34 = vadd.f32 %v4264_v63, %v12384_v60 }
 0xb5b   : > { %v4266_v58 = vpop.f32.mrf.mxu1 }
 0xb5c   : > { %v10173_v9 = vpack.c.bf16 %v4340_v62, %v4336_v23  ;;  %v4267_v4 = vadd.f32 %v4266_v58, %v12384_v60  ;;  %v4343_v16 = vmax.f32 %v4265_v34, 0.0 }
 0xb5d   : > { %v4268_v32 = vpop.f32.mrf.mxu1 }
 0xb5e   : > { %v4269_v10 = vadd.f32 %v4268_v32, %v12385_v21  ;;  %v4344_v42 = vmax.f32 %v4267_v4, 0.0 }
 0xb5f   : > { %v4270_v2 = vpop.f32.mrf.mxu1 }
 0xb60   : > { %v4347_v52 = vmax.f32 %v4269_v10, 0.0  ;;  %v4271_v47 = vadd.f32 %v4270_v2, %v12385_v21 }
 0xb61   : > { %v10179_v29 = vpop.f32.mrf.mxu1 }
 0xb62   : > { %v10181_v20 = vpack.c.bf16 %v4347_v52, %v4343_v16  ;;  %v4348_v44 = vmax.f32 %v4271_v47, 0.0 }
 0xb63   : > { %v10183_v23 = vpop.f32.mrf.mxu1 }
 0xb64   : > { %v10185_v36 = vpack.c.bf16 %v4348_v44, %v4344_v42 }
 0xb65   : > { %v10187_v63 = vpop.f32.mrf.mxu1 }
 0xb67   : > { %v10189_v60 = vpop.f32.mrf.mxu1 }
 0xb69   : > { %v10191_v32 = vpop.f32.mrf.mxu1 }
 0xb6b   : > { %v10193_v62 = vpop.f32.mrf.mxu1 }
 0xb6d   : > { %v10195_v58 = vpop.f32.mrf.mxu1 }
 0xb6f   : > { %v4290_v2 = vpop.f32.mrf.mxu1 }
 0xb71   : > { %v4294_v34 = vpop.f32.mrf.mxu1 }
 0xb73   : > { %v4296_v4 = vpop.f32.mrf.mxu1 }
 0xb75   : > { %v4298_v21 = vpop.f32.mrf.mxu1 }
 0xb77   : > { %v4300_v10 = vpop.f32.mrf.mxu1 }
 0xb79   : > { %v4304_v16 = vpop.f32.mrf.mxu1 }
 0xb7b   : > { %v4306_v52 = vpop.f32.mrf.mxu1 }
 0xb7d   : > { %v4308_v47 = vpop.f32.mrf.mxu1 }
 0xb7f   : > { %v4310_v42 = vpop.f32.mrf.mxu1 }
 0xb80   : > { %v4311_v19 = vadd.f32 %v4310_v42, %v9470_v48 }
 0xb81   : > { %v4314_v44 = vpop.f32.mrf.mxu1 }
 0xb83   : > { %v4316_v17 = vpop.f32.mrf.mxu1 }
 0xb84   : > { %v4317_v40 = vadd.f32 %v4316_v17, %v9464_v50 }
 0xb85   : > { %v4318_v51 = vpop.f32.mrf.mxu1 }
 0xb86   : > { %v4319_v11 = vadd.f32 %v4318_v51, %v9466_v7  ;;  %v4384_v24 = vmax.f32 %v4317_v40, 0.0  ;;  %v4297_v40 = vadd.f32 %v4296_v4, %v9476_v53 }
 0xb87   : > { %v4320_v59 = vpop.f32.mrf.mxu1 }
 0xb88   : > { %v4321_v5 = vadd.f32 %v4320_v59, %v9466_v7  ;;  %v4315_v59 = vadd.f32 %v4314_v44, %v9464_v50  ;;  %v4387_v17 = vmax.f32 %v4319_v11, 0.0  ;;  %v4380_v7 = vmax.f32 %v4311_v19, 0.0 }
 0xb89   : > { %v4324_v13 = vpop.f32.mrf.mxu1  ;;  %v4291_v19 = vadd.f32 %v4290_v2, %v9480_v37  ;;  %v4281_v2 = vadd.f32 %v10189_v60, %v9488_v12 }
 0xb8a   : > { %v4325_v45 = vadd.f32 %v4324_v13, %v12386_v56  ;;  %v4388_v25 = vmax.f32 %v4321_v5, 0.0  ;;  %v4309_v13 = vadd.f32 %v4308_v47, %v9470_v48  ;;  %v4383_v50 = vmax.f32 %v4315_v59, 0.0 }
 0xb8b   : > { %v4326_v39 = vpop.f32.mrf.mxu1  ;;  %v4299_v48 = vadd.f32 %v4298_v21, %v9474_v8  ;;  %v4364_v4 = vmax.f32 %v4291_v19, 0.0 }
 0xb8c   : > { %v4327_v43 = vadd.f32 %v4326_v39, %v12386_v56  ;;  %v4391_v39 = vmax.f32 %v4325_v45, 0.0  ;;  %v4379_v11 = vmax.f32 %v4309_v13, 0.0 }
 0xb8d   : > { %v4328_v35 = vpop.f32.mrf.mxu1  ;;  %v4371_v51 = vmax.f32 %v4299_v48, 0.0 }
 0xb8e   : > { %v4329_v3 = vadd.f32 %v4328_v35, %v12387_v22  ;;  %v4392_v61 = vmax.f32 %v4327_v43, 0.0  ;;  %v4307_v35 = vadd.f32 %v4306_v52, %v9472_v31  ;;  %v4305_v43 = vadd.f32 %v4304_v16, %v9472_v31 }
 0xb8f   : > { %v4330_v1 = vpop.f32.mrf.mxu1  ;;  %v4295_v31 = vadd.f32 %v4294_v34, %v9476_v53  ;;  %v4285_v34 = vadd.f32 %v10191_v32, %v9482_v57  ;;  %v4356_v52 = vmax.f32 %v4281_v2, 0.0  ;;  %v6457_v2 = vld [vmem:[%s11237_s8 + $0x10] sm:$0xff]  }
 0xb90   : > { %v4331_v6 = vadd.f32 %v4330_v1, %v12387_v22  ;;  %v4395_v26 = vmax.f32 %v4329_v3, 0.0  ;;  %v4301_v22 = vadd.f32 %v4300_v10, %v9474_v8  ;;  %v4440_v1 = vpack.c.bf16 %v4388_v25, %v4384_v24 }
 0xb91   : > { %v4375_v24 = vmax.f32 %v4305_v43, 0.0  ;;  %v4289_v8 = vadd.f32 %v10195_v58, %v9480_v37  ;;  %v4367_v10 = vmax.f32 %v4295_v31, 0.0  ;;  %v4279_v37 = vadd.f32 %v10187_v63, %v9488_v12 }
 0xb92   : > { %v4396_v49 = vmax.f32 %v4331_v6, 0.0  ;;  %v4443_v15 = vpack.c.bf16 %v4395_v26, %v4391_v39  ;;  %v4372_v25 = vmax.f32 %v4301_v22, 0.0  ;;  %v4368_v6 = vmax.f32 %v4297_v40, 0.0 }
 0xb93   : > { %v4435_v45 = vpack.c.bf16 %v4379_v11, %v4375_v24  ;;  %v4363_v58 = vmax.f32 %v4289_v8, 0.0  ;;  %v4431_v60 = vpack.c.bf16 %v4371_v51, %v4367_v10  ;;  %v4359_v32 = vmax.f32 %v4285_v34, 0.0 }
 0xb94   : > { %v4444_v56 = vpack.c.bf16 %v4396_v49, %v4392_v61  ;;  %v4376_v49 = vmax.f32 %v4307_v35, 0.0  ;;  %v4439_v61 = vpack.c.bf16 %v4387_v17, %v4383_v50  ;;  %v4432_v21 = vpack.c.bf16 %v4372_v25, %v4368_v6 }
 0xb95   : > { %v4427_v59 = vpack.c.bf16 %v4363_v58, %v4359_v32 }
 0xb96   : > { %4702 = vmatprep.subr.bf16.mxu0 %v4444_v56  ;;  %5916 = vmatprep.subr.bf16.mxu1 %v4444_v56  ;;  %v4436_v26 = vpack.c.bf16 %v4380_v7, %v4376_v49 }
 0xb97   : > { %4703 = vmatpush1.bf16.msra.mxu0 %v4443_v15  ;;  %5924 = vmatpush1.bf16.msra.mxu1 %v4443_v15  ;;  %v4287_v15 = vadd.f32 %v10193_v62, %v9482_v57  ;;  %v4277_v62 = vadd.f32 %v10183_v23, %v9490_v38  ;;  %v4275_v57 = vadd.f32 %v10179_v29, %v9490_v38  ;;  %v4355_v23 = vmax.f32 %v4279_v37, 0.0 }
 0xb98   : > { %4704 = vmatprep.subr.bf16.mxu0 %v4440_v1  ;;  %5917 = vmatprep.subr.bf16.mxu1 %v4440_v1 }
 0xb99   : > { %v10209_v5 = vpop.xlane.xlu0 %4848  ;;  %v4360_v16 = vmax.f32 %v4287_v15, 0.0  ;;  %v4352_v44 = vmax.f32 %v4277_v62, 0.0  ;;  %v4351_v56 = vmax.f32 %v4275_v57, 0.0 }
 0xb9b   : > { %4705 = vmatpush1.bf16.msra.mxu0 %v4439_v61  ;;  %5925 = vmatpush1.bf16.msra.mxu1 %v4439_v61  ;;  %v4428_v47 = vpack.c.bf16 %v4364_v4, %v4360_v16  ;;  %v4424_v39 = vpack.c.bf16 %v4356_v52, %v4352_v44  ;;  %v4423_v12 = vpack.c.bf16 %v4355_v23, %v4351_v56  ;;  %v6456_v61 = vld [vmem:[%s11237_s8 + $0x20] sm:$0xff]   ;;  %v6458_v4 = vld [vmem:[%s11237_s8 + $0x28] sm:$0xff]  }
 0xb9c   : > { %4706 = vmatprep.subr.bf16.mxu0 %v4436_v26  ;;  %5918 = vmatprep.subr.bf16.mxu1 %v4436_v26 }
 0xb9d   : > { %v10215_v3 = vpop.xlane.xlu0 %4928  ;;  %v4852_v29 = vpop.xlane.xlu1 %4851 }
 0xb9e   : > { %v4976_v17 = vsel %vm3214_vm1, %v4852_v29, 0.0 }
 0xb9f   : > { %4707 = vmatpush1.bf16.msra.mxu0 %v4435_v45  ;;  %5926 = vmatpush1.bf16.msra.mxu1 %v4435_v45 }
 0xba0   : > { %4708 = vmatprep.subr.bf16.mxu0 %v4432_v21  ;;  %5919 = vmatprep.subr.bf16.mxu1 %v4432_v21 }
 0xba1   : > { %v4855_v53 = vpop.xlane.xlu0 %4854 }
 0xba2   : > { %v4978_v7 = vsel %vm3214_vm1, %v4855_v53, 0.0 }
 0xba3   : > { %4709 = vmatpush1.bf16.msra.mxu0 %v4431_v60  ;;  %5927 = vmatpush1.bf16.msra.mxu1 %v4431_v60 }
 0xba4   : > { %4710 = vmatprep.subr.bf16.mxu0 %v4428_v47  ;;  %5920 = vmatprep.subr.bf16.mxu1 %v4428_v47  ;;  %v6459_v47 = vld [vmem:[%s11237_s8 + $0x30] sm:$0xff]  }
 0xba5   : > { %v4858_v42 = vpop.xlane.xlu0 %4857 }
 0xba6   : > { %v4980_v1 = vsel %vm3214_vm1, %v4858_v42, 0.0 }
 0xba7   : > { %4711 = vmatpush1.bf16.msra.mxu0 %v4427_v59  ;;  %5928 = vmatpush1.bf16.msra.mxu1 %v4427_v59 }
 0xba8   : > { %4712 = vmatprep.subr.bf16.mxu0 %v4424_v39  ;;  %5921 = vmatprep.subr.bf16.mxu1 %v4424_v39 }
 0xba9   : > { %v4861_v35 = vpop.xlane.xlu0 %4860 }
 0xbaa   : > { %v4982_v40 = vsel %vm3214_vm1, %v4861_v35, 0.0 }
 0xbab   : > { %4713 = vmatpush1.bf16.msra.mxu0 %v4423_v12  ;;  %5929 = vmatpush1.bf16.msra.mxu1 %v4423_v12 }
 0xbac   : > { %4714 = vmatprep.subr.bf16.mxu0 %v10185_v36  ;;  %5922 = vmatprep.subr.bf16.mxu1 %v10185_v36  ;;  %v6453_v36 = vld [vmem:[%s11237_s8] sm:$0xff]  }
 0xbad   : > { %v4864_v63 = vpop.xlane.xlu0 %4863 }
 0xbae   : > { %v4984_v48 = vsel %vm3214_vm1, %v4864_v63, 0.0 }
 0xbaf   : > { %4715 = vmatpush1.bf16.msra.mxu0 %v10181_v20  ;;  %5930 = vmatpush1.bf16.msra.mxu1 %v10181_v20  ;;  %v6454_v20 = vld [vmem:[%s11237_s8 + $0x18] sm:$0xff]  }
 0xbb0   : > { %4716 = vmatprep.subr.bf16.mxu0 %v10173_v9  ;;  %5923 = vmatprep.subr.bf16.mxu1 %v10173_v9  ;;  %v4975_v9 = vsel %vm3214_vm1, %v10209_v5, 0.0  ;;  %v6455_v5 = vld [vmem:[%s11237_s8 + $0x8] sm:$0xff]  }
 0xbb1   : > { %v4867_v38 = vpop.xlane.xlu0 %4866 }
 0xbb2   : > { %v4986_v25 = vsel %vm3214_vm1, %v4867_v38, 0.0 }
 0xbb3   : > { %4717 = vmatpush1.bf16.msra.mxu0 %v10171_v30  ;;  %5931 = vmatpush1.bf16.msra.mxu1 %v10171_v30  ;;  %v4977_v30 = vadd.f32 %v4976_v17, %v4975_v9 }
 0xbb5   : > { %v4870_v13 = vpop.xlane.xlu0 %4869  ;;  %v4979_v43 = vadd.f32 %v4978_v7, %v4977_v30 }
 0xbb6   : > { %4735 = vmatmul.mubr.bf16.vlgmr.msra.gmra.mxu0 %v6453_v36  ;;  %4765 = vmatmul.mubr.bf16.vlgmr.msra.gmra.mxu1 %v6454_v20  ;;  %v4988_v31 = vsel %vm3214_vm1, %v4870_v13, 0.0  ;;  %v10287_v13 = vpop.xlane.xlu1 %4931 }
 0xbb7   : > { %4744 = vmatprep.mubr.bf16.mxu0 %v12166_v54  ;;  %4774 = vmatprep.mubr.bf16.mxu1 %v12166_v54  ;;  %v4981_v49 = vadd.f32 %v4980_v1, %v4979_v43 }
 0xbb9   : > { %v4873_v22 = vpop.xlane.xlu0 %4872  ;;  %v4983_v11 = vadd.f32 %v4982_v40, %v4981_v49 }
 0xbba   : > { %v4990_v6 = vsel %vm3214_vm1, %v4873_v22, 0.0  ;;  %v10289_v36 = vpop.xlane.xlu1 %4934 }
 0xbbb   : > { %v4985_v26 = vadd.f32 %v4984_v48, %v4983_v11 }
 0xbbd   : > { %v4876_v50 = vpop.xlane.xlu0 %4875  ;;  %v4987_v24 = vadd.f32 %v4986_v25, %v4985_v26 }
 0xbbe   : > { %4745 = vmatmul.mubr.bf16.gmra.mxu0 %v6455_v5  ;;  %4775 = vmatmul.mubr.bf16.gmra.mxu1 %v6456_v61  ;;  %v4992_v51 = vsel %vm3214_vm1, %v4876_v50, 0.0  ;;  %v10291_v20 = vpop.xlane.xlu1 %4937 }
 0xbbf   : > { %4754 = vmatprep.mubr.bf16.mxu0 %v12166_v54  ;;  %4784 = vmatprep.mubr.bf16.mxu1 %v12166_v54  ;;  %v4989_v8 = vadd.f32 %v4988_v31, %v4987_v24 }
 0xbc1   : > { %v4879_v19 = vpop.xlane.xlu0 %4878  ;;  %v4991_v45 = vadd.f32 %v4990_v6, %v4989_v8  ;;  %v12390_v8 = vld [vmem:[#allocation81_spill] sm:$0xff] }
 0xbc2   : > { %v4994_v53 = vsel %vm3214_vm1, %v4879_v19, 0.0  ;;  %v10295_v43 = vpop.xlane.xlu1 %4940 }
 0xbc3   : > { %v4993_v34 = vadd.f32 %v4992_v51, %v4991_v45  ;;  %v12391_v45 = vld [vmem:[#allocation63_spill] sm:$0xff] }
 0xbc5   : > { %v4882_v15 = vpop.xlane.xlu0 %4881  ;;  %v4995_v62 = vadd.f32 %v4994_v53, %v4993_v34 }
 0xbc6   : > { %4755 = vmatmul.mubr.bf16.gmra.mxu0 %v6457_v2  ;;  %4785 = vmatmul.mubr.bf16.gmra.mxu1 %v6458_v4  ;;  %v4996_v10 = vsel %vm3214_vm1, %v4882_v15, 0.0  ;;  %v10322_v6 = vpop.xlane.xlu1 %4943 }
 0xbc7   : > { %4794 = vmatprep.mubr.bf16.mxu1 %v12166_v54  ;;  %v4997_v58 = vadd.f32 %v4996_v10, %v4995_v62  ;;  %v12392_v10 = vld [vmem:[#allocation69_spill] sm:$0xff] }
 0xbc9   : > { %v4885_v21 = vpop.xlane.xlu0 %4884 }
 0xbca   : > { %v4998_v37 = vsel %vm3214_vm1, %v4885_v21, 0.0 }
 0xbcb   : > { %v4999_v52 = vadd.f32 %v4998_v37, %v4997_v58 }
 0xbcd   : > { %v4888_v16 = vpop.xlane.xlu0 %4887 }
 0xbce   : > { %v5000_v60 = vsel %vm3214_vm1, %v4888_v16, 0.0  ;;  %4795 = vmatmul.mubr.bf16.gmra.mxu1 %v6459_v47 }
 0xbcf   : > { %4804 = vmatprep.mubr.bf16.mxu1 %v12166_v54  ;;  %v5001_v32 = vadd.f32 %v5000_v60, %v4999_v52  ;;  %v12394_v52 = vld [vmem:[#allocation74_spill] sm:$0xff] }
 0xbd1   : > { %v4891_v42 = vpop.xlane.xlu0 %4890 }
 0xbd2   : > { %v5002_v57 = vsel %vm3214_vm1, %v4891_v42, 0.0 }
 0xbd3   : > { %v5003_v44 = vadd.f32 %v5002_v57, %v5001_v32  ;;  %v12396_v32 = vld [vmem:[#allocation6_spill] sm:$0xff] }
 0xbd5   : > { %v4894_v23 = vpop.xlane.xlu0 %4893 }
 0xbd6   : > { %v5004_v59 = vsel %vm3214_vm1, %v4894_v23, 0.0  ;;  %4805 = vmatmul.mubr.bf16.gmra.mxu1 %v9792_v28  ;;  %v10346_v23 = vpop.xlane.xlu1 %4946 }
 0xbd7   : > { %v5005_v39 = vadd.f32 %v5004_v59, %v5003_v44  ;;  %v12397_v59 = vld [vmem:[#allocation114_spill] sm:$0xff] }
 0xbd9   : > { %5006 = vadd.xlane.f32.xlu0 %v5005_v39  ;;  %v10285_v35 = vpop.xlane.xlu0 %4973 }
 0xc62   : > { %v5007_v56 = vpop.xlane.xlu0 %5006 }
 0xc63   : > { %v5008_v12 = vrot.slane %v5007_v56, 4 }
 0xc65   : > { %v5009_v63 = vadd.f32 %v5008_v12, %v5007_v56 }
 0xc67   : > { %v5010_v38 = vrot.slane %v5009_v63, 2 }
 0xc69   : > { %v5011_v29 = vadd.f32 %v5010_v38, %v5009_v63 }
 0xc6b   : > { %v5012_v17 = vrot.slane %v5011_v29, 1 }
 0xc6d   : > { %v5013_v54 = vadd.f32 %v5012_v17, %v5011_v29 }
 0xc6f   : > { %5944 = vpush %v5013_v54 }
 0xc76   : > { %v4736_v22 = vpop.f32.mrf.mxu0  ;;  %v4766_v9 = vpop.f32.mrf.mxu1 }
 0xc77   : > { %v4737_v28 = vadd.f32 %v4736_v22, %v9911_v0  ;;  %v4767_v7 = vadd.f32 %v4766_v9, %v9993_v33 }
 0xc78   : > { %v4738_v30 = vpop.f32.mrf.mxu0  ;;  %v4768_v1 = vpop.f32.mrf.mxu1 }
 0xc79   : > { %v4739_v50 = vadd.f32 %v4738_v30, %v9911_v0  ;;  %v4769_v40 = vadd.f32 %v4768_v1, %v9993_v33  ;;  %v10306_v61 = vadd.f32 %v4737_v28, %v9880_v14  ;;  %v10309_v19 = vadd.f32 %v4767_v7, %v9821_v27  ;;  %v12398_v28 = vld [vmem:[#allocation88_spill] sm:$0xff]  ;;  %v12399_v30 = vld [vmem:[#allocation67_spill] sm:$0xff] }
 0xc7a   : > { %v4740_v49 = vpop.f32.mrf.mxu0  ;;  %v4770_v48 = vpop.f32.mrf.mxu1 }
 0xc7b   : > { %v10300_v11 = vadd.f32 %v4739_v50, %v9872_v46  ;;  %v10303_v5 = vadd.f32 %v4769_v40, %v9787_v55  ;;  %12389 = vst [vmem:[#allocation139_spill] sm:$0xff] %v10309_v19  ;;  %v4741_v25 = vadd.f32 %v4740_v49, %v9915_v41  ;;  %v5321_v53 = vmul.f32 %v10309_v19, %v10309_v19  ;;  %v12401_v50 = vld [vmem:[#allocation131_spill] sm:$0xff] }
 0xc7c   : > { %v4742_v26 = vpop.f32.mrf.mxu0  ;;  %v4772_v0 = vpop.f32.mrf.mxu1  ;;  %v5309_v34 = vmul.f32 %v10306_v61, %v10306_v61 }
 0xc7d   : > { %12388 = vst [vmem:[#allocation140_spill] sm:$0xff] %v10303_v5  ;;  %v4743_v33 = vadd.f32 %v4742_v26, %v9915_v41  ;;  %v4773_v31 = vadd.f32 %v4772_v0, %v10009_v18  ;;  %v5261_v55 = vadd.f32 %v10300_v11, %v10306_v61  ;;  %v5279_v14 = vadd.f32 %v10303_v5, %v10309_v19  ;;  %v10368_v0 = vpop.xlane.xlu1 %4949 }
 0xc7e   : > { %v4746_v24 = vpop.f32.mrf.mxu0  ;;  %v4776_v46 = vpop.f32.mrf.mxu1  ;;  %v5322_v27 = vmul.f32 %v10303_v5, %v10303_v5  ;;  %v5310_v15 = vmul.f32 %v10300_v11, %v10300_v11  ;;  %v4771_v41 = vadd.f32 %v4770_v48, %v10009_v18  ;;  %v10329_v2 = vadd.f32 %v4741_v25, %v12391_v45 }
 0xc7f   : > { %v10326_v51 = vadd.f32 %v4743_v33, %v12390_v8  ;;  %5262 = vadd.xlane.f32.xlu1 %v5261_v55  ;;  %5280 = vadd.xlane.f32.xlu0 %v5279_v14  ;;  %v10336_v62 = vadd.f32 %v4773_v31, %v12392_v10  ;;  %v4747_v17 = vadd.f32 %v4746_v24, %v12396_v32  ;;  %v12402_v33 = vld [vmem:[#allocation72_spill] sm:$0xff]  ;;  %v12403_v24 = vld [vmem:[#allocation66_spill] sm:$0xff] }
 0xc80   : > { %v4748_v4 = vpop.f32.mrf.mxu0  ;;  %v4778_v21 = vpop.f32.mrf.mxu1  ;;  %v5359_v16 = vadd.f32 %v5322_v27, %v5321_v53  ;;  %v5341_v37 = vadd.f32 %v5310_v15, %v5309_v34  ;;  %v10341_v47 = vadd.f32 %v4771_v41, %v12394_v52  ;;  %v5311_v57 = vmul.f32 %v10329_v2, %v10329_v2  ;;  %v12405_v27 = vld [vmem:[#allocation2_spill] sm:$0xff]  ;;  %v12406_v41 = vld [vmem:[#allocation71_spill] sm:$0xff]  ;;  %v12407_v10 = vld [vmem:[#allocation68_spill] sm:$0xff] }
 0xc81   : > { %12393 = vst [vmem:[#allocation138_spill] sm:$0xff] %v10336_v62  ;;  %v5312_v58 = vmul.f32 %v10326_v51, %v10326_v51  ;;  %v4749_v44 = vadd.f32 %v4748_v4, %v12396_v32  ;;  %v4779_v39 = vadd.f32 %v4778_v21, %v12397_v59  ;;  %v5264_v63 = vadd.f32 %v10326_v51, %v10329_v2 }
 0xc82   : > { %v4780_v18 = vpop.f32.mrf.mxu1  ;;  %v4750_v60 = vpop.f32.mrf.mxu0  ;;  %12395 = vst [vmem:[#allocation137_spill] sm:$0xff] %v10341_v47  ;;  %v5324_v38 = vmul.f32 %v10336_v62, %v10336_v62  ;;  %v4777_v54 = vadd.f32 %v4776_v46, %v12397_v59  ;;  %v5323_v9 = vmul.f32 %v10341_v47, %v10341_v47  ;;  %v5282_v25 = vadd.f32 %v10336_v62, %v10341_v47 }
 0xc83   : > { %5360 = vadd.xlane.f32.xlu1 %v5359_v16  ;;  %5342 = vadd.xlane.f32.xlu0 %v5341_v37  ;;  %v5344_v12 = vadd.f32 %v5312_v58, %v5311_v57  ;;  %v10358_v7 = vadd.f32 %v4749_v44, %v12398_v28  ;;  %v10361_v1 = vadd.f32 %v4779_v39, %v12399_v30  ;;  %v12410_v57 = vld [vmem:[#allocation134_spill] sm:$0xff]  ;;  %v12414_v28 = vld [vmem:[#allocation77_spill] sm:$0xff] }
 0xc84   : > { %v4782_v42 = vpop.f32.mrf.mxu1  ;;  %v4752_v29 = vpop.f32.mrf.mxu0  ;;  %v5362_v48 = vadd.f32 %v5324_v38, %v5323_v9  ;;  %v10371_v31 = vadd.f32 %v4747_v17, %v12402_v33  ;;  %v10374_v46 = vadd.f32 %v4777_v54, %v12403_v24  ;;  %v4751_v55 = vadd.f32 %v4750_v60, %v12401_v50  ;;  %v12408_v60 = vld [vmem:[#allocation94_spill] sm:$0xff]  ;;  %v12413_v54 = vld [vmem:[#allocation113_spill] sm:$0xff] }
 0xc85   : > { %12400 = vst [vmem:[#allocation135_spill] sm:$0xff] %v10361_v1  ;;  %v4753_v40 = vadd.f32 %v4752_v29, %v12401_v50  ;;  %v4783_v15 = vadd.f32 %v4782_v42, %v12405_v27  ;;  %v5314_v21 = vmul.f32 %v10358_v7, %v10358_v7  ;;  %v4781_v37 = vadd.f32 %v4780_v18, %v12405_v27  ;;  %v10398_v42 = vpop.xlane.xlu1 %4952  ;;  %v12415_v24 = vld [vmem:[#allocation73_spill] sm:$0xff] }
 0xc86   : > { %v4786_v56 = vpop.f32.mrf.mxu1  ;;  %v4756_v26 = vpop.f32.mrf.mxu0  ;;  %12404 = vst [vmem:[#allocation136_spill] sm:$0xff] %v10374_v46  ;;  %v5267_v45 = vadd.f32 %v10358_v7, %v10371_v31  ;;  %v5285_v4 = vadd.f32 %v10361_v1, %v10374_v46  ;;  %v10390_v16 = vadd.f32 %v4751_v55, %v12407_v10  ;;  %v5313_v58 = vmul.f32 %v10371_v31, %v10371_v31 }
 0xc87   : > { %5345 = vadd.xlane.f32.xlu1 %v5344_v12  ;;  %5265 = vadd.xlane.f32.xlu0 %v5264_v63  ;;  %v10379_v8 = vadd.f32 %v4753_v40, %v12406_v41  ;;  %v10396_v52 = vadd.f32 %v4783_v15, %v12408_v60  ;;  %v5326_v39 = vmul.f32 %v10361_v1, %v10361_v1  ;;  %v12411_v63 = vld [vmem:[#allocation84_spill] sm:$0xff]  ;;  %v12416_v15 = vld [vmem:[#allocation82_spill] sm:$0xff] }
 0xc88   : > { %v4788_v22 = vpop.f32.mrf.mxu1  ;;  %v4758_v53 = vpop.f32.mrf.mxu0  ;;  %v5347_v44 = vadd.f32 %v5314_v21, %v5313_v58  ;;  %v10406_v38 = vadd.f32 %v4781_v37, %v12411_v63  ;;  %v4757_v29 = vadd.f32 %v4756_v26, %v12410_v57  ;;  %v5325_v17 = vmul.f32 %v10374_v46, %v10374_v46  ;;  %v12419_v58 = vld [vmem:[#allocation65_spill] sm:$0xff]  ;;  %v12422_v63 = vld [vmem:[#allocation70_spill] sm:$0xff] }
 0xc89   : > { %12409 = vst [vmem:[#allocation81_spill] sm:$0xff] %v10396_v52  ;;  %v4759_v32 = vadd.f32 %v4758_v53, %v12410_v57  ;;  %v5270_v59 = vadd.f32 %v10379_v8, %v10390_v16  ;;  %v4789_v9 = vadd.f32 %v4788_v22, %v12413_v54  ;;  %v10419_v26 = vpop.xlane.xlu1 %4955  ;;  %v4787_v27 = vadd.f32 %v4786_v56, %v12413_v54 }
 0xc8a   : > { %v10364_v49 = vpop.f32.mrf.mxu1  ;;  %v4760_v18 = vpop.f32.mrf.mxu0  ;;  %12412 = vst [vmem:[#allocation63_spill] sm:$0xff] %v10406_v38  ;;  %v5365_v50 = vadd.f32 %v5326_v39, %v5325_v17  ;;  %v5288_v40 = vadd.f32 %v10396_v52, %v10406_v38  ;;  %v10422_v55 = vadd.f32 %v4757_v29, %v12415_v24  ;;  %v5315_v22 = vmul.f32 %v10390_v16, %v10390_v16 }
 0xc8b   : > { %5363 = vadd.xlane.f32.xlu1 %v5362_v48  ;;  %5283 = vadd.xlane.f32.xlu0 %v5282_v25  ;;  %v10413_v30 = vadd.f32 %v4759_v32, %v12414_v28  ;;  %v5316_v48 = vmul.f32 %v10379_v8, %v10379_v8  ;;  %v10428_v41 = vadd.f32 %v4789_v9, %v12416_v15  ;;  %v5019_v32 = vsel %vm3214_vm1, %v10287_v13, 0.0 }
 0xc8c   : > { %v4792_v14 = vpop.f32.mrf.mxu1  ;;  %v4762_v25 = vpop.f32.mrf.mxu0  ;;  %v5328_v10 = vmul.f32 %v10396_v52, %v10396_v52  ;;  %v10436_v56 = vadd.f32 %v4787_v27, %v12419_v58  ;;  %v5327_v57 = vmul.f32 %v10406_v38, %v10406_v38  ;;  %v5018_v13 = vsel %vm3214_vm1, %v10215_v3, 0.0 }
 0xc8d   : > { %12417 = vst [vmem:[#allocation69_spill] sm:$0xff] %v10428_v41  ;;  %v5350_v21 = vadd.f32 %v5316_v48, %v5315_v22  ;;  %v5273_v53 = vadd.f32 %v10413_v30, %v10422_v55  ;;  %v10444_v39 = vpop.xlane.xlu1 %4958  ;;  %v5317_v48 = vmul.f32 %v10422_v55, %v10422_v55  ;;  %v5023_v24 = vsel %vm3214_vm1, %v10291_v20, 0.0  ;;  %v12427_v22 = vld [vmem:[#allocation107_spill] sm:$0xff] }
 0xc8e   : > { %v10387_v34 = vpop.f32.mrf.mxu1  ;;  %12420 = vst [vmem:[#allocation74_spill] sm:$0xff] %v10436_v56  ;;  %v5368_v17 = vadd.f32 %v5328_v10, %v5327_v57  ;;  %v5291_v54 = vadd.f32 %v10428_v41, %v10436_v56  ;;  %v5025_v20 = vsel %vm3214_vm1, %v10295_v43, 0.0  ;;  %v12432_v43 = vld [vmem:[#allocation141_spill] sm:$0xff] }
 0xc8f   : > { %5268 = vadd.xlane.f32.xlu1 %v5267_v45  ;;  %5286 = vadd.xlane.f32.xlu0 %v5285_v4  ;;  %v12418_v45 = vld [vmem:[#allocation129_spill] sm:$0xff] }
 0xc90   : > { %v4798_v12 = vpop.f32.mrf.mxu1  ;;  %v4763_v4 = vadd.f32 %v4762_v25, %v12418_v45  ;;  %v4761_v60 = vadd.f32 %v4760_v18, %v12418_v45  ;;  %v5318_v18 = vmul.f32 %v10413_v30, %v10413_v30  ;;  %v5020_v25 = vadd.f32 %v5019_v32, %v5018_v13 }
 0xc91   : > { %v4799_v3 = vadd.f32 %v4798_v12, %v12427_v22  ;;  %v5330_v45 = vmul.f32 %v10428_v41, %v10428_v41  ;;  %v4962_v58 = vpop.xlane.xlu1 %4961  ;;  %v5329_v12 = vmul.f32 %v10436_v56, %v10436_v56  ;;  %v5027_v32 = vsel %vm3214_vm1, %v10322_v6, 0.0 }
 0xc92   : > { %v4800_v33 = vpop.f32.mrf.mxu1  ;;  %v10447_v29 = vadd.f32 %v4763_v4, %v12422_v63  ;;  %v5353_v15 = vadd.f32 %v5318_v18, %v5317_v48  ;;  %v5029_v13 = vsel %vm3214_vm1, %v10346_v23, 0.0 }
 0xc93   : > { %5348 = vadd.xlane.f32.xlu1 %v5347_v44  ;;  %5271 = vadd.xlane.f32.xlu0 %v5270_v59  ;;  %v12421_v44 = vld [vmem:[#allocation55_spill] sm:$0xff]  ;;  %v4801_v6 = vadd.f32 %v4800_v33, %v12432_v43 }
 0xc94   : > { %v4802_v37 = vpop.f32.mrf.mxu1  ;;  %v4793_v59 = vadd.f32 %v4792_v14, %v12421_v44  ;;  %12423 = vst [vmem:[#allocation6_spill] sm:$0xff] %v10447_v29  ;;  %v4791_v9 = vadd.f32 %v10364_v49, %v12421_v44  ;;  %v5021_v14 = vsel %vm3214_vm1, %v10289_v36, 0.0  ;;  %v12425_v49 = vld [vmem:[#allocation83_spill] sm:$0xff] }
 0xc95   : > { %v5022_v4 = vadd.f32 %v5021_v14, %v5020_v25  ;;  %v12433_v14 = vld [vmem:[#allocation95_spill] sm:$0xff]  ;;  %v5031_v25 = vsel %vm3214_vm1, %v10368_v0, 0.0 }
 0xc96   : > { %v4806_v28 = vpop.f32.mrf.mxu1  ;;  %v10467_v27 = vadd.f32 %v4793_v59, %v12425_v49  ;;  %v12430_v59 = vld [vmem:[#allocation12_spill] sm:$0xff]  ;;  %v4965_v49 = vpop.xlane.xlu1 %4964 }
 0xc97   : > { %5366 = vadd.xlane.f32.xlu1 %v5365_v50  ;;  %5289 = vadd.xlane.f32.xlu0 %v5288_v40  ;;  %v12424_v50 = vld [vmem:[#allocation75_spill] sm:$0xff]  ;;  %v5024_v57 = vadd.f32 %v5023_v24, %v5022_v4  ;;  %v10488_v63 = vadd.f32 %v4799_v3, %v12430_v59  ;;  %v12437_v3 = vld [vmem:[#allocation142_spill] sm:$0xff] }
 0xc98   : > { %v10460_v40 = vadd.f32 %v4761_v60, %v12424_v50  ;;  %12426 = vst [vmem:[#allocation114_spill] sm:$0xff] %v10467_v27  ;;  %v4808_v10 = vpop.f32.mrf.mxu1  ;;  %v4797_v60 = vadd.f32 %v10387_v34, %v12427_v22  ;;  %v5320_v34 = vmul.f32 %v10447_v29, %v10447_v29  ;;  %v5332_v24 = vmul.f32 %v10467_v27, %v10467_v27  ;;  %v12435_v22 = vld [vmem:[#allocation13_spill] sm:$0xff] }
 0xc99   : > { %12431 = vst [vmem:[#allocation67_spill] sm:$0xff] %v10488_v63  ;;  %v5026_v18 = vadd.f32 %v5025_v20, %v5024_v57  ;;  %v12438_v20 = vld [vmem:[#allocation10_spill] sm:$0xff]  ;;  %v5035_v57 = vsel %vm3214_vm1, %v10419_v26, 0.0 }
 0xc9a   : > { %v5276_v36 = vadd.f32 %v10447_v29, %v10460_v40  ;;  %v10496_v50 = vadd.f32 %v4797_v60, %v12433_v14  ;;  %v5319_v48 = vmul.f32 %v10460_v40, %v10460_v40  ;;  %v10514_v0 = vadd.f32 %v4801_v6, %v12438_v20  ;;  %v4968_v26 = vpop.xlane.xlu1 %4967 }
 0xc9b   : > { %5351 = vadd.xlane.f32.xlu1 %v5350_v21  ;;  %5274 = vadd.xlane.f32.xlu0 %v5273_v53  ;;  %v12428_v21 = vld [vmem:[#allocation64_spill] sm:$0xff]  ;;  %v4807_v60 = vadd.f32 %v4806_v28, %v12437_v3 }
 0xc9c   : > { %v10475_v53 = vadd.f32 %v4791_v9, %v12428_v21  ;;  %v4810_v9 = vpop.f32.mrf.mxu1  ;;  %12434 = vst [vmem:[#allocation131_spill] sm:$0xff] %v10496_v50  ;;  %v5297_v33 = vadd.f32 %v10488_v63, %v10496_v50  ;;  %v5033_v21 = vsel %vm3214_vm1, %v10398_v42, 0.0  ;;  %12439 = vst [vmem:[#allocation66_spill] sm:$0xff] %v10514_v0  ;;  %v12442_v42 = vld [vmem:[#allocation143_spill] sm:$0xff] }
 0xc9d   : > { %v4811_v6 = vadd.f32 %v4810_v9, %v12442_v42  ;;  %v12447_v9 = vld [vmem:[#allocation7_spill] sm:$0xff] }
 0xc9e   : > { %12429 = vst [vmem:[#allocation88_spill] sm:$0xff] %v10475_v53  ;;  %v5294_v44 = vadd.f32 %v10467_v27, %v10475_v53  ;;  %v4812_v4 = vpop.f32.mrf.mxu1 }
 0xc9f   : > { %5369 = vadd.xlane.f32.xlu1 %v5368_v17  ;;  %5292 = vadd.xlane.f32.xlu0 %v5291_v54  ;;  %v4803_v17 = vadd.f32 %v4802_v37, %v12432_v43  ;;  %v5371_v54 = vadd.f32 %v5330_v45, %v5329_v12  ;;  %v5028_v37 = vadd.f32 %v5027_v32, %v5026_v18  ;;  %v5037_v18 = vsel %vm3214_vm1, %v10444_v39, 0.0 }
 0xca0   : > { %v5331_v12 = vmul.f32 %v10475_v53, %v10475_v53  ;;  %v5334_v32 = vmul.f32 %v10488_v63, %v10488_v63  ;;  %v4813_v43 = vadd.f32 %v4812_v4, %v12442_v42  ;;  %s5945_s18 = spop %5944 }
 0xca1   : > { %v10506_v23 = vadd.f32 %v4803_v17, %v12435_v22  ;;  %v5030_v45 = vadd.f32 %v5029_v13, %v5028_v37  ;;  %v12443_v13 = vld [vmem:[#allocation15_spill] sm:$0xff]  ;;  %s5017_s19 = smul.f32 3.0517578e-05, %s5945_s18 }
 0xca2   : > { %v5374_v17 = vadd.f32 %v5332_v24, %v5331_v12  ;;  %v10534_v14 = vadd.f32 %v4807_v60, %v12443_v13  ;;  %v4971_v60 = vpop.xlane.xlu1 %4970 }
 0xca3   : > { %5354 = vadd.xlane.f32.xlu1 %v5353_v15  ;;  %5277 = vadd.xlane.f32.xlu0 %v5276_v36  ;;  %12436 = vst [vmem:[#allocation72_spill] sm:$0xff] %v10506_v23  ;;  %v4809_v15 = vadd.f32 %v4808_v10, %v12437_v3  ;;  %v5356_v36 = vadd.f32 %v5320_v34, %v5319_v48  ;;  %v5045_v42 = vsel %vm3214_vm1, %v4971_v60, 0.0  ;;  %s5061_s20 = smul.f32 %s5017_s19, %s5017_s19 }
 0xca4   : > { %v5032_v10 = vadd.f32 %v5031_v25, %v5030_v45  ;;  %v5300_v28 = vadd.f32 %v10506_v23, %v10514_v0  ;;  %v5333_v34 = vmul.f32 %v10496_v50, %v10496_v50  ;;  %12444 = vst [vmem:[#allocation71_spill] sm:$0xff] %v10534_v14  ;;  %v12445_v25 = vld [vmem:[#allocation80_spill] sm:$0xff]  ;;  %v5336_v3 = vmul.f32 %v10506_v23, %v10506_v23 }
 0xca5   : > { %v10538_v24 = vadd.f32 %v4813_v43, %v12445_v25  ;;  %v5335_v45 = vmul.f32 %v10514_v0, %v10514_v0  ;;  %v5337_v4 = vmul.f32 %v10534_v14, %v10534_v14 }
 0xca6   : > { %v5377_v37 = vadd.f32 %v5334_v32, %v5333_v34 }
 0xca7   : > { %5372 = vadd.xlane.f32.xlu1 %v5371_v54  ;;  %5295 = vadd.xlane.f32.xlu0 %v5294_v44  ;;  %v12440_v44 = vld [vmem:[#allocation17_spill] sm:$0xff]  ;;  %v5034_v54 = vadd.f32 %v5033_v21, %v5032_v10  ;;  %12446 = vst [vmem:[#allocation68_spill] sm:$0xff] %v10538_v24  ;;  %v5041_v21 = vsel %vm3214_vm1, %v4965_v49, 0.0  ;;  %v5380_v12 = vadd.f32 %v5336_v3, %v5335_v45 }
 0xca8   : > { %v10524_v59 = vadd.f32 %v4809_v15, %v12440_v44 }
 0xca9   : > { %v5036_v48 = vadd.f32 %v5035_v57, %v5034_v54  ;;  %v5043_v57 = vsel %vm3214_vm1, %v4968_v26, 0.0 }
 0xcaa   : > { %12441 = vst [vmem:[#allocation2_spill] sm:$0xff] %v10524_v59  ;;  %v5303_v22 = vadd.f32 %v10524_v59, %v10534_v14  ;;  %v5338_v39 = vmul.f32 %v10524_v59, %v10524_v59 }
 0xcab   : > { %5357 = vadd.xlane.f32.xlu1 %v5356_v36  ;;  %5298 = vadd.xlane.f32.xlu0 %v5297_v33  ;;  %v5038_v15 = vadd.f32 %v5037_v18, %v5036_v48  ;;  %v5039_v36 = vsel %vm3214_vm1, %v4962_v58, 0.0  ;;  %v10548_v33 = vadd.f32 %v4811_v6, %v12447_v9  ;;  %v5340_v58 = vmul.f32 %v10538_v24, %v10538_v24 }
 0xcac   : > { %v5383_v10 = vadd.f32 %v5338_v39, %v5337_v4 }
 0xcad   : > { %12448 = vst [vmem:[#allocation94_spill] sm:$0xff] %v10548_v33  ;;  %v5040_v20 = vadd.f32 %v5039_v36, %v5038_v15  ;;  %v5339_v44 = vmul.f32 %v10548_v33, %v10548_v33  ;;  %v5306_v49 = vadd.f32 %v10538_v24, %v10548_v33 }
 0xcaf   : > { %5375 = vadd.xlane.f32.xlu1 %v5374_v17  ;;  %5301 = vadd.xlane.f32.xlu0 %v5300_v28  ;;  %v5042_v32 = vadd.f32 %v5041_v21, %v5040_v20  ;;  %v5386_v17 = vadd.f32 %v5340_v58, %v5339_v44  ;;  %v5047_v28 = vsel %vm3214_vm1, %v10285_v35, 0.0 }
 0xcb1   : > { %v5044_v43 = vadd.f32 %v5043_v57, %v5042_v32 }
 0xcb3   : > { %5378 = vadd.xlane.f32.xlu1 %v5377_v37  ;;  %5304 = vadd.xlane.f32.xlu0 %v5303_v22  ;;  %v5046_v54 = vadd.f32 %v5045_v42, %v5044_v43 }
 0xcb5   : > { %v5048_v34 = vadd.f32 %v5047_v28, %v5046_v54 }
 0xcb7   : > { %5381 = vadd.xlane.f32.xlu1 %v5380_v12  ;;  %5384 = vadd.xlane.f32.xlu0 %v5383_v10 }
 0xcbb   : > { %5307 = vadd.xlane.f32.xlu1 %v5306_v49  ;;  %5387 = vadd.xlane.f32.xlu0 %v5386_v17 }
 0xcbf   : > { %5049 = vadd.xlane.f32.xlu1 %v5048_v34 }
 0xd08   : > { %v5263_v18 = vpop.xlane.xlu1 %5262  ;;  %v5281_v26 = vpop.xlane.xlu0 %5280 }
 0xd09   : > { %v5389_v20 = vsel %vm3214_vm1, %v5263_v18, 0.0 }
 0xd0c   : > { %v5361_v13 = vpop.xlane.xlu1 %5360  ;;  %v5343_v6 = vpop.xlane.xlu0 %5342 }
 0xd0d   : > { %v5432_v54 = vsel %vm3214_vm1, %v5343_v6, 0.0 }
 0xd10   : > { %v5346_v48 = vpop.xlane.xlu1 %5345  ;;  %v5266_v37 = vpop.xlane.xlu0 %5265 }
 0xd11   : > { %v5390_v35 = vsel %vm3214_vm1, %v5266_v37, 0.0  ;;  %v5433_v43 = vsel %vm3214_vm1, %v5346_v48, 0.0 }
 0xd12   : > { %v5391_v12 = vadd.f32 %v5390_v35, %v5389_v20  ;;  %v5434_v37 = vadd.f32 %v5433_v43, %v5432_v54 }
 0xd14   : > { %v5364_v25 = vpop.xlane.xlu1 %5363  ;;  %v5284_v22 = vpop.xlane.xlu0 %5283 }
 0xd15   : > { %v5402_v48 = vsel %vm3214_vm1, %v5284_v22, 0.0 }
 0xd18   : > { %v5269_v3 = vpop.xlane.xlu1 %5268  ;;  %v5287_v39 = vpop.xlane.xlu0 %5286 }
 0xd19   : > { %v5392_v60 = vsel %vm3214_vm1, %v5269_v3, 0.0 }
 0xd1a   : > { %v5393_v58 = vadd.f32 %v5392_v60, %v5391_v12 }
 0xd1c   : > { %v5349_v15 = vpop.xlane.xlu1 %5348  ;;  %v5272_v36 = vpop.xlane.xlu0 %5271 }
 0xd1d   : > { %v5394_v10 = vsel %vm3214_vm1, %v5272_v36, 0.0  ;;  %v5435_v34 = vsel %vm3214_vm1, %v5349_v15, 0.0  ;;  %v5400_v36 = vsel %vm3214_vm1, %v5281_v26, 0.0  ;;  %v5404_v15 = vsel %vm3214_vm1, %v5287_v39, 0.0 }
 0xd1e   : > { %v5395_v42 = vadd.f32 %v5394_v10, %v5393_v58  ;;  %v5436_v20 = vadd.f32 %v5435_v34, %v5434_v37  ;;  %v5443_v34 = vsel %vm3214_vm1, %v5361_v13, 0.0  ;;  %v5445_v39 = vsel %vm3214_vm1, %v5364_v25, 0.0 }
 0xd20   : > { %v5367_v9 = vpop.xlane.xlu1 %5366  ;;  %v5290_v45 = vpop.xlane.xlu0 %5289 }
 0xd21   : > { %v5406_v26 = vsel %vm3214_vm1, %v5290_v45, 0.0  ;;  %v5447_v45 = vsel %vm3214_vm1, %v5367_v9, 0.0 }
 0xd24   : > { %v5352_v4 = vpop.xlane.xlu1 %5351  ;;  %v5275_v21 = vpop.xlane.xlu0 %5274 }
 0xd25   : > { %v5396_v44 = vsel %vm3214_vm1, %v5275_v21, 0.0  ;;  %v5437_v35 = vsel %vm3214_vm1, %v5352_v4, 0.0 }
 0xd26   : > { %v5397_v49 = vadd.f32 %v5396_v44, %v5395_v42  ;;  %v5438_v58 = vadd.f32 %v5437_v35, %v5436_v20 }
 0xd28   : > { %v5370_v57 = vpop.xlane.xlu1 %5369  ;;  %v5293_v32 = vpop.xlane.xlu0 %5292 }
 0xd29   : > { %v5408_v22 = vsel %vm3214_vm1, %v5293_v32, 0.0  ;;  %v5449_v32 = vsel %vm3214_vm1, %v5370_v57, 0.0 }
 0xd2c   : > { %v5355_v17 = vpop.xlane.xlu1 %5354  ;;  %v5278_v28 = vpop.xlane.xlu0 %5277 }
 0xd2d   : > { %v5398_v18 = vsel %vm3214_vm1, %v5278_v28, 0.0  ;;  %v5439_v10 = vsel %vm3214_vm1, %v5355_v17, 0.0 }
 0xd2e   : > { %v5399_v3 = vadd.f32 %v5398_v18, %v5397_v49  ;;  %v5440_v44 = vadd.f32 %v5439_v10, %v5438_v58 }
 0xd30   : > { %v5401_v21 = vadd.f32 %v5400_v36, %v5399_v3  ;;  %v5373_v60 = vpop.xlane.xlu1 %5372  ;;  %v5296_v12 = vpop.xlane.xlu0 %5295 }
 0xd31   : > { %v5410_v36 = vsel %vm3214_vm1, %v5296_v12, 0.0 }
 0xd32   : > { %v5403_v6 = vadd.f32 %v5402_v48, %v5401_v21 }
 0xd34   : > { %v5405_v42 = vadd.f32 %v5404_v15, %v5403_v6  ;;  %v5358_v43 = vpop.xlane.xlu1 %5357  ;;  %v5299_v49 = vpop.xlane.xlu0 %5298  ;;  %v5451_v15 = vsel %vm3214_vm1, %v5373_v60, 0.0 }
 0xd35   : > { %v5441_v4 = vsel %vm3214_vm1, %v5358_v43, 0.0  ;;  %v5412_v21 = vsel %vm3214_vm1, %v5299_v49, 0.0 }
 0xd36   : > { %v5407_v28 = vadd.f32 %v5406_v26, %v5405_v42  ;;  %v5442_v54 = vadd.f32 %v5441_v4, %v5440_v44 }
 0xd38   : > { %v5409_v18 = vadd.f32 %v5408_v22, %v5407_v28  ;;  %v5444_v17 = vadd.f32 %v5443_v34, %v5442_v54  ;;  %v5376_v37 = vpop.xlane.xlu1 %5375  ;;  %v5302_v3 = vpop.xlane.xlu0 %5301 }
 0xd39   : > { %v5414_v44 = vsel %vm3214_vm1, %v5302_v3, 0.0  ;;  %v5453_v26 = vsel %vm3214_vm1, %v5376_v37, 0.0 }
 0xd3a   : > { %v5411_v35 = vadd.f32 %v5410_v36, %v5409_v18  ;;  %v5446_v20 = vadd.f32 %v5445_v39, %v5444_v17 }
 0xd3c   : > { %v5413_v48 = vadd.f32 %v5412_v21, %v5411_v35  ;;  %v5448_v10 = vadd.f32 %v5447_v45, %v5446_v20  ;;  %v5379_v58 = vpop.xlane.xlu1 %5378  ;;  %v5305_v13 = vpop.xlane.xlu0 %5304 }
 0xd3d   : > { %v5455_v49 = vsel %vm3214_vm1, %v5379_v58, 0.0  ;;  %v5416_v4 = vsel %vm3214_vm1, %v5305_v13, 0.0 }
 0xd3e   : > { %v5450_v6 = vadd.f32 %v5449_v32, %v5448_v10  ;;  %v5415_v42 = vadd.f32 %v5414_v44, %v5413_v48 }
 0xd40   : > { %v5452_v25 = vadd.f32 %v5451_v15, %v5450_v6  ;;  %v5382_v12 = vpop.xlane.xlu1 %5381  ;;  %v5385_v43 = vpop.xlane.xlu0 %5384  ;;  %v5417_v54 = vadd.f32 %v5416_v4, %v5415_v42  ;;  %v10597_v6 = vstv %s5017_s19  ;;  %v12449_v15 = vld [vmem:[#allocation11_spill] sm:$0xff] }
 0xd41   : > { %v5457_v57 = vsel %vm3214_vm1, %v5382_v12, 0.0  ;;  %v5459_v3 = vsel %vm3214_vm1, %v5385_v43, 0.0  ;;  %v5064_v44 = vsub.f32 %v12449_v15, %v10597_v6  ;;  %v12451_v12 = vld [vmem:[#allocation8_spill] sm:$0xff] }
 0xd42   : > { %v5454_v9 = vadd.f32 %v5453_v26, %v5452_v25  ;;  %v12450_v25 = vld [vmem:[#allocation9_spill] sm:$0xff]  ;;  %v5066_v43 = vsub.f32 %v12451_v12, %v10597_v6  ;;  %v12452_v26 = vld [vmem:[#allocation130_spill] sm:$0xff] }
 0xd43   : > { %v5065_v42 = vsub.f32 %v12450_v25, %v10597_v6  ;;  %v12465_v25 = vld [vmem:[#allocation112_spill] sm:$0xff] }
 0xd44   : > { %v5456_v28 = vadd.f32 %v5455_v49, %v5454_v9  ;;  %v5308_v34 = vpop.xlane.xlu1 %5307  ;;  %v5388_v17 = vpop.xlane.xlu0 %5387  ;;  %v5067_v9 = vsub.f32 %v12452_v26, %v10597_v6  ;;  %v12453_v49 = vld [vmem:[#allocation132_spill] sm:$0xff]  ;;  %v5080_v12 = vsub.f32 %v12465_v25, %v10597_v6  ;;  %v12466_v26 = vld [vmem:[#allocation87_spill] sm:$0xff] }
 0xd45   : > { %v5418_v60 = vsel %vm3214_vm1, %v5308_v34, 0.0  ;;  %v5461_v37 = vsel %vm3214_vm1, %v5388_v17, 0.0  ;;  %v5068_v4 = vsub.f32 %v12453_v49, %v10597_v6  ;;  %v12455_v34 = vld [vmem:[#allocation128_spill] sm:$0xff]  ;;  %v5081_v49 = vsub.f32 %v12466_v26, %v10597_v6 }
 0xd46   : > { %v5458_v22 = vadd.f32 %v5457_v57, %v5456_v28  ;;  %v5419_v18 = vadd.f32 %v5418_v60, %v5417_v54  ;;  %v12454_v28 = vld [vmem:[#allocation133_spill] sm:$0xff]  ;;  %v5070_v57 = vsub.f32 %v12455_v34, %v10597_v6  ;;  %v12456_v60 = vld [vmem:[#allocation126_spill] sm:$0xff]  ;;  %v12473_v26 = vld [vmem:[#allocation104_spill] sm:$0xff] }
 0xd47   : > { %v5069_v54 = vsub.f32 %v12454_v28, %v10597_v6  ;;  %v12467_v28 = vld [vmem:[#allocation5_spill] sm:$0xff]  ;;  %v5088_v24 = vsub.f32 %v12473_v26, %v10597_v6  ;;  %v12480_v26 = vld [vmem:[#allocation100_spill] sm:$0xff] }
 0xd48   : > { %v5460_v39 = vadd.f32 %v5459_v3, %v5458_v22  ;;  %v5050_v36 = vpop.xlane.xlu1 %5049  ;;  %5420 = vadd.xlane.f32.xlu1 %v5419_v18  ;;  %v5071_v22 = vsub.f32 %v12456_v60, %v10597_v6  ;;  %v12457_v18 = vld [vmem:[#allocation127_spill] sm:$0xff]  ;;  %v12458_v3 = vld [vmem:[#allocation124_spill] sm:$0xff]  ;;  %v5082_v34 = vsub.f32 %v12467_v28, %v10597_v6  ;;  %v12468_v60 = vld [vmem:[#allocation110_spill] sm:$0xff]  ;;  %v5095_v50 = vsub.f32 %v12480_v26, %v10597_v6 }
 0xd49   : > { %v5051_v35 = vrot.slane %v5050_v36, 4  ;;  %v5072_v17 = vsub.f32 %v12457_v18, %v10597_v6  ;;  %v5083_v18 = vsub.f32 %v12468_v60, %v10597_v6  ;;  %v12474_v28 = vld [vmem:[#allocation103_spill] sm:$0xff]  ;;  %v12475_v60 = vld [vmem:[#allocation105_spill] sm:$0xff] }
 0xd4a   : > { %v5462_v20 = vadd.f32 %v5461_v37, %v5460_v39  ;;  %v5073_v39 = vsub.f32 %v12458_v3, %v10597_v6  ;;  %v12469_v3 = vld [vmem:[#allocation111_spill] sm:$0xff]  ;;  %v5089_v33 = vsub.f32 %v12474_v28, %v10597_v6  ;;  %v5090_v59 = vsub.f32 %v12475_v60, %v10597_v6 }
 0xd4b   : > { %v5052_v45 = vadd.f32 %v5051_v35, %v5050_v36  ;;  %v12459_v36 = vld [vmem:[#allocation120_spill] sm:$0xff]  ;;  %v12460_v35 = vld [vmem:[#allocation125_spill] sm:$0xff] }
 0xd4c   : > { %5463 = vadd.xlane.f32.xlu0 %v5462_v20  ;;  %v5074_v37 = vsub.f32 %v12459_v36, %v10597_v6  ;;  %v5075_v20 = vsub.f32 %v12460_v35, %v10597_v6  ;;  %v5084_v36 = vsub.f32 %v12469_v3, %v10597_v6  ;;  %v12470_v35 = vld [vmem:[#allocation108_spill] sm:$0xff]  ;;  %v12476_v3 = vld [vmem:[#allocation106_spill] sm:$0xff] }
 0xd4d   : > { %v5053_v21 = vrot.slane %v5052_v45, 2  ;;  %v5091_v14 = vsub.f32 %v12476_v3, %v10597_v6 }
 0xd4f   : > { %v5054_v48 = vadd.f32 %v5053_v21, %v5052_v45  ;;  %v12461_v45 = vld [vmem:[#allocation121_spill] sm:$0xff] }
 0xd50   : > { %v5076_v21 = vsub.f32 %v12461_v45, %v10597_v6  ;;  %v5085_v45 = vsub.f32 %v12470_v35, %v10597_v6  ;;  %v12477_v35 = vld [vmem:[#allocation101_spill] sm:$0xff] }
 0xd51   : > { %v5055_v10 = vrot.slane %v5054_v48, 1  ;;  %v5092_v23 = vsub.f32 %v12477_v35, %v10597_v6 }
 0xd53   : > { %v5056_v58 = vadd.f32 %v5055_v10, %v5054_v48  ;;  %v12462_v48 = vld [vmem:[#allocation86_spill] sm:$0xff] }
 0xd54   : > { %v5077_v10 = vsub.f32 %v12462_v48, %v10597_v6  ;;  %v12471_v48 = vld [vmem:[#allocation109_spill] sm:$0xff] }
 0xd55   : > { %5946 = vpush %v5056_v58  ;;  %v12463_v58 = vld [vmem:[#allocation119_spill] sm:$0xff] }
 0xd86   : > { %s5947_s22 = spop %5946 }
 0xd87   : > { %s5060_s24 = smul.f32 3.0517578e-05, %s5947_s22 }
 0xd89   : > { %s5062_s23 = ssub.f32 %s5060_s24, %s5061_s20 }
 0xd8b   : > { %s5096_s30 = sadd.f32 1e-05, %s5062_s23 }
 0xd8d   : > { %v5097_v13 = vstv %s5096_s30 }
 0xd8e   : > { %6382 = vrsqrt.f32 %v5097_v13  ;;  %v5078_v13 = vsub.f32 %v12463_v58, %v10597_v6  ;;  %v5086_v58 = vsub.f32 %v12471_v48, %v10597_v6  ;;  %v12478_v48 = vld [vmem:[#allocation3_spill] sm:$0xff] }
 0xd8f   : > { %v5093_v0 = vsub.f32 %v12478_v48, %v10597_v6 }
 0xd9b   : > { %v6383_v32 = vpop.eup %6382 }
 0xd9c   : > { %5948 = vpush %v6383_v32  ;;  %v12464_v32 = vld [vmem:[#allocation115_spill] sm:$0xff] }
 0xd9d   : > { %v5079_v15 = vsub.f32 %v12464_v32, %v10597_v6  ;;  %v12472_v32 = vld [vmem:[#allocation4_spill] sm:$0xff] }
 0xd9e   : > { %v5087_v25 = vsub.f32 %v12472_v32, %v10597_v6  ;;  %v12479_v32 = vld [vmem:[#allocation102_spill] sm:$0xff] }
 0xd9f   : > { %v5094_v63 = vsub.f32 %v12479_v32, %v10597_v6 }
 0xdcd   : > { %s5949_s26 = spop %5948 }
 0xdce   : > { %v5100_v28 = vstv %s5949_s26 }
 0xdcf   : > { %v5101_v27 = vmul.f32 %v5100_v28, %v5064_v44  ;;  %v5102_v53 = vmul.f32 %v5100_v28, %v5065_v42  ;;  %v5103_v60 = vmul.f32 %v5100_v28, %v5066_v43  ;;  %v5104_v41 = vmul.f32 %v5100_v28, %v5067_v9 }
 0xdd0   : > { %v5105_v56 = vmul.f32 %v5100_v28, %v5068_v4  ;;  %v5106_v3 = vmul.f32 %v5100_v28, %v5069_v54  ;;  %v5107_v52 = vmul.f32 %v5100_v28, %v5070_v57  ;;  %v5108_v38 = vmul.f32 %v5100_v28, %v5071_v22 }
 0xdd1   : > { %v5109_v35 = vmul.f32 %v5100_v28, %v5072_v17  ;;  %v5110_v1 = vmul.f32 %v5100_v28, %v5073_v39  ;;  %v5111_v46 = vmul.f32 %v5100_v28, %v5074_v37  ;;  %v5112_v62 = vmul.f32 %v5100_v28, %v5075_v20 }
 0xdd2   : > { %v5113_v48 = vmul.f32 %v5100_v28, %v5076_v21  ;;  %v5114_v47 = vmul.f32 %v5100_v28, %v5077_v10  ;;  %v5115_v5 = vmul.f32 %v5100_v28, %v5078_v13  ;;  %v5116_v32 = vmul.f32 %v5100_v28, %v5079_v15  ;;  %v12481_v21 = vld [vmem:[#allocation76_spill] sm:$0xff]  ;;  %v12482_v13 = vld [vmem:[#allocation98_spill] sm:$0xff] }
 0xdd3   : > { %v5117_v19 = vmul.f32 %v5100_v28, %v5080_v12  ;;  %v5118_v29 = vmul.f32 %v5100_v28, %v5081_v49  ;;  %v5119_v6 = vmul.f32 %v5100_v28, %v5082_v34  ;;  %v5120_v26 = vmul.f32 %v5100_v28, %v5083_v18  ;;  %v12483_v12 = vld [vmem:[#allocation93_spill] sm:$0xff]  ;;  %v12484_v34 = vld [vmem:[#allocation99_spill] sm:$0xff] }
 0xdd4   : > { %v5121_v44 = vmul.f32 %v5100_v28, %v5084_v36  ;;  %v5122_v42 = vmul.f32 %v5100_v28, %v5085_v45  ;;  %v5123_v43 = vmul.f32 %v5100_v28, %v5086_v58  ;;  %v5124_v9 = vmul.f32 %v5100_v28, %v5087_v25  ;;  %v12485_v36 = vld [vmem:[#allocation90_spill] sm:$0xff]  ;;  %v12486_v58 = vld [vmem:[#allocation44_spill] sm:$0xff] }
 0xdd5   : > { %v5125_v4 = vmul.f32 %v5100_v28, %v5088_v24  ;;  %v5126_v54 = vmul.f32 %v5100_v28, %v5089_v33  ;;  %v5127_v57 = vmul.f32 %v5100_v28, %v5090_v59  ;;  %v5128_v22 = vmul.f32 %v5100_v28, %v5091_v14  ;;  %v12487_v24 = vld [vmem:[#allocation79_spill] sm:$0xff]  ;;  %v12488_v59 = vld [vmem:[#allocation42_spill] sm:$0xff] }
 0xdd6   : > { %v5129_v17 = vmul.f32 %v5100_v28, %v5092_v23  ;;  %v5130_v39 = vmul.f32 %v5100_v28, %v5093_v0  ;;  %v5131_v37 = vmul.f32 %v5100_v28, %v5094_v63  ;;  %v5132_v20 = vmul.f32 %v5100_v28, %v5095_v50  ;;  %v12489_v23 = vld [vmem:[#allocation91_spill] sm:$0xff]  ;;  %v12490_v63 = vld [vmem:[#allocation41_spill] sm:$0xff]  ;;  %v12491_v28 = vld [vmem:[#allocation92_spill] sm:$0xff] }
 0xdd7   : > { %v5133_v10 = vmul.f32 %v5101_v27, %v12481_v21  ;;  %v5134_v15 = vmul.f32 %v5102_v53, %v12482_v13  ;;  %v5135_v49 = vmul.f32 %v5103_v60, %v12483_v12  ;;  %v5136_v18 = vmul.f32 %v5104_v41, %v12484_v34  ;;  %v12492_v21 = vld [vmem:[#allocation38_spill] sm:$0xff]  ;;  %v12494_v12 = vld [vmem:[#allocation37_spill] sm:$0xff] }
 0xdd8   : > { %v5137_v45 = vmul.f32 %v5105_v56, %v12485_v36  ;;  %v5138_v25 = vmul.f32 %v5106_v3, %v12486_v58  ;;  %v5139_v33 = vmul.f32 %v5107_v52, %v12487_v24  ;;  %v5140_v14 = vmul.f32 %v5108_v38, %v12488_v59  ;;  %v12493_v13 = vld [vmem:[#allocation78_spill] sm:$0xff]  ;;  %v12495_v56 = vld [vmem:[#allocation85_spill] sm:$0xff]  ;;  %v12496_v3 = vld [vmem:[#allocation36_spill] sm:$0xff] }
 0xdd9   : > { %v5141_v0 = vmul.f32 %v5109_v35, %v12489_v23  ;;  %v5142_v50 = vmul.f32 %v5110_v1, %v12490_v63  ;;  %v5143_v27 = vmul.f32 %v5111_v46, %v12491_v28  ;;  %v5144_v53 = vmul.f32 %v5112_v62, %v12492_v21  ;;  %v12497_v52 = vld [vmem:[#allocation89_spill] sm:$0xff]  ;;  %v12499_v35 = vld [vmem:[#allocation52_spill] sm:$0xff]  ;;  %v12502_v62 = vld [vmem:[#allocation27_spill] sm:$0xff] }
 0xdda   : > { %v5145_v60 = vmul.f32 %v5113_v48, %v12493_v13  ;;  %v5146_v41 = vmul.f32 %v5114_v47, %v12494_v12  ;;  %v5147_v34 = vmul.f32 %v5115_v5, %v12495_v56  ;;  %v5148_v36 = vmul.f32 %v5116_v32, %v12496_v3  ;;  %v12498_v38 = vld [vmem:[#allocation33_spill] sm:$0xff]  ;;  %v12500_v1 = vld [vmem:[#allocation32_spill] sm:$0xff]  ;;  %v12503_v48 = vld [vmem:[#allocation47_spill] sm:$0xff] }
 0xddb   : > { %v5149_v58 = vmul.f32 %v5117_v19, %v12497_v52  ;;  %v5150_v24 = vmul.f32 %v5118_v29, %v12498_v38  ;;  %v5151_v59 = vmul.f32 %v5119_v6, %v12499_v35  ;;  %v5152_v23 = vmul.f32 %v5120_v26, %v12500_v1  ;;  %v12501_v46 = vld [vmem:[#allocation16_spill] sm:$0xff]  ;;  %v12505_v12 = vld [vmem:[#allocation21_spill] sm:$0xff]  ;;  %v12506_v56 = vld [vmem:[#allocation18_spill] sm:$0xff] }
 0xddc   : > { %v5153_v63 = vmul.f32 %v5121_v44, %v12501_v46  ;;  %v5154_v28 = vmul.f32 %v5122_v42, %v12502_v62  ;;  %v5155_v21 = vmul.f32 %v5123_v43, %v12503_v48  ;;  %v12504_v13 = vld [vmem:[#allocation28_spill] sm:$0xff]  ;;  %v5157_v5 = vmul.f32 %v5125_v4, %v12505_v12  ;;  %v12507_v3 = vld [vmem:[#allocation57_spill] sm:$0xff]  ;;  %v12509_v6 = vld [vmem:[#allocation14_spill] sm:$0xff] }
 0xddd   : > { %v5156_v47 = vmul.f32 %v5124_v9, %v12504_v13  ;;  %v5158_v32 = vmul.f32 %v5126_v54, %v12506_v56  ;;  %v5159_v19 = vmul.f32 %v5127_v57, %v12507_v3  ;;  %v12508_v52 = vld [vmem:[#allocation24_spill] sm:$0xff]  ;;  %v5161_v26 = vmul.f32 %v5129_v17, %v12509_v6  ;;  %v12510_v44 = vld [vmem:[#allocation19_spill] sm:$0xff]  ;;  %v12511_v43 = vld [vmem:[#allocation53_spill] sm:$0xff] }
 0xdde   : > { %v5160_v29 = vmul.f32 %v5128_v22, %v12508_v52  ;;  %v5162_v42 = vmul.f32 %v5130_v39, %v12510_v44  ;;  %v5163_v9 = vmul.f32 %v5131_v37, %v12511_v43  ;;  %v12512_v4 = vld [vmem:[#allocation20_spill] sm:$0xff]  ;;  %v12513_v38 = vld [vmem:[#allocation122_spill] sm:$0xff]  ;;  %v12514_v22 = vld [vmem:[#allocation117_spill] sm:$0xff] }
 0xddf   : > { %v5164_v54 = vmul.f32 %v5132_v20, %v12512_v4  ;;  %v5165_v57 = vadd.f32 %v5133_v10, %v12513_v38  ;;  %v5166_v35 = vadd.f32 %v5134_v15, %v12514_v22  ;;  %v12515_v1 = vld [vmem:[#allocation123_spill] sm:$0xff]  ;;  %v12516_v62 = vld [vmem:[#allocation118_spill] sm:$0xff]  ;;  %v12517_v13 = vld [vmem:[#allocation116_spill] sm:$0xff] }
 0xde0   : > { %v5167_v46 = vadd.f32 %v5135_v49, %v12515_v1  ;;  %v5168_v48 = vadd.f32 %v5136_v18, %v12516_v62  ;;  %v5169_v17 = vadd.f32 %v5137_v45, %v12517_v13  ;;  %v12518_v12 = vld [vmem:[#allocation96_spill] sm:$0xff]  ;;  %v12520_v3 = vld [vmem:[#allocation97_spill] sm:$0xff]  ;;  %v12521_v52 = vld [vmem:[#allocation59_spill] sm:$0xff] }
 0xde1   : > { %v5170_v39 = vadd.f32 %v5138_v25, %v12518_v12  ;;  %v12519_v56 = vld [vmem:[#allocation40_spill] sm:$0xff]  ;;  %v5172_v20 = vadd.f32 %v5140_v14, %v12520_v3  ;;  %v5173_v10 = vadd.f32 %v5141_v0, %v12521_v52  ;;  %v12522_v6 = vld [vmem:[#allocation43_spill] sm:$0xff]  ;;  %v12524_v43 = vld [vmem:[#allocation45_spill] sm:$0xff]  ;;  %5197 = vst [vmem:[%s10695_s28] sm:$0xff] %v5165_v57 }
 0xde2   : > { %v5171_v37 = vadd.f32 %v5139_v33, %v12519_v56  ;;  %v5174_v15 = vadd.f32 %v5142_v50, %v12522_v6  ;;  %v12523_v44 = vld [vmem:[#allocation51_spill] sm:$0xff]  ;;  %v5176_v18 = vadd.f32 %v5144_v53, %v12524_v43  ;;  %5198 = vst [vmem:[%s10695_s28 + $0x8] sm:$0xff] %v5166_v35  ;;  %5199 = vst [vmem:[%s10695_s28 + $0x10] sm:$0xff] %v5167_v46  ;;  %v12525_v45 = vld [vmem:[#allocation34_spill] sm:$0xff] }
 0xde3   : > { %v5175_v49 = vadd.f32 %v5143_v27, %v12523_v44  ;;  %5200 = vst [vmem:[%s10695_s28 + $0x18] sm:$0xff] %v5168_v48  ;;  %v5177_v25 = vadd.f32 %v5145_v60, %v12525_v45  ;;  %v12526_v33 = vld [vmem:[#allocation56_spill] sm:$0xff]  ;;  %v12527_v4 = vld [vmem:[#allocation39_spill] sm:$0xff]  ;;  %v12528_v38 = vld [vmem:[#allocation58_spill] sm:$0xff] }
 0xde4   : > { %v5178_v14 = vadd.f32 %v5146_v41, %v12526_v33  ;;  %v5179_v0 = vadd.f32 %v5147_v34, %v12527_v4  ;;  %v5180_v50 = vadd.f32 %v5148_v36, %v12528_v38  ;;  %5201 = vst [vmem:[%s10695_s28 + $0x20] sm:$0xff] %v5169_v17  ;;  %5202 = vst [vmem:[%s10695_s28 + $0x28] sm:$0xff] %v5170_v39  ;;  %v12529_v27 = vld [vmem:[#allocation30_spill] sm:$0xff]  ;;  %v12531_v35 = vld [vmem:[#allocation35_spill] sm:$0xff] }
 0xde5   : > { %5203 = vst [vmem:[%s10695_s28 + $0x30] sm:$0xff] %v5171_v37  ;;  %5204 = vst [vmem:[%s10695_s28 + $0x38] sm:$0xff] %v5172_v20  ;;  %v5181_v53 = vadd.f32 %v5149_v58, %v12529_v27  ;;  %v12530_v57 = vld [vmem:[#allocation54_spill] sm:$0xff]  ;;  %v5183_v60 = vadd.f32 %v5151_v59, %v12531_v35  ;;  %v12532_v1 = vld [vmem:[#allocation60_spill] sm:$0xff]  ;;  %v5421_v59 = vpop.xlane.xlu1 %5420 }
 0xde6   : > { %v5182_v22 = vadd.f32 %v5150_v24, %v12530_v57  ;;  %v5184_v41 = vadd.f32 %v5152_v23, %v12532_v1  ;;  %5205 = vst [vmem:[%s10695_s28 + $0x40] sm:$0xff] %v5173_v10  ;;  %5206 = vst [vmem:[%s10695_s28 + $0x48] sm:$0xff] %v5174_v15  ;;  %v12533_v34 = vld [vmem:[#allocation26_spill] sm:$0xff]  ;;  %v12534_v46 = vld [vmem:[#allocation61_spill] sm:$0xff]  ;;  %v5464_v23 = vpop.xlane.xlu0 %5463 }
 0xde7   : > { %5207 = vst [vmem:[%s10695_s28 + $0x50] sm:$0xff] %v5175_v49  ;;  %5208 = vst [vmem:[%s10695_s28 + $0x58] sm:$0xff] %v5176_v18  ;;  %v5185_v36 = vadd.f32 %v5153_v63, %v12533_v34  ;;  %v5186_v62 = vadd.f32 %v5154_v28, %v12534_v46  ;;  %v12535_v48 = vld [vmem:[#allocation31_spill] sm:$0xff]  ;;  %v12536_v13 = vld [vmem:[#allocation46_spill] sm:$0xff]  ;;  %v5465_v6 = vrot.slane %v5464_v23, 4 }
 0xde8   : > { %v5187_v58 = vadd.f32 %v5155_v21, %v12535_v48  ;;  %v5188_v24 = vadd.f32 %v5156_v47, %v12536_v13  ;;  %5209 = vst [vmem:[%s10695_s28 + $0x60] sm:$0xff] %v5177_v25  ;;  %5210 = vst [vmem:[%s10695_s28 + $0x68] sm:$0xff] %v5178_v14  ;;  %v12537_v17 = vld [vmem:[#allocation22_spill] sm:$0xff]  ;;  %v12538_v12 = vld [vmem:[#allocation49_spill] sm:$0xff] }
 0xde9   : > { %5211 = vst [vmem:[%s10695_s28 + $0x70] sm:$0xff] %v5179_v0  ;;  %5212 = vst [vmem:[%s10695_s28 + $0x78] sm:$0xff] %v5180_v50  ;;  %v5189_v63 = vadd.f32 %v5157_v5, %v12537_v17  ;;  %v5190_v28 = vadd.f32 %v5158_v32, %v12538_v12  ;;  %v12539_v39 = vld [vmem:[#allocation50_spill] sm:$0xff]  ;;  %v12540_v56 = vld [vmem:[#allocation29_spill] sm:$0xff] }
 0xdea   : > { %v5191_v21 = vadd.f32 %v5159_v19, %v12539_v39  ;;  %v5192_v47 = vadd.f32 %v5160_v29, %v12540_v56  ;;  %5213 = vst [vmem:[%s10695_s28 + $0x80] sm:$0xff] %v5181_v53  ;;  %5214 = vst [vmem:[%s10695_s28 + $0x88] sm:$0xff] %v5182_v22  ;;  %v12541_v37 = vld [vmem:[#allocation62_spill] sm:$0xff]  ;;  %v12542_v20 = vld [vmem:[#allocation23_spill] sm:$0xff]  ;;  %v5422_v29 = vrot.slane %v5421_v59, 4 }
 0xdeb   : > { %5215 = vst [vmem:[%s10695_s28 + $0x90] sm:$0xff] %v5183_v60  ;;  %5216 = vst [vmem:[%s10695_s28 + $0x98] sm:$0xff] %v5184_v41  ;;  %v5193_v3 = vadd.f32 %v5161_v26, %v12541_v37  ;;  %v5194_v5 = vadd.f32 %v5162_v42, %v12542_v20  ;;  %v12543_v52 = vld [vmem:[#allocation48_spill] sm:$0xff]  ;;  %v12544_v10 = vld [vmem:[#allocation25_spill] sm:$0xff]  ;;  %v5466_v42 = vadd.f32 %v5465_v6, %v5464_v23 }
 0xdec   : > { %v5195_v32 = vadd.f32 %v5163_v9, %v12543_v52  ;;  %v5196_v19 = vadd.f32 %v5164_v54, %v12544_v10  ;;  %5217 = vst [vmem:[%s10695_s28 + $0xa0] sm:$0xff] %v5185_v36  ;;  %5218 = vst [vmem:[%s10695_s28 + $0xa8] sm:$0xff] %v5186_v62  ;;  %v5423_v26 = vadd.f32 %v5422_v29, %v5421_v59  ;;  %v10772_v14 = vld [vmem:[%s11239_s10] sm:$0xff]  ;;  %v10777_v4 = vld [vmem:[%s11239_s10 + $0x8] sm:$0xff] }
 0xded   : > { %5219 = vst [vmem:[%s10695_s28 + $0xb0] sm:$0xff] %v5187_v58  ;;  %5220 = vst [vmem:[%s10695_s28 + $0xb8] sm:$0xff] %v5188_v24  ;;  %v5467_v9 = vrot.slane %v5466_v42, 2  ;;  %v10782_v0 = vld [vmem:[%s11239_s10 + $0x10] sm:$0xff]  ;;  %v10787_v38 = vld [vmem:[%s11239_s10 + $0x18] sm:$0xff] }
 0xdee   : > { %5221 = vst [vmem:[%s10695_s28 + $0xc0] sm:$0xff] %v5189_v63  ;;  %5222 = vst [vmem:[%s10695_s28 + $0xc8] sm:$0xff] %v5190_v28  ;;  %v5424_v15 = vrot.slane %v5423_v26, 2  ;;  %v10792_v50 = vld [vmem:[%s11239_s10 + $0x20] sm:$0xff]  ;;  %v10797_v27 = vld [vmem:[%s11239_s10 + $0x28] sm:$0xff] }
 0xdef   : > { %5223 = vst [vmem:[%s10695_s28 + $0xd0] sm:$0xff] %v5191_v21  ;;  %5224 = vst [vmem:[%s10695_s28 + $0xd8] sm:$0xff] %v5192_v47  ;;  %v5468_v54 = vadd.f32 %v5467_v9, %v5466_v42  ;;  %v10802_v53 = vld [vmem:[%s11239_s10 + $0x30] sm:$0xff]  ;;  %v10809_v35 = vld [vmem:[%s11239_s10 + $0x38] sm:$0xff] }
 0xdf0   : > { %5225 = vst [vmem:[%s10695_s28 + $0xe0] sm:$0xff] %v5193_v3  ;;  %5226 = vst [vmem:[%s10695_s28 + $0xe8] sm:$0xff] %v5194_v5  ;;  %v5425_v44 = vadd.f32 %v5424_v15, %v5423_v26  ;;  %v10814_v60 = vld [vmem:[%s11239_s10 + $0x40] sm:$0xff]  ;;  %v10823_v46 = vld [vmem:[%s11239_s10 + $0x48] sm:$0xff] }
 0xdf1   : > { %5227 = vst [vmem:[%s10695_s28 + $0xf0] sm:$0xff] %v5195_v32  ;;  %5228 = vst [vmem:[%s10695_s28 + $0xf8] sm:$0xff] %v5196_v19  ;;  %v5469_v43 = vrot.slane %v5468_v54, 1  ;;  %v10828_v62 = vld [vmem:[%s11239_s10 + $0x50] sm:$0xff]  ;;  %v10837_v59 = vld [vmem:[%s11239_s10 + $0x58] sm:$0xff] }
 0xdf2   : > { %v5426_v49 = vrot.slane %v5425_v44, 1  ;;  %12545 = vst [vmem:[#allocation134_spill] sm:$0xff] %v10837_v59  ;;  %v10842_v23 = vld [vmem:[%s11239_s10 + $0x60] sm:$0xff]  ;;  %v10851_v39 = vld [vmem:[%s11239_s10 + $0x68] sm:$0xff]  ;;  %v10856_v21 = vld [vmem:[%s11239_s10 + $0x70] sm:$0xff] }
 0xdf3   : > { %v5470_v45 = vadd.f32 %v5469_v43, %v5468_v54  ;;  %12546 = vst [vmem:[#allocation84_spill] sm:$0xff] %v10842_v23  ;;  %12547 = vst [vmem:[#allocation113_spill] sm:$0xff] %v10851_v39  ;;  %v10865_v20 = vld [vmem:[%s11239_s10 + $0x78] sm:$0xff]  ;;  %v10874_v19 = vld [vmem:[%s11240_s11] sm:$0xff] }
 0xdf4   : > { %v5427_v18 = vadd.f32 %v5426_v49, %v5425_v44  ;;  %12548 = vst [vmem:[#allocation77_spill] sm:$0xff] %v10856_v21  ;;  %12549 = vst [vmem:[#allocation73_spill] sm:$0xff] %v10865_v20  ;;  %v10883_v15 = vld [vmem:[%s11240_s11 + $0x8] sm:$0xff]  ;;  %v10888_v9 = vld [vmem:[%s11240_s11 + $0x10] sm:$0xff] }
 0xdf5   : > { %12550 = vst [vmem:[#allocation82_spill] sm:$0xff] %v10874_v19  ;;  %12551 = vst [vmem:[#allocation129_spill] sm:$0xff] %v10883_v15  ;;  %v10909_v49 = vld [vmem:[%s11240_s11 + $0x28] sm:$0xff]  ;;  %v10914_v43 = vld [vmem:[%s11240_s11 + $0x30] sm:$0xff] }
 0xdf6   : > { %5950 = vpush %v5427_v18  ;;  %12552 = vst [vmem:[#allocation65_spill] sm:$0xff] %v10888_v9  ;;  %v10897_v18 = vld [vmem:[%s11240_s11 + $0x18] sm:$0xff]  ;;  %v10935_v44 = vld [vmem:[%s11240_s11 + $0x48] sm:$0xff] }
 0xdf7   : > { %5952 = vpush %v5470_v45  ;;  %12553 = vst [vmem:[#allocation55_spill] sm:$0xff] %v10897_v18  ;;  %v10902_v45 = vld [vmem:[%s11240_s11 + $0x20] sm:$0xff]  ;;  %v10940_v29 = vld [vmem:[%s11240_s11 + $0x50] sm:$0xff] }
 0xdf8   : > { %12554 = vst [vmem:[#allocation70_spill] sm:$0xff] %v10902_v45  ;;  %12555 = vst [vmem:[#allocation75_spill] sm:$0xff] %v10909_v49  ;;  %v10949_v54 = vld [vmem:[%s11240_s11 + $0x58] sm:$0xff]  ;;  %v10954_v32 = vld [vmem:[%s11240_s11 + $0x60] sm:$0xff] }
 0xdf9   : > { %12556 = vst [vmem:[#allocation83_spill] sm:$0xff] %v10914_v43  ;;  %12559 = vst [vmem:[#allocation12_spill] sm:$0xff] %v10935_v44  ;;  %v10963_v6 = vld [vmem:[%s11240_s11 + $0x68] sm:$0xff]  ;;  %v10968_v5 = vld [vmem:[%s11240_s11 + $0x70] sm:$0xff] }
 0xdfa   : > { %12560 = vst [vmem:[#allocation141_spill] sm:$0xff] %v10940_v29  ;;  %12561 = vst [vmem:[#allocation95_spill] sm:$0xff] %v10949_v54  ;;  %v10980_v26 = vld [vmem:[%s11240_s11 + $0x78] sm:$0xff] }
 0xdfb   : > { %12562 = vst [vmem:[#allocation13_spill] sm:$0xff] %v10954_v32  ;;  %12563 = vst [vmem:[#allocation142_spill] sm:$0xff] %v10963_v6 }
 0xdfc   : > { %12564 = vst [vmem:[#allocation10_spill] sm:$0xff] %v10968_v5  ;;  %12565 = vst [vmem:[#allocation17_spill] sm:$0xff] %v10980_v26 }
 0xe27   : > { %s5951_s29 = spop %5950 }
 0xe28   : > { %s10765_s14 = smul.f32 3.0517578e-05, %s5951_s29  ;;  %s5953_s15 = spop %5952 }
 0xe29   : > { %s5474_s17 = smul.f32 3.0517578e-05, %s5953_s15 }
 0xe2a   : > { %s5475_s18 = smul.f32 %s10765_s14, %s10765_s14  ;;  %v10975_v37 = vstv %s10765_s14 }
 0xe2b   : > { %v5574_v52 = vsub.f32 %v10306_v61, %v10975_v37  ;;  %v5575_v42 = vsub.f32 %v10300_v11, %v10975_v37  ;;  %v5576_v12 = vsub.f32 %v10329_v2, %v10975_v37  ;;  %v5577_v17 = vsub.f32 %v10326_v51, %v10975_v37 }
 0xe2c   : > { %s5476_s19 = ssub.f32 %s5474_s17, %s5475_s18  ;;  %v5578_v47 = vsub.f32 %v10371_v31, %v10975_v37  ;;  %v5579_v28 = vsub.f32 %v10358_v7, %v10975_v37  ;;  %v5580_v3 = vsub.f32 %v10390_v16, %v10975_v37  ;;  %v5581_v61 = vsub.f32 %v10379_v8, %v10975_v37  ;;  %v12566_v31 = vld [vmem:[#allocation6_spill] sm:$0xff]  ;;  %v12567_v7 = vld [vmem:[#allocation139_spill] sm:$0xff]  ;;  %v12568_v16 = vld [vmem:[#allocation140_spill] sm:$0xff]  ;;  %s11120_s17 = scalar_lea.vmem %s11242_s13, %s6560_s16 }
 0xe2d   : > { %v5582_v11 = vsub.f32 %v10422_v55, %v10975_v37  ;;  %v5583_v2 = vsub.f32 %v10413_v30, %v10975_v37  ;;  %v5584_v51 = vsub.f32 %v10460_v40, %v10975_v37  ;;  %v5585_v56 = vsub.f32 %v12566_v31, %v10975_v37  ;;  %v12569_v8 = vld [vmem:[#allocation137_spill] sm:$0xff]  ;;  %v12570_v55 = vld [vmem:[#allocation138_spill] sm:$0xff]  ;;  %v12571_v30 = vld [vmem:[#allocation136_spill] sm:$0xff] }
 0xe2e   : > { %s5606_s20 = sadd.f32 1e-05, %s5476_s19  ;;  %v5586_v63 = vsub.f32 %v12567_v7, %v10975_v37  ;;  %v5587_v10 = vsub.f32 %v12568_v16, %v10975_v37  ;;  %v5588_v24 = vsub.f32 %v12569_v8, %v10975_v37  ;;  %v5589_v13 = vsub.f32 %v12570_v55, %v10975_v37  ;;  %v12572_v40 = vld [vmem:[#allocation135_spill] sm:$0xff]  ;;  %v12574_v7 = vld [vmem:[#allocation81_spill] sm:$0xff]  ;;  %v12575_v16 = vld [vmem:[#allocation74_spill] sm:$0xff] }
 0xe2f   : > { %v5590_v58 = vsub.f32 %v12571_v30, %v10975_v37  ;;  %v5591_v48 = vsub.f32 %v12572_v40, %v10975_v37  ;;  %v12573_v31 = vld [vmem:[#allocation63_spill] sm:$0xff]  ;;  %v5593_v34 = vsub.f32 %v12574_v7, %v10975_v37  ;;  %v5594_v41 = vsub.f32 %v12575_v16, %v10975_v37  ;;  %v12576_v8 = vld [vmem:[#allocation69_spill] sm:$0xff]  ;;  %v12577_v55 = vld [vmem:[#allocation88_spill] sm:$0xff] }
 0xe30   : > { %v5607_v25 = vstv %s5606_s20  ;;  %v5592_v36 = vsub.f32 %v12573_v31, %v10975_v37  ;;  %v5595_v1 = vsub.f32 %v12576_v8, %v10975_v37  ;;  %v5596_v22 = vsub.f32 %v12577_v55, %v10975_v37  ;;  %v12578_v30 = vld [vmem:[#allocation114_spill] sm:$0xff]  ;;  %v12579_v40 = vld [vmem:[#allocation131_spill] sm:$0xff]  ;;  %v12582_v16 = vld [vmem:[#allocation72_spill] sm:$0xff] }
 0xe31   : > { %6384 = vrsqrt.f32 %v5607_v25  ;;  %v10921_v25 = vld [vmem:[%s11240_s11 + $0x38] sm:$0xff]  ;;  %v5597_v57 = vsub.f32 %v12578_v30, %v10975_v37  ;;  %v5598_v26 = vsub.f32 %v12579_v40, %v10975_v37  ;;  %v12580_v31 = vld [vmem:[#allocation67_spill] sm:$0xff]  ;;  %v12581_v7 = vld [vmem:[#allocation66_spill] sm:$0xff]  ;;  %v5601_v32 = vsub.f32 %v12582_v16, %v10975_v37 }
 0xe32   : > { %12557 = vst [vmem:[#allocation107_spill] sm:$0xff] %v10921_v25  ;;  %v5599_v5 = vsub.f32 %v12580_v31, %v10975_v37  ;;  %v5600_v6 = vsub.f32 %v12581_v7, %v10975_v37  ;;  %v12583_v8 = vld [vmem:[#allocation71_spill] sm:$0xff]  ;;  %v12584_v55 = vld [vmem:[#allocation2_spill] sm:$0xff]  ;;  %v12586_v40 = vld [vmem:[#allocation68_spill] sm:$0xff] }
 0xe33   : > { %v5602_v54 = vsub.f32 %v12583_v8, %v10975_v37  ;;  %v5603_v29 = vsub.f32 %v12584_v55, %v10975_v37  ;;  %v12585_v30 = vld [vmem:[#allocation94_spill] sm:$0xff] }
 0xe34   : > { %v5604_v44 = vsub.f32 %v12585_v30, %v10975_v37 }
 0xe3e   : > { %v6385_v33 = vpop.eup %6384 }
 0xe3f   : > { %5954 = vpush %v6385_v33  ;;  %v10926_v33 = vld [vmem:[%s11240_s11 + $0x40] sm:$0xff] }
 0xe40   : > { %12558 = vst [vmem:[#allocation64_spill] sm:$0xff] %v10926_v33  ;;  %v5605_v33 = vsub.f32 %v12586_v40, %v10975_v37 }
 0xe70   : > { %s5955_s14 = spop %5954 }
 0xe71   : > { %v5610_v31 = vstv %s5955_s14 }
 0xe72   : > { %v5611_v25 = vmul.f32 %v5610_v31, %v5574_v52  ;;  %v5612_v43 = vmul.f32 %v5610_v31, %v5575_v42  ;;  %v5613_v7 = vmul.f32 %v5610_v31, %v5576_v12  ;;  %v5614_v49 = vmul.f32 %v5610_v31, %v5577_v17 }
 0xe73   : > { %v5615_v45 = vmul.f32 %v5610_v31, %v5578_v47  ;;  %v5616_v16 = vmul.f32 %v5610_v31, %v5579_v28  ;;  %v5617_v18 = vmul.f32 %v5610_v31, %v5580_v3  ;;  %v5618_v9 = vmul.f32 %v5610_v31, %v5581_v61 }
 0xe74   : > { %v5619_v8 = vmul.f32 %v5610_v31, %v5582_v11  ;;  %v5620_v15 = vmul.f32 %v5610_v31, %v5583_v2  ;;  %v5621_v19 = vmul.f32 %v5610_v31, %v5584_v51  ;;  %v5622_v20 = vmul.f32 %v5610_v31, %v5585_v56 }
 0xe75   : > { %v5623_v55 = vmul.f32 %v5610_v31, %v5586_v63  ;;  %v5624_v21 = vmul.f32 %v5610_v31, %v5587_v10  ;;  %v5625_v39 = vmul.f32 %v5610_v31, %v5588_v24  ;;  %v5626_v30 = vmul.f32 %v5610_v31, %v5589_v13 }
 0xe76   : > { %v5627_v23 = vmul.f32 %v5610_v31, %v5590_v58  ;;  %v5628_v59 = vmul.f32 %v5610_v31, %v5591_v48  ;;  %v5629_v37 = vmul.f32 %v5610_v31, %v5592_v36  ;;  %v5630_v40 = vmul.f32 %v5610_v31, %v5593_v34 }
 0xe77   : > { %v5631_v52 = vmul.f32 %v5610_v31, %v5594_v41  ;;  %v5632_v42 = vmul.f32 %v5610_v31, %v5595_v1  ;;  %v5633_v12 = vmul.f32 %v5610_v31, %v5596_v22  ;;  %v5634_v17 = vmul.f32 %v5610_v31, %v5597_v57 }
 0xe78   : > { %v5635_v47 = vmul.f32 %v5610_v31, %v5598_v26  ;;  %v5636_v28 = vmul.f32 %v5610_v31, %v5599_v5  ;;  %v5637_v3 = vmul.f32 %v5610_v31, %v5600_v6  ;;  %v5638_v61 = vmul.f32 %v5610_v31, %v5601_v32 }
 0xe79   : > { %v5639_v11 = vmul.f32 %v5610_v31, %v5602_v54  ;;  %v5640_v2 = vmul.f32 %v5610_v31, %v5603_v29  ;;  %v5641_v51 = vmul.f32 %v5610_v31, %v5604_v44  ;;  %v5642_v56 = vmul.f32 %v5610_v31, %v5605_v33 }
 0xe7a   : > { %v12587_v63 = vunpack.c.l.bf16 %v10772_v14  ;;  %v12588_v58 = vunpack.c.h.bf16 %v10772_v14  ;;  %v12589_v34 = vunpack.c.l.bf16 %v10777_v4  ;;  %v12590_v22 = vunpack.c.h.bf16 %v10777_v4 }
 0xe7b   : > { %v12591_v1 = vunpack.c.l.bf16 %v10782_v0  ;;  %v12592_v13 = vunpack.c.h.bf16 %v10782_v0  ;;  %v12593_v32 = vunpack.c.l.bf16 %v10787_v38  ;;  %v12594_v29 = vunpack.c.h.bf16 %v10787_v38 }
 0xe7c   : > { %v5643_v24 = vmul.f32 %v5611_v25, %v12587_v63  ;;  %v5644_v48 = vmul.f32 %v5612_v43, %v12588_v58  ;;  %v5645_v41 = vmul.f32 %v5613_v7, %v12589_v34  ;;  %v5646_v57 = vmul.f32 %v5614_v49, %v12590_v22 }
 0xe7d   : > { %v5647_v36 = vmul.f32 %v5615_v45, %v12591_v1  ;;  %v5648_v5 = vmul.f32 %v5616_v16, %v12592_v13  ;;  %v5649_v10 = vmul.f32 %v5617_v18, %v12593_v32  ;;  %v5650_v6 = vmul.f32 %v5618_v9, %v12594_v29  ;;  %v12621_v29 = vld [vmem:[#allocation73_spill] sm:$0xff] }
 0xe7e   : > { %v12595_v14 = vunpack.c.l.bf16 %v10792_v50  ;;  %v12596_v44 = vunpack.c.h.bf16 %v10792_v50  ;;  %v12597_v4 = vunpack.c.l.bf16 %v10797_v27  ;;  %v12598_v43 = vunpack.c.h.bf16 %v10797_v27 }
 0xe7f   : > { %v12599_v0 = vunpack.c.l.bf16 %v10802_v53  ;;  %v12600_v18 = vunpack.c.h.bf16 %v10802_v53  ;;  %v12601_v9 = vunpack.c.l.bf16 %v10809_v35  ;;  %v12602_v31 = vunpack.c.h.bf16 %v10809_v35  ;;  %v12609_v35 = vld [vmem:[#allocation134_spill] sm:$0xff] }
 0xe80   : > { %v5651_v26 = vmul.f32 %v5619_v8, %v12595_v14  ;;  %v5652_v54 = vmul.f32 %v5620_v15, %v12596_v44  ;;  %v5653_v49 = vmul.f32 %v5621_v19, %v12597_v4  ;;  %v5654_v45 = vmul.f32 %v5622_v20, %v12598_v43  ;;  %v12624_v44 = vld [vmem:[#allocation82_spill] sm:$0xff] }
 0xe81   : > { %v5655_v25 = vmul.f32 %v5623_v55, %v12599_v0  ;;  %v5656_v38 = vmul.f32 %v5624_v21, %v12600_v18  ;;  %v5657_v33 = vmul.f32 %v5625_v39, %v12601_v9  ;;  %v5658_v50 = vmul.f32 %v5626_v30, %v12602_v31 }
 0xe82   : > { %v12603_v15 = vunpack.c.l.bf16 %v10814_v60  ;;  %v12604_v19 = vunpack.c.h.bf16 %v10814_v60  ;;  %v12605_v20 = vunpack.c.l.bf16 %v10823_v46  ;;  %v12606_v8 = vunpack.c.h.bf16 %v10823_v46  ;;  %v12612_v60 = vld [vmem:[#allocation84_spill] sm:$0xff]  ;;  %v12615_v46 = vld [vmem:[#allocation113_spill] sm:$0xff] }
 0xe83   : > { %v12607_v21 = vunpack.c.l.bf16 %v10828_v62  ;;  %v12608_v39 = vunpack.c.h.bf16 %v10828_v62  ;;  %v12610_v30 = vunpack.c.l.bf16 %v12609_v35  ;;  %v12618_v62 = vld [vmem:[#allocation77_spill] sm:$0xff]  ;;  %v12625_v4 = vunpack.c.l.bf16 %v12624_v44 }
 0xe84   : > { %v5659_v7 = vmul.f32 %v5627_v23, %v12603_v15  ;;  %v5660_v27 = vmul.f32 %v5628_v59, %v12604_v19  ;;  %v5661_v16 = vmul.f32 %v5629_v37, %v12605_v20  ;;  %v5662_v53 = vmul.f32 %v5630_v40, %v12606_v8  ;;  %v12630_v19 = vld [vmem:[#allocation65_spill] sm:$0xff] }
 0xe85   : > { %v5663_v55 = vmul.f32 %v5631_v52, %v12607_v21  ;;  %v5664_v63 = vmul.f32 %v5632_v42, %v12608_v39  ;;  %v5665_v58 = vmul.f32 %v5633_v12, %v12610_v30  ;;  %v12611_v23 = vunpack.c.h.bf16 %v12609_v35  ;;  %v12633_v21 = vld [vmem:[#allocation55_spill] sm:$0xff]  ;;  %v12636_v30 = vld [vmem:[#allocation70_spill] sm:$0xff] }
 0xe86   : > { %v12613_v59 = vunpack.c.l.bf16 %v12612_v60  ;;  %v12614_v37 = vunpack.c.h.bf16 %v12612_v60  ;;  %v12616_v40 = vunpack.c.l.bf16 %v12615_v46  ;;  %v12617_v52 = vunpack.c.h.bf16 %v12615_v46 }
 0xe87   : > { %v5666_v34 = vmul.f32 %v5634_v17, %v12611_v23  ;;  %v12619_v42 = vunpack.c.l.bf16 %v12618_v62  ;;  %v12620_v17 = vunpack.c.h.bf16 %v12618_v62  ;;  %v5675_v43 = vadd.f32 %v5643_v24, %v12625_v4 }
 0xe88   : > { %v5667_v22 = vmul.f32 %v5635_v47, %v12613_v59  ;;  %v5668_v1 = vmul.f32 %v5636_v28, %v12614_v37  ;;  %v5669_v13 = vmul.f32 %v5637_v3, %v12616_v40  ;;  %v5670_v32 = vmul.f32 %v5638_v61, %v12617_v52  ;;  %v12645_v52 = vld [vmem:[#allocation107_spill] sm:$0xff] }
 0xe89   : > { %v5671_v12 = vmul.f32 %v5639_v11, %v12619_v42  ;;  %v5672_v47 = vmul.f32 %v5640_v2, %v12620_v17  ;;  %v12622_v28 = vunpack.c.l.bf16 %v12621_v29  ;;  %v12623_v3 = vunpack.c.h.bf16 %v12621_v29  ;;  %v12627_v11 = vld [vmem:[#allocation129_spill] sm:$0xff]  ;;  %5707 = vst [vmem:[%s11120_s17] sm:$0xff] %v5675_v43  ;;  %v12648_v17 = vld [vmem:[#allocation64_spill] sm:$0xff] }
 0xe8a   : > { %v12626_v0 = vunpack.c.h.bf16 %v12624_v44  ;;  %v12628_v9 = vunpack.c.l.bf16 %v12627_v11  ;;  %v12629_v2 = vunpack.c.h.bf16 %v12627_v11  ;;  %v12631_v20 = vunpack.c.l.bf16 %v12630_v19  ;;  %v12654_v43 = vld [vmem:[#allocation141_spill] sm:$0xff]  ;;  %v12657_v11 = vld [vmem:[#allocation95_spill] sm:$0xff] }
 0xe8b   : > { %v5673_v14 = vmul.f32 %v5641_v51, %v12622_v28  ;;  %v5674_v61 = vmul.f32 %v5642_v56, %v12623_v3  ;;  %v12632_v8 = vunpack.c.h.bf16 %v12630_v19  ;;  %v12634_v39 = vunpack.c.l.bf16 %v12633_v21  ;;  %v12651_v3 = vld [vmem:[#allocation12_spill] sm:$0xff] }
 0xe8c   : > { %v5676_v18 = vadd.f32 %v5644_v48, %v12626_v0  ;;  %v5677_v31 = vadd.f32 %v5645_v41, %v12628_v9  ;;  %v5678_v15 = vadd.f32 %v5646_v57, %v12629_v2  ;;  %v5679_v51 = vadd.f32 %v5647_v36, %v12631_v20  ;;  %v12639_v36 = vld [vmem:[#allocation75_spill] sm:$0xff]  ;;  %v12660_v2 = vld [vmem:[#allocation13_spill] sm:$0xff]  ;;  %v12663_v20 = vld [vmem:[#allocation142_spill] sm:$0xff] }
 0xe8d   : > { %v5680_v56 = vadd.f32 %v5648_v5, %v12632_v8  ;;  %v5681_v24 = vadd.f32 %v5649_v10, %v12634_v39  ;;  %v12635_v35 = vunpack.c.h.bf16 %v12633_v21  ;;  %v12637_v41 = vunpack.c.l.bf16 %v12636_v30  ;;  %v12642_v10 = vld [vmem:[#allocation83_spill] sm:$0xff] }
 0xe8e   : > { %v12638_v57 = vunpack.c.h.bf16 %v12636_v30  ;;  %v12640_v59 = vunpack.c.l.bf16 %v12639_v36  ;;  %v12641_v5 = vunpack.c.h.bf16 %v12639_v36  ;;  %5708 = vst [vmem:[%s11120_s17 + $0x8] sm:$0xff] %v5676_v18  ;;  %5709 = vst [vmem:[%s11120_s17 + $0x10] sm:$0xff] %v5677_v31  ;;  %v12644_v40 = vunpack.c.h.bf16 %v12642_v10 }
 0xe8f   : > { %v5682_v48 = vadd.f32 %v5650_v6, %v12635_v35  ;;  %v5683_v23 = vadd.f32 %v5651_v26, %v12637_v41  ;;  %5710 = vst [vmem:[%s11120_s17 + $0x18] sm:$0xff] %v5678_v15  ;;  %v12643_v6 = vunpack.c.l.bf16 %v12642_v10  ;;  %v12646_v62 = vunpack.c.l.bf16 %v12645_v52  ;;  %5711 = vst [vmem:[%s11120_s17 + $0x20] sm:$0xff] %v5679_v51 }
 0xe90   : > { %v5684_v60 = vadd.f32 %v5652_v54, %v12638_v57  ;;  %v5685_v37 = vadd.f32 %v5653_v49, %v12640_v59  ;;  %v5686_v46 = vadd.f32 %v5654_v45, %v12641_v5  ;;  %v5688_v54 = vadd.f32 %v5656_v38, %v12644_v40  ;;  %5712 = vst [vmem:[%s11120_s17 + $0x28] sm:$0xff] %v5680_v56 }
 0xe91   : > { %v5687_v26 = vadd.f32 %v5655_v25, %v12643_v6  ;;  %v5689_v49 = vadd.f32 %v5657_v33, %v12646_v62  ;;  %v12647_v42 = vunpack.c.h.bf16 %v12645_v52  ;;  %5713 = vst [vmem:[%s11120_s17 + $0x30] sm:$0xff] %v5681_v24  ;;  %5714 = vst [vmem:[%s11120_s17 + $0x38] sm:$0xff] %v5682_v48  ;;  %v12649_v29 = vunpack.c.l.bf16 %v12648_v17 }
 0xe92   : > { %v12650_v28 = vunpack.c.h.bf16 %v12648_v17  ;;  %v12652_v44 = vunpack.c.l.bf16 %v12651_v3  ;;  %v12653_v4 = vunpack.c.h.bf16 %v12651_v3  ;;  %5715 = vst [vmem:[%s11120_s17 + $0x40] sm:$0xff] %v5683_v23  ;;  %5716 = vst [vmem:[%s11120_s17 + $0x48] sm:$0xff] %v5684_v60  ;;  %v12655_v0 = vunpack.c.l.bf16 %v12654_v43 }
 0xe93   : > { %v5690_v45 = vadd.f32 %v5658_v50, %v12647_v42  ;;  %v5691_v25 = vadd.f32 %v5659_v7, %v12649_v29  ;;  %5717 = vst [vmem:[%s11120_s17 + $0x50] sm:$0xff] %v5685_v37  ;;  %5718 = vst [vmem:[%s11120_s17 + $0x58] sm:$0xff] %v5686_v46  ;;  %v12656_v18 = vunpack.c.h.bf16 %v12654_v43  ;;  %v12658_v9 = vunpack.c.l.bf16 %v12657_v11 }
 0xe94   : > { %v5692_v38 = vadd.f32 %v5660_v27, %v12650_v28  ;;  %v5693_v33 = vadd.f32 %v5661_v16, %v12652_v44  ;;  %v5694_v50 = vadd.f32 %v5662_v53, %v12653_v4  ;;  %v5695_v7 = vadd.f32 %v5663_v55, %v12655_v0  ;;  %5719 = vst [vmem:[%s11120_s17 + $0x60] sm:$0xff] %v5687_v26 }
 0xe95   : > { %v5696_v27 = vadd.f32 %v5664_v63, %v12656_v18  ;;  %v5697_v16 = vadd.f32 %v5665_v58, %v12658_v9  ;;  %v12659_v31 = vunpack.c.h.bf16 %v12657_v11  ;;  %5720 = vst [vmem:[%s11120_s17 + $0x68] sm:$0xff] %v5688_v54  ;;  %5721 = vst [vmem:[%s11120_s17 + $0x70] sm:$0xff] %v5689_v49  ;;  %v12661_v15 = vunpack.c.l.bf16 %v12660_v2 }
 0xe96   : > { %5722 = vst [vmem:[%s11120_s17 + $0x78] sm:$0xff] %v5690_v45  ;;  %v12662_v19 = vunpack.c.h.bf16 %v12660_v2  ;;  %v12664_v58 = vunpack.c.l.bf16 %v12663_v20  ;;  %5723 = vst [vmem:[%s11120_s17 + $0x80] sm:$0xff] %v5691_v25 }
 0xe97   : > { %v5698_v53 = vadd.f32 %v5666_v34, %v12659_v31  ;;  %v5699_v55 = vadd.f32 %v5667_v22, %v12661_v15  ;;  %v12665_v34 = vunpack.c.h.bf16 %v12663_v20  ;;  %5724 = vst [vmem:[%s11120_s17 + $0x88] sm:$0xff] %v5692_v38  ;;  %5725 = vst [vmem:[%s11120_s17 + $0x90] sm:$0xff] %v5693_v33  ;;  %v12666_v22 = vld [vmem:[#allocation10_spill] sm:$0xff] }
 0xe98   : > { %v5700_v63 = vadd.f32 %v5668_v1, %v12662_v19  ;;  %v5701_v51 = vadd.f32 %v5669_v13, %v12664_v58  ;;  %5726 = vst [vmem:[%s11120_s17 + $0x98] sm:$0xff] %v5694_v50  ;;  %v12667_v56 = vunpack.c.l.bf16 %v12666_v22  ;;  %v12668_v21 = vunpack.c.h.bf16 %v12666_v22  ;;  %v12669_v13 = vld [vmem:[#allocation17_spill] sm:$0xff]  ;;  %5727 = vst [vmem:[%s11120_s17 + $0xa0] sm:$0xff] %v5695_v7 }
 0xe99   : > { %v5702_v8 = vadd.f32 %v5670_v32, %v12665_v34  ;;  %v12670_v24 = vunpack.c.l.bf16 %v12669_v13  ;;  %v12671_v32 = vunpack.c.h.bf16 %v12669_v13  ;;  %5728 = vst [vmem:[%s11120_s17 + $0xa8] sm:$0xff] %v5696_v27  ;;  %5729 = vst [vmem:[%s11120_s17 + $0xb0] sm:$0xff] %v5697_v16 }
 0xe9a   : > { %v5703_v1 = vadd.f32 %v5671_v12, %v12667_v56  ;;  %v5704_v39 = vadd.f32 %v5672_v47, %v12668_v21  ;;  %5730 = vst [vmem:[%s11120_s17 + $0xb8] sm:$0xff] %v5698_v53  ;;  %5731 = vst [vmem:[%s11120_s17 + $0xc0] sm:$0xff] %v5699_v55 }
 0xe9b   : > { %v5705_v35 = vadd.f32 %v5673_v14, %v12670_v24  ;;  %v5706_v48 = vadd.f32 %v5674_v61, %v12671_v32  ;;  %5732 = vst [vmem:[%s11120_s17 + $0xc8] sm:$0xff] %v5700_v63  ;;  %5733 = vst [vmem:[%s11120_s17 + $0xd0] sm:$0xff] %v5701_v51 }
 0xe9c   : > { %5734 = vst [vmem:[%s11120_s17 + $0xd8] sm:$0xff] %v5702_v8  ;;  %5735 = vst [vmem:[%s11120_s17 + $0xe0] sm:$0xff] %v5703_v1 }
 0xe9d   : > { %5736 = vst [vmem:[%s11120_s17 + $0xe8] sm:$0xff] %v5704_v39  ;;  %5737 = vst [vmem:[%s11120_s17 + $0xf0] sm:$0xff] %v5705_v35 }
 0xe9e   : > { %5738 = vst [vmem:[%s11120_s17 + $0xf8] sm:$0xff] %v5706_v48 }
 0xe9f PF: > { %s24_s25 = sadd.s32 1, %s6466_s25  }
 0xea0   : > { %p21_p4 = scmp.ge.s32.totalorder %s24_s25, 4  }
 0xea2   :  { %23 = sbr.rel (!%p21_p4) target bundleno = 1 (0x1), region = 113 }

</bundles_post_ra>
